<compile_context>
chip_gen: v7x
topology: tpu7x:2x2x1
jax: 0.10.0
libtpu: 0.0.40
codegen_flags: <defaults>
</compile_context>

<pallas_src>
import functools

import numpy as np
import jax
import jax.numpy as jnp
from jax import lax
from jax.experimental import pallas as pl
from jax.experimental.pallas import tpu as pltpu

_EPS = 1e-5


# ---------------------------------------------------------------------------
# In-kernel helpers (2D values only, all shapes static)
# ---------------------------------------------------------------------------
def _shift_cols(x, off):
    """y[:, s] = x[:, s + off], zero-filled where s + off falls outside [0, S)."""
    if off == 0:
        return x
    rows, cols = x.shape
    z = jnp.zeros((rows, abs(off)), x.dtype)
    if off > 0:
        return jnp.concatenate([x[:, off:], z], axis=1)
    return jnp.concatenate([z, x[:, :cols + off]], axis=1)


def _conv3x3_taps(b_full, masks, row_block, width, batch):
    """Sum the 9 tap contributions of a 3x3 (pad=1) convolution.

    b_full: (9*row_block, S) weight-contracted values, tap-major row blocks,
            columns ordered (y, x, batch) with batch minor.
    masks:  (9, S) precomputed 0/1 edge-validity masks.
    """
    acc = None
    t = 0
    for dy in range(3):
        for dx in range(3):
            off = ((dy - 1) * width + (dx - 1)) * batch
            blk = b_full[t * row_block:(t + 1) * row_block, :]
            term = _shift_cols(blk, off) * masks[t:t + 1, :]
            acc = term if acc is None else acc + term
            t += 1
    return acc


def _bn_relu_rows(x, gamma, beta):
    """Per-row (= per-channel) training-mode BatchNorm (two-pass, biased) + ReLU."""
    mean = jnp.mean(x, axis=1, keepdims=True)
    ctr = x - mean
    var = jnp.mean(ctr * ctr, axis=1, keepdims=True)
    return jnp.maximum(ctr * (gamma * lax.rsqrt(var + _EPS)) + beta, 0.0)


# ---------------------------------------------------------------------------
# The fused generator kernel (single grid step, everything VMEM-resident)
# ---------------------------------------------------------------------------
def _generator_kernel(zt_ref, wfc_ref, bfc_ref, g0_ref, be0_ref,
                      w1_ref, m1_ref, s1_ref, g1_ref, be1_ref,
                      w2_ref, m2_ref, s2_ref, g2_ref, be2_ref,
                      w3_ref, m3_ref, s3_ref, g3_ref, be3_ref,
                      w4_ref, m4_ref, b4_ref, o_ref, *, s0, n, c, cimg):
    c8 = 8 * c
    zt = zt_ref[...]                                             # (z_size, n)

    # fc -> (C8, s0*s0*n), columns ordered (y, x, batch); + per-unit bias,
    # then BatchNorm0 + ReLU (per-channel batch stats over all columns).
    wfc = wfc_ref[...]
    parts = [jnp.dot(wfc[p * c8:(p + 1) * c8, :], zt,
                     preferred_element_type=jnp.float32)
             for p in range(s0 * s0)]
    a = jnp.concatenate(parts, axis=1) + bfc_ref[...]
    a = _bn_relu_rows(a, g0_ref[...], be0_ref[...])

    # Three ConvTranspose(4x4, s=2, p=1) + BN + ReLU layers via the sub-pixel
    # lowering: one weight matmul, 9 masked column shifts, BN/ReLU, then one
    # 0/1-matrix matmul that performs the 2x2 pixel shuffle.
    # (ConvTranspose bias dropped: it cancels exactly under batch-stat BN.)
    side = s0
    layers = ((w1_ref, m1_ref, s1_ref, g1_ref, be1_ref, 4 * c),
              (w2_ref, m2_ref, s2_ref, g2_ref, be2_ref, 2 * c),
              (w3_ref, m3_ref, s3_ref, g3_ref, be3_ref, c))
    for w_ref, m_ref, sc_ref, g_ref, be_ref, cout in layers:
        b_full = jnp.dot(w_ref[...], a, preferred_element_type=jnp.float32)
        pre = _conv3x3_taps(b_full, m_ref[...], 4 * cout, side, n)  # (4*cout, S)
        wide = jnp.concatenate(
            [pre[p * cout:(p + 1) * cout, :] for p in range(4)], axis=1)
        y = _bn_relu_rows(wide, g_ref[...], be_ref[...])            # (cout, 4S)
        a = jnp.dot(y, sc_ref[...], preferred_element_type=jnp.float32)
        side = 2 * side

    # deconv4: ConvTranspose(3x3, s=1, p=1) + bias + exact sigmoid.
    b4_full = jnp.dot(w4_ref[...], a, preferred_element_type=jnp.float32)
    out = _conv3x3_taps(b4_full, m4_ref[...], cimg, side, n) + b4_ref[...]
    o_ref[...] = 1.0 / (1.0 + jnp.exp(-out))


# ---------------------------------------------------------------------------
# Host-side constant builders (run once per (model, batch-size))
# ---------------------------------------------------------------------------
def _build_tap_masks(h, w, n):
    """(9, h*w*n) 0/1 masks: tap (dy,dx) is valid at (y,x) iff the shifted
    position (y+dy-1, x+dx-1) lies inside the h x w grid."""
    m = np.zeros((9, h * w * n), np.float32)
    t = 0
    for dy in range(3):
        for dx in range(3):
            for y in range(h):
                yy = y + dy - 1
                for x in range(w):
                    xx = x + dx - 1
                    if 0 <= yy < h and 0 <= xx < w:
                        base = (y * w + x) * n
                        m[t, base:base + n] = 1.0
            t += 1
    return m


def _build_pixel_shuffle(h, w, n):
    """(4S, 4S) 0/1 permutation: rows ordered (phase=(py,px), y, x, batch) over
    the h x w input grid, columns ordered (yo, xo, batch) over the 2h x 2w
    output grid, with yo = 2y+py, xo = 2x+px."""
    s = h * w * n
    sc = np.zeros((4 * s, 4 * s), np.float32)
    for py in range(2):
        for px in range(2):
            p = 2 * py + px
            for y in range(h):
                for x in range(w):
                    for b in range(n):
                        r = p * s + (y * w + x) * n + b
                        col = ((2 * y + py) * (2 * w) + (2 * x + px)) * n + b
                        sc[r, col] = 1.0
    return sc


def _prep_deconv_s2_weight(wt):
    """ConvTranspose2d(k=4, s=2, p=1) weight (Cin,Cout,4,4) -> (9*4*Cout, Cin),
    rows ordered (dy, dx, py, px, cout), for the sub-pixel lowering:
      out[co, 2y+py, 2x+px] = sum in[ci, y+dy-1, x+dx-1] * w[ci,co,py+3-2dy,px+3-2dx]
    (zero where the kernel index falls outside [0, 4))."""
    wt = np.asarray(wt, np.float32)
    cin, cout = wt.shape[0], wt.shape[1]
    wg = np.zeros((3, 3, 2, 2, cout, cin), np.float32)
    for dy in range(3):
        for dx in range(3):
            for py in range(2):
                for px in range(2):
                    ky, kx = py + 3 - 2 * dy, px + 3 - 2 * dx
                    if 0 <= ky < 4 and 0 <= kx < 4:
                        wg[dy, dx, py, px] = wt[:, :, ky, kx].T
    return wg.reshape(9 * 4 * cout, cin)


def _prep_deconv_s1_weight(wt):
    """ConvTranspose2d(k=3, s=1, p=1) weight (Cin,Cout,3,3) -> (9*Cout, Cin),
    rows ordered (dy, dx, cout); equivalent stride-1 conv with flipped kernel."""
    wt = np.asarray(wt, np.float32)
    wf = np.flip(wt, (2, 3))                         # wf[ci,co,dy,dx] = wt[ci,co,2-dy,2-dx]
    return wf.transpose(2, 3, 1, 0).reshape(-1, wt.shape[0])


# ---------------------------------------------------------------------------
# JAX wrapper: one pallas_call + two tiny XLA layout ops
# ---------------------------------------------------------------------------
def _generator_forward(params, aux, z, *, s0, n, c, cimg):
    hw = 8 * s0
    s_out = hw * hw * n
    args = (
        z.astype(jnp.float32).T,                                  # (z_size, n)
        params["wfc"], aux["bfc"], params["g0"], params["be0"],
        params["w1"], aux["m1"], aux["sc1"], params["g1"], params["be1"],
        params["w2"], aux["m2"], aux["sc2"], params["g2"], params["be2"],
        params["w3"], aux["m3"], aux["sc3"], params["g3"], params["be3"],
        params["w4"], aux["m4"], params["b4"],
    )
    kernel = functools.partial(_generator_kernel, s0=s0, n=n, c=c, cimg=cimg)
    out = pl.pallas_call(
        kernel,
        out_shape=jax.ShapeDtypeStruct((cimg, s_out), jnp.float32),
        grid=(1,),
        in_specs=[pl.BlockSpec(a.shape, lambda i: (0, 0)) for a in args],
        out_specs=pl.BlockSpec((cimg, s_out), lambda i: (0, 0)),
        compiler_params=pltpu.CompilerParams(
            dimension_semantics=("arbitrary",),
            vmem_limit_bytes=32 * 1024 * 1024),
    )(*args)
    # (Cimg, H*W*N) -> (N, Cimg, H, W): the only post-kernel XLA ops (tiny).
    return out.reshape(cimg, hw, hw, n).transpose(3, 0, 1, 2)


class GeneratorPallas:
    def __init__(self, image_size, image_channel_size, z_size=32, channel_size=8,
                 key=jax.random.PRNGKey(42)):
        self.z_size = z_size
        self.image_size = image_size
        self.image_channel_size = image_channel_size
        self.channel_size = channel_size
        c = channel_size
        s0 = image_size // 8
        self.s0 = s0
        c8 = c * 8
        fc_out = s0 * s0 * c8

        ks = jax.random.split(key, 10)
        init = lambda k, shape, scale: np.asarray(
            jax.random.normal(k, shape, jnp.float32)) * np.float32(scale)

        # Raw parameters in PyTorch layout.
        fc_w = init(ks[0], (fc_out, z_size), 0.05)                # Linear: (out, in)
        fc_b = init(ks[1], (fc_out,), 0.05)
        w1 = init(ks[2], (c8, c * 4, 4, 4), 0.05)
        w2 = init(ks[4], (c * 4, c * 2, 4, 4), 0.05)
        w3 = init(ks[6], (c * 2, c, 4, 4), 0.05)
        w4 = init(ks[8], (c, image_channel_size, 3, 3), 0.05)
        b4 = init(ks[9], (image_channel_size,), 0.05)
        # deconv1..3 biases are not materialised: a per-channel constant added
        # before batch-stat BatchNorm cancels exactly (no effect on forward).

        # GEMM-ready layouts, computed once on the host.  fc weight rows are
        # regrouped (y, x, c) so the kernel slices one (C8, z) block per
        # spatial position; fc bias kept per (c, spatial) unit.
        wfc = fc_w.reshape(c8, s0, s0, z_size).transpose(1, 2, 0, 3)
        self._fc_b2d = fc_b.reshape(c8, s0 * s0)                  # numpy, [c, y*s0+x]

        self.params = {
            "wfc": jnp.asarray(wfc.reshape(s0 * s0 * c8, z_size)),
            "w1": jnp.asarray(_prep_deconv_s2_weight(w1)),
            "w2": jnp.asarray(_prep_deconv_s2_weight(w2)),
            "w3": jnp.asarray(_prep_deconv_s2_weight(w3)),
            "w4": jnp.asarray(_prep_deconv_s1_weight(w4)),
            "b4": jnp.asarray(b4.reshape(-1, 1)),
            # BatchNorm affine params (PyTorch default init: gamma=1, beta=0).
            "g0": jnp.ones((c8, 1), jnp.float32), "be0": jnp.zeros((c8, 1), jnp.float32),
            "g1": jnp.ones((c * 4, 1), jnp.float32), "be1": jnp.zeros((c * 4, 1), jnp.float32),
            "g2": jnp.ones((c * 2, 1), jnp.float32), "be2": jnp.zeros((c * 2, 1), jnp.float32),
            "g3": jnp.ones((c, 1), jnp.float32), "be3": jnp.zeros((c, 1), jnp.float32),
        }
        self._cache = {}

    def _get_fwd(self, n):
        if n in self._cache:
            return self._cache[n]
        s0, c = self.s0, self.channel_size
        cimg = self.image_channel_size
        c8 = 8 * c
        sides = (s0, 2 * s0, 4 * s0, 8 * s0)       # per-layer input grid side
        aux = {
            "bfc": jnp.asarray(np.repeat(self._fc_b2d[:, :, None], n, axis=2)
                               .reshape(c8, s0 * s0 * n)),
            "m1": jnp.asarray(_build_tap_masks(sides[0], sides[0], n)),
            "sc1": jnp.asarray(_build_pixel_shuffle(sides[0], sides[0], n)),
            "m2": jnp.asarray(_build_tap_masks(sides[1], sides[1], n)),
            "sc2": jnp.asarray(_build_pixel_shuffle(sides[1], sides[1], n)),
            "m3": jnp.asarray(_build_tap_masks(sides[2], sides[2], n)),
            "sc3": jnp.asarray(_build_pixel_shuffle(sides[2], sides[2], n)),
            "m4": jnp.asarray(_build_tap_masks(sides[3], sides[3], n)),
        }
        fwd = jax.jit(functools.partial(
            _generator_forward, s0=s0, n=n, c=c, cimg=cimg))
        self._cache[n] = (fwd, aux)
        return fwd, aux

    def __call__(self, z):
        fwd, aux = self._get_fwd(int(z.shape[0]))
        return fwd(self.params, aux, z)


if __name__ == "__main__":
    image_size = 16
    image_channel_size = 3
    z_size = 32
    channel_size = 8
    batch = 2

    gen = GeneratorPallas(image_size, image_channel_size,
                          z_size=z_size, channel_size=channel_size)
    z = jax.random.normal(jax.random.PRNGKey(0), (batch, z_size), jnp.float32)

    out = jax.block_until_ready(gen(z))
    assert out.shape == (batch, image_channel_size, image_size, image_size), out.shape
    assert bool(jnp.all(jnp.isfinite(out)))
    assert bool(jnp.all((out >= 0.0) & (out <= 1.0)))
    print("KERNEL_OK")
</pallas_src>

<mosaic_0001>
module attributes {stable_mosaic.version = 11 : i64} {
  func.func @_generator_kernel(%arg0: i32, %arg1: memref<32x2xf32, #tpu.memory_space<vmem>>, %arg2: memref<256x32xf32, #tpu.memory_space<vmem>>, %arg3: memref<64x8xf32, #tpu.memory_space<vmem>>, %arg4: memref<64x1xf32, #tpu.memory_space<vmem>>, %arg5: memref<64x1xf32, #tpu.memory_space<vmem>>, %arg6: memref<1152x64xf32, #tpu.memory_space<vmem>>, %arg7: memref<9x8xf32, #tpu.memory_space<vmem>>, %arg8: memref<32x32xf32, #tpu.memory_space<vmem>>, %arg9: memref<32x1xf32, #tpu.memory_space<vmem>>, %arg10: memref<32x1xf32, #tpu.memory_space<vmem>>, %arg11: memref<576x32xf32, #tpu.memory_space<vmem>>, %arg12: memref<9x32xf32, #tpu.memory_space<vmem>>, %arg13: memref<128x128xf32, #tpu.memory_space<vmem>>, %arg14: memref<16x1xf32, #tpu.memory_space<vmem>>, %arg15: memref<16x1xf32, #tpu.memory_space<vmem>>, %arg16: memref<288x16xf32, #tpu.memory_space<vmem>>, %arg17: memref<9x128xf32, #tpu.memory_space<vmem>>, %arg18: memref<512x512xf32, #tpu.memory_space<vmem>>, %arg19: memref<8x1xf32, #tpu.memory_space<vmem>>, %arg20: memref<8x1xf32, #tpu.memory_space<vmem>>, %arg21: memref<27x8xf32, #tpu.memory_space<vmem>>, %arg22: memref<9x512xf32, #tpu.memory_space<vmem>>, %arg23: memref<3x1xf32, #tpu.memory_space<vmem>>, %arg24: memref<3x512xf32, #tpu.memory_space<vmem>>) attributes {dimension_semantics = [#tpu.dimension_semantics<arbitrary>], iteration_bounds = array<i64: 1>, scalar_prefetch = 0 : i64, scratch_operands = 0 : i64, tpu.core_type = #tpu.core_type<tc>, window_params = [{pipeline_mode = #tpu.pipeline_mode<synchronous>, transform_indices = @transform_0, window_bounds = array<i64: 32, 2>}, {pipeline_mode = #tpu.pipeline_mode<synchronous>, transform_indices = @transform_1, window_bounds = array<i64: 256, 32>}, {pipeline_mode = #tpu.pipeline_mode<synchronous>, transform_indices = @transform_2, window_bounds = array<i64: 64, 8>}, {pipeline_mode = #tpu.pipeline_mode<synchronous>, transform_indices = @transform_3, window_bounds = array<i64: 64, 1>}, {pipeline_mode = #tpu.pipeline_mode<synchronous>, transform_indices = @transform_4, window_bounds = array<i64: 64, 1>}, {pipeline_mode = #tpu.pipeline_mode<synchronous>, transform_indices = @transform_5, window_bounds = array<i64: 1152, 64>}, {pipeline_mode = #tpu.pipeline_mode<synchronous>, transform_indices = @transform_6, window_bounds = array<i64: 9, 8>}, {pipeline_mode = #tpu.pipeline_mode<synchronous>, transform_indices = @transform_7, window_bounds = array<i64: 32, 32>}, {pipeline_mode = #tpu.pipeline_mode<synchronous>, transform_indices = @transform_8, window_bounds = array<i64: 32, 1>}, {pipeline_mode = #tpu.pipeline_mode<synchronous>, transform_indices = @transform_9, window_bounds = array<i64: 32, 1>}, {pipeline_mode = #tpu.pipeline_mode<synchronous>, transform_indices = @transform_10, window_bounds = array<i64: 576, 32>}, {pipeline_mode = #tpu.pipeline_mode<synchronous>, transform_indices = @transform_11, window_bounds = array<i64: 9, 32>}, {pipeline_mode = #tpu.pipeline_mode<synchronous>, transform_indices = @transform_12, window_bounds = array<i64: 128, 128>}, {pipeline_mode = #tpu.pipeline_mode<synchronous>, transform_indices = @transform_13, window_bounds = array<i64: 16, 1>}, {pipeline_mode = #tpu.pipeline_mode<synchronous>, transform_indices = @transform_14, window_bounds = array<i64: 16, 1>}, {pipeline_mode = #tpu.pipeline_mode<synchronous>, transform_indices = @transform_15, window_bounds = array<i64: 288, 16>}, {pipeline_mode = #tpu.pipeline_mode<synchronous>, transform_indices = @transform_16, window_bounds = array<i64: 9, 128>}, {pipeline_mode = #tpu.pipeline_mode<synchronous>, transform_indices = @transform_17, window_bounds = array<i64: 512, 512>}, {pipeline_mode = #tpu.pipeline_mode<synchronous>, transform_indices = @transform_18, window_bounds = array<i64: 8, 1>}, {pipeline_mode = #tpu.pipeline_mode<synchronous>, transform_indices = @transform_19, window_bounds = array<i64: 8, 1>}, {pipeline_mode = #tpu.pipeline_mode<synchronous>, transform_indices = @transform_20, window_bounds = array<i64: 27, 8>}, {pipeline_mode = #tpu.pipeline_mode<synchronous>, transform_indices = @transform_21, window_bounds = array<i64: 9, 512>}, {pipeline_mode = #tpu.pipeline_mode<synchronous>, transform_indices = @transform_22, window_bounds = array<i64: 3, 1>}, {pipeline_mode = #tpu.pipeline_mode<synchronous>, transform_indices = @transform_23, window_bounds = array<i64: 3, 512>}]} {
    %c0 = arith.constant 0 : index
    %c0_0 = arith.constant 0 : index
    %0 = vector.load %arg1[%c0, %c0_0] : memref<32x2xf32, #tpu.memory_space<vmem>>, vector<32x2xf32>
    %c0_1 = arith.constant 0 : index
    %c0_2 = arith.constant 0 : index
    %1 = vector.load %arg2[%c0_1, %c0_2] : memref<256x32xf32, #tpu.memory_space<vmem>>, vector<256x32xf32>
    %2 = vector.extract_strided_slice %1 {offsets = [0, 0], sizes = [64, 32], strides = [1, 1]} : vector<256x32xf32> to vector<64x32xf32>
    %cst = arith.constant dense<0.000000e+00> : vector<64x2xf32>
    %3 = tpu.matmul %2, %0, %cst {dimension_numbers = #tpu.dot_dimension_numbers<[1], [0], [0], [1], [0, 0, 1, 1], [], []>} : vector<64x32xf32>, vector<32x2xf32>, vector<64x2xf32> -> vector<64x2xf32>
    %4 = vector.extract_strided_slice %1 {offsets = [64, 0], sizes = [64, 32], strides = [1, 1]} : vector<256x32xf32> to vector<64x32xf32>
    %cst_3 = arith.constant dense<0.000000e+00> : vector<64x2xf32>
    %5 = tpu.matmul %4, %0, %cst_3 {dimension_numbers = #tpu.dot_dimension_numbers<[1], [0], [0], [1], [0, 0, 1, 1], [], []>} : vector<64x32xf32>, vector<32x2xf32>, vector<64x2xf32> -> vector<64x2xf32>
    %6 = vector.extract_strided_slice %1 {offsets = [128, 0], sizes = [64, 32], strides = [1, 1]} : vector<256x32xf32> to vector<64x32xf32>
    %cst_4 = arith.constant dense<0.000000e+00> : vector<64x2xf32>
    %7 = tpu.matmul %6, %0, %cst_4 {dimension_numbers = #tpu.dot_dimension_numbers<[1], [0], [0], [1], [0, 0, 1, 1], [], []>} : vector<64x32xf32>, vector<32x2xf32>, vector<64x2xf32> -> vector<64x2xf32>
    %8 = vector.extract_strided_slice %1 {offsets = [192, 0], sizes = [64, 32], strides = [1, 1]} : vector<256x32xf32> to vector<64x32xf32>
    %cst_5 = arith.constant dense<0.000000e+00> : vector<64x2xf32>
    %9 = tpu.matmul %8, %0, %cst_5 {dimension_numbers = #tpu.dot_dimension_numbers<[1], [0], [0], [1], [0, 0, 1, 1], [], []>} : vector<64x32xf32>, vector<32x2xf32>, vector<64x2xf32> -> vector<64x2xf32>
    %10 = tpu.concatenate %3, %5, %7, %9 in 1 : vector<64x2xf32>, vector<64x2xf32>, vector<64x2xf32>, vector<64x2xf32> -> vector<64x8xf32>
    %c0_6 = arith.constant 0 : index
    %c0_7 = arith.constant 0 : index
    %11 = vector.load %arg3[%c0_6, %c0_7] : memref<64x8xf32, #tpu.memory_space<vmem>>, vector<64x8xf32>
    %12 = arith.addf %10, %11 : vector<64x8xf32>
    %c0_8 = arith.constant 0 : index
    %c0_9 = arith.constant 0 : index
    %13 = vector.load %arg4[%c0_8, %c0_9] : memref<64x1xf32, #tpu.memory_space<vmem>>, vector<64x1xf32>
    %c0_10 = arith.constant 0 : index
    %c0_11 = arith.constant 0 : index
    %14 = vector.load %arg5[%c0_10, %c0_11] : memref<64x1xf32, #tpu.memory_space<vmem>>, vector<64x1xf32>
    %cst_12 = arith.constant dense<0.000000e+00> : vector<64xf32>
    %15 = vector.multi_reduction <add>, %12, %cst_12 [1] : vector<64x8xf32> to vector<64xf32>
    %16 = vector.shape_cast %15 : vector<64xf32> to vector<64x1xf32>
    %cst_13 = arith.constant 8.000000e+00 : f32
    %17 = vector.broadcast %cst_13 : f32 to vector<64x1xf32>
    %18 = arith.divf %16, %17 : vector<64x1xf32>
    %19 = vector.broadcast %18 : vector<64x1xf32> to vector<64x8xf32>
    %20 = arith.subf %12, %19 : vector<64x8xf32>
    %21 = arith.mulf %20, %20 : vector<64x8xf32>
    %cst_14 = arith.constant dense<0.000000e+00> : vector<64xf32>
    %22 = vector.multi_reduction <add>, %21, %cst_14 [1] : vector<64x8xf32> to vector<64xf32>
    %23 = vector.shape_cast %22 : vector<64xf32> to vector<64x1xf32>
    %cst_15 = arith.constant 8.000000e+00 : f32
    %24 = vector.broadcast %cst_15 : f32 to vector<64x1xf32>
    %25 = arith.divf %23, %24 : vector<64x1xf32>
    %cst_16 = arith.constant 9.99999974E-6 : f32
    %26 = vector.broadcast %cst_16 : f32 to vector<64x1xf32>
    %27 = arith.addf %25, %26 : vector<64x1xf32>
    %28 = math.rsqrt %27 : vector<64x1xf32>
    %29 = arith.mulf %13, %28 : vector<64x1xf32>
    %30 = vector.broadcast %29 : vector<64x1xf32> to vector<64x8xf32>
    %31 = arith.mulf %20, %30 : vector<64x8xf32>
    %32 = vector.broadcast %14 : vector<64x1xf32> to vector<64x8xf32>
    %33 = arith.addf %31, %32 : vector<64x8xf32>
    %cst_17 = arith.constant 0.000000e+00 : f32
    %34 = vector.broadcast %cst_17 : f32 to vector<64x8xf32>
    %35 = arith.maximumf %33, %34 : vector<64x8xf32>
    %c0_18 = arith.constant 0 : index
    %c0_19 = arith.constant 0 : index
    %36 = vector.load %arg6[%c0_18, %c0_19] : memref<1152x64xf32, #tpu.memory_space<vmem>>, vector<1152x64xf32>
    %cst_20 = arith.constant dense<0.000000e+00> : vector<1152x8xf32>
    %37 = tpu.matmul %36, %35, %cst_20 {dimension_numbers = #tpu.dot_dimension_numbers<[1], [0], [0], [1], [0, 0, 1, 1], [], []>} : vector<1152x64xf32>, vector<64x8xf32>, vector<1152x8xf32> -> vector<1152x8xf32>
    %c0_21 = arith.constant 0 : index
    %c0_22 = arith.constant 0 : index
    %38 = vector.load %arg7[%c0_21, %c0_22] : memref<9x8xf32, #tpu.memory_space<vmem>>, vector<9x8xf32>
    %39 = vector.extract_strided_slice %37 {offsets = [0, 0], sizes = [128, 8], strides = [1, 1]} : vector<1152x8xf32> to vector<128x8xf32>
    %cst_23 = arith.constant 0.000000e+00 : f32
    %40 = vector.broadcast %cst_23 : f32 to vector<128x6xf32>
    %41 = vector.extract_strided_slice %39 {offsets = [0, 0], sizes = [128, 2], strides = [1, 1]} : vector<128x8xf32> to vector<128x2xf32>
    %42 = tpu.concatenate %40, %41 in 1 : vector<128x6xf32>, vector<128x2xf32> -> vector<128x8xf32>
    %43 = vector.extract_strided_slice %38 {offsets = [0, 0], sizes = [1, 8], strides = [1, 1]} : vector<9x8xf32> to vector<1x8xf32>
    %44 = vector.broadcast %43 : vector<1x8xf32> to vector<128x8xf32>
    %45 = arith.mulf %42, %44 : vector<128x8xf32>
    %46 = vector.extract_strided_slice %37 {offsets = [128, 0], sizes = [128, 8], strides = [1, 1]} : vector<1152x8xf32> to vector<128x8xf32>
    %cst_24 = arith.constant 0.000000e+00 : f32
    %47 = vector.broadcast %cst_24 : f32 to vector<128x4xf32>
    %48 = vector.extract_strided_slice %46 {offsets = [0, 0], sizes = [128, 4], strides = [1, 1]} : vector<128x8xf32> to vector<128x4xf32>
    %49 = tpu.concatenate %47, %48 in 1 : vector<128x4xf32>, vector<128x4xf32> -> vector<128x8xf32>
    %50 = vector.extract_strided_slice %38 {offsets = [1, 0], sizes = [1, 8], strides = [1, 1]} : vector<9x8xf32> to vector<1x8xf32>
    %51 = vector.broadcast %50 : vector<1x8xf32> to vector<128x8xf32>
    %52 = arith.mulf %49, %51 : vector<128x8xf32>
    %53 = arith.addf %45, %52 : vector<128x8xf32>
    %54 = vector.extract_strided_slice %37 {offsets = [256, 0], sizes = [128, 8], strides = [1, 1]} : vector<1152x8xf32> to vector<128x8xf32>
    %cst_25 = arith.constant 0.000000e+00 : f32
    %55 = vector.broadcast %cst_25 : f32 to vector<128x2xf32>
    %56 = vector.extract_strided_slice %54 {offsets = [0, 0], sizes = [128, 6], strides = [1, 1]} : vector<128x8xf32> to vector<128x6xf32>
    %57 = tpu.concatenate %55, %56 in 1 : vector<128x2xf32>, vector<128x6xf32> -> vector<128x8xf32>
    %58 = vector.extract_strided_slice %38 {offsets = [2, 0], sizes = [1, 8], strides = [1, 1]} : vector<9x8xf32> to vector<1x8xf32>
    %59 = vector.broadcast %58 : vector<1x8xf32> to vector<128x8xf32>
    %60 = arith.mulf %57, %59 : vector<128x8xf32>
    %61 = arith.addf %53, %60 : vector<128x8xf32>
    %62 = vector.extract_strided_slice %37 {offsets = [384, 0], sizes = [128, 8], strides = [1, 1]} : vector<1152x8xf32> to vector<128x8xf32>
    %cst_26 = arith.constant 0.000000e+00 : f32
    %63 = vector.broadcast %cst_26 : f32 to vector<128x2xf32>
    %64 = vector.extract_strided_slice %62 {offsets = [0, 0], sizes = [128, 6], strides = [1, 1]} : vector<128x8xf32> to vector<128x6xf32>
    %65 = tpu.concatenate %63, %64 in 1 : vector<128x2xf32>, vector<128x6xf32> -> vector<128x8xf32>
    %66 = vector.extract_strided_slice %38 {offsets = [3, 0], sizes = [1, 8], strides = [1, 1]} : vector<9x8xf32> to vector<1x8xf32>
    %67 = vector.broadcast %66 : vector<1x8xf32> to vector<128x8xf32>
    %68 = arith.mulf %65, %67 : vector<128x8xf32>
    %69 = arith.addf %61, %68 : vector<128x8xf32>
    %70 = vector.extract_strided_slice %37 {offsets = [512, 0], sizes = [128, 8], strides = [1, 1]} : vector<1152x8xf32> to vector<128x8xf32>
    %71 = vector.extract_strided_slice %38 {offsets = [4, 0], sizes = [1, 8], strides = [1, 1]} : vector<9x8xf32> to vector<1x8xf32>
    %72 = vector.broadcast %71 : vector<1x8xf32> to vector<128x8xf32>
    %73 = arith.mulf %70, %72 : vector<128x8xf32>
    %74 = arith.addf %69, %73 : vector<128x8xf32>
    %75 = vector.extract_strided_slice %37 {offsets = [640, 0], sizes = [128, 8], strides = [1, 1]} : vector<1152x8xf32> to vector<128x8xf32>
    %cst_27 = arith.constant 0.000000e+00 : f32
    %76 = vector.broadcast %cst_27 : f32 to vector<128x2xf32>
    %77 = vector.extract_strided_slice %75 {offsets = [0, 2], sizes = [128, 6], strides = [1, 1]} : vector<128x8xf32> to vector<128x6xf32>
    %78 = tpu.concatenate %77, %76 in 1 : vector<128x6xf32>, vector<128x2xf32> -> vector<128x8xf32>
    %79 = vector.extract_strided_slice %38 {offsets = [5, 0], sizes = [1, 8], strides = [1, 1]} : vector<9x8xf32> to vector<1x8xf32>
    %80 = vector.broadcast %79 : vector<1x8xf32> to vector<128x8xf32>
    %81 = arith.mulf %78, %80 : vector<128x8xf32>
    %82 = arith.addf %74, %81 : vector<128x8xf32>
    %83 = vector.extract_strided_slice %37 {offsets = [768, 0], sizes = [128, 8], strides = [1, 1]} : vector<1152x8xf32> to vector<128x8xf32>
    %cst_28 = arith.constant 0.000000e+00 : f32
    %84 = vector.broadcast %cst_28 : f32 to vector<128x2xf32>
    %85 = vector.extract_strided_slice %83 {offsets = [0, 2], sizes = [128, 6], strides = [1, 1]} : vector<128x8xf32> to vector<128x6xf32>
    %86 = tpu.concatenate %85, %84 in 1 : vector<128x6xf32>, vector<128x2xf32> -> vector<128x8xf32>
    %87 = vector.extract_strided_slice %38 {offsets = [6, 0], sizes = [1, 8], strides = [1, 1]} : vector<9x8xf32> to vector<1x8xf32>
    %88 = vector.broadcast %87 : vector<1x8xf32> to vector<128x8xf32>
    %89 = arith.mulf %86, %88 : vector<128x8xf32>
    %90 = arith.addf %82, %89 : vector<128x8xf32>
    %91 = vector.extract_strided_slice %37 {offsets = [896, 0], sizes = [128, 8], strides = [1, 1]} : vector<1152x8xf32> to vector<128x8xf32>
    %cst_29 = arith.constant 0.000000e+00 : f32
    %92 = vector.broadcast %cst_29 : f32 to vector<128x4xf32>
    %93 = vector.extract_strided_slice %91 {offsets = [0, 4], sizes = [128, 4], strides = [1, 1]} : vector<128x8xf32> to vector<128x4xf32>
    %94 = tpu.concatenate %93, %92 in 1 : vector<128x4xf32>, vector<128x4xf32> -> vector<128x8xf32>
    %95 = vector.extract_strided_slice %38 {offsets = [7, 0], sizes = [1, 8], strides = [1, 1]} : vector<9x8xf32> to vector<1x8xf32>
    %96 = vector.broadcast %95 : vector<1x8xf32> to vector<128x8xf32>
    %97 = arith.mulf %94, %96 : vector<128x8xf32>
    %98 = arith.addf %90, %97 : vector<128x8xf32>
    %99 = vector.extract_strided_slice %37 {offsets = [1024, 0], sizes = [128, 8], strides = [1, 1]} : vector<1152x8xf32> to vector<128x8xf32>
    %cst_30 = arith.constant 0.000000e+00 : f32
    %100 = vector.broadcast %cst_30 : f32 to vector<128x6xf32>
    %101 = vector.extract_strided_slice %99 {offsets = [0, 6], sizes = [128, 2], strides = [1, 1]} : vector<128x8xf32> to vector<128x2xf32>
    %102 = tpu.concatenate %101, %100 in 1 : vector<128x2xf32>, vector<128x6xf32> -> vector<128x8xf32>
    %103 = vector.extract_strided_slice %38 {offsets = [8, 0], sizes = [1, 8], strides = [1, 1]} : vector<9x8xf32> to vector<1x8xf32>
    %104 = vector.broadcast %103 : vector<1x8xf32> to vector<128x8xf32>
    %105 = arith.mulf %102, %104 : vector<128x8xf32>
    %106 = arith.addf %98, %105 : vector<128x8xf32>
    %107 = vector.extract_strided_slice %106 {offsets = [0, 0], sizes = [32, 8], strides = [1, 1]} : vector<128x8xf32> to vector<32x8xf32>
    %108 = vector.extract_strided_slice %106 {offsets = [32, 0], sizes = [32, 8], strides = [1, 1]} : vector<128x8xf32> to vector<32x8xf32>
    %109 = vector.extract_strided_slice %106 {offsets = [64, 0], sizes = [32, 8], strides = [1, 1]} : vector<128x8xf32> to vector<32x8xf32>
    %110 = vector.extract_strided_slice %106 {offsets = [96, 0], sizes = [32, 8], strides = [1, 1]} : vector<128x8xf32> to vector<32x8xf32>
    %111 = tpu.concatenate %107, %108, %109, %110 in 1 : vector<32x8xf32>, vector<32x8xf32>, vector<32x8xf32>, vector<32x8xf32> -> vector<32x32xf32>
    %c0_31 = arith.constant 0 : index
    %c0_32 = arith.constant 0 : index
    %112 = vector.load %arg9[%c0_31, %c0_32] : memref<32x1xf32, #tpu.memory_space<vmem>>, vector<32x1xf32>
    %c0_33 = arith.constant 0 : index
    %c0_34 = arith.constant 0 : index
    %113 = vector.load %arg10[%c0_33, %c0_34] : memref<32x1xf32, #tpu.memory_space<vmem>>, vector<32x1xf32>
    %cst_35 = arith.constant dense<0.000000e+00> : vector<32xf32>
    %114 = vector.multi_reduction <add>, %111, %cst_35 [1] : vector<32x32xf32> to vector<32xf32>
    %115 = vector.shape_cast %114 : vector<32xf32> to vector<32x1xf32>
    %cst_36 = arith.constant 3.200000e+01 : f32
    %116 = vector.broadcast %cst_36 : f32 to vector<32x1xf32>
    %117 = arith.divf %115, %116 : vector<32x1xf32>
    %118 = vector.broadcast %117 : vector<32x1xf32> to vector<32x32xf32>
    %119 = arith.subf %111, %118 : vector<32x32xf32>
    %120 = arith.mulf %119, %119 : vector<32x32xf32>
    %cst_37 = arith.constant dense<0.000000e+00> : vector<32xf32>
    %121 = vector.multi_reduction <add>, %120, %cst_37 [1] : vector<32x32xf32> to vector<32xf32>
    %122 = vector.shape_cast %121 : vector<32xf32> to vector<32x1xf32>
    %cst_38 = arith.constant 3.200000e+01 : f32
    %123 = vector.broadcast %cst_38 : f32 to vector<32x1xf32>
    %124 = arith.divf %122, %123 : vector<32x1xf32>
    %cst_39 = arith.constant 9.99999974E-6 : f32
    %125 = vector.broadcast %cst_39 : f32 to vector<32x1xf32>
    %126 = arith.addf %124, %125 : vector<32x1xf32>
    %127 = math.rsqrt %126 : vector<32x1xf32>
    %128 = arith.mulf %112, %127 : vector<32x1xf32>
    %129 = vector.broadcast %128 : vector<32x1xf32> to vector<32x32xf32>
    %130 = arith.mulf %119, %129 : vector<32x32xf32>
    %131 = vector.broadcast %113 : vector<32x1xf32> to vector<32x32xf32>
    %132 = arith.addf %130, %131 : vector<32x32xf32>
    %cst_40 = arith.constant 0.000000e+00 : f32
    %133 = vector.broadcast %cst_40 : f32 to vector<32x32xf32>
    %134 = arith.maximumf %132, %133 : vector<32x32xf32>
    %c0_41 = arith.constant 0 : index
    %c0_42 = arith.constant 0 : index
    %135 = vector.load %arg8[%c0_41, %c0_42] : memref<32x32xf32, #tpu.memory_space<vmem>>, vector<32x32xf32>
    %cst_43 = arith.constant dense<0.000000e+00> : vector<32x32xf32>
    %136 = tpu.matmul %134, %135, %cst_43 {dimension_numbers = #tpu.dot_dimension_numbers<[1], [0], [0], [1], [0, 0, 1, 1], [], []>} : vector<32x32xf32>, vector<32x32xf32>, vector<32x32xf32> -> vector<32x32xf32>
    %c0_44 = arith.constant 0 : index
    %c0_45 = arith.constant 0 : index
    %137 = vector.load %arg11[%c0_44, %c0_45] : memref<576x32xf32, #tpu.memory_space<vmem>>, vector<576x32xf32>
    %cst_46 = arith.constant dense<0.000000e+00> : vector<576x32xf32>
    %138 = tpu.matmul %137, %136, %cst_46 {dimension_numbers = #tpu.dot_dimension_numbers<[1], [0], [0], [1], [0, 0, 1, 1], [], []>} : vector<576x32xf32>, vector<32x32xf32>, vector<576x32xf32> -> vector<576x32xf32>
    %c0_47 = arith.constant 0 : index
    %c0_48 = arith.constant 0 : index
    %139 = vector.load %arg12[%c0_47, %c0_48] : memref<9x32xf32, #tpu.memory_space<vmem>>, vector<9x32xf32>
    %140 = vector.extract_strided_slice %138 {offsets = [0, 0], sizes = [64, 32], strides = [1, 1]} : vector<576x32xf32> to vector<64x32xf32>
    %cst_49 = arith.constant 0.000000e+00 : f32
    %141 = vector.broadcast %cst_49 : f32 to vector<64x10xf32>
    %142 = vector.extract_strided_slice %140 {offsets = [0, 0], sizes = [64, 22], strides = [1, 1]} : vector<64x32xf32> to vector<64x22xf32>
    %143 = tpu.concatenate %141, %142 in 1 : vector<64x10xf32>, vector<64x22xf32> -> vector<64x32xf32>
    %144 = vector.extract_strided_slice %139 {offsets = [0, 0], sizes = [1, 32], strides = [1, 1]} : vector<9x32xf32> to vector<1x32xf32>
    %145 = vector.broadcast %144 : vector<1x32xf32> to vector<64x32xf32>
    %146 = arith.mulf %143, %145 : vector<64x32xf32>
    %147 = vector.extract_strided_slice %138 {offsets = [64, 0], sizes = [64, 32], strides = [1, 1]} : vector<576x32xf32> to vector<64x32xf32>
    %cst_50 = arith.constant 0.000000e+00 : f32
    %148 = vector.broadcast %cst_50 : f32 to vector<64x8xf32>
    %149 = vector.extract_strided_slice %147 {offsets = [0, 0], sizes = [64, 24], strides = [1, 1]} : vector<64x32xf32> to vector<64x24xf32>
    %150 = tpu.concatenate %148, %149 in 1 : vector<64x8xf32>, vector<64x24xf32> -> vector<64x32xf32>
    %151 = vector.extract_strided_slice %139 {offsets = [1, 0], sizes = [1, 32], strides = [1, 1]} : vector<9x32xf32> to vector<1x32xf32>
    %152 = vector.broadcast %151 : vector<1x32xf32> to vector<64x32xf32>
    %153 = arith.mulf %150, %152 : vector<64x32xf32>
    %154 = arith.addf %146, %153 : vector<64x32xf32>
    %155 = vector.extract_strided_slice %138 {offsets = [128, 0], sizes = [64, 32], strides = [1, 1]} : vector<576x32xf32> to vector<64x32xf32>
    %cst_51 = arith.constant 0.000000e+00 : f32
    %156 = vector.broadcast %cst_51 : f32 to vector<64x6xf32>
    %157 = vector.extract_strided_slice %155 {offsets = [0, 0], sizes = [64, 26], strides = [1, 1]} : vector<64x32xf32> to vector<64x26xf32>
    %158 = tpu.concatenate %156, %157 in 1 : vector<64x6xf32>, vector<64x26xf32> -> vector<64x32xf32>
    %159 = vector.extract_strided_slice %139 {offsets = [2, 0], sizes = [1, 32], strides = [1, 1]} : vector<9x32xf32> to vector<1x32xf32>
    %160 = vector.broadcast %159 : vector<1x32xf32> to vector<64x32xf32>
    %161 = arith.mulf %158, %160 : vector<64x32xf32>
    %162 = arith.addf %154, %161 : vector<64x32xf32>
    %163 = vector.extract_strided_slice %138 {offsets = [192, 0], sizes = [64, 32], strides = [1, 1]} : vector<576x32xf32> to vector<64x32xf32>
    %cst_52 = arith.constant 0.000000e+00 : f32
    %164 = vector.broadcast %cst_52 : f32 to vector<64x2xf32>
    %165 = vector.extract_strided_slice %163 {offsets = [0, 0], sizes = [64, 30], strides = [1, 1]} : vector<64x32xf32> to vector<64x30xf32>
    %166 = tpu.concatenate %164, %165 in 1 : vector<64x2xf32>, vector<64x30xf32> -> vector<64x32xf32>
    %167 = vector.extract_strided_slice %139 {offsets = [3, 0], sizes = [1, 32], strides = [1, 1]} : vector<9x32xf32> to vector<1x32xf32>
    %168 = vector.broadcast %167 : vector<1x32xf32> to vector<64x32xf32>
    %169 = arith.mulf %166, %168 : vector<64x32xf32>
    %170 = arith.addf %162, %169 : vector<64x32xf32>
    %171 = vector.extract_strided_slice %138 {offsets = [256, 0], sizes = [64, 32], strides = [1, 1]} : vector<576x32xf32> to vector<64x32xf32>
    %172 = vector.extract_strided_slice %139 {offsets = [4, 0], sizes = [1, 32], strides = [1, 1]} : vector<9x32xf32> to vector<1x32xf32>
    %173 = vector.broadcast %172 : vector<1x32xf32> to vector<64x32xf32>
    %174 = arith.mulf %171, %173 : vector<64x32xf32>
    %175 = arith.addf %170, %174 : vector<64x32xf32>
    %176 = vector.extract_strided_slice %138 {offsets = [320, 0], sizes = [64, 32], strides = [1, 1]} : vector<576x32xf32> to vector<64x32xf32>
    %cst_53 = arith.constant 0.000000e+00 : f32
    %177 = vector.broadcast %cst_53 : f32 to vector<64x2xf32>
    %178 = vector.extract_strided_slice %176 {offsets = [0, 2], sizes = [64, 30], strides = [1, 1]} : vector<64x32xf32> to vector<64x30xf32>
    %179 = tpu.concatenate %178, %177 in 1 : vector<64x30xf32>, vector<64x2xf32> -> vector<64x32xf32>
    %180 = vector.extract_strided_slice %139 {offsets = [5, 0], sizes = [1, 32], strides = [1, 1]} : vector<9x32xf32> to vector<1x32xf32>
    %181 = vector.broadcast %180 : vector<1x32xf32> to vector<64x32xf32>
    %182 = arith.mulf %179, %181 : vector<64x32xf32>
    %183 = arith.addf %175, %182 : vector<64x32xf32>
    %184 = vector.extract_strided_slice %138 {offsets = [384, 0], sizes = [64, 32], strides = [1, 1]} : vector<576x32xf32> to vector<64x32xf32>
    %cst_54 = arith.constant 0.000000e+00 : f32
    %185 = vector.broadcast %cst_54 : f32 to vector<64x6xf32>
    %186 = vector.extract_strided_slice %184 {offsets = [0, 6], sizes = [64, 26], strides = [1, 1]} : vector<64x32xf32> to vector<64x26xf32>
    %187 = tpu.concatenate %186, %185 in 1 : vector<64x26xf32>, vector<64x6xf32> -> vector<64x32xf32>
    %188 = vector.extract_strided_slice %139 {offsets = [6, 0], sizes = [1, 32], strides = [1, 1]} : vector<9x32xf32> to vector<1x32xf32>
    %189 = vector.broadcast %188 : vector<1x32xf32> to vector<64x32xf32>
    %190 = arith.mulf %187, %189 : vector<64x32xf32>
    %191 = arith.addf %183, %190 : vector<64x32xf32>
    %192 = vector.extract_strided_slice %138 {offsets = [448, 0], sizes = [64, 32], strides = [1, 1]} : vector<576x32xf32> to vector<64x32xf32>
    %cst_55 = arith.constant 0.000000e+00 : f32
    %193 = vector.broadcast %cst_55 : f32 to vector<64x8xf32>
    %194 = vector.extract_strided_slice %192 {offsets = [0, 8], sizes = [64, 24], strides = [1, 1]} : vector<64x32xf32> to vector<64x24xf32>
    %195 = tpu.concatenate %194, %193 in 1 : vector<64x24xf32>, vector<64x8xf32> -> vector<64x32xf32>
    %196 = vector.extract_strided_slice %139 {offsets = [7, 0], sizes = [1, 32], strides = [1, 1]} : vector<9x32xf32> to vector<1x32xf32>
    %197 = vector.broadcast %196 : vector<1x32xf32> to vector<64x32xf32>
    %198 = arith.mulf %195, %197 : vector<64x32xf32>
    %199 = arith.addf %191, %198 : vector<64x32xf32>
    %200 = vector.extract_strided_slice %138 {offsets = [512, 0], sizes = [64, 32], strides = [1, 1]} : vector<576x32xf32> to vector<64x32xf32>
    %cst_56 = arith.constant 0.000000e+00 : f32
    %201 = vector.broadcast %cst_56 : f32 to vector<64x10xf32>
    %202 = vector.extract_strided_slice %200 {offsets = [0, 10], sizes = [64, 22], strides = [1, 1]} : vector<64x32xf32> to vector<64x22xf32>
    %203 = tpu.concatenate %202, %201 in 1 : vector<64x22xf32>, vector<64x10xf32> -> vector<64x32xf32>
    %204 = vector.extract_strided_slice %139 {offsets = [8, 0], sizes = [1, 32], strides = [1, 1]} : vector<9x32xf32> to vector<1x32xf32>
    %205 = vector.broadcast %204 : vector<1x32xf32> to vector<64x32xf32>
    %206 = arith.mulf %203, %205 : vector<64x32xf32>
    %207 = arith.addf %199, %206 : vector<64x32xf32>
    %208 = vector.extract_strided_slice %207 {offsets = [0, 0], sizes = [16, 32], strides = [1, 1]} : vector<64x32xf32> to vector<16x32xf32>
    %209 = vector.extract_strided_slice %207 {offsets = [16, 0], sizes = [16, 32], strides = [1, 1]} : vector<64x32xf32> to vector<16x32xf32>
    %210 = vector.extract_strided_slice %207 {offsets = [32, 0], sizes = [16, 32], strides = [1, 1]} : vector<64x32xf32> to vector<16x32xf32>
    %211 = vector.extract_strided_slice %207 {offsets = [48, 0], sizes = [16, 32], strides = [1, 1]} : vector<64x32xf32> to vector<16x32xf32>
    %212 = tpu.concatenate %208, %209, %210, %211 in 1 : vector<16x32xf32>, vector<16x32xf32>, vector<16x32xf32>, vector<16x32xf32> -> vector<16x128xf32>
    %c0_57 = arith.constant 0 : index
    %c0_58 = arith.constant 0 : index
    %213 = vector.load %arg14[%c0_57, %c0_58] : memref<16x1xf32, #tpu.memory_space<vmem>>, vector<16x1xf32>
    %c0_59 = arith.constant 0 : index
    %c0_60 = arith.constant 0 : index
    %214 = vector.load %arg15[%c0_59, %c0_60] : memref<16x1xf32, #tpu.memory_space<vmem>>, vector<16x1xf32>
    %cst_61 = arith.constant dense<0.000000e+00> : vector<16xf32>
    %215 = vector.multi_reduction <add>, %212, %cst_61 [1] : vector<16x128xf32> to vector<16xf32>
    %216 = vector.shape_cast %215 : vector<16xf32> to vector<16x1xf32>
    %cst_62 = arith.constant 1.280000e+02 : f32
    %217 = vector.broadcast %cst_62 : f32 to vector<16x1xf32>
    %218 = arith.divf %216, %217 : vector<16x1xf32>
    %219 = vector.broadcast %218 : vector<16x1xf32> to vector<16x128xf32>
    %220 = arith.subf %212, %219 : vector<16x128xf32>
    %221 = arith.mulf %220, %220 : vector<16x128xf32>
    %cst_63 = arith.constant dense<0.000000e+00> : vector<16xf32>
    %222 = vector.multi_reduction <add>, %221, %cst_63 [1] : vector<16x128xf32> to vector<16xf32>
    %223 = vector.shape_cast %222 : vector<16xf32> to vector<16x1xf32>
    %cst_64 = arith.constant 1.280000e+02 : f32
    %224 = vector.broadcast %cst_64 : f32 to vector<16x1xf32>
    %225 = arith.divf %223, %224 : vector<16x1xf32>
    %cst_65 = arith.constant 9.99999974E-6 : f32
    %226 = vector.broadcast %cst_65 : f32 to vector<16x1xf32>
    %227 = arith.addf %225, %226 : vector<16x1xf32>
    %228 = math.rsqrt %227 : vector<16x1xf32>
    %229 = arith.mulf %213, %228 : vector<16x1xf32>
    %230 = vector.broadcast %229 : vector<16x1xf32> to vector<16x128xf32>
    %231 = arith.mulf %220, %230 : vector<16x128xf32>
    %232 = vector.broadcast %214 : vector<16x1xf32> to vector<16x128xf32>
    %233 = arith.addf %231, %232 : vector<16x128xf32>
    %cst_66 = arith.constant 0.000000e+00 : f32
    %234 = vector.broadcast %cst_66 : f32 to vector<16x128xf32>
    %235 = arith.maximumf %233, %234 : vector<16x128xf32>
    %c0_67 = arith.constant 0 : index
    %c0_68 = arith.constant 0 : index
    %236 = vector.load %arg13[%c0_67, %c0_68] : memref<128x128xf32, #tpu.memory_space<vmem>>, vector<128x128xf32>
    %cst_69 = arith.constant dense<0.000000e+00> : vector<16x128xf32>
    %237 = tpu.matmul %235, %236, %cst_69 {dimension_numbers = #tpu.dot_dimension_numbers<[1], [0], [0], [1], [0, 0, 1, 1], [], []>} : vector<16x128xf32>, vector<128x128xf32>, vector<16x128xf32> -> vector<16x128xf32>
    %c0_70 = arith.constant 0 : index
    %c0_71 = arith.constant 0 : index
    %238 = vector.load %arg16[%c0_70, %c0_71] : memref<288x16xf32, #tpu.memory_space<vmem>>, vector<288x16xf32>
    %cst_72 = arith.constant dense<0.000000e+00> : vector<288x128xf32>
    %239 = tpu.matmul %238, %237, %cst_72 {dimension_numbers = #tpu.dot_dimension_numbers<[1], [0], [0], [1], [0, 0, 1, 1], [], []>} : vector<288x16xf32>, vector<16x128xf32>, vector<288x128xf32> -> vector<288x128xf32>
    %c0_73 = arith.constant 0 : index
    %c0_74 = arith.constant 0 : index
    %240 = vector.load %arg17[%c0_73, %c0_74] : memref<9x128xf32, #tpu.memory_space<vmem>>, vector<9x128xf32>
    %241 = vector.extract_strided_slice %239 {offsets = [0, 0], sizes = [32, 128], strides = [1, 1]} : vector<288x128xf32> to vector<32x128xf32>
    %cst_75 = arith.constant 0.000000e+00 : f32
    %242 = vector.broadcast %cst_75 : f32 to vector<32x18xf32>
    %243 = vector.extract_strided_slice %241 {offsets = [0, 0], sizes = [32, 110], strides = [1, 1]} : vector<32x128xf32> to vector<32x110xf32>
    %244 = tpu.concatenate %242, %243 in 1 : vector<32x18xf32>, vector<32x110xf32> -> vector<32x128xf32>
    %245 = vector.extract_strided_slice %240 {offsets = [0, 0], sizes = [1, 128], strides = [1, 1]} : vector<9x128xf32> to vector<1x128xf32>
    %246 = vector.broadcast %245 : vector<1x128xf32> to vector<32x128xf32>
    %247 = arith.mulf %244, %246 : vector<32x128xf32>
    %248 = vector.extract_strided_slice %239 {offsets = [32, 0], sizes = [32, 128], strides = [1, 1]} : vector<288x128xf32> to vector<32x128xf32>
    %cst_76 = arith.constant 0.000000e+00 : f32
    %249 = vector.broadcast %cst_76 : f32 to vector<32x16xf32>
    %250 = vector.extract_strided_slice %248 {offsets = [0, 0], sizes = [32, 112], strides = [1, 1]} : vector<32x128xf32> to vector<32x112xf32>
    %251 = tpu.concatenate %249, %250 in 1 : vector<32x16xf32>, vector<32x112xf32> -> vector<32x128xf32>
    %252 = vector.extract_strided_slice %240 {offsets = [1, 0], sizes = [1, 128], strides = [1, 1]} : vector<9x128xf32> to vector<1x128xf32>
    %253 = vector.broadcast %252 : vector<1x128xf32> to vector<32x128xf32>
    %254 = arith.mulf %251, %253 : vector<32x128xf32>
    %255 = arith.addf %247, %254 : vector<32x128xf32>
    %256 = vector.extract_strided_slice %239 {offsets = [64, 0], sizes = [32, 128], strides = [1, 1]} : vector<288x128xf32> to vector<32x128xf32>
    %cst_77 = arith.constant 0.000000e+00 : f32
    %257 = vector.broadcast %cst_77 : f32 to vector<32x14xf32>
    %258 = vector.extract_strided_slice %256 {offsets = [0, 0], sizes = [32, 114], strides = [1, 1]} : vector<32x128xf32> to vector<32x114xf32>
    %259 = tpu.concatenate %257, %258 in 1 : vector<32x14xf32>, vector<32x114xf32> -> vector<32x128xf32>
    %260 = vector.extract_strided_slice %240 {offsets = [2, 0], sizes = [1, 128], strides = [1, 1]} : vector<9x128xf32> to vector<1x128xf32>
    %261 = vector.broadcast %260 : vector<1x128xf32> to vector<32x128xf32>
    %262 = arith.mulf %259, %261 : vector<32x128xf32>
    %263 = arith.addf %255, %262 : vector<32x128xf32>
    %264 = vector.extract_strided_slice %239 {offsets = [96, 0], sizes = [32, 128], strides = [1, 1]} : vector<288x128xf32> to vector<32x128xf32>
    %cst_78 = arith.constant 0.000000e+00 : f32
    %265 = vector.broadcast %cst_78 : f32 to vector<32x2xf32>
    %266 = vector.extract_strided_slice %264 {offsets = [0, 0], sizes = [32, 126], strides = [1, 1]} : vector<32x128xf32> to vector<32x126xf32>
    %267 = tpu.concatenate %265, %266 in 1 : vector<32x2xf32>, vector<32x126xf32> -> vector<32x128xf32>
    %268 = vector.extract_strided_slice %240 {offsets = [3, 0], sizes = [1, 128], strides = [1, 1]} : vector<9x128xf32> to vector<1x128xf32>
    %269 = vector.broadcast %268 : vector<1x128xf32> to vector<32x128xf32>
    %270 = arith.mulf %267, %269 : vector<32x128xf32>
    %271 = arith.addf %263, %270 : vector<32x128xf32>
    %272 = vector.extract_strided_slice %239 {offsets = [128, 0], sizes = [32, 128], strides = [1, 1]} : vector<288x128xf32> to vector<32x128xf32>
    %273 = vector.extract_strided_slice %240 {offsets = [4, 0], sizes = [1, 128], strides = [1, 1]} : vector<9x128xf32> to vector<1x128xf32>
    %274 = vector.broadcast %273 : vector<1x128xf32> to vector<32x128xf32>
    %275 = arith.mulf %272, %274 : vector<32x128xf32>
    %276 = arith.addf %271, %275 : vector<32x128xf32>
    %277 = vector.extract_strided_slice %239 {offsets = [160, 0], sizes = [32, 128], strides = [1, 1]} : vector<288x128xf32> to vector<32x128xf32>
    %cst_79 = arith.constant 0.000000e+00 : f32
    %278 = vector.broadcast %cst_79 : f32 to vector<32x2xf32>
    %279 = vector.extract_strided_slice %277 {offsets = [0, 2], sizes = [32, 126], strides = [1, 1]} : vector<32x128xf32> to vector<32x126xf32>
    %280 = tpu.concatenate %279, %278 in 1 : vector<32x126xf32>, vector<32x2xf32> -> vector<32x128xf32>
    %281 = vector.extract_strided_slice %240 {offsets = [5, 0], sizes = [1, 128], strides = [1, 1]} : vector<9x128xf32> to vector<1x128xf32>
    %282 = vector.broadcast %281 : vector<1x128xf32> to vector<32x128xf32>
    %283 = arith.mulf %280, %282 : vector<32x128xf32>
    %284 = arith.addf %276, %283 : vector<32x128xf32>
    %285 = vector.extract_strided_slice %239 {offsets = [192, 0], sizes = [32, 128], strides = [1, 1]} : vector<288x128xf32> to vector<32x128xf32>
    %cst_80 = arith.constant 0.000000e+00 : f32
    %286 = vector.broadcast %cst_80 : f32 to vector<32x14xf32>
    %287 = vector.extract_strided_slice %285 {offsets = [0, 14], sizes = [32, 114], strides = [1, 1]} : vector<32x128xf32> to vector<32x114xf32>
    %288 = tpu.concatenate %287, %286 in 1 : vector<32x114xf32>, vector<32x14xf32> -> vector<32x128xf32>
    %289 = vector.extract_strided_slice %240 {offsets = [6, 0], sizes = [1, 128], strides = [1, 1]} : vector<9x128xf32> to vector<1x128xf32>
    %290 = vector.broadcast %289 : vector<1x128xf32> to vector<32x128xf32>
    %291 = arith.mulf %288, %290 : vector<32x128xf32>
    %292 = arith.addf %284, %291 : vector<32x128xf32>
    %293 = vector.extract_strided_slice %239 {offsets = [224, 0], sizes = [32, 128], strides = [1, 1]} : vector<288x128xf32> to vector<32x128xf32>
    %cst_81 = arith.constant 0.000000e+00 : f32
    %294 = vector.broadcast %cst_81 : f32 to vector<32x16xf32>
    %295 = vector.extract_strided_slice %293 {offsets = [0, 16], sizes = [32, 112], strides = [1, 1]} : vector<32x128xf32> to vector<32x112xf32>
    %296 = tpu.concatenate %295, %294 in 1 : vector<32x112xf32>, vector<32x16xf32> -> vector<32x128xf32>
    %297 = vector.extract_strided_slice %240 {offsets = [7, 0], sizes = [1, 128], strides = [1, 1]} : vector<9x128xf32> to vector<1x128xf32>
    %298 = vector.broadcast %297 : vector<1x128xf32> to vector<32x128xf32>
    %299 = arith.mulf %296, %298 : vector<32x128xf32>
    %300 = arith.addf %292, %299 : vector<32x128xf32>
    %301 = vector.extract_strided_slice %239 {offsets = [256, 0], sizes = [32, 128], strides = [1, 1]} : vector<288x128xf32> to vector<32x128xf32>
    %cst_82 = arith.constant 0.000000e+00 : f32
    %302 = vector.broadcast %cst_82 : f32 to vector<32x18xf32>
    %303 = vector.extract_strided_slice %301 {offsets = [0, 18], sizes = [32, 110], strides = [1, 1]} : vector<32x128xf32> to vector<32x110xf32>
    %304 = tpu.concatenate %303, %302 in 1 : vector<32x110xf32>, vector<32x18xf32> -> vector<32x128xf32>
    %305 = vector.extract_strided_slice %240 {offsets = [8, 0], sizes = [1, 128], strides = [1, 1]} : vector<9x128xf32> to vector<1x128xf32>
    %306 = vector.broadcast %305 : vector<1x128xf32> to vector<32x128xf32>
    %307 = arith.mulf %304, %306 : vector<32x128xf32>
    %308 = arith.addf %300, %307 : vector<32x128xf32>
    %309 = vector.extract_strided_slice %308 {offsets = [0, 0], sizes = [8, 128], strides = [1, 1]} : vector<32x128xf32> to vector<8x128xf32>
    %310 = vector.extract_strided_slice %308 {offsets = [8, 0], sizes = [8, 128], strides = [1, 1]} : vector<32x128xf32> to vector<8x128xf32>
    %311 = vector.extract_strided_slice %308 {offsets = [16, 0], sizes = [8, 128], strides = [1, 1]} : vector<32x128xf32> to vector<8x128xf32>
    %312 = vector.extract_strided_slice %308 {offsets = [24, 0], sizes = [8, 128], strides = [1, 1]} : vector<32x128xf32> to vector<8x128xf32>
    %313 = tpu.concatenate %309, %310, %311, %312 in 1 : vector<8x128xf32>, vector<8x128xf32>, vector<8x128xf32>, vector<8x128xf32> -> vector<8x512xf32>
    %c0_83 = arith.constant 0 : index
    %c0_84 = arith.constant 0 : index
    %314 = vector.load %arg19[%c0_83, %c0_84] : memref<8x1xf32, #tpu.memory_space<vmem>>, vector<8x1xf32>
    %c0_85 = arith.constant 0 : index
    %c0_86 = arith.constant 0 : index
    %315 = vector.load %arg20[%c0_85, %c0_86] : memref<8x1xf32, #tpu.memory_space<vmem>>, vector<8x1xf32>
    %cst_87 = arith.constant dense<0.000000e+00> : vector<8xf32>
    %316 = vector.multi_reduction <add>, %313, %cst_87 [1] : vector<8x512xf32> to vector<8xf32>
    %317 = vector.shape_cast %316 : vector<8xf32> to vector<8x1xf32>
    %cst_88 = arith.constant 5.120000e+02 : f32
    %318 = vector.broadcast %cst_88 : f32 to vector<8x1xf32>
    %319 = arith.divf %317, %318 : vector<8x1xf32>
    %320 = vector.broadcast %319 : vector<8x1xf32> to vector<8x512xf32>
    %321 = arith.subf %313, %320 : vector<8x512xf32>
    %322 = arith.mulf %321, %321 : vector<8x512xf32>
    %cst_89 = arith.constant dense<0.000000e+00> : vector<8xf32>
    %323 = vector.multi_reduction <add>, %322, %cst_89 [1] : vector<8x512xf32> to vector<8xf32>
    %324 = vector.shape_cast %323 : vector<8xf32> to vector<8x1xf32>
    %cst_90 = arith.constant 5.120000e+02 : f32
    %325 = vector.broadcast %cst_90 : f32 to vector<8x1xf32>
    %326 = arith.divf %324, %325 : vector<8x1xf32>
    %cst_91 = arith.constant 9.99999974E-6 : f32
    %327 = vector.broadcast %cst_91 : f32 to vector<8x1xf32>
    %328 = arith.addf %326, %327 : vector<8x1xf32>
    %329 = math.rsqrt %328 : vector<8x1xf32>
    %330 = arith.mulf %314, %329 : vector<8x1xf32>
    %331 = vector.broadcast %330 : vector<8x1xf32> to vector<8x512xf32>
    %332 = arith.mulf %321, %331 : vector<8x512xf32>
    %333 = vector.broadcast %315 : vector<8x1xf32> to vector<8x512xf32>
    %334 = arith.addf %332, %333 : vector<8x512xf32>
    %cst_92 = arith.constant 0.000000e+00 : f32
    %335 = vector.broadcast %cst_92 : f32 to vector<8x512xf32>
    %336 = arith.maximumf %334, %335 : vector<8x512xf32>
    %c0_93 = arith.constant 0 : index
    %c0_94 = arith.constant 0 : index
    %337 = vector.load %arg18[%c0_93, %c0_94] : memref<512x512xf32, #tpu.memory_space<vmem>>, vector<512x512xf32>
    %cst_95 = arith.constant dense<0.000000e+00> : vector<8x512xf32>
    %338 = tpu.matmul %336, %337, %cst_95 {dimension_numbers = #tpu.dot_dimension_numbers<[1], [0], [0], [1], [0, 0, 1, 1], [], []>} : vector<8x512xf32>, vector<512x512xf32>, vector<8x512xf32> -> vector<8x512xf32>
    %c0_96 = arith.constant 0 : index
    %c0_97 = arith.constant 0 : index
    %339 = vector.load %arg21[%c0_96, %c0_97] : memref<27x8xf32, #tpu.memory_space<vmem>>, vector<27x8xf32>
    %cst_98 = arith.constant dense<0.000000e+00> : vector<27x512xf32>
    %340 = tpu.matmul %339, %338, %cst_98 {dimension_numbers = #tpu.dot_dimension_numbers<[1], [0], [0], [1], [0, 0, 1, 1], [], []>} : vector<27x8xf32>, vector<8x512xf32>, vector<27x512xf32> -> vector<27x512xf32>
    %c0_99 = arith.constant 0 : index
    %c0_100 = arith.constant 0 : index
    %341 = vector.load %arg22[%c0_99, %c0_100] : memref<9x512xf32, #tpu.memory_space<vmem>>, vector<9x512xf32>
    %342 = vector.extract_strided_slice %340 {offsets = [0, 0], sizes = [3, 512], strides = [1, 1]} : vector<27x512xf32> to vector<3x512xf32>
    %cst_101 = arith.constant 0.000000e+00 : f32
    %343 = vector.broadcast %cst_101 : f32 to vector<3x34xf32>
    %344 = vector.extract_strided_slice %342 {offsets = [0, 0], sizes = [3, 478], strides = [1, 1]} : vector<3x512xf32> to vector<3x478xf32>
    %345 = tpu.concatenate %343, %344 in 1 : vector<3x34xf32>, vector<3x478xf32> -> vector<3x512xf32>
    %346 = vector.extract_strided_slice %341 {offsets = [0, 0], sizes = [1, 512], strides = [1, 1]} : vector<9x512xf32> to vector<1x512xf32>
    %347 = vector.broadcast %346 : vector<1x512xf32> to vector<3x512xf32>
    %348 = arith.mulf %345, %347 : vector<3x512xf32>
    %349 = vector.extract_strided_slice %340 {offsets = [3, 0], sizes = [3, 512], strides = [1, 1]} : vector<27x512xf32> to vector<3x512xf32>
    %cst_102 = arith.constant 0.000000e+00 : f32
    %350 = vector.broadcast %cst_102 : f32 to vector<3x32xf32>
    %351 = vector.extract_strided_slice %349 {offsets = [0, 0], sizes = [3, 480], strides = [1, 1]} : vector<3x512xf32> to vector<3x480xf32>
    %352 = tpu.concatenate %350, %351 in 1 : vector<3x32xf32>, vector<3x480xf32> -> vector<3x512xf32>
    %353 = vector.extract_strided_slice %341 {offsets = [1, 0], sizes = [1, 512], strides = [1, 1]} : vector<9x512xf32> to vector<1x512xf32>
    %354 = vector.broadcast %353 : vector<1x512xf32> to vector<3x512xf32>
    %355 = arith.mulf %352, %354 : vector<3x512xf32>
    %356 = arith.addf %348, %355 : vector<3x512xf32>
    %357 = vector.extract_strided_slice %340 {offsets = [6, 0], sizes = [3, 512], strides = [1, 1]} : vector<27x512xf32> to vector<3x512xf32>
    %cst_103 = arith.constant 0.000000e+00 : f32
    %358 = vector.broadcast %cst_103 : f32 to vector<3x30xf32>
    %359 = vector.extract_strided_slice %357 {offsets = [0, 0], sizes = [3, 482], strides = [1, 1]} : vector<3x512xf32> to vector<3x482xf32>
    %360 = tpu.concatenate %358, %359 in 1 : vector<3x30xf32>, vector<3x482xf32> -> vector<3x512xf32>
    %361 = vector.extract_strided_slice %341 {offsets = [2, 0], sizes = [1, 512], strides = [1, 1]} : vector<9x512xf32> to vector<1x512xf32>
    %362 = vector.broadcast %361 : vector<1x512xf32> to vector<3x512xf32>
    %363 = arith.mulf %360, %362 : vector<3x512xf32>
    %364 = arith.addf %356, %363 : vector<3x512xf32>
    %365 = vector.extract_strided_slice %340 {offsets = [9, 0], sizes = [3, 512], strides = [1, 1]} : vector<27x512xf32> to vector<3x512xf32>
    %cst_104 = arith.constant 0.000000e+00 : f32
    %366 = vector.broadcast %cst_104 : f32 to vector<3x2xf32>
    %367 = vector.extract_strided_slice %365 {offsets = [0, 0], sizes = [3, 510], strides = [1, 1]} : vector<3x512xf32> to vector<3x510xf32>
    %368 = tpu.concatenate %366, %367 in 1 : vector<3x2xf32>, vector<3x510xf32> -> vector<3x512xf32>
    %369 = vector.extract_strided_slice %341 {offsets = [3, 0], sizes = [1, 512], strides = [1, 1]} : vector<9x512xf32> to vector<1x512xf32>
    %370 = vector.broadcast %369 : vector<1x512xf32> to vector<3x512xf32>
    %371 = arith.mulf %368, %370 : vector<3x512xf32>
    %372 = arith.addf %364, %371 : vector<3x512xf32>
    %373 = vector.extract_strided_slice %340 {offsets = [12, 0], sizes = [3, 512], strides = [1, 1]} : vector<27x512xf32> to vector<3x512xf32>
    %374 = vector.extract_strided_slice %341 {offsets = [4, 0], sizes = [1, 512], strides = [1, 1]} : vector<9x512xf32> to vector<1x512xf32>
    %375 = vector.broadcast %374 : vector<1x512xf32> to vector<3x512xf32>
    %376 = arith.mulf %373, %375 : vector<3x512xf32>
    %377 = arith.addf %372, %376 : vector<3x512xf32>
    %378 = vector.extract_strided_slice %340 {offsets = [15, 0], sizes = [3, 512], strides = [1, 1]} : vector<27x512xf32> to vector<3x512xf32>
    %cst_105 = arith.constant 0.000000e+00 : f32
    %379 = vector.broadcast %cst_105 : f32 to vector<3x2xf32>
    %380 = vector.extract_strided_slice %378 {offsets = [0, 2], sizes = [3, 510], strides = [1, 1]} : vector<3x512xf32> to vector<3x510xf32>
    %381 = tpu.concatenate %380, %379 in 1 : vector<3x510xf32>, vector<3x2xf32> -> vector<3x512xf32>
    %382 = vector.extract_strided_slice %341 {offsets = [5, 0], sizes = [1, 512], strides = [1, 1]} : vector<9x512xf32> to vector<1x512xf32>
    %383 = vector.broadcast %382 : vector<1x512xf32> to vector<3x512xf32>
    %384 = arith.mulf %381, %383 : vector<3x512xf32>
    %385 = arith.addf %377, %384 : vector<3x512xf32>
    %386 = vector.extract_strided_slice %340 {offsets = [18, 0], sizes = [3, 512], strides = [1, 1]} : vector<27x512xf32> to vector<3x512xf32>
    %cst_106 = arith.constant 0.000000e+00 : f32
    %387 = vector.broadcast %cst_106 : f32 to vector<3x30xf32>
    %388 = vector.extract_strided_slice %386 {offsets = [0, 30], sizes = [3, 482], strides = [1, 1]} : vector<3x512xf32> to vector<3x482xf32>
    %389 = tpu.concatenate %388, %387 in 1 : vector<3x482xf32>, vector<3x30xf32> -> vector<3x512xf32>
    %390 = vector.extract_strided_slice %341 {offsets = [6, 0], sizes = [1, 512], strides = [1, 1]} : vector<9x512xf32> to vector<1x512xf32>
    %391 = vector.broadcast %390 : vector<1x512xf32> to vector<3x512xf32>
    %392 = arith.mulf %389, %391 : vector<3x512xf32>
    %393 = arith.addf %385, %392 : vector<3x512xf32>
    %394 = vector.extract_strided_slice %340 {offsets = [21, 0], sizes = [3, 512], strides = [1, 1]} : vector<27x512xf32> to vector<3x512xf32>
    %cst_107 = arith.constant 0.000000e+00 : f32
    %395 = vector.broadcast %cst_107 : f32 to vector<3x32xf32>
    %396 = vector.extract_strided_slice %394 {offsets = [0, 32], sizes = [3, 480], strides = [1, 1]} : vector<3x512xf32> to vector<3x480xf32>
    %397 = tpu.concatenate %396, %395 in 1 : vector<3x480xf32>, vector<3x32xf32> -> vector<3x512xf32>
    %398 = vector.extract_strided_slice %341 {offsets = [7, 0], sizes = [1, 512], strides = [1, 1]} : vector<9x512xf32> to vector<1x512xf32>
    %399 = vector.broadcast %398 : vector<1x512xf32> to vector<3x512xf32>
    %400 = arith.mulf %397, %399 : vector<3x512xf32>
    %401 = arith.addf %393, %400 : vector<3x512xf32>
    %402 = vector.extract_strided_slice %340 {offsets = [24, 0], sizes = [3, 512], strides = [1, 1]} : vector<27x512xf32> to vector<3x512xf32>
    %cst_108 = arith.constant 0.000000e+00 : f32
    %403 = vector.broadcast %cst_108 : f32 to vector<3x34xf32>
    %404 = vector.extract_strided_slice %402 {offsets = [0, 34], sizes = [3, 478], strides = [1, 1]} : vector<3x512xf32> to vector<3x478xf32>
    %405 = tpu.concatenate %404, %403 in 1 : vector<3x478xf32>, vector<3x34xf32> -> vector<3x512xf32>
    %406 = vector.extract_strided_slice %341 {offsets = [8, 0], sizes = [1, 512], strides = [1, 1]} : vector<9x512xf32> to vector<1x512xf32>
    %407 = vector.broadcast %406 : vector<1x512xf32> to vector<3x512xf32>
    %408 = arith.mulf %405, %407 : vector<3x512xf32>
    %409 = arith.addf %401, %408 : vector<3x512xf32>
    %c0_109 = arith.constant 0 : index
    %c0_110 = arith.constant 0 : index
    %410 = vector.load %arg23[%c0_109, %c0_110] : memref<3x1xf32, #tpu.memory_space<vmem>>, vector<3x1xf32>
    %411 = vector.broadcast %410 : vector<3x1xf32> to vector<3x512xf32>
    %412 = arith.addf %409, %411 : vector<3x512xf32>
    %cst_111 = arith.constant 0.000000e+00 : f32
    %413 = vector.broadcast %cst_111 : f32 to vector<3x512xf32>
    %414 = arith.subf %413, %412 : vector<3x512xf32>
    %415 = math.exp %414 : vector<3x512xf32>
    %cst_112 = arith.constant 1.000000e+00 : f32
    %416 = vector.broadcast %cst_112 : f32 to vector<3x512xf32>
    %417 = arith.addf %416, %415 : vector<3x512xf32>
    %cst_113 = arith.constant 1.000000e+00 : f32
    %418 = vector.broadcast %cst_113 : f32 to vector<3x512xf32>
    %419 = arith.divf %418, %417 : vector<3x512xf32>
    %c0_114 = arith.constant 0 : index
    %c0_115 = arith.constant 0 : index
    %420 = vector.load %arg24[%c0_114, %c0_115] : memref<3x512xf32, #tpu.memory_space<vmem>>, vector<3x512xf32>
    tpu.vector_store %arg24[%c0_114, %c0_115], %419 {strides = array<i32>} : memref<3x512xf32, #tpu.memory_space<vmem>>, vector<3x512xf32>,
    return
  }
  func.func @transform_0(%arg0: i32) -> (i32, i32) {
    %c0_i32 = arith.constant 0 : i32
    %c0_i32_0 = arith.constant 0 : i32
    %c0_i32_1 = arith.constant 0 : i32
    return %c0_i32, %c0_i32_0 : i32, i32
  }
  func.func @transform_1(%arg0: i32) -> (i32, i32) {
    %c0_i32 = arith.constant 0 : i32
    %c0_i32_0 = arith.constant 0 : i32
    %c0_i32_1 = arith.constant 0 : i32
    return %c0_i32, %c0_i32_0 : i32, i32
  }
  func.func @transform_2(%arg0: i32) -> (i32, i32) {
    %c0_i32 = arith.constant 0 : i32
    %c0_i32_0 = arith.constant 0 : i32
    %c0_i32_1 = arith.constant 0 : i32
    return %c0_i32, %c0_i32_0 : i32, i32
  }
  func.func @transform_3(%arg0: i32) -> (i32, i32) {
    %c0_i32 = arith.constant 0 : i32
    %c0_i32_0 = arith.constant 0 : i32
    %c0_i32_1 = arith.constant 0 : i32
    return %c0_i32, %c0_i32_0 : i32, i32
  }
  func.func @transform_4(%arg0: i32) -> (i32, i32) {
    %c0_i32 = arith.constant 0 : i32
    %c0_i32_0 = arith.constant 0 : i32
    %c0_i32_1 = arith.constant 0 : i32
    return %c0_i32, %c0_i32_0 : i32, i32
  }
  func.func @transform_5(%arg0: i32) -> (i32, i32) {
    %c0_i32 = arith.constant 0 : i32
    %c0_i32_0 = arith.constant 0 : i32
    %c0_i32_1 = arith.constant 0 : i32
    return %c0_i32, %c0_i32_0 : i32, i32
  }
  func.func @transform_6(%arg0: i32) -> (i32, i32) {
    %c0_i32 = arith.constant 0 : i32
    %c0_i32_0 = arith.constant 0 : i32
    %c0_i32_1 = arith.constant 0 : i32
    return %c0_i32, %c0_i32_0 : i32, i32
  }
  func.func @transform_7(%arg0: i32) -> (i32, i32) {
    %c0_i32 = arith.constant 0 : i32
    %c0_i32_0 = arith.constant 0 : i32
    %c0_i32_1 = arith.constant 0 : i32
    return %c0_i32, %c0_i32_0 : i32, i32
  }
  func.func @transform_8(%arg0: i32) -> (i32, i32) {
    %c0_i32 = arith.constant 0 : i32
    %c0_i32_0 = arith.constant 0 : i32
    %c0_i32_1 = arith.constant 0 : i32
    return %c0_i32, %c0_i32_0 : i32, i32
  }
  func.func @transform_9(%arg0: i32) -> (i32, i32) {
    %c0_i32 = arith.constant 0 : i32
    %c0_i32_0 = arith.constant 0 : i32
    %c0_i32_1 = arith.constant 0 : i32
    return %c0_i32, %c0_i32_0 : i32, i32
  }
  func.func @transform_10(%arg0: i32) -> (i32, i32) {
    %c0_i32 = arith.constant 0 : i32
    %c0_i32_0 = arith.constant 0 : i32
    %c0_i32_1 = arith.constant 0 : i32
    return %c0_i32, %c0_i32_0 : i32, i32
  }
  func.func @transform_11(%arg0: i32) -> (i32, i32) {
    %c0_i32 = arith.constant 0 : i32
    %c0_i32_0 = arith.constant 0 : i32
    %c0_i32_1 = arith.constant 0 : i32
    return %c0_i32, %c0_i32_0 : i32, i32
  }
  func.func @transform_12(%arg0: i32) -> (i32, i32) {
    %c0_i32 = arith.constant 0 : i32
    %c0_i32_0 = arith.constant 0 : i32
    %c0_i32_1 = arith.constant 0 : i32
    return %c0_i32, %c0_i32_0 : i32, i32
  }
  func.func @transform_13(%arg0: i32) -> (i32, i32) {
    %c0_i32 = arith.constant 0 : i32
    %c0_i32_0 = arith.constant 0 : i32
    %c0_i32_1 = arith.constant 0 : i32
    return %c0_i32, %c0_i32_0 : i32, i32
  }
  func.func @transform_14(%arg0: i32) -> (i32, i32) {
    %c0_i32 = arith.constant 0 : i32
    %c0_i32_0 = arith.constant 0 : i32
    %c0_i32_1 = arith.constant 0 : i32
    return %c0_i32, %c0_i32_0 : i32, i32
  }
  func.func @transform_15(%arg0: i32) -> (i32, i32) {
    %c0_i32 = arith.constant 0 : i32
    %c0_i32_0 = arith.constant 0 : i32
    %c0_i32_1 = arith.constant 0 : i32
    return %c0_i32, %c0_i32_0 : i32, i32
  }
  func.func @transform_16(%arg0: i32) -> (i32, i32) {
    %c0_i32 = arith.constant 0 : i32
    %c0_i32_0 = arith.constant 0 : i32
    %c0_i32_1 = arith.constant 0 : i32
    return %c0_i32, %c0_i32_0 : i32, i32
  }
  func.func @transform_17(%arg0: i32) -> (i32, i32) {
    %c0_i32 = arith.constant 0 : i32
    %c0_i32_0 = arith.constant 0 : i32
    %c0_i32_1 = arith.constant 0 : i32
    return %c0_i32, %c0_i32_0 : i32, i32
  }
  func.func @transform_18(%arg0: i32) -> (i32, i32) {
    %c0_i32 = arith.constant 0 : i32
    %c0_i32_0 = arith.constant 0 : i32
    %c0_i32_1 = arith.constant 0 : i32
    return %c0_i32, %c0_i32_0 : i32, i32
  }
  func.func @transform_19(%arg0: i32) -> (i32, i32) {
    %c0_i32 = arith.constant 0 : i32
    %c0_i32_0 = arith.constant 0 : i32
    %c0_i32_1 = arith.constant 0 : i32
    return %c0_i32, %c0_i32_0 : i32, i32
  }
  func.func @transform_20(%arg0: i32) -> (i32, i32) {
    %c0_i32 = arith.constant 0 : i32
    %c0_i32_0 = arith.constant 0 : i32
    %c0_i32_1 = arith.constant 0 : i32
    return %c0_i32, %c0_i32_0 : i32, i32
  }
  func.func @transform_21(%arg0: i32) -> (i32, i32) {
    %c0_i32 = arith.constant 0 : i32
    %c0_i32_0 = arith.constant 0 : i32
    %c0_i32_1 = arith.constant 0 : i32
    return %c0_i32, %c0_i32_0 : i32, i32
  }
  func.func @transform_22(%arg0: i32) -> (i32, i32) {
    %c0_i32 = arith.constant 0 : i32
    %c0_i32_0 = arith.constant 0 : i32
    %c0_i32_1 = arith.constant 0 : i32
    return %c0_i32, %c0_i32_0 : i32, i32
  }
  func.func @transform_23(%arg0: i32) -> (i32, i32) {
    %c0_i32 = arith.constant 0 : i32
    %c0_i32_0 = arith.constant 0 : i32
    %c0_i32_1 = arith.constant 0 : i32
    return %c0_i32, %c0_i32_0 : i32, i32
  }
}

</mosaic_0001>

<bundles_post_ra>
// kernel: _generator_forward.1
= control target key start
LH: loop header
LB: loop body
LE: loop exit
PB: predicated region body
PF: predicated region fallthrough
CT: control target
= control target key end

     0   :  { %vm110_vm0 = vcmask 261120   ;;  %s8538_s25 = smov 4   ;;  %vm723_vm1 = vcmask 15360   ;;  %vm732_vm2 = vcmask 31744   ;;  %vm741_vm3 = vcmask 48128   ;;  %s8545_s27 = smov 8   ;;  %s12720_s0 = inlined_call_operand.vmem [shape: f32[32,2], index: 0, kind: input, shape index: {}]   ;;  %s12721_s1 = inlined_call_operand.vmem [shape: f32[256,32], index: 1, kind: input, shape index: {}]   ;;  %s12722_s2 = inlined_call_operand.vmem [shape: f32[64,8], index: 2, kind: input, shape index: {}]   ;;  %s12723_s4 = inlined_call_operand.vmem [shape: f32[64,1], index: 4, kind: input, shape index: {}]   ;;  %s12724_s3 = inlined_call_operand.vmem [shape: f32[64,1], index: 3, kind: input, shape index: {}]   ;;  %s12725_s5 = inlined_call_operand.vmem [shape: f32[1152,64], index: 5, kind: input, shape index: {}]   ;;  %s12726_s6 = inlined_call_operand.vmem [shape: f32[9,8], index: 6, kind: input, shape index: {}]   ;;  %s12727_s9 = inlined_call_operand.vmem [shape: f32[32,1], index: 9, kind: input, shape index: {}]   ;;  %s12728_s7 = inlined_call_operand.vmem [shape: f32[32,32], index: 7, kind: input, shape index: {}]   ;;  %s12729_s8 = inlined_call_operand.vmem [shape: f32[32,1], index: 8, kind: input, shape index: {}]   ;;  %s12730_s10 = inlined_call_operand.vmem [shape: f32[576,32], index: 10, kind: input, shape index: {}]   ;;  %s12731_s11 = inlined_call_operand.vmem [shape: f32[9,32], index: 11, kind: input, shape index: {}]   ;;  %s12732_s14 = inlined_call_operand.vmem [shape: f32[16,1], index: 14, kind: input, shape index: {}]   ;;  %s12733_s12 = inlined_call_operand.vmem [shape: f32[128,128], index: 12, kind: input, shape index: {}]   ;;  %s12734_s13 = inlined_call_operand.vmem [shape: f32[16,1], index: 13, kind: input, shape index: {}]   ;;  %s12735_s15 = inlined_call_operand.vmem [shape: f32[288,16], index: 15, kind: input, shape index: {}]   ;;  %s12736_s16 = inlined_call_operand.vmem [shape: f32[9,128], index: 16, kind: input, shape index: {}]   ;;  %s12737_s17 = inlined_call_operand.vmem [shape: f32[512,512], index: 17, kind: input, shape index: {}]   ;;  %s12738_s19 = inlined_call_operand.vmem [shape: f32[8,1], index: 19, kind: input, shape index: {}]   ;;  %s12739_s18 = inlined_call_operand.vmem [shape: f32[8,1], index: 18, kind: input, shape index: {}]   ;;  %s12740_s22 = inlined_call_operand.vmem [shape: f32[3,1], index: 22, kind: input, shape index: {}]   ;;  %s12741_s20 = inlined_call_operand.vmem [shape: f32[27,8], index: 20, kind: input, shape index: {}]   ;;  %s12742_s21 = inlined_call_operand.vmem [shape: f32[9,512], index: 21, kind: input, shape index: {}]   ;;  %s12743_s23 = inlined_call_operand.vmem [shape: f32[3,512], index: 23, kind: output, shape index: {}]  }
   0x1   :  { %12772 = sst [smem:[#allocation60_spill]] %s12720_s0  ;;  %vm782_vm4 = vcmask 64512   ;;  %vm1136_vm5 = vcmask 523264   ;;  %vm3356_vm6 = vcmask 130048   ;;  %vm3361_vm7 = vcmask 195584   ;;  %s8549_s0 = smov 120  }
   0x2   :  { %12773 = sst [smem:[#allocation61_spill]] %s12721_s1  ;;  %s12780_s24 = sld [smem:[#allocation60_spill]]  ;;  %vm4327_vm8 = vcmask 80896   ;;  %vm4580_vm9 = vcmask 244736   ;;  %vm4641_vm10 = vcmask 211968   ;;  %vm4762_vm11 = vcmask 179200  }
   0x3   :  { %12774 = sst [smem:[#allocation62_spill]] %s12722_s2  ;;  %s12781_s28 = sld [smem:[#allocation61_spill]]  ;;  %vm4819_vm12 = vcmask 785408   ;;  %vm5373_vm13 = vcmask 146432   ;;  %vm5434_vm14 = vcmask 113664   ;;  %vm5511_vm15 = vcmask 1031168  }
   0x4   :  { %12775 = sst [smem:[#allocation63_spill]] %s12723_s4  ;;  %s12782_s2 = sld [smem:[#allocation62_spill]] }
   0x5   :  { %12776 = sst [smem:[#allocation64_spill]] %s12724_s3  ;;  %s12783_s4 = sld [smem:[#allocation63_spill]] }
   0x6   :  { %12777 = sst [smem:[#allocation65_spill]] %s12725_s5  ;;  %s8540_s5 = smov 6  }
   0x7   :  { %12778 = sst [smem:[#allocation66_spill]] %s12726_s6  ;;  %s12784_s29 = sld [smem:[#allocation64_spill]] }
   0x8   :  { %12779 = sst [smem:[#allocation67_spill]] %s12727_s9  ;;  %v74_v0 = vld [vmem:[%s12780_s24] sm:$0xff]  ;;  %v75_v1 = vld [vmem:[%s12780_s24 + $0x8] sm:$0xff]  ;;  %v76_v2 = vld [vmem:[%s12780_s24 + $0x10] sm:$0xff]  ;;  %s12785_s30 = sld [smem:[#allocation65_spill]] }
   0x9   :  { %v8104_v3 = vpack.c.bf16 %v75_v1, %v74_v0  ;;  %v77_v4 = vld [vmem:[%s12780_s24 + $0x18] sm:$0xff]  ;;  %v78_v5 = vld [vmem:[%s12781_s28] sm:$0xff]  ;;  %v79_v8 = vld [vmem:[%s12781_s28 + $0x8] sm:$0xff]  ;;  %s8543_s24 = smov 124   ;;  %s8544_s1 = smov 122  }
   0xa   :  { %v94_v6 = vld [vmem:[%s12781_s28 + $0x80] sm:$0xff]  ;;  %v8108_v7 = vpack.c.bf16 %v77_v4, %v76_v2  ;;  %7577 = vmatprep.mubr.msk.f32.mxu1 %vm110_vm0, %v78_v5  ;;  %v95_v9 = vld [vmem:[%s12781_s28 + $0x88] sm:$0xff]  ;;  %v80_v10 = vld [vmem:[%s12781_s28 + $0x10] sm:$0xff]  ;;  %s8546_s9 = smov 16   ;;  %s8550_s3 = smov 118  }
   0xb   :  { %7617 = vmatprep.mubr.msk.f32.mxu0 %vm110_vm0, %v94_v6  ;;  %8105 = vmatprep.subr.bf16.mxu1 %v8104_v3  ;;  %v96_v11 = vld [vmem:[%s12781_s28 + $0x90] sm:$0xff]  ;;  %v81_v12 = vld [vmem:[%s12781_s28 + $0x18] sm:$0xff]  ;;  %v82_v14 = vld [vmem:[%s12781_s28 + $0x20] sm:$0xff] }
   0xc   :  { %8121 = vmatprep.subr.bf16.mxu0 %v8104_v3  ;;  %8107 = vmatpush3.bf16.msra.mxu1 %v8104_v3  ;;  %v97_v13 = vld [vmem:[%s12781_s28 + $0x98] sm:$0xff]  ;;  %v98_v15 = vld [vmem:[%s12781_s28 + $0xa0] sm:$0xff]  ;;  %v83_v16 = vld [vmem:[%s12781_s28 + $0x28] sm:$0xff] }
   0xd   :  { %8123 = vmatpush3.bf16.msra.mxu0 %v8104_v3  ;;  %8109 = vmatprep.subr.bf16.mxu1 %v8108_v7  ;;  %v99_v17 = vld [vmem:[%s12781_s28 + $0xa8] sm:$0xff]  ;;  %v84_v18 = vld [vmem:[%s12781_s28 + $0x30] sm:$0xff]  ;;  %v85_v20 = vld [vmem:[%s12781_s28 + $0x38] sm:$0xff] }
   0xe   :  { %8125 = vmatprep.subr.bf16.mxu0 %v8108_v7  ;;  %v100_v19 = vld [vmem:[%s12781_s28 + $0xb0] sm:$0xff]  ;;  %v101_v21 = vld [vmem:[%s12781_s28 + $0xb8] sm:$0xff]  ;;  %v86_v22 = vld [vmem:[%s12781_s28 + $0x40] sm:$0xff] }
   0xf   :  { %v87_v23 = vld [vmem:[%s12781_s28 + $0x48] sm:$0xff]  ;;  %v88_v24 = vld [vmem:[%s12781_s28 + $0x50] sm:$0xff]  ;;  %v89_v25 = vld [vmem:[%s12781_s28 + $0x58] sm:$0xff] }
  0x10   :  { %8111 = vmatpush3.bf16.msra.mxu1 %v8108_v7  ;;  %v90_v26 = vld [vmem:[%s12781_s28 + $0x60] sm:$0xff]  ;;  %v91_v27 = vld [vmem:[%s12781_s28 + $0x68] sm:$0xff]  ;;  %v92_v28 = vld [vmem:[%s12781_s28 + $0x70] sm:$0xff] }
  0x11   :  { %8127 = vmatpush3.bf16.msra.mxu0 %v8108_v7  ;;  %8113 = vmatprep.subr.bf16.mxu1 %v8104_v3  ;;  %v93_v29 = vld [vmem:[%s12781_s28 + $0x78] sm:$0xff]  ;;  %v102_v30 = vld [vmem:[%s12781_s28 + $0xc0] sm:$0xff]  ;;  %v103_v31 = vld [vmem:[%s12781_s28 + $0xc8] sm:$0xff] }
  0x12   :  { %v104_v32 = vld [vmem:[%s12781_s28 + $0xd0] sm:$0xff]  ;;  %v105_v33 = vld [vmem:[%s12781_s28 + $0xd8] sm:$0xff]  ;;  %v106_v34 = vld [vmem:[%s12781_s28 + $0xe0] sm:$0xff] }
  0x13   :  { %7578 = vmatmul.mubr.msk.f32.vlgmr.msra.gmra.mrb[0].mxu1 %vm110_vm0, %v79_v8  ;;  %v107_v35 = vld [vmem:[%s12781_s28 + $0xe8] sm:$0xff]  ;;  %v108_v36 = vld [vmem:[%s12781_s28 + $0xf0] sm:$0xff]  ;;  %v109_v37 = vld [vmem:[%s12781_s28 + $0xf8] sm:$0xff]  ;;  %s8539_s28 = smov 2  }
  0x14   :  { %7618 = vmatmul.mubr.msk.f32.vlgmr.msra.gmra.mrb[0].mxu0 %vm110_vm0, %v95_v9  ;;  %7580 = vmatprep.mubr.msk.f32.mxu1 %vm110_vm0, %v80_v10 }
  0x15   :  { %7620 = vmatprep.mubr.msk.f32.mxu0 %vm110_vm0, %v96_v11  ;;  %8115 = vmatpush3.bf16.msra.mxu1 %v8104_v3 }
  0x16   :  { %8117 = vmatprep.subr.bf16.mxu1 %v8108_v7 }
  0x17   :  { %7581 = vmatmul.mubr.msk.f32.gmra.mrb[2].mxu1 %vm110_vm0, %v81_v12 }
  0x18   :  { %7621 = vmatmul.mubr.msk.f32.gmra.mrb[2].mxu0 %vm110_vm0, %v97_v13  ;;  %7583 = vmatprep.mubr.msk.f32.mxu1 %vm110_vm0, %v82_v14 }
  0x19   :  { %7623 = vmatprep.mubr.msk.f32.mxu0 %vm110_vm0, %v98_v15  ;;  %8119 = vmatpush3.bf16.msra.mxu1 %v8108_v7 }
  0x1a   :  { %8129 = vmatprep.subr.bf16.mxu1 %v8104_v3 }
  0x1b   :  { %7584 = vmatmul.mubr.msk.f32.gmra.mrb[4].mxu1 %vm110_vm0, %v83_v16 }
  0x1c   :  { %7624 = vmatmul.mubr.msk.f32.gmra.mrb[4].mxu0 %vm110_vm0, %v99_v17  ;;  %7586 = vmatprep.mubr.msk.f32.mxu1 %vm110_vm0, %v84_v18 }
  0x1d   :  { %7626 = vmatprep.mubr.msk.f32.mxu0 %vm110_vm0, %v100_v19 }
  0x1f   :  { %7587 = vmatmul.mubr.msk.f32.gmra.mrb[6].mxu1 %vm110_vm0, %v85_v20 }
  0x20   :  { %7627 = vmatmul.mubr.msk.f32.gmra.mrb[6].mxu0 %vm110_vm0, %v101_v21  ;;  %7597 = vmatprep.mubr.msk.f32.mxu1 %vm110_vm0, %v86_v22  ;;  %v751_v22 = vld [vmem:[%s12782_s2 + $0x8] sm:$0xff] }
  0x23   :  { %7598 = vmatmul.mubr.msk.f32.vlgmr.msra.gmra.mrb[8].mxu1 %vm110_vm0, %v87_v23 }
  0x24   :  { %7600 = vmatprep.mubr.msk.f32.mxu1 %vm110_vm0, %v88_v24  ;;  %8131 = vmatpush3.bf16.msra.mxu1 %v8104_v3 }
  0x25   :  { %8133 = vmatprep.subr.bf16.mxu1 %v8108_v7 }
  0x27   :  { %7601 = vmatmul.mubr.msk.f32.gmra.mrb[10].mxu1 %vm110_vm0, %v89_v25 }
  0x28   :  { %7603 = vmatprep.mubr.msk.f32.mxu1 %vm110_vm0, %v90_v26  ;;  %8135 = vmatpush3.bf16.msra.mxu1 %v8108_v7 }
  0x2b   :  { %7604 = vmatmul.mubr.msk.f32.gmra.mrb[12].mxu1 %vm110_vm0, %v91_v27 }
  0x2c   :  { %7606 = vmatprep.mubr.msk.f32.mxu1 %vm110_vm0, %v92_v28 }
  0x2f   :  { %7607 = vmatmul.mubr.msk.f32.gmra.mrb[14].mxu1 %vm110_vm0, %v93_v29 }
  0x30   :  { %7637 = vmatprep.mubr.msk.f32.mxu1 %vm110_vm0, %v102_v30 }
  0x33   :  { %7638 = vmatmul.mubr.msk.f32.vlgmr.msra.gmra.mrb[16].mxu1 %vm110_vm0, %v103_v31 }
  0x34   :  { %7640 = vmatprep.mubr.msk.f32.mxu1 %vm110_vm0, %v104_v32  ;;  %v750_v32 = vld [vmem:[%s12782_s2] sm:$0xff] }
  0x37   :  { %7641 = vmatmul.mubr.msk.f32.gmra.mrb[18].mxu1 %vm110_vm0, %v105_v33 }
  0x38   :  { %7643 = vmatprep.mubr.msk.f32.mxu1 %vm110_vm0, %v106_v34 }
  0x3b   :  { %7644 = vmatmul.mubr.msk.f32.gmra.mrb[20].mxu1 %vm110_vm0, %v107_v35 }
  0x3c   :  { %7646 = vmatprep.mubr.msk.f32.mxu1 %vm110_vm0, %v108_v36 }
  0x3f   :  { %7647 = vmatmul.mubr.msk.f32.gmra.mrb[22].mxu1 %vm110_vm0, %v109_v37 }
  0xe6   :  { %v8824_v38 = vpop.f32.mrb[0].mxu1 }
  0xe7   :  { %v7619_v39 = vpop.f32.mrb[0].mxu0  ;;  %v8827_v40 = vpop.f32.mrb[1].mxu1 }
  0xe8   :  { %669 = vrot.lane.b32.xlu1 %v7619_v39, %s8538_s25  ;;  %v459_v41 = vpop.f32.mrb[1].mxu0  ;;  %v753_v39 = vld [vmem:[%s12782_s2 + $0x18] sm:$0xff] }
  0xea   :  { %v8829_v42 = vpop.f32.mrb[2].mxu1 }
  0xeb   :  { %v7622_v43 = vpop.f32.mrb[2].mxu0  ;;  %v8832_v44 = vpop.f32.mrb[3].mxu1 }
  0xec   :  { %667 = vrot.lane.b32.xlu1 %v459_v41, %s8538_s25  ;;  %v469_v45 = vpop.f32.mrb[3].mxu0 }
  0xed   :  { %671 = vrot.lane.b32.xlu0 %v469_v45, %s8538_s25 }
  0xee   :  { %v8835_v46 = vpop.f32.mrb[4].mxu1 }
  0xef   :  { %v7625_v47 = vpop.f32.mrb[4].mxu0  ;;  %v8838_v48 = vpop.f32.mrb[5].mxu1 }
  0xf0   :  { %673 = vrot.lane.b32.xlu1 %v7622_v43, %s8538_s25  ;;  %v479_v49 = vpop.f32.mrb[5].mxu0 }
  0xf1   :  { %675 = vrot.lane.b32.xlu0 %v479_v49, %s8538_s25 }
  0xf2   :  { %v8841_v50 = vpop.f32.mrb[6].mxu1 }
  0xf3   :  { %v7628_v51 = vpop.f32.mrb[6].mxu0  ;;  %v8844_v52 = vpop.f32.mrb[7].mxu1 }
  0xf4   :  { %677 = vrot.lane.b32.xlu1 %v7625_v47, %s8538_s25  ;;  %v489_v53 = vpop.f32.mrb[7].mxu0 }
  0xf5   :  { %679 = vrot.lane.b32.xlu0 %v489_v53, %s8538_s25  ;;  %v752_v53 = vld [vmem:[%s12782_s2 + $0x10] sm:$0xff] }
  0xf6   :  { %v7599_v54 = vpop.f32.mrb[8].mxu1 }
  0xf7   :  { %v330_v55 = vpop.f32.mrb[9].mxu1 }
  0xf8   :  { %681 = vrot.lane.b32.xlu1 %v7628_v51, %s8538_s25 }
  0xf9   :  { %637 = vrot.lane.b32.xlu0 %v7599_v54, %s8539_s28 }
  0xfa   :  { %v7602_v56 = vpop.f32.mrb[10].mxu1 }
  0xfb   :  { %v340_v57 = vpop.f32.mrb[11].mxu1 }
  0xfc   :  { %641 = vrot.lane.b32.xlu1 %v7602_v56, %s8539_s28 }
  0xfd   :  { %635 = vrot.lane.b32.xlu0 %v330_v55, %s8539_s28 }
  0xfe   :  { %v7605_v58 = vpop.f32.mrb[12].mxu1 }
  0xff   :  { %v350_v59 = vpop.f32.mrb[13].mxu1 }
 0x100   :  { %645 = vrot.lane.b32.xlu1 %v7605_v58, %s8539_s28 }
 0x101   :  { %639 = vrot.lane.b32.xlu0 %v340_v57, %s8539_s28 }
 0x102   :  { %v7608_v60 = vpop.f32.mrb[14].mxu1 }
 0x103   :  { %v360_v61 = vpop.f32.mrb[15].mxu1 }
 0x104   :  { %649 = vrot.lane.b32.xlu1 %v7608_v60, %s8539_s28 }
 0x105   :  { %643 = vrot.lane.b32.xlu0 %v350_v59, %s8539_s28 }
 0x106   :  { %v7639_v62 = vpop.f32.mrb[16].mxu1 }
 0x107   :  { %v588_v63 = vpop.f32.mrb[17].mxu1 }
 0x108   :  { %701 = vrot.lane.b32.xlu1 %v7639_v62, %s8540_s5  ;;  %v755_v62 = vld [vmem:[%s12782_s2 + $0x28] sm:$0xff] }
 0x109   :  { %647 = vrot.lane.b32.xlu0 %v360_v61, %s8539_s28 }
 0x10a   :  { %v7642_v0 = vpop.f32.mrb[18].mxu1 }
 0x10b   :  { %v598_v1 = vpop.f32.mrb[19].mxu1 }
 0x10c   :  { %705 = vrot.lane.b32.xlu1 %v7642_v0, %s8540_s5 }
 0x10d   :  { %699 = vrot.lane.b32.xlu0 %v588_v63, %s8540_s5 }
 0x10e   :  { %v7645_v2 = vpop.f32.mrb[20].mxu1 }
 0x10f   :  { %v608_v3 = vpop.f32.mrb[21].mxu1 }
 0x110   :  { %709 = vrot.lane.b32.xlu1 %v7645_v2, %s8540_s5 }
 0x111   :  { %703 = vrot.lane.b32.xlu0 %v598_v1, %s8540_s5  ;;  %v756_v1 = vld [vmem:[%s12782_s2 + $0x30] sm:$0xff] }
 0x112   :  { %v7648_v4 = vpop.f32.mrb[22].mxu1 }
 0x113   :  { %v618_v5 = vpop.f32.mrb[23].mxu1 }
 0x114   :  { %713 = vrot.lane.b32.xlu1 %v7648_v4, %s8540_s5 }
 0x115   :  { %707 = vrot.lane.b32.xlu0 %v608_v3, %s8540_s5 }
 0x119   :  { %711 = vrot.lane.b32.xlu0 %v618_v5, %s8540_s5 }
 0x15a   :  { %v670_v6 = vpop.permute.xlu1 %669 }
 0x15e   :  { %v668_v7 = vpop.permute.xlu1 %667 }
 0x15f   :  { %v672_v8 = vpop.permute.xlu0 %671 }
 0x162   :  { %v674_v9 = vpop.permute.xlu1 %673 }
 0x163   :  { %v676_v10 = vpop.permute.xlu0 %675 }
 0x166   :  { %v678_v11 = vpop.permute.xlu1 %677 }
 0x167   :  { %v680_v12 = vpop.permute.xlu0 %679 }
 0x16a   :  { %v682_v13 = vpop.permute.xlu1 %681 }
 0x16b   :  { %v638_v14 = vpop.permute.xlu0 %637 }
 0x16c   :  { %v725_v20 = vsel %vm723_vm1, %v8824_v38, %v638_v14  ;;  %v8541_v14 = vmov 0  }
 0x16d   :  { %v734_v23 = vsel %vm732_vm2, %v725_v20, %v670_v6  ;;  %8491 = vset.pattern.permute.xlu1 %v8541_v14  ;;  %8490 = vset.pattern.permute.xlu0 %v8541_v14 }
 0x16e   :  { %v642_v15 = vpop.permute.xlu1 %641 }
 0x16f   :  { %v636_v16 = vpop.permute.xlu0 %635  ;;  %v727_v27 = vsel %vm723_vm1, %v8829_v42, %v642_v15 }
 0x170   :  { %v724_v28 = vsel %vm723_vm1, %v8827_v40, %v636_v16  ;;  %v736_v33 = vsel %vm732_vm2, %v727_v27, %v674_v9 }
 0x171   :  { %v733_v34 = vsel %vm732_vm2, %v724_v28, %v668_v7 }
 0x172   :  { %v646_v17 = vpop.permute.xlu1 %645 }
 0x173   :  { %v640_v18 = vpop.permute.xlu0 %639  ;;  %v729_v41 = vsel %vm723_vm1, %v8835_v46, %v646_v17  ;;  %v754_v46 = vld [vmem:[%s12782_s2 + $0x20] sm:$0xff] }
 0x174   :  { %v726_v36 = vsel %vm723_vm1, %v8832_v44, %v640_v18  ;;  %v738_v54 = vsel %vm732_vm2, %v729_v41, %v678_v11 }
 0x175   :  { %v735_v43 = vsel %vm732_vm2, %v726_v36, %v672_v8  ;;  %v757_v8 = vld [vmem:[%s12782_s2 + $0x38] sm:$0xff]  ;;  %s8547_s2 = smov 24  }
 0x176   :  { %v650_v19 = vpop.permute.xlu1 %649 }
 0x177   :  { %v644_v21 = vpop.permute.xlu0 %643  ;;  %v731_v55 = vsel %vm723_vm1, %v8841_v50, %v650_v19 }
 0x178   :  { %v728_v44 = vsel %vm723_vm1, %v8838_v48, %v644_v21  ;;  %v740_v0 = vsel %vm732_vm2, %v731_v55, %v682_v13 }
 0x179   :  { %v737_v56 = vsel %vm732_vm2, %v728_v44, %v676_v10 }
 0x17a   :  { %v702_v24 = vpop.permute.xlu1 %701 }
 0x17b   :  { %v743_v25 = vsel %vm741_vm3, %v734_v23, %v702_v24  ;;  %v648_v26 = vpop.permute.xlu0 %647 }
 0x17c   :  { %v759_v29 = vadd.f32 %v751_v22, %v743_v25  ;;  %v730_v59 = vsel %vm723_vm1, %v8844_v52, %v648_v26 }
 0x17d   :  { %v739_v2 = vsel %vm732_vm2, %v730_v59, %v680_v12  ;;  %v776_v59 = vld [vmem:[%s12783_s4 + $0x10] sm:$0xff] }
 0x17e   :  { %v706_v30 = vpop.permute.xlu1 %705  ;;  %v786_v31 = vsel %vm782_vm4, %v759_v29, 0.0 }
 0x17f   :  { %v700_v35 = vpop.permute.xlu0 %699  ;;  %787 = vadd.xlane.f32.xlu1 %v786_v31  ;;  %v745_v37 = vsel %vm741_vm3, %v736_v33, %v706_v30 }
 0x180   :  { %v742_v38 = vsel %vm741_vm3, %v733_v34, %v700_v35  ;;  %v761_v49 = vadd.f32 %v753_v39, %v745_v37 }
 0x181   :  { %v758_v40 = vadd.f32 %v750_v32, %v742_v38 }
 0x182   :  { %v710_v42 = vpop.permute.xlu1 %709  ;;  %v792_v48 = vsel %vm782_vm4, %v761_v49, 0.0 }
 0x183   :  { %v704_v45 = vpop.permute.xlu0 %703  ;;  %v783_v47 = vsel %vm782_vm4, %v758_v40, 0.0  ;;  %v747_v60 = vsel %vm741_vm3, %v738_v54, %v710_v42 }
 0x184   :  { %v744_v51 = vsel %vm741_vm3, %v735_v43, %v704_v45  ;;  %784 = vadd.xlane.f32.xlu0 %v783_v47  ;;  %v763_v5 = vadd.f32 %v755_v62, %v747_v60  ;;  %v777_v60 = vld [vmem:[%s12783_s4 + $0x18] sm:$0xff] }
 0x185   :  { %v760_v58 = vadd.f32 %v752_v53, %v744_v51 }
 0x186   :  { %v714_v63 = vpop.permute.xlu1 %713  ;;  %v798_v10 = vsel %vm782_vm4, %v763_v5, 0.0 }
 0x187   :  { %v708_v57 = vpop.permute.xlu0 %707  ;;  %v789_v4 = vsel %vm782_vm4, %v760_v58, 0.0  ;;  %v749_v6 = vsel %vm741_vm3, %v740_v0, %v714_v63 }
 0x188   :  { %v746_v61 = vsel %vm741_vm3, %v737_v56, %v708_v57  ;;  %793 = vadd.xlane.f32.xlu0 %v792_v48  ;;  %v765_v12 = vadd.f32 %v757_v8, %v749_v6  ;;  %v774_v48 = vld [vmem:[%s12783_s4] sm:$0xff]  ;;  %v767_v6 = vld [vmem:[%s12784_s29 + $0x8] sm:$0xff] }
 0x189   :  { %v762_v50 = vadd.f32 %v754_v46, %v746_v61  ;;  %v779_v61 = vld [vmem:[%s12783_s4 + $0x28] sm:$0xff] }
 0x18a   :  { %v804_v13 = vsel %vm782_vm4, %v765_v12, 0.0 }
 0x18b   :  { %v712_v52 = vpop.permute.xlu0 %711  ;;  %v795_v3 = vsel %vm782_vm4, %v762_v50, 0.0 }
 0x18c   :  { %v748_v7 = vsel %vm741_vm3, %v739_v2, %v712_v52  ;;  %796 = vadd.xlane.f32.xlu1 %v795_v3  ;;  %790 = vadd.xlane.f32.xlu0 %v789_v4 }
 0x18d   :  { %v764_v9 = vadd.f32 %v756_v1, %v748_v7 }
 0x18f   :  { %v801_v11 = vsel %vm782_vm4, %v764_v9, 0.0 }
 0x190   :  { %799 = vadd.xlane.f32.xlu0 %v798_v10  ;;  %802 = vadd.xlane.f32.xlu1 %v801_v11 }
 0x194   :  { %805 = vadd.xlane.f32.xlu0 %v804_v13 }
 0x20c   :  { %v788_v15 = vpop.xlane.xlu1 %787 }
 0x20d   :  { %v809_v16 = vmul.f32 0.125, %v788_v15  ;;  %v766_v15 = vld [vmem:[%s12784_s29] sm:$0xff] }
 0x20f   :  { %v8928_v17 = vsub.f32 %v759_v29, %v809_v16  ;;  %v778_v16 = vld [vmem:[%s12783_s4 + $0x20] sm:$0xff] }
 0x211   :  { %v785_v18 = vpop.xlane.xlu0 %784  ;;  %v825_v19 = vmul.f32 %v8928_v17, %v8928_v17 }
 0x212   :  { %v808_v20 = vmul.f32 0.125, %v785_v18 }
 0x213   :  { %v835_v21 = vsel %vm782_vm4, %v825_v19, 0.0 }
 0x214   :  { %v8933_v22 = vsub.f32 %v758_v40, %v808_v20  ;;  %836 = vadd.xlane.f32.xlu0 %v835_v21 }
 0x215   :  { %v794_v23 = vpop.xlane.xlu0 %793 }
 0x216   :  { %v811_v24 = vmul.f32 0.125, %v794_v23  ;;  %v824_v25 = vmul.f32 %v8933_v22, %v8933_v22 }
 0x218   :  { %v8937_v26 = vsub.f32 %v761_v49, %v811_v24  ;;  %v832_v27 = vsel %vm782_vm4, %v824_v25, 0.0 }
 0x219   :  { %v797_v28 = vpop.xlane.xlu1 %796  ;;  %833 = vadd.xlane.f32.xlu1 %v832_v27  ;;  %v791_v29 = vpop.xlane.xlu0 %790 }
 0x21a   :  { %v812_v30 = vmul.f32 0.125, %v797_v28  ;;  %v810_v31 = vmul.f32 0.125, %v791_v29  ;;  %v827_v32 = vmul.f32 %v8937_v26, %v8937_v26  ;;  %v769_v28 = vld [vmem:[%s12784_s29 + $0x18] sm:$0xff] }
 0x21c   :  { %v8942_v33 = vsub.f32 %v762_v50, %v812_v30  ;;  %v8944_v34 = vsub.f32 %v760_v58, %v810_v31  ;;  %v841_v35 = vsel %vm782_vm4, %v827_v32, 0.0  ;;  %v775_v58 = vld [vmem:[%s12783_s4 + $0x8] sm:$0xff] }
 0x21d   :  { %v803_v36 = vpop.xlane.xlu1 %802  ;;  %842 = vadd.xlane.f32.xlu0 %v841_v35  ;;  %v800_v37 = vpop.xlane.xlu0 %799  ;;  %v768_v35 = vld [vmem:[%s12784_s29 + $0x10] sm:$0xff] }
 0x21e   :  { %v814_v38 = vmul.f32 0.125, %v803_v36  ;;  %v813_v39 = vmul.f32 0.125, %v800_v37  ;;  %v826_v40 = vmul.f32 %v8944_v34, %v8944_v34  ;;  %v828_v45 = vmul.f32 %v8942_v33, %v8942_v33 }
 0x220   :  { %v8949_v41 = vsub.f32 %v764_v9, %v814_v38  ;;  %v8951_v42 = vsub.f32 %v763_v5, %v813_v39  ;;  %v838_v43 = vsel %vm782_vm4, %v826_v40, 0.0  ;;  %v844_v53 = vsel %vm782_vm4, %v828_v45, 0.0  ;;  %v771_v38 = vld [vmem:[%s12784_s29 + $0x28] sm:$0xff] }
 0x221   :  { %839 = vadd.xlane.f32.xlu1 %v838_v43  ;;  %v806_v47 = vpop.xlane.xlu0 %805  ;;  %v772_v43 = vld [vmem:[%s12784_s29 + $0x30] sm:$0xff] }
 0x222   :  { %v815_v49 = vmul.f32 0.125, %v806_v47  ;;  %v829_v44 = vmul.f32 %v8951_v42, %v8951_v42  ;;  %v830_v46 = vmul.f32 %v8949_v41, %v8949_v41  ;;  %v770_v47 = vld [vmem:[%s12784_s29 + $0x20] sm:$0xff] }
 0x224   :  { %v8958_v51 = vsub.f32 %v765_v12, %v815_v49  ;;  %v847_v54 = vsel %vm782_vm4, %v829_v44, 0.0  ;;  %v850_v56 = vsel %vm782_vm4, %v830_v46, 0.0  ;;  %v773_v46 = vld [vmem:[%s12784_s29 + $0x38] sm:$0xff]  ;;  %s8542_s29 = smov 126  }
 0x225   :  { %845 = vadd.xlane.f32.xlu1 %v844_v53  ;;  %848 = vadd.xlane.f32.xlu0 %v847_v54 }
 0x226   :  { %v831_v55 = vmul.f32 %v8958_v51, %v8958_v51 }
 0x228   :  { %v853_v57 = vsel %vm782_vm4, %v831_v55, 0.0  ;;  %v780_v55 = vld [vmem:[%s12783_s4 + $0x30] sm:$0xff] }
 0x229   :  { %851 = vadd.xlane.f32.xlu1 %v850_v56  ;;  %854 = vadd.xlane.f32.xlu0 %v853_v57  ;;  %v781_v57 = vld [vmem:[%s12783_s4 + $0x38] sm:$0xff]  ;;  %s12787_s4 = sld [smem:[#allocation66_spill]] }
 0x23a   :  { %938 = vperm.xlu1 %8491, %v774_v48   ;;  %v992_v48 = vld [vmem:[%s12785_s30] sm:$0xff] }
 0x23b   :  { %7665 = vmatprep.mubr.msk.f32.mxu0 %vm1136_vm5, %v992_v48  ;;  %v1012_v48 = vld [vmem:[%s12785_s30 + $0xa0] sm:$0xff] }
 0x23e   :  { %943 = vperm.xlu1 %8491, %v775_v58  }
 0x242   :  { %948 = vperm.xlu1 %8491, %v776_v59  }
 0x246   :  { %953 = vperm.xlu1 %8491, %v777_v60  }
 0x24a   :  { %963 = vperm.xlu1 %8491, %v779_v61  }
 0x2a1   :  { %v837_v62 = vpop.xlane.xlu0 %836 }
 0x2a2   :  { %v857_v63 = vmul.f32 0.125, %v837_v62 }
 0x2a4   :  { %v865_v50 = vadd.f32 1e-05, %v857_v63 }
 0x2a6   :  { %8492 = vrsqrt.f32 %v865_v50  ;;  %v834_v0 = vpop.xlane.xlu1 %833 }
 0x2a7   :  { %v856_v1 = vmul.f32 0.125, %v834_v0 }
 0x2a9   :  { %v864_v2 = vadd.f32 1e-05, %v856_v1 }
 0x2aa   :  { %v843_v52 = vpop.xlane.xlu0 %842 }
 0x2ab   :  { %8494 = vrsqrt.f32 %v864_v2  ;;  %v859_v3 = vmul.f32 0.125, %v843_v52 }
 0x2ad   :  { %v867_v4 = vadd.f32 1e-05, %v859_v3 }
 0x2ae   :  { %v840_v5 = vpop.xlane.xlu1 %839 }
 0x2af   :  { %8496 = vrsqrt.f32 %v867_v4  ;;  %v858_v7 = vmul.f32 0.125, %v840_v5 }
 0x2b0   :  { %v8493_v8 = vpop.eup %8492 }
 0x2b1   :  { %v866_v9 = vadd.f32 1e-05, %v858_v7  ;;  %v881_v10 = vmul.f32 %v8493_v8, %v767_v6 }
 0x2b2   :  { %v846_v11 = vpop.xlane.xlu1 %845  ;;  %v849_v12 = vpop.xlane.xlu0 %848 }
 0x2b3   :  { %8498 = vrsqrt.f32 %v866_v9  ;;  %v860_v13 = vmul.f32 0.125, %v846_v11  ;;  %v861_v14 = vmul.f32 0.125, %v849_v12  ;;  %895 = vperm.xlu0 %8490, %v881_v10  }
 0x2b5   :  { %v8495_v18 = vpop.eup %8494  ;;  %v869_v19 = vadd.f32 1e-05, %v861_v14  ;;  %v868_v20 = vadd.f32 1e-05, %v860_v13 }
 0x2b6   :  { %v852_v21 = vpop.xlane.xlu1 %851  ;;  %v855_v23 = vpop.xlane.xlu0 %854  ;;  %v880_v24 = vmul.f32 %v8495_v18, %v766_v15 }
 0x2b7   :  { %v862_v25 = vmul.f32 0.125, %v852_v21  ;;  %v863_v27 = vmul.f32 0.125, %v855_v23  ;;  %958 = vperm.xlu0 %8490, %v778_v16   ;;  %8500 = vrsqrt.f32 %v869_v19 }
 0x2b8   :  { %890 = vperm.xlu1 %8491, %v880_v24   ;;  %8502 = vrsqrt.f32 %v868_v20 }
 0x2b9   :  { %v8497_v29 = vpop.eup %8496  ;;  %v870_v30 = vadd.f32 1e-05, %v862_v25  ;;  %v871_v31 = vadd.f32 1e-05, %v863_v27 }
 0x2ba   :  { %v883_v32 = vmul.f32 %v8497_v29, %v769_v28  ;;  %v939_v58 = vpop.permute.xlu1 %938 }
 0x2bb   :  { %8504 = vrsqrt.f32 %v870_v30 }
 0x2bc   :  { %905 = vperm.xlu1 %8491, %v883_v32   ;;  %8506 = vrsqrt.f32 %v871_v31 }
 0x2bd   :  { %v8499_v36 = vpop.eup %8498 }
 0x2be   :  { %v882_v37 = vmul.f32 %v8499_v36, %v768_v35  ;;  %v944_v59 = vpop.permute.xlu1 %943  ;;  %v996_v36 = vld [vmem:[%s12785_s30 + $0x20] sm:$0xff] }
 0x2c0   :  { %900 = vperm.xlu1 %8491, %v882_v37   ;;  %v997_v37 = vld [vmem:[%s12785_s30 + $0x28] sm:$0xff] }
 0x2c1   :  { %v8501_v39 = vpop.eup %8500 }
 0x2c2   :  { %v885_v40 = vmul.f32 %v8501_v39, %v771_v38  ;;  %v8503_v45 = vpop.eup %8502  ;;  %v949_v60 = vpop.permute.xlu1 %948  ;;  %v998_v38 = vld [vmem:[%s12785_s30 + $0x30] sm:$0xff]  ;;  %v999_v39 = vld [vmem:[%s12785_s30 + $0x38] sm:$0xff] }
 0x2c3   :  { %v884_v53 = vmul.f32 %v8503_v45, %v770_v47  ;;  %v1002_v45 = vld [vmem:[%s12785_s30 + $0x50] sm:$0xff]  ;;  %v1003_v47 = vld [vmem:[%s12785_s30 + $0x58] sm:$0xff] }
 0x2c4   :  { %915 = vperm.xlu1 %8491, %v885_v40   ;;  %v1000_v40 = vld [vmem:[%s12785_s30 + $0x40] sm:$0xff] }
 0x2c5   :  { %v8505_v49 = vpop.eup %8504 }
 0x2c6   :  { %v886_v44 = vmul.f32 %v8505_v49, %v772_v43  ;;  %v8507_v54 = vpop.eup %8506  ;;  %v954_v61 = vpop.permute.xlu1 %953  ;;  %v1001_v43 = vld [vmem:[%s12785_s30 + $0x48] sm:$0xff]  ;;  %v1004_v49 = vld [vmem:[%s12785_s30 + $0x60] sm:$0xff] }
 0x2c7   :  { %v887_v56 = vmul.f32 %v8507_v54, %v773_v46  ;;  %v1007_v54 = vld [vmem:[%s12785_s30 + $0x78] sm:$0xff]  ;;  %v1008_v46 = vld [vmem:[%s12785_s30 + $0x80] sm:$0xff] }
 0x2c8   :  { %920 = vperm.xlu0 %8490, %v886_v44   ;;  %910 = vperm.xlu1 %8491, %v884_v53   ;;  %v1005_v44 = vld [vmem:[%s12785_s30 + $0x68] sm:$0xff]  ;;  %v1006_v53 = vld [vmem:[%s12785_s30 + $0x70] sm:$0xff] }
 0x2ca   :  { %v964_v63 = vpop.permute.xlu1 %963 }
 0x2cc   :  { %968 = vperm.xlu0 %8490, %v780_v55   ;;  %925 = vperm.xlu1 %8491, %v887_v56   ;;  %v1009_v55 = vld [vmem:[%s12785_s30 + $0x88] sm:$0xff]  ;;  %v1010_v56 = vld [vmem:[%s12785_s30 + $0x90] sm:$0xff] }
 0x2d0   :  { %973 = vperm.xlu1 %8491, %v781_v57   ;;  %v1011_v57 = vld [vmem:[%s12785_s30 + $0x98] sm:$0xff] }
 0x332   :  { %v896_v62 = vpop.permute.xlu0 %895 }
 0x333   :  { %v929_v50 = vmul.f32 %v896_v62, %v8928_v17  ;;  %v1017_v62 = vld [vmem:[%s12785_s30 + $0xc8] sm:$0xff] }
 0x335   :  { %v977_v1 = vadd.f32 %v944_v59, %v929_v50  ;;  %v1014_v59 = vld [vmem:[%s12785_s30 + $0xb0] sm:$0xff]  ;;  %v1019_v50 = vld [vmem:[%s12785_s30 + $0xd8] sm:$0xff] }
 0x336   :  { %v959_v12 = vpop.permute.xlu0 %958 }
 0x337   :  { %v891_v0 = vpop.permute.xlu1 %890  ;;  %v985_v4 = vmax.f32 %v977_v1, 0.0  ;;  %v1021_v1 = vld [vmem:[%s12785_s30 + $0xe8] sm:$0xff] }
 0x338   :  { %v928_v2 = vmul.f32 %v891_v0, %v8933_v22  ;;  %v1020_v0 = vld [vmem:[%s12785_s30 + $0xe0] sm:$0xff] }
 0x33a   :  { %v976_v52 = vadd.f32 %v939_v58, %v928_v2  ;;  %v1013_v58 = vld [vmem:[%s12785_s30 + $0xa8] sm:$0xff]  ;;  %v1022_v2 = vld [vmem:[%s12785_s30 + $0xf0] sm:$0xff] }
 0x33b   :  { %v906_v3 = vpop.permute.xlu1 %905 }
 0x33c   :  { %v984_v5 = vmax.f32 %v976_v52, 0.0  ;;  %v931_v6 = vmul.f32 %v906_v3, %v8937_v26  ;;  %v1023_v52 = vld [vmem:[%s12785_s30 + $0xf8] sm:$0xff]  ;;  %v1024_v3 = vld [vmem:[%s12785_s30 + $0x100] sm:$0xff] }
 0x33e   :  { %v8136_v7 = vpack.c.bf16 %v985_v4, %v984_v5  ;;  %v979_v9 = vadd.f32 %v954_v61, %v931_v6  ;;  %v1016_v61 = vld [vmem:[%s12785_s30 + $0xc0] sm:$0xff]  ;;  %v1025_v4 = vld [vmem:[%s12785_s30 + $0x108] sm:$0xff]  ;;  %v1026_v5 = vld [vmem:[%s12785_s30 + $0x110] sm:$0xff] }
 0x33f   :  { %v901_v8 = vpop.permute.xlu1 %900  ;;  %v1027_v6 = vld [vmem:[%s12785_s30 + $0x118] sm:$0xff] }
 0x340   :  { %v930_v10 = vmul.f32 %v901_v8, %v8944_v34  ;;  %8137 = vmatprep.subr.bf16.mxu0 %v8136_v7  ;;  %v987_v17 = vmax.f32 %v979_v9, 0.0  ;;  %v1029_v8 = vld [vmem:[%s12785_s30 + $0x128] sm:$0xff]  ;;  %v1030_v9 = vld [vmem:[%s12785_s30 + $0x130] sm:$0xff] }
 0x341   :  { %8139 = vmatpush3.bf16.msra.mxu0 %v8136_v7  ;;  %v1028_v7 = vld [vmem:[%s12785_s30 + $0x120] sm:$0xff] }
 0x342   :  { %v978_v11 = vadd.f32 %v949_v60, %v930_v10  ;;  %v1015_v60 = vld [vmem:[%s12785_s30 + $0xb8] sm:$0xff] }
 0x343   :  { %v916_v14 = vpop.permute.xlu1 %915  ;;  %v1031_v10 = vld [vmem:[%s12785_s30 + $0x138] sm:$0xff] }
 0x344   :  { %v986_v13 = vmax.f32 %v978_v11, 0.0  ;;  %v933_v22 = vmul.f32 %v916_v14, %v8951_v42  ;;  %v1032_v11 = vld [vmem:[%s12785_s30 + $0x140] sm:$0xff] }
 0x345   :  { %v1036_v14 = vld [vmem:[%s12785_s30 + $0x160] sm:$0xff] }
 0x346   :  { %v8140_v15 = vpack.c.bf16 %v987_v17, %v986_v13  ;;  %v981_v19 = vadd.f32 %v964_v63, %v933_v22  ;;  %v1018_v63 = vld [vmem:[%s12785_s30 + $0xd0] sm:$0xff]  ;;  %v1035_v13 = vld [vmem:[%s12785_s30 + $0x158] sm:$0xff]  ;;  %v1037_v22 = vld [vmem:[%s12785_s30 + $0x168] sm:$0xff] }
 0x347   :  { %v921_v16 = vpop.permute.xlu0 %920  ;;  %v911_v18 = vpop.permute.xlu1 %910  ;;  %v1034_v17 = vld [vmem:[%s12785_s30 + $0x150] sm:$0xff] }
 0x348   :  { %8141 = vmatprep.subr.bf16.mxu0 %v8140_v15  ;;  %v932_v26 = vmul.f32 %v911_v18, %v8942_v33  ;;  %v989_v23 = vmax.f32 %v981_v19, 0.0  ;;  %v934_v25 = vmul.f32 %v921_v16, %v8949_v41  ;;  %v993_v33 = vld [vmem:[%s12785_s30 + $0x8] sm:$0xff]  ;;  %v994_v41 = vld [vmem:[%s12785_s30 + $0x10] sm:$0xff]  ;;  %v1039_v16 = vld [vmem:[%s12785_s30 + $0x178] sm:$0xff] }
 0x349   :  { %8143 = vmatpush3.bf16.msra.mxu0 %v8140_v15  ;;  %v1038_v15 = vld [vmem:[%s12785_s30 + $0x170] sm:$0xff]  ;;  %v1040_v18 = vld [vmem:[%s12785_s30 + $0x180] sm:$0xff]  ;;  %v1041_v19 = vld [vmem:[%s12785_s30 + $0x188] sm:$0xff] }
 0x34a   :  { %v980_v20 = vadd.f32 %v959_v12, %v932_v26  ;;  %v1033_v12 = vld [vmem:[%s12785_s30 + $0x148] sm:$0xff]  ;;  %v1042_v26 = vld [vmem:[%s12785_s30 + $0x190] sm:$0xff] }
 0x34b   :  { %v926_v21 = vpop.permute.xlu1 %925  ;;  %v969_v34 = vpop.permute.xlu0 %968 }
 0x34c   :  { %v988_v24 = vmax.f32 %v980_v20, 0.0  ;;  %v935_v27 = vmul.f32 %v926_v21, %v8958_v51  ;;  %v982_v28 = vadd.f32 %v969_v34, %v934_v25  ;;  %v995_v51 = vld [vmem:[%s12785_s30 + $0x18] sm:$0xff]  ;;  %v1044_v21 = vld [vmem:[%s12785_s30 + $0x1a0] sm:$0xff]  ;;  %v1045_v34 = vld [vmem:[%s12785_s30 + $0x1a8] sm:$0xff] }
 0x34d   :  { %v1043_v20 = vld [vmem:[%s12785_s30 + $0x198] sm:$0xff]  ;;  %v1048_v25 = vld [vmem:[%s12785_s30 + $0x1c0] sm:$0xff] }
 0x34e   :  { %v8144_v29 = vpack.c.bf16 %v989_v23, %v988_v24  ;;  %v990_v31 = vmax.f32 %v982_v28, 0.0  ;;  %v1046_v23 = vld [vmem:[%s12785_s30 + $0x1b0] sm:$0xff]  ;;  %v1047_v24 = vld [vmem:[%s12785_s30 + $0x1b8] sm:$0xff] }
 0x34f   :  { %v974_v42 = vpop.permute.xlu1 %973  ;;  %v1050_v28 = vld [vmem:[%s12785_s30 + $0x1d0] sm:$0xff] }
 0x350   :  { %v983_v30 = vadd.f32 %v974_v42, %v935_v27  ;;  %8145 = vmatprep.subr.bf16.mxu0 %v8144_v29  ;;  %v1049_v27 = vld [vmem:[%s12785_s30 + $0x1c8] sm:$0xff]  ;;  %v1052_v42 = vld [vmem:[%s12785_s30 + $0x1e0] sm:$0xff] }
 0x351   :  { %8147 = vmatpush3.bf16.msra.mxu0 %v8144_v29  ;;  %v1051_v29 = vld [vmem:[%s12785_s30 + $0x1d8] sm:$0xff] }
 0x352   :  { %v991_v32 = vmax.f32 %v983_v30, 0.0  ;;  %v1053_v30 = vld [vmem:[%s12785_s30 + $0x1e8] sm:$0xff] }
 0x354   :  { %v8148_v35 = vpack.c.bf16 %v991_v32, %v990_v31  ;;  %v1054_v31 = vld [vmem:[%s12785_s30 + $0x1f0] sm:$0xff]  ;;  %v1055_v32 = vld [vmem:[%s12785_s30 + $0x1f8] sm:$0xff] }
 0x356   :  { %8149 = vmatprep.subr.bf16.mxu0 %v8148_v35 }
 0x357   :  { %8151 = vmatpush3.bf16.msra.mxu0 %v8148_v35  ;;  %v1056_v35 = vld [vmem:[%s12785_s30 + $0x200] sm:$0xff] }
 0x35a   :  { %7666 = vmatmul.mubr.msk.f32.vlgmr.msra.gmra.mrb[8].mxu0 %vm1136_vm5, %v993_v33  ;;  %v1057_v33 = vld [vmem:[%s12785_s30 + $0x208] sm:$0xff] }
 0x35b   :  { %7668 = vmatprep.mubr.msk.f32.mxu0 %vm1136_vm5, %v994_v41  ;;  %v1058_v41 = vld [vmem:[%s12785_s30 + $0x210] sm:$0xff] }
 0x35e   :  { %7669 = vmatmul.mubr.msk.f32.gmra.mrb[10].mxu0 %vm1136_vm5, %v995_v51  ;;  %v1059_v51 = vld [vmem:[%s12785_s30 + $0x218] sm:$0xff] }
 0x35f   :  { %7671 = vmatprep.mubr.msk.f32.mxu0 %vm1136_vm5, %v996_v36  ;;  %v1060_v36 = vld [vmem:[%s12785_s30 + $0x220] sm:$0xff] }
 0x362   :  { %7672 = vmatmul.mubr.msk.f32.gmra.mrb[12].mxu0 %vm1136_vm5, %v997_v37  ;;  %v1061_v37 = vld [vmem:[%s12785_s30 + $0x228] sm:$0xff] }
 0x363   :  { %7674 = vmatprep.mubr.msk.f32.mxu0 %vm1136_vm5, %v998_v38  ;;  %v1062_v38 = vld [vmem:[%s12785_s30 + $0x230] sm:$0xff] }
 0x366   :  { %7675 = vmatmul.mubr.msk.f32.gmra.mrb[14].mxu0 %vm1136_vm5, %v999_v39  ;;  %v1063_v39 = vld [vmem:[%s12785_s30 + $0x238] sm:$0xff] }
 0x367   :  { %7677 = vmatprep.mubr.msk.f32.mxu0 %vm1136_vm5, %v1000_v40  ;;  %v1064_v40 = vld [vmem:[%s12785_s30 + $0x240] sm:$0xff] }
 0x36a   :  { %7678 = vmatmul.mubr.msk.f32.gmra.mrb[16].mxu0 %vm1136_vm5, %v1001_v43  ;;  %v1065_v43 = vld [vmem:[%s12785_s30 + $0x248] sm:$0xff] }
 0x36b   :  { %7680 = vmatprep.mubr.msk.f32.mxu0 %vm1136_vm5, %v1002_v45  ;;  %v1066_v45 = vld [vmem:[%s12785_s30 + $0x250] sm:$0xff] }
 0x36e   :  { %7681 = vmatmul.mubr.msk.f32.gmra.mrb[18].mxu0 %vm1136_vm5, %v1003_v47  ;;  %v1067_v47 = vld [vmem:[%s12785_s30 + $0x258] sm:$0xff] }
 0x36f   :  { %7683 = vmatprep.mubr.msk.f32.mxu0 %vm1136_vm5, %v1004_v49  ;;  %v1068_v49 = vld [vmem:[%s12785_s30 + $0x260] sm:$0xff] }
 0x372   :  { %7684 = vmatmul.mubr.msk.f32.gmra.mrb[20].mxu0 %vm1136_vm5, %v1005_v44  ;;  %v1069_v44 = vld [vmem:[%s12785_s30 + $0x268] sm:$0xff] }
 0x373   :  { %7686 = vmatprep.mubr.msk.f32.mxu0 %vm1136_vm5, %v1006_v53  ;;  %v1070_v53 = vld [vmem:[%s12785_s30 + $0x270] sm:$0xff] }
 0x376   :  { %7687 = vmatmul.mubr.msk.f32.gmra.mrb[22].mxu0 %vm1136_vm5, %v1007_v54  ;;  %v1071_v54 = vld [vmem:[%s12785_s30 + $0x278] sm:$0xff] }
 0x377   :  { %7689 = vmatprep.mubr.msk.f32.mxu0 %vm1136_vm5, %v1008_v46  ;;  %v1072_v46 = vld [vmem:[%s12785_s30 + $0x280] sm:$0xff] }
 0x37a   :  { %7690 = vmatmul.mubr.msk.f32.gmra.mrb[24].mxu0 %vm1136_vm5, %v1009_v55  ;;  %v1073_v55 = vld [vmem:[%s12785_s30 + $0x288] sm:$0xff] }
 0x37b   :  { %7692 = vmatprep.mubr.msk.f32.mxu0 %vm1136_vm5, %v1010_v56  ;;  %v1074_v56 = vld [vmem:[%s12785_s30 + $0x290] sm:$0xff] }
 0x37e   :  { %7693 = vmatmul.mubr.msk.f32.gmra.mrb[26].mxu0 %vm1136_vm5, %v1011_v57  ;;  %v1075_v57 = vld [vmem:[%s12785_s30 + $0x298] sm:$0xff] }
 0x37f   :  { %7695 = vmatprep.mubr.msk.f32.mxu0 %vm1136_vm5, %v1012_v48  ;;  %v1076_v48 = vld [vmem:[%s12785_s30 + $0x2a0] sm:$0xff] }
 0x382   :  { %7696 = vmatmul.mubr.msk.f32.gmra.mrb[28].mxu0 %vm1136_vm5, %v1013_v58  ;;  %v1077_v58 = vld [vmem:[%s12785_s30 + $0x2a8] sm:$0xff] }
 0x383   :  { %7698 = vmatprep.mubr.msk.f32.mxu0 %vm1136_vm5, %v1014_v59  ;;  %v1078_v59 = vld [vmem:[%s12785_s30 + $0x2b0] sm:$0xff] }
 0x386   :  { %7699 = vmatmul.mubr.msk.f32.gmra.mrb[30].mxu0 %vm1136_vm5, %v1015_v60  ;;  %v1079_v60 = vld [vmem:[%s12785_s30 + $0x2b8] sm:$0xff] }
 0x387   :  { %7701 = vmatprep.mubr.msk.f32.mxu0 %vm1136_vm5, %v1016_v61  ;;  %v1080_v61 = vld [vmem:[%s12785_s30 + $0x2c0] sm:$0xff] }
 0x38a   :  { %7702 = vmatmul.mubr.msk.f32.gmra.mrb[32].mxu0 %vm1136_vm5, %v1017_v62  ;;  %v1081_v62 = vld [vmem:[%s12785_s30 + $0x2c8] sm:$0xff] }
 0x38b   :  { %7704 = vmatprep.mubr.msk.f32.mxu0 %vm1136_vm5, %v1018_v63  ;;  %v1082_v63 = vld [vmem:[%s12785_s30 + $0x2d0] sm:$0xff] }
 0x38e   :  { %7705 = vmatmul.mubr.msk.f32.gmra.mrb[34].mxu0 %vm1136_vm5, %v1019_v50  ;;  %v1083_v50 = vld [vmem:[%s12785_s30 + $0x2d8] sm:$0xff] }
 0x38f   :  { %7707 = vmatprep.mubr.msk.f32.mxu0 %vm1136_vm5, %v1020_v0  ;;  %v1084_v0 = vld [vmem:[%s12785_s30 + $0x2e0] sm:$0xff] }
 0x392   :  { %7708 = vmatmul.mubr.msk.f32.gmra.mrb[36].mxu0 %vm1136_vm5, %v1021_v1  ;;  %v1085_v1 = vld [vmem:[%s12785_s30 + $0x2e8] sm:$0xff] }
 0x393   :  { %7710 = vmatprep.mubr.msk.f32.mxu0 %vm1136_vm5, %v1022_v2  ;;  %v1086_v2 = vld [vmem:[%s12785_s30 + $0x2f0] sm:$0xff] }
 0x396   :  { %7711 = vmatmul.mubr.msk.f32.gmra.mrb[38].mxu0 %vm1136_vm5, %v1023_v52  ;;  %v1087_v52 = vld [vmem:[%s12785_s30 + $0x2f8] sm:$0xff] }
 0x397   :  { %7713 = vmatprep.mubr.msk.f32.mxu0 %vm1136_vm5, %v1024_v3  ;;  %v1088_v3 = vld [vmem:[%s12785_s30 + $0x300] sm:$0xff] }
 0x39a   :  { %7714 = vmatmul.mubr.msk.f32.gmra.mrb[40].mxu0 %vm1136_vm5, %v1025_v4  ;;  %v1089_v4 = vld [vmem:[%s12785_s30 + $0x308] sm:$0xff] }
 0x39b   :  { %7716 = vmatprep.mubr.msk.f32.mxu0 %vm1136_vm5, %v1026_v5  ;;  %v1090_v5 = vld [vmem:[%s12785_s30 + $0x310] sm:$0xff] }
 0x39e   :  { %7717 = vmatmul.mubr.msk.f32.gmra.mrb[42].mxu0 %vm1136_vm5, %v1027_v6  ;;  %v1091_v6 = vld [vmem:[%s12785_s30 + $0x318] sm:$0xff] }
 0x39f   :  { %7719 = vmatprep.mubr.msk.f32.mxu0 %vm1136_vm5, %v1028_v7  ;;  %v1092_v7 = vld [vmem:[%s12785_s30 + $0x320] sm:$0xff] }
 0x3a2   :  { %7720 = vmatmul.mubr.msk.f32.gmra.mrb[44].mxu0 %vm1136_vm5, %v1029_v8  ;;  %v1093_v8 = vld [vmem:[%s12785_s30 + $0x328] sm:$0xff] }
 0x3a3   :  { %7722 = vmatprep.mubr.msk.f32.mxu0 %vm1136_vm5, %v1030_v9  ;;  %v1094_v9 = vld [vmem:[%s12785_s30 + $0x330] sm:$0xff] }
 0x3a6   :  { %7723 = vmatmul.mubr.msk.f32.gmra.mrb[46].mxu0 %vm1136_vm5, %v1031_v10  ;;  %v1095_v10 = vld [vmem:[%s12785_s30 + $0x338] sm:$0xff] }
 0x3a7   :  { %7725 = vmatprep.mubr.msk.f32.mxu0 %vm1136_vm5, %v1032_v11  ;;  %v1096_v11 = vld [vmem:[%s12785_s30 + $0x340] sm:$0xff] }
 0x3aa   :  { %7726 = vmatmul.mubr.msk.f32.gmra.mrb[48].mxu0 %vm1136_vm5, %v1033_v12  ;;  %v1097_v12 = vld [vmem:[%s12785_s30 + $0x348] sm:$0xff] }
 0x3ab   :  { %7728 = vmatprep.mubr.msk.f32.mxu0 %vm1136_vm5, %v1034_v17  ;;  %v1098_v17 = vld [vmem:[%s12785_s30 + $0x350] sm:$0xff] }
 0x3ae   :  { %7729 = vmatmul.mubr.msk.f32.gmra.mrb[50].mxu0 %vm1136_vm5, %v1035_v13  ;;  %v1099_v13 = vld [vmem:[%s12785_s30 + $0x358] sm:$0xff] }
 0x3af   :  { %7731 = vmatprep.mubr.msk.f32.mxu0 %vm1136_vm5, %v1036_v14  ;;  %v1100_v14 = vld [vmem:[%s12785_s30 + $0x360] sm:$0xff] }
 0x3b2   :  { %7732 = vmatmul.mubr.msk.f32.gmra.mrb[52].mxu0 %vm1136_vm5, %v1037_v22 }
 0x3b3   :  { %7734 = vmatprep.mubr.msk.f32.mxu0 %vm1136_vm5, %v1038_v15 }
 0x3b6   :  { %7735 = vmatmul.mubr.msk.f32.gmra.mrb[54].mxu0 %vm1136_vm5, %v1039_v16  ;;  %v1101_v16 = vld [vmem:[%s12785_s30 + $0x368] sm:$0xff] }
 0x3b7   :  { %7737 = vmatprep.mubr.msk.f32.mxu0 %vm1136_vm5, %v1040_v18  ;;  %v1102_v18 = vld [vmem:[%s12785_s30 + $0x370] sm:$0xff] }
 0x3ba   :  { %7738 = vmatmul.mubr.msk.f32.gmra.mrb[56].mxu0 %vm1136_vm5, %v1041_v19 }
 0x3bb   :  { %7740 = vmatprep.mubr.msk.f32.mxu0 %vm1136_vm5, %v1042_v26 }
 0x3be   :  { %7741 = vmatmul.mubr.msk.f32.gmra.mrb[58].mxu0 %vm1136_vm5, %v1043_v20  ;;  %v1103_v20 = vld [vmem:[%s12785_s30 + $0x378] sm:$0xff] }
 0x3bf   :  { %7743 = vmatprep.mubr.msk.f32.mxu0 %vm1136_vm5, %v1044_v21  ;;  %v1104_v21 = vld [vmem:[%s12785_s30 + $0x380] sm:$0xff] }
 0x3c2   :  { %7744 = vmatmul.mubr.msk.f32.gmra.mrb[60].mxu0 %vm1136_vm5, %v1045_v34 }
 0x3c3   :  { %7746 = vmatprep.mubr.msk.f32.mxu0 %vm1136_vm5, %v1046_v23 }
 0x3c6   :  { %7747 = vmatmul.mubr.msk.f32.gmra.mrb[62].mxu0 %vm1136_vm5, %v1047_v24  ;;  %v1105_v24 = vld [vmem:[%s12785_s30 + $0x388] sm:$0xff] }
 0x3c7   :  { %7749 = vmatprep.mubr.msk.f32.mxu0 %vm1136_vm5, %v1048_v25  ;;  %v1106_v25 = vld [vmem:[%s12785_s30 + $0x390] sm:$0xff] }
 0x3ca   :  { %7750 = vmatmul.mubr.msk.f32.gmra.mrb[64].mxu0 %vm1136_vm5, %v1049_v27 }
 0x3cb   :  { %7752 = vmatprep.mubr.msk.f32.mxu0 %vm1136_vm5, %v1050_v28 }
 0x3ce   :  { %7753 = vmatmul.mubr.msk.f32.gmra.mrb[66].mxu0 %vm1136_vm5, %v1051_v29  ;;  %v1107_v29 = vld [vmem:[%s12785_s30 + $0x398] sm:$0xff] }
 0x3cf   :  { %7755 = vmatprep.mubr.msk.f32.mxu0 %vm1136_vm5, %v1052_v42  ;;  %v1108_v42 = vld [vmem:[%s12785_s30 + $0x3a0] sm:$0xff] }
 0x3d2   :  { %7756 = vmatmul.mubr.msk.f32.gmra.mrb[68].mxu0 %vm1136_vm5, %v1053_v30 }
 0x3d3   :  { %7758 = vmatprep.mubr.msk.f32.mxu0 %vm1136_vm5, %v1054_v31 }
 0x3d6   :  { %7759 = vmatmul.mubr.msk.f32.gmra.mrb[70].mxu0 %vm1136_vm5, %v1055_v32  ;;  %v1109_v32 = vld [vmem:[%s12785_s30 + $0x3a8] sm:$0xff] }
 0x3d7   :  { %7761 = vmatprep.mubr.msk.f32.mxu0 %vm1136_vm5, %v1056_v35  ;;  %v1110_v35 = vld [vmem:[%s12785_s30 + $0x3b0] sm:$0xff] }
 0x3da   :  { %7762 = vmatmul.mubr.msk.f32.gmra.mrb[72].mxu0 %vm1136_vm5, %v1057_v33 }
 0x3db   :  { %7764 = vmatprep.mubr.msk.f32.mxu0 %vm1136_vm5, %v1058_v41 }
 0x3de   :  { %7765 = vmatmul.mubr.msk.f32.gmra.mrb[74].mxu0 %vm1136_vm5, %v1059_v51  ;;  %v1111_v51 = vld [vmem:[%s12785_s30 + $0x3b8] sm:$0xff] }
 0x3df   :  { %7767 = vmatprep.mubr.msk.f32.mxu0 %vm1136_vm5, %v1060_v36  ;;  %v1112_v36 = vld [vmem:[%s12785_s30 + $0x3c0] sm:$0xff] }
 0x3e2   :  { %7768 = vmatmul.mubr.msk.f32.gmra.mrb[76].mxu0 %vm1136_vm5, %v1061_v37 }
 0x3e3   :  { %7770 = vmatprep.mubr.msk.f32.mxu0 %vm1136_vm5, %v1062_v38 }
 0x3e6   :  { %7771 = vmatmul.mubr.msk.f32.gmra.mrb[78].mxu0 %vm1136_vm5, %v1063_v39  ;;  %v1113_v39 = vld [vmem:[%s12785_s30 + $0x3c8] sm:$0xff] }
 0x3e7   :  { %7773 = vmatprep.mubr.msk.f32.mxu0 %vm1136_vm5, %v1064_v40  ;;  %v1114_v40 = vld [vmem:[%s12785_s30 + $0x3d0] sm:$0xff] }
 0x3ea   :  { %7774 = vmatmul.mubr.msk.f32.gmra.mrb[80].mxu0 %vm1136_vm5, %v1065_v43 }
 0x3eb   :  { %7776 = vmatprep.mubr.msk.f32.mxu0 %vm1136_vm5, %v1066_v45 }
 0x3ee   :  { %7777 = vmatmul.mubr.msk.f32.gmra.mrb[82].mxu0 %vm1136_vm5, %v1067_v47  ;;  %v1115_v47 = vld [vmem:[%s12785_s30 + $0x3d8] sm:$0xff] }
 0x3ef   :  { %7779 = vmatprep.mubr.msk.f32.mxu0 %vm1136_vm5, %v1068_v49  ;;  %v1116_v49 = vld [vmem:[%s12785_s30 + $0x3e0] sm:$0xff] }
 0x3f2   :  { %7780 = vmatmul.mubr.msk.f32.gmra.mrb[84].mxu0 %vm1136_vm5, %v1069_v44 }
 0x3f3   :  { %7782 = vmatprep.mubr.msk.f32.mxu0 %vm1136_vm5, %v1070_v53 }
 0x3f6   :  { %7783 = vmatmul.mubr.msk.f32.gmra.mrb[86].mxu0 %vm1136_vm5, %v1071_v54  ;;  %v1117_v54 = vld [vmem:[%s12785_s30 + $0x3e8] sm:$0xff] }
 0x3f7   :  { %7785 = vmatprep.mubr.msk.f32.mxu0 %vm1136_vm5, %v1072_v46  ;;  %v1118_v46 = vld [vmem:[%s12785_s30 + $0x3f0] sm:$0xff] }
 0x3fa   :  { %7786 = vmatmul.mubr.msk.f32.gmra.mrb[88].mxu0 %vm1136_vm5, %v1073_v55 }
 0x3fb   :  { %7788 = vmatprep.mubr.msk.f32.mxu0 %vm1136_vm5, %v1074_v56 }
 0x3fe   :  { %7789 = vmatmul.mubr.msk.f32.gmra.mrb[90].mxu0 %vm1136_vm5, %v1075_v57  ;;  %v1119_v57 = vld [vmem:[%s12785_s30 + $0x3f8] sm:$0xff] }
 0x3ff   :  { %7791 = vmatprep.mubr.msk.f32.mxu0 %vm1136_vm5, %v1076_v48  ;;  %v1120_v48 = vld [vmem:[%s12785_s30 + $0x400] sm:$0xff] }
 0x402   :  { %7792 = vmatmul.mubr.msk.f32.gmra.mrb[92].mxu0 %vm1136_vm5, %v1077_v58 }
 0x403   :  { %7794 = vmatprep.mubr.msk.f32.mxu0 %vm1136_vm5, %v1078_v59 }
 0x406   :  { %7795 = vmatmul.mubr.msk.f32.gmra.mrb[94].mxu0 %vm1136_vm5, %v1079_v60  ;;  %v1121_v60 = vld [vmem:[%s12785_s30 + $0x408] sm:$0xff] }
 0x407   :  { %7797 = vmatprep.mubr.msk.f32.mxu0 %vm1136_vm5, %v1080_v61  ;;  %v1122_v61 = vld [vmem:[%s12785_s30 + $0x410] sm:$0xff] }
 0x40a   :  { %7798 = vmatmul.mubr.msk.f32.gmra.mrb[96].mxu0 %vm1136_vm5, %v1081_v62 }
 0x40b   :  { %7800 = vmatprep.mubr.msk.f32.mxu0 %vm1136_vm5, %v1082_v63 }
 0x40e   :  { %7801 = vmatmul.mubr.msk.f32.gmra.mrb[98].mxu0 %vm1136_vm5, %v1083_v50  ;;  %v1123_v50 = vld [vmem:[%s12785_s30 + $0x418] sm:$0xff] }
 0x40f   :  { %7803 = vmatprep.mubr.msk.f32.mxu0 %vm1136_vm5, %v1084_v0  ;;  %v1124_v0 = vld [vmem:[%s12785_s30 + $0x420] sm:$0xff] }
 0x412   :  { %7804 = vmatmul.mubr.msk.f32.gmra.mrb[100].mxu0 %vm1136_vm5, %v1085_v1 }
 0x413   :  { %7806 = vmatprep.mubr.msk.f32.mxu0 %vm1136_vm5, %v1086_v2 }
 0x416   :  { %7807 = vmatmul.mubr.msk.f32.gmra.mrb[102].mxu0 %vm1136_vm5, %v1087_v52  ;;  %v1125_v52 = vld [vmem:[%s12785_s30 + $0x428] sm:$0xff] }
 0x417   :  { %7809 = vmatprep.mubr.msk.f32.mxu0 %vm1136_vm5, %v1088_v3  ;;  %v1126_v3 = vld [vmem:[%s12785_s30 + $0x430] sm:$0xff] }
 0x41a   :  { %7810 = vmatmul.mubr.msk.f32.gmra.mrb[104].mxu0 %vm1136_vm5, %v1089_v4 }
 0x41b   :  { %7812 = vmatprep.mubr.msk.f32.mxu0 %vm1136_vm5, %v1090_v5 }
 0x41e   :  { %7813 = vmatmul.mubr.msk.f32.gmra.mrb[106].mxu0 %vm1136_vm5, %v1091_v6  ;;  %v1127_v6 = vld [vmem:[%s12785_s30 + $0x438] sm:$0xff] }
 0x41f   :  { %7815 = vmatprep.mubr.msk.f32.mxu0 %vm1136_vm5, %v1092_v7  ;;  %v1128_v7 = vld [vmem:[%s12785_s30 + $0x440] sm:$0xff] }
 0x422   :  { %7816 = vmatmul.mubr.msk.f32.gmra.mrb[108].mxu0 %vm1136_vm5, %v1093_v8 }
 0x423   :  { %7818 = vmatprep.mubr.msk.f32.mxu0 %vm1136_vm5, %v1094_v9 }
 0x426   :  { %7819 = vmatmul.mubr.msk.f32.gmra.mrb[110].mxu0 %vm1136_vm5, %v1095_v10  ;;  %v1129_v10 = vld [vmem:[%s12785_s30 + $0x448] sm:$0xff] }
 0x427   :  { %7821 = vmatprep.mubr.msk.f32.mxu0 %vm1136_vm5, %v1096_v11 }
 0x42a   :  { %7822 = vmatmul.mubr.msk.f32.gmra.mrb[112].mxu0 %vm1136_vm5, %v1097_v12  ;;  %v1130_v12 = vld [vmem:[%s12785_s30 + $0x450] sm:$0xff] }
 0x42b   :  { %7824 = vmatprep.mubr.msk.f32.mxu0 %vm1136_vm5, %v1098_v17 }
 0x42d   :  { %v7667_v22 = vpop.f32.mrb[8].mxu0 }
 0x42e   :  { %7825 = vmatmul.mubr.msk.f32.gmra.mrb[114].mxu0 %vm1136_vm5, %v1099_v13  ;;  %2374 = vrot.lane.b32.xlu0 %v7667_v22, %s8540_s5  ;;  %v1635_v15 = vpop.f32.mrb[9].mxu0  ;;  %v1131_v13 = vld [vmem:[%s12785_s30 + $0x458] sm:$0xff]  ;;  %v1132_v22 = vld [vmem:[%s12785_s30 + $0x460] sm:$0xff] }
 0x42f   :  { %7827 = vmatprep.mubr.msk.f32.mxu0 %vm1136_vm5, %v1100_v14 }
 0x431   :  { %v7670_v19 = vpop.f32.mrb[10].mxu0 }
 0x432   :  { %7828 = vmatmul.mubr.msk.f32.gmra.mrb[116].mxu0 %vm1136_vm5, %v1101_v16  ;;  %2372 = vrot.lane.b32.xlu0 %v1635_v15, %s8540_s5  ;;  %v1645_v26 = vpop.f32.mrb[11].mxu0  ;;  %v1133_v16 = vld [vmem:[%s12785_s30 + $0x468] sm:$0xff] }
 0x433   :  { %2378 = vrot.lane.b32.xlu1 %v7670_v19, %s8540_s5  ;;  %7830 = vmatprep.mubr.msk.f32.mxu0 %vm1136_vm5, %v1102_v18  ;;  %v1134_v18 = vld [vmem:[%s12785_s30 + $0x470] sm:$0xff] }
 0x435   :  { %v7673_v34 = vpop.f32.mrb[12].mxu0 }
 0x436   :  { %7831 = vmatmul.mubr.msk.f32.gmra.mrb[118].mxu0 %vm1136_vm5, %v1103_v20  ;;  %2376 = vrot.lane.b32.xlu0 %v1645_v26, %s8540_s5  ;;  %v1655_v23 = vpop.f32.mrb[13].mxu0  ;;  %v1135_v20 = vld [vmem:[%s12785_s30 + $0x478] sm:$0xff]  ;;  %s8553_s30 = smov 96  }
 0x437   :  { %7833 = vmatprep.mubr.msk.f32.mxu0 %vm1136_vm5, %v1104_v21 }
 0x439   :  { %v7676_v27 = vpop.f32.mrb[14].mxu0 }
 0x43a   :  { %7834 = vmatmul.mubr.msk.f32.gmra.mrb[120].mxu0 %vm1136_vm5, %v1105_v24  ;;  %2382 = vrot.lane.b32.xlu0 %v7673_v34, %s8540_s5  ;;  %v1665_v28 = vpop.f32.mrb[15].mxu0 }
 0x43b   :  { %2384 = vrot.lane.b32.xlu1 %v1665_v28, %s8540_s5  ;;  %7836 = vmatprep.mubr.msk.f32.mxu0 %vm1136_vm5, %v1106_v25 }
 0x43d   :  { %v7679_v30 = vpop.f32.mrb[16].mxu0 }
 0x43e   :  { %7837 = vmatmul.mubr.msk.f32.gmra.mrb[122].mxu0 %vm1136_vm5, %v1107_v29  ;;  %2380 = vrot.lane.b32.xlu0 %v1655_v23, %s8540_s5  ;;  %v1675_v31 = vpop.f32.mrb[17].mxu0 }
 0x43f   :  { %2388 = vrot.lane.b32.xlu1 %v1675_v31, %s8540_s5  ;;  %7839 = vmatprep.mubr.msk.f32.mxu0 %vm1136_vm5, %v1108_v42 }
 0x441   :  { %v7682_v33 = vpop.f32.mrb[18].mxu0 }
 0x442   :  { %7840 = vmatmul.mubr.msk.f32.gmra.mrb[124].mxu0 %vm1136_vm5, %v1109_v32  ;;  %2386 = vrot.lane.b32.xlu0 %v7676_v27, %s8540_s5  ;;  %v1685_v41 = vpop.f32.mrb[19].mxu0 }
 0x443   :  { %2394 = vrot.lane.b32.xlu1 %v7682_v33, %s8540_s5  ;;  %7842 = vmatprep.mubr.msk.f32.mxu0 %vm1136_vm5, %v1110_v35 }
 0x445   :  { %v7685_v37 = vpop.f32.mrb[20].mxu0 }
 0x446   :  { %7843 = vmatmul.mubr.msk.f32.gmra.mrb[126].mxu0 %vm1136_vm5, %v1111_v51  ;;  %2390 = vrot.lane.b32.xlu0 %v7679_v30, %s8540_s5  ;;  %v1695_v38 = vpop.f32.mrb[21].mxu0 }
 0x447   :  { %2392 = vrot.lane.b32.xlu1 %v1685_v41, %s8540_s5  ;;  %7845 = vmatprep.mubr.msk.f32.mxu0 %vm1136_vm5, %v1112_v36 }
 0x449   :  { %v7688_v43 = vpop.f32.mrb[22].mxu0 }
 0x44a   :  { %7846 = vmatmul.mubr.msk.f32.gmra.mrb[128].mxu0 %vm1136_vm5, %v1113_v39  ;;  %2402 = vrot.lane.b32.xlu0 %v7688_v43, %s8540_s5  ;;  %v1705_v45 = vpop.f32.mrb[23].mxu0 }
 0x44b   :  { %2398 = vrot.lane.b32.xlu1 %v7685_v37, %s8540_s5  ;;  %7848 = vmatprep.mubr.msk.f32.mxu0 %vm1136_vm5, %v1114_v40 }
 0x44d   :  { %v7691_v44 = vpop.f32.mrb[24].mxu0 }
 0x44e   :  { %7849 = vmatmul.mubr.msk.f32.gmra.mrb[130].mxu0 %vm1136_vm5, %v1115_v47  ;;  %2400 = vrot.lane.b32.xlu0 %v1705_v45, %s8540_s5  ;;  %v1715_v53 = vpop.f32.mrb[25].mxu0  ;;  %v2436_v45 = vlaneseq }
 0x44f   :  { %2396 = vrot.lane.b32.xlu1 %v1695_v38, %s8540_s5  ;;  %7851 = vmatprep.mubr.msk.f32.mxu0 %vm1136_vm5, %v1116_v49 }
 0x451   :  { %v7694_v55 = vpop.f32.mrb[26].mxu0 }
 0x452   :  { %7852 = vmatmul.mubr.msk.f32.gmra.mrb[132].mxu0 %vm1136_vm5, %v1117_v54  ;;  %2478 = vrot.lane.b32.xlu0 %v7694_v55, %s8538_s25  ;;  %v1725_v56 = vpop.f32.mrb[27].mxu0 }
 0x453   :  { %2474 = vrot.lane.b32.xlu1 %v7691_v44, %s8538_s25  ;;  %7854 = vmatprep.mubr.msk.f32.mxu0 %vm1136_vm5, %v1118_v46 }
 0x455   :  { %v7697_v58 = vpop.f32.mrb[28].mxu0 }
 0x456   :  { %7855 = vmatmul.mubr.msk.f32.gmra.mrb[134].mxu0 %vm1136_vm5, %v1119_v57  ;;  %2482 = vrot.lane.b32.xlu0 %v7697_v58, %s8538_s25  ;;  %v1735_v59 = vpop.f32.mrb[29].mxu0 }
 0x457   :  { %2472 = vrot.lane.b32.xlu1 %v1715_v53, %s8538_s25  ;;  %7857 = vmatprep.mubr.msk.f32.mxu0 %vm1136_vm5, %v1120_v48  ;;  %v9663_v53 = vshrl.u32 %v2436_v45, 7  ;;  %v9675_v48 = vld [vmem:[%s12787_s4] sm:$0xff] }
 0x458   :  { %12788 = vst [vmem:[#allocation3_spill] sm:$0xff] %v9675_v48 }
 0x459   :  { %v7700_v62 = vpop.f32.mrb[30].mxu0 }
 0x45a   :  { %7858 = vmatmul.mubr.msk.f32.gmra.mrb[136].mxu0 %vm1136_vm5, %v1121_v60  ;;  %2486 = vrot.lane.b32.xlu0 %v7700_v62, %s8538_s25  ;;  %v1745_v63 = vpop.f32.mrb[31].mxu0 }
 0x45b   :  { %2476 = vrot.lane.b32.xlu1 %v1725_v56, %s8538_s25  ;;  %7860 = vmatprep.mubr.msk.f32.mxu0 %vm1136_vm5, %v1122_v61  ;;  %v9667_v56 = vsub.s32 4, %v9663_v53 }
 0x45d   :  { %v7703_v1 = vpop.f32.mrb[32].mxu0  ;;  %12786 = vst [vmem:[#allocation2_spill] sm:$0xff] %v9667_v56  ;;  %v9680_v61 = vrot.slane %v9675_v48, %v9667_v56 }
 0x45e   :  { %7861 = vmatmul.mubr.msk.f32.gmra.mrb[138].mxu0 %vm1136_vm5, %v1123_v50  ;;  %2484 = vrot.lane.b32.xlu0 %v1745_v63, %s8538_s25  ;;  %v1755_v2 = vpop.f32.mrb[33].mxu0 }
 0x45f   :  { %2480 = vrot.lane.b32.xlu1 %v1735_v59, %s8538_s25  ;;  %7863 = vmatprep.mubr.msk.f32.mxu0 %vm1136_vm5, %v1124_v0 }
 0x461   :  { %v7706_v4 = vpop.f32.mrb[34].mxu0 }
 0x462   :  { %7864 = vmatmul.mubr.msk.f32.gmra.mrb[140].mxu0 %vm1136_vm5, %v1125_v52  ;;  %2490 = vrot.lane.b32.xlu0 %v7703_v1, %s8538_s25  ;;  %v1765_v5 = vpop.f32.mrb[35].mxu0 }
 0x463   :  { %2488 = vrot.lane.b32.xlu1 %v1755_v2, %s8538_s25  ;;  %7866 = vmatprep.mubr.msk.f32.mxu0 %vm1136_vm5, %v1126_v3 }
 0x465   :  { %v7709_v8 = vpop.f32.mrb[36].mxu0 }
 0x466   :  { %7867 = vmatmul.mubr.msk.f32.gmra.mrb[142].mxu0 %vm1136_vm5, %v1127_v6  ;;  %2498 = vrot.lane.b32.xlu0 %v7709_v8, %s8538_s25  ;;  %v1775_v9 = vpop.f32.mrb[37].mxu0 }
 0x467   :  { %2494 = vrot.lane.b32.xlu1 %v7706_v4, %s8538_s25  ;;  %7869 = vmatprep.mubr.msk.f32.mxu0 %vm1136_vm5, %v1128_v7 }
 0x469   :  { %v7712_v11 = vpop.f32.mrb[38].mxu0 }
 0x46a   :  { %v1785_v17 = vpop.f32.mrb[39].mxu0  ;;  %7870 = vmatmul.mubr.msk.f32.gmra.mrb[144].mxu0 %vm1136_vm5, %v1129_v10 }
 0x46b   :  { %2492 = vrot.lane.b32.xlu1 %v1765_v5, %s8538_s25  ;;  %2500 = vrot.lane.b32.xlu0 %v1785_v17, %s8538_s25 }
 0x46c   :  { %7872 = vmatprep.mubr.msk.f32.mxu0 %vm1136_vm5, %v1130_v12 }
 0x46d   :  { %v7715_v14 = vpop.f32.mrb[40].mxu0 }
 0x46e   :  { %v1795_v15 = vpop.f32.mrb[41].mxu0  ;;  %7873 = vmatmul.mubr.msk.f32.gmra.mrb[146].mxu0 %vm1136_vm5, %v1131_v13 }
 0x46f   :  { %2496 = vrot.lane.b32.xlu1 %v1775_v9, %s8538_s25  ;;  %2588 = vrot.lane.b32.xlu0 %v1795_v15, %s8539_s28 }
 0x470   :  { %7875 = vmatprep.mubr.msk.f32.mxu0 %vm1136_vm5, %v1132_v22 }
 0x471   :  { %v9626_v19 = vpop.f32.mrb[42].mxu0 }
 0x472   :  { %v9628_v26 = vpop.f32.mrb[43].mxu0  ;;  %7876 = vmatmul.mubr.msk.f32.gmra.mrb[148].mxu0 %vm1136_vm5, %v1133_v16 }
 0x473   :  { %2502 = vrot.lane.b32.xlu1 %v7712_v11, %s8538_s25  ;;  %7878 = vmatprep.mubr.msk.f32.mxu0 %vm1136_vm5, %v1134_v18  ;;  %s12918_s25 = sld [smem:[#allocation67_spill]] }
 0x475   :  { %v7721_v21 = vpop.f32.mrb[44].mxu0 }
 0x476   :  { %v1815_v34 = vpop.f32.mrb[45].mxu0  ;;  %7879 = vmatmul.mubr.msk.f32.gmra.mrb[150].mxu0 %vm1136_vm5, %v1135_v20  ;;  %v9729_v20 = vsub.s32 1, %v9663_v53 }
 0x477   :  { %2590 = vrot.lane.b32.xlu1 %v7715_v14, %s8539_s28  ;;  %2596 = vrot.lane.b32.xlu0 %v1815_v34, %s8539_s28 }
 0x478   :  { %12791 = vst [vmem:[#allocation6_spill] sm:$0xff] %v9729_v20 }
 0x479   :  { %v7724_v23 = vpop.f32.mrb[46].mxu0 }
 0x47a   :  { %v1825_v24 = vpop.f32.mrb[47].mxu0 }
 0x47b   :  { %2598 = vrot.lane.b32.xlu1 %v7721_v21, %s8539_s28  ;;  %2602 = vrot.lane.b32.xlu0 %v7724_v23, %s8539_s28  ;;  %v9732_v21 = vsub.s32 0, %v9663_v53 }
 0x47d   :  { %v7727_v25 = vpop.f32.mrb[48].mxu0  ;;  %12792 = vst [vmem:[#allocation7_spill] sm:$0xff] %v9732_v21 }
 0x47e   :  { %v1835_v27 = vpop.f32.mrb[49].mxu0 }
 0x47f   :  { %2600 = vrot.lane.b32.xlu1 %v1825_v24, %s8539_s28  ;;  %2604 = vrot.lane.b32.xlu0 %v1835_v27, %s8539_s28  ;;  %v9744_v27 = vrot.slane %v9675_v48, %v9729_v20 }
 0x481   :  { %v7730_v28 = vpop.f32.mrb[50].mxu0 }
 0x482   :  { %v1845_v29 = vpop.f32.mrb[51].mxu0 }
 0x483   :  { %2606 = vrot.lane.b32.xlu1 %v7727_v25, %s8539_s28 }
 0x485   :  { %v7733_v42 = vpop.f32.mrb[52].mxu0 }
 0x486   :  { %2614 = vrot.lane.b32.xlu0 %v7733_v42, %s8539_s28  ;;  %v1855_v30 = vpop.f32.mrb[53].mxu0 }
 0x487   :  { %2610 = vrot.lane.b32.xlu1 %v7730_v28, %s8539_s28  ;;  %v9748_v28 = vrot.slane %v9675_v48, %v9732_v21 }
 0x489   :  { %v7736_v31 = vpop.f32.mrb[54].mxu0 }
 0x48a   :  { %2612 = vrot.lane.b32.xlu0 %v1855_v30, %s8539_s28  ;;  %v1865_v32 = vpop.f32.mrb[55].mxu0 }
 0x48b   :  { %2608 = vrot.lane.b32.xlu1 %v1845_v29, %s8539_s28 }
 0x48d   :  { %v7739_v35 = vpop.f32.mrb[56].mxu0 }
 0x48e   :  { %2616 = vrot.lane.b32.xlu0 %v1865_v32, %s8539_s28  ;;  %v1875_v33 = vpop.f32.mrb[57].mxu0 }
 0x48f   :  { %2618 = vrot.lane.b32.xlu1 %v7736_v31, %s8539_s28 }
 0x491   :  { %v9650_v41 = vpop.f32.mrb[58].mxu0 }
 0x492   :  { %2704 = vrot.lane.b32.xlu0 %v1875_v33, %s8539_s28  ;;  %v9653_v51 = vpop.f32.mrb[59].mxu0 }
 0x493   :  { %2706 = vrot.lane.b32.xlu1 %v7739_v35, %s8539_s28 }
 0x495   :  { %v7745_v36 = vpop.f32.mrb[60].mxu0 }
 0x496   :  { %v1895_v37 = vpop.f32.mrb[61].mxu0 }
 0x497   :  { %2714 = vrot.lane.b32.xlu1 %v7745_v36, %s8539_s28 }
 0x499   :  { %v7748_v38 = vpop.f32.mrb[62].mxu0 }
 0x49a   :  { %2718 = vrot.lane.b32.xlu0 %v7748_v38, %s8539_s28  ;;  %v1905_v39 = vpop.f32.mrb[63].mxu0 }
 0x49b   :  { %2712 = vrot.lane.b32.xlu1 %v1895_v37, %s8539_s28 }
 0x49d   :  { %v7751_v40 = vpop.f32.mrb[64].mxu0 }
 0x49e   :  { %2722 = vrot.lane.b32.xlu0 %v7751_v40, %s8539_s28  ;;  %v1915_v43 = vpop.f32.mrb[65].mxu0 }
 0x49f   :  { %2716 = vrot.lane.b32.xlu1 %v1905_v39, %s8539_s28 }
 0x4a0   :  { %v2375_v47 = vpop.permute.xlu0 %2374 }
 0x4a1   :  { %v7754_v49 = vpop.f32.mrb[66].mxu0  ;;  %v2421_v42 = vsel %vm741_vm3, 0.0, %v2375_v47 }
 0x4a2   :  { %2720 = vrot.lane.b32.xlu0 %v1915_v43, %s8539_s28  ;;  %v1925_v44 = vpop.f32.mrb[67].mxu0  ;;  %v2441_v39 = vmul.f32 %v9748_v28, %v2421_v42 }
 0x4a3   :  { %2724 = vrot.lane.b32.xlu1 %v1925_v44, %s8539_s28 }
 0x4a4   :  { %v2373_v54 = vpop.permute.xlu0 %2372 }
 0x4a5   :  { %v7757_v46 = vpop.f32.mrb[68].mxu0  ;;  %v2379_v58 = vpop.permute.xlu1 %2378  ;;  %v2420_v43 = vsel %vm741_vm3, 0.0, %v2373_v54 }
 0x4a6   :  { %2726 = vrot.lane.b32.xlu0 %v7754_v49, %s8539_s28  ;;  %v1935_v55 = vpop.f32.mrb[69].mxu0  ;;  %v2423_v29 = vsel %vm741_vm3, 0.0, %v2379_v58 }
 0x4a7   :  { %2728 = vrot.lane.b32.xlu1 %v1935_v55, %s8539_s28  ;;  %v2443_v33 = vmul.f32 %v9748_v28, %v2423_v29 }
 0x4a8   :  { %v9670_v57 = vpop.permute.xlu0 %2376 }
 0x4a9   :  { %v7760_v59 = vpop.f32.mrb[70].mxu0  ;;  %v2422_v54 = vsel %vm741_vm3, 0.0, %v9670_v57 }
 0x4aa   :  { %2730 = vrot.lane.b32.xlu0 %v7757_v46, %s8539_s28  ;;  %v1945_v60 = vpop.f32.mrb[71].mxu0 }
 0x4ab   :  { %2734 = vrot.lane.b32.xlu1 %v7760_v59, %s8539_s28  ;;  %v2440_v59 = vmul.f32 %v9748_v28, %v2420_v43 }
 0x4ac   :  { %v9683_v62 = vpop.permute.xlu0 %2382 }
 0x4ad   :  { %v9685_v63 = vpop.permute.xlu1 %2384  ;;  %v7763_v50 = vpop.f32.mrb[72].mxu0 }
 0x4ae   :  { %v9688_v0 = vmul.f32 %v7763_v50, %v9680_v61  ;;  %v1955_v1 = vpop.f32.mrb[73].mxu0 }
 0x4af   :  { %v9691_v2 = vmul.f32 %v9680_v61, %v1955_v1  ;;  %2732 = vrot.lane.b32.xlu1 %v1945_v60, %s8539_s28 }
 0x4b0   :  { %v9694_v52 = vpop.permute.xlu0 %2380 }
 0x4b1   :  { %v9696_v3 = vpop.permute.xlu1 %2388  ;;  %v7766_v4 = vpop.f32.mrb[74].mxu0 }
 0x4b2   :  { %v9699_v5 = vmul.f32 %v7766_v4, %v9680_v61  ;;  %v1965_v6 = vpop.f32.mrb[75].mxu0 }
 0x4b3   :  { %v9702_v7 = vmul.f32 %v9680_v61, %v1965_v6 }
 0x4b4   :  { %12789 = vst [vmem:[#allocation4_spill] sm:$0xff] %v9699_v5  ;;  %v9704_v8 = vpop.permute.xlu0 %2386 }
 0x4b5   :  { %12790 = vst [vmem:[#allocation5_spill] sm:$0xff] %v9702_v7  ;;  %v9706_v9 = vpop.permute.xlu1 %2394  ;;  %v9708_v10 = vpop.f32.mrb[76].mxu0 }
 0x4b6   :  { %v9710_v11 = vpop.f32.mrb[77].mxu0 }
 0x4b8   :  { %v9712_v12 = vpop.permute.xlu0 %2390 }
 0x4b9   :  { %v9714_v17 = vpop.permute.xlu1 %2392  ;;  %v9716_v13 = vpop.f32.mrb[78].mxu0 }
 0x4ba   :  { %v9718_v14 = vpop.f32.mrb[79].mxu0 }
 0x4bc   :  { %v9720_v22 = vpop.permute.xlu0 %2402 }
 0x4bd   :  { %v9722_v15 = vpop.permute.xlu1 %2398  ;;  %v9724_v16 = vpop.f32.mrb[80].mxu0 }
 0x4be   :  { %v9726_v18 = vpop.f32.mrb[81].mxu0 }
 0x4c0   :  { %v9734_v34 = vpop.permute.xlu0 %2400 }
 0x4c1   :  { %v9736_v23 = vpop.permute.xlu1 %2396  ;;  %v9738_v24 = vpop.f32.mrb[82].mxu0 }
 0x4c2   :  { %v9740_v25 = vpop.f32.mrb[83].mxu0 }
 0x4c4   :  { %v2479_v30 = vpop.permute.xlu0 %2478 }
 0x4c5   :  { %v2523_v31 = vsel %vm732_vm2, 0.0, %v2479_v30  ;;  %v2475_v32 = vpop.permute.xlu1 %2474  ;;  %v9753_v35 = vpop.f32.mrb[84].mxu0  ;;  %v2442_v30 = vmul.f32 %v9748_v28, %v2422_v54 }
 0x4c6   :  { %v2543_v36 = vmul.f32 %v9744_v27, %v2523_v31  ;;  %v2521_v37 = vsel %vm732_vm2, 0.0, %v2475_v32  ;;  %v9758_v38 = vpop.f32.mrb[85].mxu0 }
 0x4c7   :  { %12793 = vst [vmem:[#allocation8_spill] sm:$0xff] %v9758_v38  ;;  %v2541_v40 = vmul.f32 %v9744_v27, %v2521_v37 }
 0x4c8   :  { %v9763_v45 = vadd.f32 %v2543_v36, %v2443_v33  ;;  %v9765_v47 = vpop.permute.xlu0 %2482 }
 0x4c9   :  { %v9767_v49 = vadd.f32 %v2541_v40, %v2441_v39  ;;  %v2473_v44 = vpop.permute.xlu1 %2472  ;;  %v9769_v46 = vpop.f32.mrb[86].mxu0 }
 0x4ca   :  { %12794 = vst [vmem:[#allocation9_spill] sm:$0xff] %v9763_v45  ;;  %12795 = vst [vmem:[#allocation10_spill] sm:$0xff] %v9769_v46  ;;  %v2520_v55 = vsel %vm732_vm2, 0.0, %v2473_v44  ;;  %v9772_v58 = vpop.f32.mrb[87].mxu0 }
 0x4cb   :  { %12796 = vst [vmem:[#allocation11_spill] sm:$0xff] %v9772_v58  ;;  %v2540_v60 = vmul.f32 %v9744_v27, %v2520_v55 }
 0x4cc   :  { %v9778_v50 = vpop.permute.xlu0 %2486 }
 0x4cd   :  { %v9780_v1 = vadd.f32 %v2540_v60, %v2440_v59  ;;  %v2477_v4 = vpop.permute.xlu1 %2476  ;;  %v9782_v6 = vpop.f32.mrb[88].mxu0 }
 0x4ce   :  { %v2522_v29 = vsel %vm732_vm2, 0.0, %v2477_v4  ;;  %v9785_v42 = vpop.f32.mrb[89].mxu0 }
 0x4cf   :  { %v2542_v31 = vmul.f32 %v9744_v27, %v2522_v29 }
 0x4d0   :  { %v9789_v32 = vpop.permute.xlu0 %2484 }
 0x4d1   :  { %v9791_v33 = vadd.f32 %v2542_v31, %v2442_v30  ;;  %v9793_v57 = vpop.permute.xlu1 %2480  ;;  %v9795_v36 = vpop.f32.mrb[90].mxu0 }
 0x4d2   :  { %v9797_v37 = vpop.f32.mrb[91].mxu0 }
 0x4d3   :  { %12797 = vst [vmem:[#allocation12_spill] sm:$0xff] %v9791_v33 }
 0x4d4   :  { %v9799_v39 = vpop.permute.xlu0 %2490 }
 0x4d5   :  { %v9801_v40 = vpop.permute.xlu1 %2488  ;;  %v7793_v43 = vpop.f32.mrb[92].mxu0 }
 0x4d6   :  { %12798 = vst [vmem:[#allocation13_spill] sm:$0xff] %v9801_v40  ;;  %2866 = vrot.lane.b32.xlu0 %v7793_v43, %s8542_s29  ;;  %v2055_v44 = vpop.f32.mrb[93].mxu0 }
 0x4d8   :  { %v9804_v55 = vpop.permute.xlu0 %2498 }
 0x4d9   :  { %12799 = vst [vmem:[#allocation14_spill] sm:$0xff] %v9804_v55  ;;  %v9806_v59 = vpop.permute.xlu1 %2494  ;;  %v7796_v60 = vpop.f32.mrb[94].mxu0 }
 0x4da   :  { %12800 = vst [vmem:[#allocation15_spill] sm:$0xff] %v9806_v59  ;;  %2864 = vrot.lane.b32.xlu0 %v2055_v44, %s8542_s29  ;;  %2870 = vrot.lane.b32.xlu1 %v7796_v60, %s8542_s29  ;;  %v2065_v54 = vpop.f32.mrb[95].mxu0 }
 0x4dd   :  { %v9810_v4 = vpop.permute.xlu1 %2492  ;;  %v9812_v29 = vpop.permute.xlu0 %2500 }
 0x4de   :  { %12801 = vst [vmem:[#allocation16_spill] sm:$0xff] %v9810_v4  ;;  %12802 = vst [vmem:[#allocation17_spill] sm:$0xff] %v9812_v29  ;;  %v7799_v30 = vpop.f32.mrb[96].mxu0  ;;  %2868 = vrot.lane.b32.xlu1 %v2065_v54, %s8542_s29 }
 0x4df   :  { %2874 = vrot.lane.b32.xlu0 %v7799_v30, %s8542_s29  ;;  %v2075_v31 = vpop.f32.mrb[97].mxu0 }
 0x4e1   :  { %v9816_v43 = vpop.permute.xlu1 %2496  ;;  %v7802_v20 = vpop.f32.mrb[98].mxu0 }
 0x4e2   :  { %12803 = vst [vmem:[#allocation18_spill] sm:$0xff] %v9816_v43  ;;  %2872 = vrot.lane.b32.xlu1 %v2075_v31, %s8542_s29  ;;  %v2085_v44 = vpop.f32.mrb[99].mxu0  ;;  %v2589_v60 = vpop.permute.xlu0 %2588 }
 0x4e3   :  { %2878 = vrot.lane.b32.xlu0 %v7802_v20, %s8542_s29  ;;  %v2636_v59 = vsel %vm723_vm1, 0.0, %v2589_v60 }
 0x4e5   :  { %v9820_v21 = vpop.permute.xlu1 %2502  ;;  %v7805_v56 = vpop.f32.mrb[100].mxu0 }
 0x4e6   :  { %12804 = vst [vmem:[#allocation19_spill] sm:$0xff] %v9820_v21  ;;  %v2095_v5 = vpop.f32.mrb[101].mxu0 }
 0x4e7   :  { %2876 = vrot.lane.b32.xlu0 %v2085_v44, %s8542_s29  ;;  %2880 = vrot.lane.b32.xlu1 %v2095_v5, %s8542_s29 }
 0x4e9   :  { %v2591_v54 = vpop.permute.xlu1 %2590  ;;  %v9824_v30 = vpop.permute.xlu0 %2596 }
 0x4ea   :  { %12805 = vst [vmem:[#allocation20_spill] sm:$0xff] %v9824_v30  ;;  %v7808_v7 = vpop.f32.mrb[102].mxu0 }
 0x4eb   :  { %2882 = vrot.lane.b32.xlu0 %v7805_v56, %s8542_s29  ;;  %v2105_v45 = vpop.f32.mrb[103].mxu0 }
 0x4ec   :  { %2884 = vrot.lane.b32.xlu1 %v2105_v45, %s8542_s29 }
 0x4ed   :  { %v9828_v20 = vpop.permute.xlu1 %2598  ;;  %v9830_v31 = vpop.permute.xlu0 %2602 }
 0x4ee   :  { %12806 = vst [vmem:[#allocation21_spill] sm:$0xff] %v9828_v20  ;;  %12807 = vst [vmem:[#allocation22_spill] sm:$0xff] %v9830_v31  ;;  %v9832_v33 = vpop.f32.mrb[104].mxu0 }
 0x4ef   :  { %2886 = vrot.lane.b32.xlu0 %v7808_v7, %s8542_s29  ;;  %v9835_v44 = vpop.f32.mrb[105].mxu0 }
 0x4f1   :  { %v9837_v5 = vpop.permute.xlu1 %2600  ;;  %v9839_v21 = vpop.f32.mrb[106].mxu0 }
 0x4f2   :  { %12808 = vst [vmem:[#allocation23_spill] sm:$0xff] %v9837_v5  ;;  %v9841_v30 = vpop.f32.mrb[107].mxu0  ;;  %v9843_v56 = vpop.permute.xlu0 %2604  ;;  %v9854_v5 = vsub.s32 2, %v9663_v53 }
 0x4f3   :  { %12809 = vst [vmem:[#allocation24_spill] sm:$0xff] %v9843_v56 }
 0x4f4   :  { %12813 = vst [vmem:[#allocation28_spill] sm:$0xff] %v9854_v5 }
 0x4f5   :  { %v9845_v43 = vpop.permute.xlu1 %2606  ;;  %v7817_v45 = vpop.f32.mrb[108].mxu0 }
 0x4f6   :  { %12810 = vst [vmem:[#allocation25_spill] sm:$0xff] %v9845_v43  ;;  %2982 = vrot.lane.b32.xlu1 %v7817_v45, %s8542_s29  ;;  %v2135_v31 = vpop.f32.mrb[109].mxu0 }
 0x4f7   :  { %2980 = vrot.lane.b32.xlu0 %v2135_v31, %s8542_s29  ;;  %v9864_v31 = vrot.slane %v9675_v48, %v9854_v5 }
 0x4f8   :  { %v9849_v20 = vpop.permute.xlu0 %2614 }
 0x4f9   :  { %12811 = vst [vmem:[#allocation26_spill] sm:$0xff] %v9849_v20  ;;  %v9851_v7 = vpop.permute.xlu1 %2610  ;;  %v7820_v29 = vpop.f32.mrb[110].mxu0  ;;  %12816 = vst [vmem:[#allocation31_spill] sm:$0xff] %v9864_v31  ;;  %v2656_v58 = vmul.f32 %v9864_v31, %v2636_v59 }
 0x4fa   :  { %12812 = vst [vmem:[#allocation27_spill] sm:$0xff] %v9851_v7  ;;  %2986 = vrot.lane.b32.xlu1 %v7820_v29, %s8542_s29  ;;  %v2145_v4 = vpop.f32.mrb[111].mxu0  ;;  %v9867_v7 = vsub.s32 3, %v9663_v53  ;;  %v2637_v29 = vsel %vm723_vm1, 0.0, %v2591_v54 }
 0x4fb   :  { %2984 = vrot.lane.b32.xlu0 %v2145_v4, %s8542_s29  ;;  %v2657_v38 = vmul.f32 %v9864_v31, %v2637_v29 }
 0x4fc   :  { %v9858_v43 = vpop.permute.xlu0 %2612  ;;  %12817 = vst [vmem:[#allocation32_spill] sm:$0xff] %v9867_v7  ;;  %v9879_v5 = vrot.slane %v9675_v48, %v9867_v7 }
 0x4fd   :  { %12814 = vst [vmem:[#allocation29_spill] sm:$0xff] %v9858_v43  ;;  %v9860_v56 = vpop.permute.xlu1 %2608  ;;  %v7823_v45 = vpop.f32.mrb[112].mxu0  ;;  %v2673_v7 = vadd.f32 %v2657_v38, %v9767_v49 }
 0x4fe   :  { %12815 = vst [vmem:[#allocation30_spill] sm:$0xff] %v9860_v56  ;;  %v2155_v20 = vpop.f32.mrb[113].mxu0  ;;  %12820 = vst [vmem:[#allocation35_spill] sm:$0xff] %v9879_v5 }
 0x4ff   :  { %2990 = vrot.lane.b32.xlu0 %v7823_v45, %s8542_s29 }
 0x500   :  { %v9872_v4 = vpop.permute.xlu0 %2616 }
 0x501   :  { %12818 = vst [vmem:[#allocation33_spill] sm:$0xff] %v9872_v4  ;;  %v9874_v43 = vpop.permute.xlu1 %2618  ;;  %v7826_v56 = vpop.f32.mrb[114].mxu0  ;;  %v2672_v4 = vadd.f32 %v2656_v58, %v9780_v1 }
 0x502   :  { %12819 = vst [vmem:[#allocation34_spill] sm:$0xff] %v9874_v43  ;;  %v2165_v46 = vpop.f32.mrb[115].mxu0 }
 0x503   :  { %2988 = vrot.lane.b32.xlu0 %v2155_v20, %s8542_s29 }
 0x504   :  { %v2705_v60 = vpop.permute.xlu0 %2704 }
 0x505   :  { %v2752_v45 = vsel %vm723_vm1, 0.0, %v2705_v60  ;;  %v2707_v54 = vpop.permute.xlu1 %2706  ;;  %v7829_v55 = vpop.f32.mrb[116].mxu0 }
 0x506   :  { %v2772_v43 = vmul.f32 %v9879_v5, %v2752_v45  ;;  %v2753_v59 = vsel %vm723_vm1, 0.0, %v2707_v54  ;;  %2998 = vrot.lane.b32.xlu1 %v7829_v55, %s8542_s29  ;;  %v2175_v40 = vpop.f32.mrb[117].mxu0 }
 0x507   :  { %v2773_v29 = vmul.f32 %v9879_v5, %v2753_v59  ;;  %2994 = vrot.lane.b32.xlu0 %v7826_v56, %s8542_s29 }
 0x508   :  { %v2788_v20 = vadd.f32 %v2772_v43, %v2672_v4 }
 0x509   :  { %v2789_v31 = vadd.f32 %v2773_v29, %v2673_v7  ;;  %v7832_v60 = vpop.f32.mrb[118].mxu0  ;;  %v9918_v29 = vpop.permute.xlu1 %2714 }
 0x50a   :  { %2996 = vrot.lane.b32.xlu1 %v2175_v40, %s8542_s29  ;;  %v2185_v48 = vpop.f32.mrb[119].mxu0  ;;  %v9893_v58 = vadd.f32 %v9691_v2, %v2788_v20 }
 0x50b   :  { %2992 = vrot.lane.b32.xlu0 %v2165_v46, %s8542_s29  ;;  %v9897_v1 = vadd.f32 %v9688_v0, %v2789_v31 }
 0x50c   :  { %12821 = vst [vmem:[#allocation36_spill] sm:$0xff] %v9893_v58  ;;  %v9921_v20 = vpop.permute.xlu0 %2718 }
 0x50d   :  { %12822 = vst [vmem:[#allocation37_spill] sm:$0xff] %v9897_v1  ;;  %v9899_v55 = vpop.f32.mrb[120].mxu0 }
 0x50e   :  { %3002 = vrot.lane.b32.xlu1 %v7832_v60, %s8542_s29  ;;  %v9902_v38 = vpop.f32.mrb[121].mxu0 }
 0x511   :  { %v9904_v49 = vpop.f32.mrb[122].mxu0 }
 0x512   :  { %3000 = vrot.lane.b32.xlu1 %v2185_v48, %s8542_s29  ;;  %v9907_v40 = vpop.f32.mrb[123].mxu0 }
 0x515   :  { %v7841_v43 = vpop.f32.mrb[124].mxu0 }
 0x516   :  { %3098 = vrot.lane.b32.xlu0 %v7841_v43, %s8543_s24  ;;  %v2215_v2 = vpop.f32.mrb[125].mxu0 }
 0x519   :  { %v7844_v46 = vpop.f32.mrb[126].mxu0 }
 0x51a   :  { %3096 = vrot.lane.b32.xlu0 %v2215_v2, %s8543_s24  ;;  %v2225_v0 = vpop.f32.mrb[127].mxu0  ;;  %v9927_v2 = vpop.permute.xlu1 %2712 }
 0x51b   :  { %12823 = vst [vmem:[#allocation38_spill] sm:$0xff] %v9927_v2 }
 0x51d   :  { %v7847_v56 = vpop.f32.mrb[128].mxu0 }
 0x51e   :  { %3102 = vrot.lane.b32.xlu0 %v7844_v46, %s8543_s24  ;;  %3106 = vrot.lane.b32.xlu1 %v7847_v56, %s8543_s24  ;;  %v2235_v7 = vpop.f32.mrb[129].mxu0 }
 0x521   :  { %v7850_v31 = vpop.f32.mrb[130].mxu0 }
 0x522   :  { %3100 = vrot.lane.b32.xlu0 %v2225_v0, %s8543_s24  ;;  %3104 = vrot.lane.b32.xlu1 %v2235_v7, %s8543_s24  ;;  %v2245_v48 = vpop.f32.mrb[131].mxu0  ;;  %v9931_v0 = vpop.permute.xlu0 %2722 }
 0x523   :  { %12824 = vst [vmem:[#allocation39_spill] sm:$0xff] %v9931_v0 }
 0x525   :  { %v7853_v4 = vpop.f32.mrb[132].mxu0 }
 0x526   :  { %3110 = vrot.lane.b32.xlu1 %v7850_v31, %s8543_s24  ;;  %v2255_v45 = vpop.f32.mrb[133].mxu0 }
 0x527   :  { %3112 = vrot.lane.b32.xlu0 %v2255_v45, %s8543_s24 }
 0x529   :  { %v7856_v54 = vpop.f32.mrb[134].mxu0 }
 0x52a   :  { %3108 = vrot.lane.b32.xlu1 %v2245_v48, %s8543_s24  ;;  %v2265_v59 = vpop.f32.mrb[135].mxu0  ;;  %v9936_v48 = vpop.permute.xlu1 %2716 }
 0x52b   :  { %3118 = vrot.lane.b32.xlu0 %v7856_v54, %s8543_s24  ;;  %12825 = vst [vmem:[#allocation40_spill] sm:$0xff] %v9936_v48 }
 0x52d   :  { %v9923_v60 = vpop.f32.mrb[136].mxu0 }
 0x52e   :  { %3114 = vrot.lane.b32.xlu1 %v7853_v4, %s8543_s24  ;;  %v2275_v43 = vpop.f32.mrb[137].mxu0  ;;  %v9939_v4 = vpop.permute.xlu0 %2720 }
 0x52f   :  { %3116 = vrot.lane.b32.xlu0 %v2265_v59, %s8543_s24  ;;  %12826 = vst [vmem:[#allocation41_spill] sm:$0xff] %v9939_v4  ;;  %v9942_v59 = vpop.permute.xlu1 %2724 }
 0x530   :  { %12827 = vst [vmem:[#allocation42_spill] sm:$0xff] %v9942_v59 }
 0x531   :  { %v9929_v46 = vpop.f32.mrb[138].mxu0 }
 0x532   :  { %v9933_v56 = vpop.f32.mrb[139].mxu0  ;;  %v9944_v58 = vpop.permute.xlu0 %2726 }
 0x533   :  { %12828 = vst [vmem:[#allocation43_spill] sm:$0xff] %v9944_v58 }
 0x535   :  { %v7865_v7 = vpop.f32.mrb[140].mxu0 }
 0x536   :  { %3214 = vrot.lane.b32.xlu0 %v7865_v7, %s8544_s1  ;;  %v2295_v31 = vpop.f32.mrb[141].mxu0  ;;  %v9951_v4 = vpop.permute.xlu0 %2730 }
 0x537   :  { %3212 = vrot.lane.b32.xlu1 %v2295_v31, %s8544_s1  ;;  %v9949_v31 = vpop.permute.xlu1 %2728 }
 0x539   :  { %v7868_v45 = vpop.f32.mrb[142].mxu0 }
 0x53a   :  { %v2305_v54 = vpop.f32.mrb[143].mxu0 }
 0x53b   :  { %3218 = vrot.lane.b32.xlu1 %v7868_v45, %s8544_s1 }
 0x53d   :  { %v7871_v1 = vpop.f32.mrb[144].mxu0 }
 0x53e   :  { %v2315_v5 = vpop.f32.mrb[145].mxu0 }
 0x53f   :  { %3216 = vrot.lane.b32.xlu1 %v2305_v54, %s8544_s1  ;;  %v9957_v54 = vpop.permute.xlu1 %2734 }
 0x541   :  { %v7874_v7 = vpop.f32.mrb[146].mxu0 }
 0x542   :  { %v2325_v0 = vpop.f32.mrb[147].mxu0 }
 0x543   :  { %3222 = vrot.lane.b32.xlu1 %v7871_v1, %s8544_s1  ;;  %3224 = vrot.lane.b32.xlu0 %v2325_v0, %s8544_s1  ;;  %v9965_v0 = vpop.permute.xlu1 %2732 }
 0x545   :  { %v7877_v48 = vpop.f32.mrb[148].mxu0 }
 0x546   :  { %v2335_v45 = vpop.f32.mrb[149].mxu0 }
 0x547   :  { %3220 = vrot.lane.b32.xlu1 %v2315_v5, %s8544_s1  ;;  %3230 = vrot.lane.b32.xlu0 %v7877_v48, %s8544_s1 }
 0x548   :  { %v9955_v58 = vpop.permute.xlu0 %2866 }
 0x549   :  { %v7880_v59 = vpop.f32.mrb[150].mxu0 }
 0x54a   :  { %v2345_v2 = vpop.f32.mrb[151].mxu0 }
 0x54b   :  { %3226 = vrot.lane.b32.xlu1 %v7874_v7, %s8544_s1  ;;  %3228 = vrot.lane.b32.xlu0 %v2335_v45, %s8544_s1  ;;  %v10068_v45 = vmul.f32 %v9708_v10, %v9680_v61  ;;  %v2433_v10 = vsel %vm741_vm3, 0.0, %v9722_v15  ;;  %v10103_v15 = vmul.f32 %v9724_v16, %v9680_v61  ;;  %v10119_v16 = vsub.s32 5, %v9663_v53 }
 0x54c   :  { %v9961_v1 = vpop.permute.xlu0 %2864  ;;  %v9973_v48 = vpop.permute.xlu1 %2870 }
 0x54d   :  { %12843 = vst [vmem:[#allocation58_spill] sm:$0xff] %v10119_v16 }
 0x54f   :  { %3234 = vrot.lane.b32.xlu1 %v7880_v59, %s8544_s1  ;;  %3232 = vrot.lane.b32.xlu0 %v2345_v2, %s8544_s1 }
 0x550   :  { %v9983_v59 = vpop.permute.xlu1 %2868 }
 0x551   :  { %v9967_v5 = vpop.permute.xlu0 %2874 }
 0x553   :  { %2594 = vrot.lane.b32.xlu1 %v9626_v19, %s8539_s28  ;;  %2592 = vrot.lane.b32.xlu0 %v9628_v26, %s8539_s28 }
 0x554   :  { %v9995_v26 = vpop.permute.xlu1 %2872 }
 0x555   :  { %v9975_v7 = vpop.permute.xlu0 %2878  ;;  %12832 = vst [vmem:[#allocation47_spill] sm:$0xff] %v9995_v26  ;;  %v10200_v26 = vsub.s32 6, %v9663_v53 }
 0x556   :  { %12829 = vst [vmem:[#allocation44_spill] sm:$0xff] %v9975_v7  ;;  %v12859_v7 = vld [vmem:[#allocation19_spill] sm:$0xff] }
 0x557   :  { %2856 = vrot.lane.b32.xlu1 %v9785_v42, %s8542_s29  ;;  %2708 = vrot.lane.b32.xlu0 %v9653_v51, %s8539_s28 }
 0x559   :  { %v9981_v2 = vpop.permute.xlu0 %2876 }
 0x55a   :  { %12830 = vst [vmem:[#allocation45_spill] sm:$0xff] %v9981_v2 }
 0x55b   :  { %2858 = vrot.lane.b32.xlu1 %v9782_v6, %s8542_s29  ;;  %2710 = vrot.lane.b32.xlu0 %v9650_v41, %s8539_s28  ;;  %v10003_v6 = vpop.permute.xlu1 %2880 }
 0x55c   :  { %12834 = vst [vmem:[#allocation49_spill] sm:$0xff] %v10003_v6  ;;  %v12856_v6 = vld [vmem:[#allocation17_spill] sm:$0xff] }
 0x55d   :  { %v9989_v19 = vpop.permute.xlu0 %2882 }
 0x55e   :  { %12831 = vst [vmem:[#allocation46_spill] sm:$0xff] %v9989_v19  ;;  %v2534_v19 = vsel %vm732_vm2, 0.0, %v12856_v6 }
 0x55f   :  { %2974 = vrot.lane.b32.xlu1 %v9832_v33, %s8542_s29  ;;  %2972 = vrot.lane.b32.xlu0 %v9835_v44, %s8542_s29  ;;  %v10014_v42 = vpop.permute.xlu1 %2884 }
 0x560   :  { %12835 = vst [vmem:[#allocation50_spill] sm:$0xff] %v10014_v42 }
 0x561   :  { %v10001_v51 = vpop.permute.xlu0 %2886 }
 0x562   :  { %12833 = vst [vmem:[#allocation48_spill] sm:$0xff] %v10001_v51 }
 0x563   :  { %3088 = vrot.lane.b32.xlu1 %v9902_v38, %s8543_s24  ;;  %2860 = vrot.lane.b32.xlu0 %v9797_v37, %s8542_s29  ;;  %v2424_v38 = vsel %vm741_vm3, 0.0, %v9694_v52 }
 0x567   :  { %3090 = vrot.lane.b32.xlu1 %v9899_v55, %s8543_s24  ;;  %2862 = vrot.lane.b32.xlu0 %v9795_v36, %s8542_s29  ;;  %v2426_v55 = vsel %vm741_vm3, 0.0, %v9685_v63  ;;  %v2430_v63 = vsel %vm741_vm3, 0.0, %v9714_v17  ;;  %v2435_v17 = vsel %vm741_vm3, 0.0, %v9720_v22  ;;  %v2434_v22 = vsel %vm741_vm3, 0.0, %v9734_v34 }
 0x568   :  { %v10022_v37 = vpop.permute.xlu1 %2982  ;;  %v2446_v52 = vmul.f32 %v9748_v28, %v2426_v55  ;;  %v10078_v55 = vmul.f32 %v9748_v28, %v2430_v63  ;;  %v2524_v63 = vsel %vm732_vm2, 0.0, %v9793_v57  ;;  %v10134_v57 = vmul.f32 %v9753_v35, %v9680_v61 }
 0x569   :  { %v10009_v41 = vpop.permute.xlu0 %2980 }
 0x56a   :  { %12844 = vst [vmem:[#allocation59_spill] sm:$0xff] %v10134_v57  ;;  %v12866_v57 = vld [vmem:[#allocation25_spill] sm:$0xff] }
 0x56b   :  { %3204 = vrot.lane.b32.xlu1 %v2275_v43, %s8544_s1  ;;  %2976 = vrot.lane.b32.xlu0 %v9841_v30, %s8542_s29 }
 0x56c   :  { %v10030_v30 = vpop.permute.xlu1 %2986 }
 0x56d   :  { %v10016_v33 = vpop.permute.xlu0 %2984  ;;  %12838 = vst [vmem:[#allocation53_spill] sm:$0xff] %v10030_v30 }
 0x56e   :  { %12836 = vst [vmem:[#allocation51_spill] sm:$0xff] %v10016_v33 }
 0x56f   :  { %3206 = vrot.lane.b32.xlu1 %v9923_v60, %s8544_s1  ;;  %2978 = vrot.lane.b32.xlu0 %v9839_v21, %s8542_s29  ;;  %v2425_v21 = vsel %vm741_vm3, 0.0, %v9683_v62  ;;  %v2431_v60 = vsel %vm741_vm3, 0.0, %v9706_v9 }
 0x570   :  { %v2445_v62 = vmul.f32 %v9748_v28, %v2425_v21  ;;  %v10064_v9 = vmul.f32 %v9748_v28, %v2431_v60  ;;  %v2525_v60 = vsel %vm732_vm2, 0.0, %v9765_v47  ;;  %v10114_v47 = vmul.f32 %v9680_v61, %v9726_v18 }
 0x571   :  { %v10024_v36 = vpop.permute.xlu0 %2990  ;;  %v10130_v18 = vmul.f32 %v9680_v61, %v9740_v25 }
 0x572   :  { %12837 = vst [vmem:[#allocation52_spill] sm:$0xff] %v10024_v36  ;;  %v12855_v36 = vld [vmem:[#allocation16_spill] sm:$0xff] }
 0x573   :  { %3094 = vrot.lane.b32.xlu1 %v9904_v49, %s8543_s24  ;;  %3092 = vrot.lane.b32.xlu0 %v9907_v40, %s8543_s24  ;;  %v2428_v49 = vsel %vm741_vm3, 0.0, %v9696_v3  ;;  %v2427_v40 = vsel %vm741_vm3, 0.0, %v9704_v8  ;;  %v2444_v3 = vmul.f32 %v9748_v28, %v2424_v38  ;;  %v10082_v38 = vmul.f32 %v9716_v13, %v9680_v61  ;;  %s8558_s24 = smov 110  }
 0x574   :  { %v2447_v8 = vmul.f32 %v9748_v28, %v2427_v40  ;;  %v2432_v40 = vsel %vm741_vm3, 0.0, %v9736_v23  ;;  %v10099_v13 = vmul.f32 %v9748_v28, %v2435_v17  ;;  %v2453_v23 = vmul.f32 %v9748_v28, %v2433_v10 }
 0x575   :  { %v10038_v44 = vpop.permute.xlu0 %2988  ;;  %v2454_v17 = vmul.f32 %v9748_v28, %v2434_v22  ;;  %v2545_v10 = vmul.f32 %v9744_v27, %v2525_v60 }
 0x576   :  { %12839 = vst [vmem:[#allocation54_spill] sm:$0xff] %v10038_v44 }
 0x577   :  { %3210 = vrot.lane.b32.xlu1 %v9929_v46, %s8544_s1  ;;  %3208 = vrot.lane.b32.xlu0 %v9933_v56, %s8544_s1  ;;  %v2429_v46 = vsel %vm741_vm3, 0.0, %v9712_v12  ;;  %v10060_v56 = vmul.f32 %v9748_v28, %v2428_v49  ;;  %v10072_v12 = vmul.f32 %v9680_v61, %v9710_v11  ;;  %v10090_v11 = vmul.f32 %v9680_v61, %v9718_v14 }
 0x578   :  { %v10050_v43 = vpop.permute.xlu1 %2998  ;;  %v2449_v21 = vmul.f32 %v9748_v28, %v2429_v46  ;;  %v2527_v14 = vsel %vm732_vm2, 0.0, %v9778_v50  ;;  %v2526_v46 = vsel %vm732_vm2, 0.0, %v9789_v32  ;;  %v2452_v50 = vmul.f32 %v9748_v28, %v2432_v40  ;;  %v12845_v40 = vld [vmem:[#allocation13_spill] sm:$0xff] }
 0x579   :  { %12840 = vst [vmem:[#allocation55_spill] sm:$0xff] %v10050_v43  ;;  %v10086_v49 = vpop.permute.xlu0 %2994  ;;  %v10125_v32 = vmul.f32 %v9738_v24, %v9680_v61  ;;  %v2547_v51 = vmul.f32 %v9744_v27, %v2527_v14  ;;  %v2546_v22 = vmul.f32 %v9744_v27, %v2526_v46  ;;  %v2544_v28 = vmul.f32 %v9744_v27, %v2524_v63  ;;  %v12848_v43 = vld [vmem:[#allocation8_spill] sm:$0xff]  ;;  %v12849_v14 = vld [vmem:[#allocation10_spill] sm:$0xff]  ;;  %v12851_v63 = vld [vmem:[#allocation11_spill] sm:$0xff] }
 0x57a   :  { %12841 = vst [vmem:[#allocation56_spill] sm:$0xff] %v10086_v49  ;;  %v2529_v24 = vsel %vm732_vm2, 0.0, %v9799_v39  ;;  %v2528_v60 = vsel %vm732_vm2, 0.0, %v12845_v40  ;;  %v10149_v35 = vmul.f32 %v9680_v61, %v12848_v43  ;;  %v10153_v46 = vmul.f32 %v12849_v14, %v9680_v61  ;;  %v12853_v39 = vld [vmem:[#allocation3_spill] sm:$0xff]  ;;  %12867 = vst [vmem:[#allocation11_spill] sm:$0xff] %v10200_v26 }
 0x57b   :  { %v10157_v42 = vmul.f32 %v9680_v61, %v12851_v63  ;;  %v10161_v40 = vrot.slane %v12853_v39, %v10119_v16  ;;  %v2561_v44 = vadd.f32 %v2545_v10, %v2445_v62  ;;  %v2530_v43 = vsel %vm732_vm2, 0.0, %v12855_v36  ;;  %v12858_v16 = vld [vmem:[#allocation18_spill] sm:$0xff] }
 0x57c   :  { %v10109_v34 = vpop.permute.xlu1 %2996  ;;  %v2549_v2 = vmul.f32 %v9744_v27, %v2529_v24  ;;  %v2548_v61 = vmul.f32 %v9744_v27, %v2528_v60  ;;  %v2532_v62 = vsel %vm732_vm2, 0.0, %v12858_v16  ;;  %v2563_v10 = vadd.f32 %v2547_v51, %v2447_v8  ;;  %v12860_v60 = vld [vmem:[#allocation20_spill] sm:$0xff]  ;;  %v12861_v16 = vld [vmem:[#allocation21_spill] sm:$0xff] }
 0x57d   :  { %12842 = vst [vmem:[#allocation57_spill] sm:$0xff] %v10109_v34  ;;  %v12846_v34 = vld [vmem:[#allocation14_spill] sm:$0xff]  ;;  %v10145_v49 = vpop.permute.xlu0 %2992  ;;  %12852 = vst [vmem:[#allocation8_spill] sm:$0xff] %v10157_v42  ;;  %v2562_v33 = vadd.f32 %v2546_v22, %v2446_v52  ;;  %v2535_v36 = vsel %vm732_vm2, 0.0, %v12859_v7  ;;  %v2554_v24 = vmul.f32 %v9744_v27, %v2534_v19  ;;  %v2552_v42 = vmul.f32 %v9744_v27, %v2532_v62  ;;  %v12863_v7 = vld [vmem:[#allocation23_spill] sm:$0xff] }
 0x57e   :  { %v2533_v25 = vsel %vm732_vm2, 0.0, %v12846_v34  ;;  %12847 = vst [vmem:[#allocation13_spill] sm:$0xff] %v10145_v49  ;;  %12850 = vst [vmem:[#allocation14_spill] sm:$0xff] %v10153_v46  ;;  %v12854_v34 = vld [vmem:[#allocation15_spill] sm:$0xff]  ;;  %v2641_v51 = vsel %vm723_vm1, 0.0, %v12861_v16  ;;  %v12862_v52 = vld [vmem:[#allocation22_spill] sm:$0xff]  ;;  %v2565_v22 = vadd.f32 %v2549_v2, %v2449_v21  ;;  %v2555_v19 = vmul.f32 %v9744_v27, %v2535_v36 }
 0x57f   :  { %v2531_v49 = vsel %vm732_vm2, 0.0, %v12854_v34  ;;  %v2553_v63 = vmul.f32 %v9744_v27, %v2533_v25  ;;  %v2560_v34 = vadd.f32 %v2544_v28, %v2444_v3  ;;  %v2640_v25 = vsel %vm723_vm1, 0.0, %v12860_v60  ;;  %v12865_v60 = vld [vmem:[#allocation24_spill] sm:$0xff] }
 0x580   :  { %v10169_v14 = vpop.permute.xlu1 %3002  ;;  %v2551_v6 = vmul.f32 %v9744_v27, %v2531_v49  ;;  %v2643_v3 = vsel %vm723_vm1, 0.0, %v12862_v52  ;;  %v2642_v8 = vsel %vm723_vm1, 0.0, %v12863_v7  ;;  %v2564_v49 = vadd.f32 %v2548_v61, %v10060_v56 }
 0x581   :  { %12857 = vst [vmem:[#allocation10_spill] sm:$0xff] %v10169_v14  ;;  %v2550_v14 = vmul.f32 %v9744_v27, %v2530_v43  ;;  %v2569_v28 = vadd.f32 %v2553_v63, %v2453_v23  ;;  %v12864_v43 = vld [vmem:[#allocation31_spill] sm:$0xff]  ;;  %v2644_v62 = vsel %vm723_vm1, 0.0, %v12865_v60  ;;  %v2645_v16 = vsel %vm723_vm1, 0.0, %v12866_v57  ;;  %v12870_v57 = vld [vmem:[#allocation26_spill] sm:$0xff] }
 0x582   :  { %v2660_v46 = vmul.f32 %v12864_v43, %v2640_v25  ;;  %v2567_v2 = vadd.f32 %v2551_v6, %v10064_v9  ;;  %v2661_v56 = vmul.f32 %v12864_v43, %v2641_v51  ;;  %v2663_v27 = vmul.f32 %v12864_v43, %v2643_v3  ;;  %v12872_v6 = vld [vmem:[#allocation29_spill] sm:$0xff] }
 0x583   :  { %v2662_v21 = vmul.f32 %v12864_v43, %v2642_v8  ;;  %v2566_v23 = vadd.f32 %v2550_v14, %v10078_v55  ;;  %v2570_v61 = vadd.f32 %v2554_v24, %v2454_v17  ;;  %v2568_v63 = vadd.f32 %v2552_v42, %v2452_v50 }
 0x584   :  { %v10202_v52 = vpop.permute.xlu1 %3000  ;;  %v2649_v36 = vsel %vm723_vm1, 0.0, %v12870_v57  ;;  %v2664_v25 = vmul.f32 %v12864_v43, %v2644_v62  ;;  %v2665_v60 = vmul.f32 %v12864_v43, %v2645_v16  ;;  %v2648_v51 = vsel %vm723_vm1, 0.0, %v12872_v6  ;;  %v12876_v6 = vld [vmem:[#allocation38_spill] sm:$0xff] }
 0x585   :  { %12868 = vst [vmem:[#allocation3_spill] sm:$0xff] %v10202_v52  ;;  %v12871_v52 = vld [vmem:[#allocation27_spill] sm:$0xff]  ;;  %v2571_v3 = vadd.f32 %v2555_v19, %v10099_v13  ;;  %v2676_v8 = vadd.f32 %v2660_v46, %v2560_v34  ;;  %v10224_v42 = vrot.slane %v12853_v39, %v10200_v26  ;;  %v2677_v14 = vadd.f32 %v2661_v56, %v2561_v44  ;;  %v12878_v56 = vld [vmem:[#allocation34_spill] sm:$0xff] }
 0x586   :  { %v2647_v9 = vsel %vm723_vm1, 0.0, %v12871_v52  ;;  %v2679_v24 = vadd.f32 %v2663_v27, %v2563_v10  ;;  %v2678_v62 = vadd.f32 %v2662_v21, %v2562_v33  ;;  %v2669_v16 = vmul.f32 %v12864_v43, %v2649_v36  ;;  %v12877_v33 = vld [vmem:[#allocation33_spill] sm:$0xff]  ;;  %v12879_v21 = vld [vmem:[#allocation39_spill] sm:$0xff] }
 0x587   :  { %v2667_v52 = vmul.f32 %v12864_v43, %v2647_v9  ;;  %v2668_v13 = vmul.f32 %v12864_v43, %v2648_v51  ;;  %v2757_v46 = vsel %vm723_vm1, 0.0, %v9918_v29  ;;  %v2759_v34 = vsel %vm723_vm1, 0.0, %v9921_v20  ;;  %v12880_v29 = vld [vmem:[#allocation40_spill] sm:$0xff]  ;;  %v12884_v51 = vld [vmem:[#allocation41_spill] sm:$0xff] }
 0x588   :  { %v10178_v30 = vpop.permute.xlu0 %3098  ;;  %v2680_v19 = vadd.f32 %v2664_v25, %v2564_v49  ;;  %v2756_v44 = vsel %vm723_vm1, 0.0, %v12876_v6  ;;  %v2650_v10 = vsel %vm723_vm1, 0.0, %v12877_v33  ;;  %v2651_v27 = vsel %vm723_vm1, 0.0, %v12878_v56  ;;  %v12883_v49 = vld [vmem:[#allocation35_spill] sm:$0xff]  ;;  %v12885_v6 = vld [vmem:[#allocation42_spill] sm:$0xff] }
 0x589   :  { %v2761_v36 = vsel %vm723_vm1, 0.0, %v12879_v21  ;;  %v2758_v9 = vsel %vm723_vm1, 0.0, %v12880_v29  ;;  %v2777_v25 = vmul.f32 %v12883_v49, %v2757_v46  ;;  %v2762_v33 = vsel %vm723_vm1, 0.0, %v12885_v6  ;;  %v12886_v46 = vld [vmem:[#allocation43_spill] sm:$0xff] }
 0x58a   :  { %v2685_v56 = vadd.f32 %v2669_v16, %v2569_v28  ;;  %v2683_v26 = vadd.f32 %v2667_v52, %v2567_v2  ;;  %v2684_v21 = vadd.f32 %v2668_v13, %v2568_v63  ;;  %v2670_v29 = vmul.f32 %v12864_v43, %v2650_v10 }
 0x58b   :  { %v2782_v6 = vmul.f32 %v12883_v49, %v2762_v33  ;;  %v2764_v28 = vsel %vm723_vm1, 0.0, %v9949_v31  ;;  %v2793_v63 = vadd.f32 %v2777_v25, %v2677_v14  ;;  %v10270_v52 = vsub.s32 7, %v9663_v53 }
 0x58c   :  { %v10204_v7 = vpop.permute.xlu0 %3096  ;;  %v2784_v14 = vmul.f32 %v12883_v49, %v2764_v28  ;;  %v2766_v53 = vsel %vm723_vm1, 0.0, %v9965_v0 }
 0x58d   :  { %12869 = vst [vmem:[#allocation15_spill] sm:$0xff] %v10204_v7  ;;  %v12873_v7 = vld [vmem:[#allocation30_spill] sm:$0xff] }
 0x58e   :  { %v2646_v55 = vsel %vm723_vm1, 0.0, %v12873_v7  ;;  %v2681_v7 = vadd.f32 %v2665_v60, %v2565_v22  ;;  %v2779_v60 = vmul.f32 %v12883_v49, %v2759_v34  ;;  %v2763_v34 = vsel %vm723_vm1, 0.0, %v12886_v46 }
 0x58f   :  { %v2666_v57 = vmul.f32 %v12864_v43, %v2646_v55  ;;  %v2760_v55 = vsel %vm723_vm1, 0.0, %v12884_v51 }
 0x590   :  { %v10226_v17 = vpop.permute.xlu0 %3102  ;;  %v10228_v50 = vpop.permute.xlu1 %3106  ;;  %v2780_v51 = vmul.f32 %v12883_v49, %v2760_v55  ;;  %v2795_v16 = vadd.f32 %v2779_v60, %v2679_v24  ;;  %v2686_v24 = vadd.f32 %v2670_v29, %v2570_v61  ;;  %v2913_v29 = vsel %vm741_vm3, %v9967_v5, 0.0 }
 0x591   :  { %12874 = vst [vmem:[#allocation16_spill] sm:$0xff] %v10226_v17  ;;  %12875 = vst [vmem:[#allocation17_spill] sm:$0xff] %v10228_v50  ;;  %v2776_v50 = vmul.f32 %v12883_v49, %v2756_v44  ;;  %v2671_v17 = vmul.f32 %v12864_v43, %v2651_v27  ;;  %v2682_v2 = vadd.f32 %v2666_v57, %v2566_v23 }
 0x592   :  { %v2783_v27 = vmul.f32 %v12883_v49, %v2763_v34  ;;  %v2796_v25 = vadd.f32 %v2780_v51, %v2680_v19  ;;  %v2831_v0 = vadd.f32 %v10082_v38, %v2795_v16  ;;  %v12888_v51 = vld [vmem:[#allocation47_spill] sm:$0xff] }
 0x593   :  { %v2792_v10 = vadd.f32 %v2776_v50, %v2676_v8  ;;  %v2687_v57 = vadd.f32 %v2671_v17, %v2571_v3  ;;  %v2798_v60 = vadd.f32 %v2782_v6, %v2682_v2  ;;  %v2800_v3 = vadd.f32 %v2784_v14, %v2684_v21  ;;  %v12890_v2 = vld [vmem:[#allocation14_spill] sm:$0xff] }
 0x594   :  { %v10248_v20 = vpop.permute.xlu0 %3100  ;;  %v10250_v22 = vpop.permute.xlu1 %3104  ;;  %v2909_v17 = vsel %vm741_vm3, %v9955_v58, 0.0  ;;  %v2832_v38 = vadd.f32 %v10114_v47, %v2796_v25  ;;  %v2910_v58 = vsel %vm741_vm3, %v9983_v59, 0.0  ;;  %v3141_v59 = vsel %vm732_vm2, %v10178_v30, 0.0  ;;  %v12887_v46 = vld [vmem:[#allocation15_spill] sm:$0xff] }
 0x595   :  { %12881 = vst [vmem:[#allocation18_spill] sm:$0xff] %v10248_v20  ;;  %12882 = vst [vmem:[#allocation19_spill] sm:$0xff] %v10250_v22  ;;  %v2781_v20 = vmul.f32 %v12883_v49, %v2761_v36  ;;  %v2778_v22 = vmul.f32 %v12883_v49, %v2758_v9  ;;  %v2765_v36 = vsel %vm723_vm1, 0.0, %v9951_v4  ;;  %v2767_v9 = vsel %vm723_vm1, 0.0, %v9957_v54 }
 0x596   :  { %v2785_v8 = vmul.f32 %v12883_v49, %v2765_v36  ;;  %v2787_v50 = vmul.f32 %v12883_v49, %v2767_v9  ;;  %v2829_v4 = vadd.f32 %v10068_v45, %v2793_v63  ;;  %v10289_v54 = vrot.slane %v12853_v39, %v10270_v52  ;;  %v12892_v36 = vld [vmem:[#allocation53_spill] sm:$0xff] }
 0x597   :  { %v2797_v31 = vadd.f32 %v2781_v20, %v2681_v7  ;;  %v2794_v23 = vadd.f32 %v2778_v22, %v2678_v62  ;;  %v2799_v62 = vadd.f32 %v2783_v27, %v2683_v26  ;;  %v2786_v7 = vmul.f32 %v12883_v49, %v2766_v53 }
 0x598   :  { %v10272_v13 = vpop.permute.xlu1 %3110  ;;  %v2828_v20 = vadd.f32 %v10072_v12, %v2792_v10  ;;  %v2908_v26 = vsel %vm741_vm3, %v9961_v1, 0.0  ;;  %v2911_v12 = vsel %vm741_vm3, %v9973_v48, 0.0  ;;  %v10308_v39 = vadd.f32 %v10130_v18, %v2798_v60  ;;  %v12891_v10 = vld [vmem:[#allocation8_spill] sm:$0xff] }
 0x599   :  { %v10274_v44 = vpop.permute.xlu0 %3112  ;;  %v2830_v19 = vadd.f32 %v10090_v11, %v2794_v23  ;;  %v2833_v45 = vadd.f32 %v10103_v15, %v2797_v31  ;;  %v2801_v55 = vadd.f32 %v2785_v8, %v2685_v56  ;;  %v2803_v33 = vadd.f32 %v2787_v50, %v2687_v57  ;;  %v10357_v57 = vld [vmem:[%s12787_s4 + $0x8] ss:$0 sm:$0xff]  ;;  %v12893_v50 = vld [vmem:[#allocation16_spill] sm:$0xff]  ;;  %s8557_s4 = smov 112  }
 0x59a   :  { %v3025_v11 = vsel %vm741_vm3, %v10022_v37, 0.0  ;;  %v2802_v15 = vadd.f32 %v2786_v7, %v2686_v24  ;;  %v2929_v21 = vmul.f32 %v10161_v40, %v2909_v17  ;;  %v10316_v1 = vadd.f32 %v10125_v32, %v2799_v62  ;;  %v12894_v7 = vld [vmem:[#allocation44_spill] sm:$0xff] }
 0x59b   :  { %v3024_v48 = vsel %vm741_vm3, %v10009_v41, 0.0  ;;  %v2928_v47 = vmul.f32 %v10161_v40, %v2908_v26  ;;  %v2931_v18 = vmul.f32 %v10161_v40, %v2911_v12  ;;  %v10323_v56 = vadd.f32 %v10149_v35, %v2800_v3  ;;  %v12889_v35 = vld [vmem:[#allocation59_spill] sm:$0xff] }
 0x59c   :  { %v10300_v22 = vpop.permute.xlu1 %3108  ;;  %v2930_v37 = vmul.f32 %v10161_v40, %v2910_v58  ;;  %v3045_v32 = vmul.f32 %v10224_v42, %v3025_v11  ;;  %v3140_v41 = vsel %vm732_vm2, %v12887_v46, 0.0  ;;  %v2912_v6 = vsel %vm741_vm3, %v12888_v51, 0.0  ;;  %v12895_v12 = vld [vmem:[#allocation51_spill] sm:$0xff]  ;;  %v12898_v46 = vld [vmem:[#allocation46_spill] sm:$0xff] }
 0x59d   :  { %v10294_v61 = vpop.permute.xlu0 %3118  ;;  %v10338_v28 = vadd.f32 %v12889_v35, %v2801_v55  ;;  %v10341_v30 = vadd.f32 %v12890_v2, %v2803_v33  ;;  %v3044_v63 = vmul.f32 %v10224_v42, %v3024_v48  ;;  %v2945_v5 = vadd.f32 %v2929_v21, %v2829_v4 }
 0x59e   :  { %v10347_v27 = vadd.f32 %v12891_v10, %v2802_v15  ;;  %v3027_v9 = vsel %vm741_vm3, %v12892_v36, 0.0  ;;  %v3161_v31 = vmul.f32 %v10289_v54, %v3141_v59  ;;  %v2944_v23 = vadd.f32 %v2928_v47, %v2828_v20  ;;  %v12900_v10 = vld [vmem:[#allocation52_spill] sm:$0xff] }
 0x59f   :  { %v2947_v14 = vadd.f32 %v2931_v18, %v2831_v0  ;;  %v2933_v53 = vmul.f32 %v10161_v40, %v2913_v29  ;;  %v3160_v24 = vmul.f32 %v10289_v54, %v3140_v41  ;;  %v2946_v25 = vadd.f32 %v2930_v37, %v2830_v19  ;;  %v12896_v18 = vld [vmem:[#allocation45_spill] sm:$0xff]  ;;  %v12897_v37 = vld [vmem:[#allocation18_spill] sm:$0xff] }
 0x5a0   :  { %v10344_v16 = vpop.permute.xlu1 %3114  ;;  %v2932_v60 = vmul.f32 %v10161_v40, %v2912_v6  ;;  %v3061_v8 = vadd.f32 %v3045_v32, %v2945_v5  ;;  %v3143_v4 = vsel %vm732_vm2, %v12893_v50, 0.0  ;;  %v2915_v20 = vsel %vm741_vm3, %v12894_v7, 0.0  ;;  %v12902_v50 = vld [vmem:[#allocation17_spill] sm:$0xff] }
 0x5a1   :  { %v10333_v34 = vpop.permute.xlu0 %3116  ;;  %v3060_v0 = vadd.f32 %v3044_v63, %v2944_v23  ;;  %v3047_v3 = vmul.f32 %v10224_v42, %v3027_v9  ;;  %v3026_v55 = vsel %vm741_vm3, %v12895_v12, 0.0  ;;  %v2949_v11 = vadd.f32 %v2933_v53, %v2833_v45  ;;  %v12899_v63 = vld [vmem:[#allocation49_spill] sm:$0xff] }
 0x5a2   :  { %v3177_v19 = vadd.f32 %v3161_v31, %v3061_v8  ;;  %v3163_v21 = vmul.f32 %v10289_v54, %v3143_v4  ;;  %v2935_v47 = vmul.f32 %v10161_v40, %v2915_v20  ;;  %v2914_v59 = vsel %vm741_vm3, %v12896_v18, 0.0  ;;  %v12901_v31 = vld [vmem:[#allocation54_spill] sm:$0xff] }
 0x5a3   :  { %v3176_v15 = vadd.f32 %v3160_v24, %v3060_v0  ;;  %v3142_v29 = vsel %vm732_vm2, %v12897_v37, 0.0  ;;  %v2917_v41 = vsel %vm741_vm3, %v12898_v46, 0.0  ;;  %v3063_v51 = vadd.f32 %v3047_v3, %v2947_v14 }
 0x5a4   :  { %v3046_v45 = vmul.f32 %v10224_v42, %v3026_v55  ;;  %v2948_v2 = vadd.f32 %v2932_v60, %v2832_v38  ;;  %v2916_v5 = vsel %vm741_vm3, %v12899_v63, 0.0  ;;  %v3029_v36 = vsel %vm741_vm3, %v12900_v10, 0.0  ;;  %v12909_v63 = vld [vmem:[#allocation48_spill] sm:$0xff] }
 0x5a5   :  { %v3028_v23 = vsel %vm741_vm3, %v12901_v31, 0.0  ;;  %v3179_v14 = vadd.f32 %v3163_v21, %v3063_v51  ;;  %v3162_v53 = vmul.f32 %v10289_v54, %v3142_v29  ;;  %v2951_v38 = vadd.f32 %v2935_v47, %v10316_v1  ;;  %v12904_v1 = vld [vmem:[#allocation55_spill] sm:$0xff] }
 0x5a6   :  { %v2934_v60 = vmul.f32 %v10161_v40, %v2914_v59  ;;  %v2937_v8 = vmul.f32 %v10161_v40, %v2917_v41  ;;  %v3145_v4 = vsel %vm732_vm2, %v12902_v50, 0.0  ;;  %v3062_v20 = vadd.f32 %v3046_v45, %v2946_v25  ;;  %v12906_v59 = vld [vmem:[#allocation56_spill] sm:$0xff]  ;;  %v12908_v41 = vld [vmem:[#allocation13_spill] sm:$0xff] }
 0x5a7   :  { %v3049_v0 = vmul.f32 %v10224_v42, %v3029_v36  ;;  %v3048_v12 = vmul.f32 %v10224_v42, %v3028_v23  ;;  %v3033_v55 = vsel %vm741_vm3, %v12904_v1, 0.0  ;;  %v3031_v37 = vsel %vm741_vm3, %v12906_v59, 0.0 }
 0x5a8   :  { %v3215_v62 = vpop.permute.xlu0 %3214  ;;  %v2953_v47 = vadd.f32 %v2937_v8, %v10338_v28  ;;  %v3030_v51 = vsel %vm741_vm3, %v12908_v41, 0.0  ;;  %v3053_v28 = vmul.f32 %v10224_v42, %v3033_v55  ;;  %v3149_v1 = vsel %vm732_vm2, %v10344_v16, 0.0  ;;  %v12910_v55 = vld [vmem:[#allocation10_spill] sm:$0xff] }
 0x5a9   :  { %v3257_v17 = vsel %vm723_vm1, %v3215_v62, 0.0  ;;  %v3213_v26 = vpop.permute.xlu1 %3212  ;;  %v12903_v62 = vld [vmem:[#allocation50_spill] sm:$0xff]  ;;  %v3065_v29 = vadd.f32 %v3049_v0, %v2949_v11  ;;  %v3064_v36 = vadd.f32 %v3048_v12, %v2948_v2  ;;  %v3051_v11 = vmul.f32 %v10224_v42, %v3031_v37 }
 0x5aa   :  { %v3277_v33 = vmul.f32 %v10357_v57, %v3257_v17  ;;  %v3256_v58 = vsel %vm723_vm1, %v3213_v26, 0.0  ;;  %v2918_v7 = vsel %vm741_vm3, %v12903_v62, 0.0  ;;  %v2936_v26 = vmul.f32 %v10161_v40, %v2916_v5 }
 0x5ab   :  { %v3276_v48 = vmul.f32 %v10357_v57, %v3256_v58  ;;  %v3178_v58 = vadd.f32 %v3162_v53, %v3062_v20  ;;  %v2938_v18 = vmul.f32 %v10161_v40, %v2918_v7  ;;  %v3147_v53 = vsel %vm732_vm2, %v10272_v13, 0.0 }
 0x5ac   :  { %v3293_v32 = vadd.f32 %v3277_v33, %v3177_v19  ;;  %v3165_v33 = vmul.f32 %v10289_v54, %v3145_v4  ;;  %v3069_v7 = vadd.f32 %v3053_v28, %v2953_v47  ;;  %v3167_v13 = vmul.f32 %v10289_v54, %v3147_v53 }
 0x5ad   :  { %v3292_v6 = vadd.f32 %v3276_v48, %v3176_v15  ;;  %v3219_v35 = vpop.permute.xlu1 %3218  ;;  %v12905_v15 = vld [vmem:[#allocation19_spill] sm:$0xff]  ;;  %v2950_v48 = vadd.f32 %v2934_v60, %v10308_v39  ;;  %v2919_v39 = vsel %vm741_vm3, %v12909_v63, 0.0  ;;  %v2952_v60 = vadd.f32 %v2936_v26, %v10323_v56 }
 0x5ae   :  { %v3259_v9 = vsel %vm723_vm1, %v3219_v35, 0.0  ;;  %3310 = vrot.lane.b32.xlu1 %v3293_v32, %s8545_s27  ;;  %v3144_v21 = vsel %vm732_vm2, %v12905_v15, 0.0  ;;  %v12907_v32 = vld [vmem:[#allocation57_spill] sm:$0xff]  ;;  %v2954_v2 = vadd.f32 %v2938_v18, %v10347_v27  ;;  %v2939_v8 = vmul.f32 %v10161_v40, %v2919_v39 }
 0x5af   :  { %v3279_v24 = vmul.f32 %v10357_v57, %v3259_v9  ;;  %3308 = vrot.lane.b32.xlu0 %v3292_v6, %s8545_s27  ;;  %v3032_v46 = vsel %vm741_vm3, %v12907_v32, 0.0  ;;  %v3164_v5 = vmul.f32 %v10289_v54, %v3144_v21  ;;  %v3181_v9 = vadd.f32 %v3165_v33, %v3065_v29  ;;  %v12911_v33 = vld [vmem:[#allocation3_spill] sm:$0xff] }
 0x5b0   :  { %v3052_v23 = vmul.f32 %v10224_v42, %v3032_v46  ;;  %v3169_v37 = vmul.f32 %v10289_v54, %v3149_v1  ;;  %v3151_v41 = vsel %vm732_vm2, %v10294_v61, 0.0 }
 0x5b1   :  { %v3295_v3 = vadd.f32 %v3279_v24, %v3179_v14  ;;  %v3217_v17 = vpop.permute.xlu1 %3216  ;;  %v3050_v14 = vmul.f32 %v10224_v42, %v3030_v51  ;;  %v3146_v24 = vsel %vm732_vm2, %v10300_v22, 0.0  ;;  %v3180_v20 = vadd.f32 %v3164_v5, %v3064_v36 }
 0x5b2   :  { %v3258_v19 = vsel %vm723_vm1, %v3217_v17, 0.0  ;;  %v3148_v22 = vsel %vm732_vm2, %v10274_v44, 0.0  ;;  %v3166_v56 = vmul.f32 %v10289_v54, %v3146_v24  ;;  %v3067_v17 = vadd.f32 %v3051_v11, %v2951_v38 }
 0x5b3   :  { %v3278_v25 = vmul.f32 %v10357_v57, %v3258_v19  ;;  %3314 = vrot.lane.b32.xlu1 %v3295_v3, %s8545_s27  ;;  %v3068_v26 = vadd.f32 %v3052_v23, %v2952_v60  ;;  %v3066_v12 = vadd.f32 %v3050_v14, %v2950_v48  ;;  %v3035_v19 = vsel %vm741_vm3, %v12910_v55, 0.0  ;;  %v12913_v55 = vld [vmem:[#allocation9_spill] sm:$0xff] }
 0x5b4   :  { %v3168_v47 = vmul.f32 %v10289_v54, %v3148_v22  ;;  %v3183_v16 = vadd.f32 %v3167_v13, %v3067_v17  ;;  %v3055_v32 = vmul.f32 %v10224_v42, %v3035_v19  ;;  %v3150_v51 = vsel %vm732_vm2, %v10333_v34, 0.0 }
 0x5b5   :  { %v3294_v45 = vadd.f32 %v3278_v25, %v3178_v58  ;;  %v3223_v6 = vpop.permute.xlu1 %3222  ;;  %v3225_v35 = vpop.permute.xlu0 %3224  ;;  %v3034_v58 = vsel %vm741_vm3, %v12911_v33, 0.0  ;;  %v3182_v59 = vadd.f32 %v3166_v56, %v3066_v12  ;;  %v2955_v5 = vadd.f32 %v2939_v8, %v10341_v30  ;;  %v12912_v56 = vld [vmem:[#allocation12_spill] sm:$0xff] }
 0x5b6   :  { %v3261_v10 = vsel %vm723_vm1, %v3223_v6, 0.0  ;;  %v3262_v0 = vsel %vm723_vm1, %v3225_v35, 0.0  ;;  %v3054_v46 = vmul.f32 %v10224_v42, %v3034_v58  ;;  %v3171_v61 = vmul.f32 %v10289_v54, %v3151_v41  ;;  %v12914_v58 = vld [vmem:[#allocation5_spill] sm:$0xff] }
 0x5b7   :  { %v3281_v31 = vmul.f32 %v10357_v57, %v3261_v10  ;;  %3312 = vrot.lane.b32.xlu0 %v3294_v45, %s8545_s27  ;;  %v3282_v44 = vmul.f32 %v10357_v57, %v3262_v0  ;;  %v3184_v10 = vadd.f32 %v3168_v47, %v3068_v26  ;;  %v3170_v34 = vmul.f32 %v10289_v54, %v3150_v51 }
 0x5b8   :  { %v3070_v23 = vadd.f32 %v3054_v46, %v2954_v2 }
 0x5b9   :  { %v3297_v50 = vadd.f32 %v3281_v31, %v3181_v9  ;;  %v3221_v4 = vpop.permute.xlu1 %3220  ;;  %v3231_v62 = vpop.permute.xlu0 %3230  ;;  %v3298_v45 = vadd.f32 %v3282_v44, %v3182_v59  ;;  %v3185_v9 = vadd.f32 %v3169_v37, %v3069_v7  ;;  %v3071_v31 = vadd.f32 %v3055_v32, %v2955_v5 }
 0x5ba   :  { %v3260_v3 = vsel %vm723_vm1, %v3221_v4, 0.0  ;;  %v3265_v38 = vsel %vm723_vm1, %v3231_v62, 0.0  ;;  %v3186_v62 = vadd.f32 %v3170_v34, %v3070_v23 }
 0x5bb   :  { %v3280_v27 = vmul.f32 %v10357_v57, %v3260_v3  ;;  %3326 = vrot.lane.b32.xlu1 %v3297_v50, %s8546_s9  ;;  %v3285_v6 = vmul.f32 %v10357_v57, %v3265_v38  ;;  %v3187_v4 = vadd.f32 %v3171_v61, %v3071_v31 }
 0x5bd   :  { %v3296_v15 = vadd.f32 %v3280_v27, %v3180_v20  ;;  %v3227_v21 = vpop.permute.xlu1 %3226  ;;  %v3229_v25 = vpop.permute.xlu0 %3228  ;;  %v3301_v14 = vadd.f32 %v3285_v6, %v3185_v9 }
 0x5be   :  { %v3263_v48 = vsel %vm723_vm1, %v3227_v21, 0.0  ;;  %v3264_v18 = vsel %vm723_vm1, %v3229_v25, 0.0  ;;  %v12915_v21 = vld [vmem:[#allocation4_spill] sm:$0xff] }
 0x5bf   :  { %v3283_v29 = vmul.f32 %v10357_v57, %v3263_v48  ;;  %3324 = vrot.lane.b32.xlu0 %v3296_v15, %s8546_s9  ;;  %v3284_v63 = vmul.f32 %v10357_v57, %v3264_v18 }
 0x5c1   :  { %v3299_v35 = vadd.f32 %v3283_v29, %v3183_v16  ;;  %v3235_v39 = vpop.permute.xlu1 %3234  ;;  %v3233_v28 = vpop.permute.xlu0 %3232  ;;  %v3300_v53 = vadd.f32 %v3284_v63, %v3184_v10 }
 0x5c2   :  { %v3267_v36 = vsel %vm723_vm1, %v3235_v39, 0.0  ;;  %v3266_v11 = vsel %vm723_vm1, %v3233_v28, 0.0 }
 0x5c3   :  { %3330 = vrot.lane.b32.xlu1 %v3299_v35, %s8546_s9  ;;  %3328 = vrot.lane.b32.xlu0 %v3298_v45, %s8546_s9  ;;  %v3287_v30 = vmul.f32 %v10357_v57, %v3267_v36  ;;  %v3286_v24 = vmul.f32 %v10357_v57, %v3266_v11 }
 0x5c5   :  { %v2595_v60 = vpop.permute.xlu1 %2594  ;;  %v2593_v8 = vpop.permute.xlu0 %2592  ;;  %v3303_v2 = vadd.f32 %v3287_v30, %v3187_v4  ;;  %v3302_v0 = vadd.f32 %v3286_v24, %v3186_v62 }
 0x5c6   :  { %v2638_v50 = vsel %vm723_vm1, 0.0, %v2593_v8  ;;  %v2639_v20 = vsel %vm723_vm1, 0.0, %v2595_v60  ;;  %v12916_v60 = vld [vmem:[#allocation36_spill] sm:$0xff] }
 0x5c7   :  { %v2658_v7 = vmul.f32 %v12864_v43, %v2638_v50  ;;  %3342 = vrot.lane.b32.xlu1 %v3301_v14, %s8547_s2  ;;  %3340 = vrot.lane.b32.xlu0 %v3300_v53, %s8547_s2  ;;  %v2659_v22 = vmul.f32 %v12864_v43, %v2639_v20 }
 0x5c9   :  { %v2709_v3 = vpop.permute.xlu0 %2708  ;;  %v2674_v27 = vadd.f32 %v2658_v7, %v12912_v56  ;;  %v2675_v19 = vadd.f32 %v2659_v22, %v12913_v55  ;;  %v2857_v43 = vpop.permute.xlu1 %2856  ;;  %v12917_v7 = vld [vmem:[#allocation37_spill] sm:$0xff] }
 0x5ca   :  { %v2754_v13 = vsel %vm723_vm1, 0.0, %v2709_v3  ;;  %v2904_v63 = vsel %vm741_vm3, %v2857_v43, 0.0 }
 0x5cb   :  { %v2774_v17 = vmul.f32 %v12883_v49, %v2754_v13  ;;  %3346 = vrot.lane.b32.xlu1 %v3303_v2, %s8547_s2  ;;  %3344 = vrot.lane.b32.xlu0 %v3302_v0, %s8547_s2  ;;  %v2924_v10 = vmul.f32 %v10161_v40, %v2904_v63 }
 0x5cd   :  { %v2790_v26 = vadd.f32 %v2774_v17, %v2674_v27  ;;  %v2711_v12 = vpop.permute.xlu0 %2710  ;;  %v2859_v47 = vpop.permute.xlu1 %2858  ;;  %v2940_v8 = vadd.f32 %v2924_v10, %v12916_v60 }
 0x5ce   :  { %v2755_v1 = vsel %vm723_vm1, 0.0, %v2711_v12  ;;  %v2905_v39 = vsel %vm741_vm3, %v2859_v47, 0.0 }
 0x5cf   :  { %v2775_v33 = vmul.f32 %v12883_v49, %v2755_v1  ;;  %v2826_v44 = vadd.f32 %v12914_v58, %v2790_v26  ;;  %v2925_v11 = vmul.f32 %v10161_v40, %v2905_v39 }
 0x5d1   :  { %v2791_v15 = vadd.f32 %v2775_v33, %v2675_v19  ;;  %v2975_v38 = vpop.permute.xlu1 %2974  ;;  %v2973_v48 = vpop.permute.xlu0 %2972  ;;  %v2941_v20 = vadd.f32 %v2925_v11, %v12917_v7 }
 0x5d2   :  { %v3020_v5 = vsel %vm741_vm3, %v2973_v48, 0.0  ;;  %v3021_v36 = vsel %vm741_vm3, %v2975_v38, 0.0 }
 0x5d3   :  { %v2827_v25 = vadd.f32 %v12915_v21, %v2791_v15  ;;  %v3040_v9 = vmul.f32 %v10224_v42, %v3020_v5  ;;  %v3041_v53 = vmul.f32 %v10224_v42, %v3021_v36 }
 0x5d5   :  { %v3089_v18 = vpop.permute.xlu1 %3088  ;;  %v2861_v16 = vpop.permute.xlu0 %2860  ;;  %v3056_v13 = vadd.f32 %v3040_v9, %v2940_v8  ;;  %v3057_v12 = vadd.f32 %v3041_v53, %v2941_v20 }
 0x5d6   :  { %v3136_v61 = vsel %vm732_vm2, %v3089_v18, 0.0  ;;  %v2906_v34 = vsel %vm741_vm3, %v2861_v16, 0.0 }
 0x5d7   :  { %v3156_v50 = vmul.f32 %v10289_v54, %v3136_v61  ;;  %v2926_v2 = vmul.f32 %v10161_v40, %v2906_v34 }
 0x5d9   :  { %v3091_v59 = vpop.permute.xlu1 %3090  ;;  %v2863_v37 = vpop.permute.xlu0 %2862  ;;  %v3172_v19 = vadd.f32 %v3156_v50, %v3056_v13  ;;  %v2942_v21 = vadd.f32 %v2926_v2, %v2826_v44 }
 0x5da   :  { %v3137_v31 = vsel %vm732_vm2, %v3091_v59, 0.0  ;;  %v2907_v30 = vsel %vm741_vm3, %v2863_v37, 0.0 }
 0x5db   :  { %v3157_v0 = vmul.f32 %v10289_v54, %v3137_v31  ;;  %v2927_v22 = vmul.f32 %v10161_v40, %v2907_v30 }
 0x5dd   :  { %v3205_v29 = vpop.permute.xlu1 %3204  ;;  %v2977_v32 = vpop.permute.xlu0 %2976  ;;  %v3173_v40 = vadd.f32 %v3157_v0, %v3057_v12  ;;  %v2943_v47 = vadd.f32 %v2927_v22, %v2827_v25 }
 0x5de   :  { %v3252_v24 = vsel %vm723_vm1, %v3205_v29, 0.0  ;;  %v3022_v4 = vsel %vm741_vm3, %v2977_v32, 0.0 }
 0x5df   :  { %v3272_v56 = vmul.f32 %v10357_v57, %v3252_v24  ;;  %v3042_v1 = vmul.f32 %v10224_v42, %v3022_v4 }
 0x5e1   :  { %v3207_v46 = vpop.permute.xlu1 %3206  ;;  %v2979_v41 = vpop.permute.xlu0 %2978  ;;  %v3288_v38 = vadd.f32 %v3272_v56, %v3172_v19  ;;  %v3058_v59 = vadd.f32 %v3042_v1, %v2942_v21  ;;  %v3371_v19 = vld [vmem:[%s12918_s25 + $0x8] sm:$0xff] }
 0x5e2   :  { %v3253_v62 = vsel %vm723_vm1, %v3207_v46, 0.0  ;;  %v3023_v3 = vsel %vm741_vm3, %v2979_v41, 0.0 }
 0x5e3   :  { %v3273_v55 = vmul.f32 %v10357_v57, %v3253_v62  ;;  %v3043_v33 = vmul.f32 %v10224_v42, %v3023_v3 }
 0x5e5   :  { %v3095_v51 = vpop.permute.xlu1 %3094  ;;  %v3093_v45 = vpop.permute.xlu0 %3092  ;;  %v3289_v37 = vadd.f32 %v3273_v55, %v3173_v40  ;;  %v3059_v32 = vadd.f32 %v3043_v33, %v2943_v47  ;;  %v3370_v55 = vld [vmem:[%s12918_s25] sm:$0xff] }
 0x5e6   :  { %v3138_v27 = vsel %vm732_vm2, %v3093_v45, 0.0  ;;  %v3139_v58 = vsel %vm732_vm2, %v3095_v51, 0.0  ;;  %v3479_v33 = vld [vmem:[%s12728_s7] sm:$0xff]  ;;  %vm5544_vm2 = vcmask 932864  }
 0x5e7   :  { %v3158_v43 = vmul.f32 %v10289_v54, %v3138_v27  ;;  %v3159_v29 = vmul.f32 %v10289_v54, %v3139_v58  ;;  %v3480_v58 = vld [vmem:[%s12728_s7 + $0x8] sm:$0xff] }
 0x5e9   :  { %v3211_v49 = vpop.permute.xlu1 %3210  ;;  %v3209_v6 = vpop.permute.xlu0 %3208  ;;  %v3174_v46 = vadd.f32 %v3158_v43, %v3058_v59  ;;  %v3175_v63 = vadd.f32 %v3159_v29, %v3059_v32  ;;  %v3366_v32 = vld [vmem:[%s12729_s8] sm:$0xff] }
 0x5ea   :  { %v3254_v15 = vsel %vm723_vm1, %v3209_v6, 0.0  ;;  %v3255_v48 = vsel %vm723_vm1, %v3211_v49, 0.0 }
 0x5eb   :  { %v3274_v42 = vmul.f32 %v10357_v57, %v3254_v15  ;;  %v3275_v44 = vmul.f32 %v10357_v57, %v3255_v48  ;;  %v8152_v15 = vpack.c.bf16 %v3480_v58, %v3479_v33  ;;  %v3585_v33 = vld [vmem:[%s12730_s10 + $0x28] sm:$0xff]  ;;  %v3586_v58 = vld [vmem:[%s12730_s10 + $0x30] sm:$0xff] }
 0x5ed   :  { %v3290_v39 = vadd.f32 %v3274_v42, %v3174_v46  ;;  %v3291_v36 = vadd.f32 %v3275_v44, %v3175_v63  ;;  %8153 = vmatprep.subr.bf16.mxu1 %v8152_v15  ;;  %v3367_v46 = vld [vmem:[%s12729_s8 + $0x8] sm:$0xff]  ;;  %v3482_v63 = vld [vmem:[%s12728_s7 + $0x18] sm:$0xff] }
 0x5ee   :  { %8155 = vmatpush3.bf16.msra.mxu1 %v8152_v15  ;;  %v3587_v15 = vld [vmem:[%s12730_s10 + $0x38] sm:$0xff] }
 0x620   :  { %v3311_v35 = vpop.permute.xlu1 %3310 }
 0x621   :  { %v3309_v28 = vpop.permute.xlu0 %3308  ;;  %v3353_v41 = vsel %vm782_vm4, %v3289_v37, %v3311_v35 }
 0x622   :  { %v3352_v25 = vsel %vm782_vm4, %v3288_v38, %v3309_v28 }
 0x625   :  { %v10496_v23 = vpop.permute.xlu1 %3314 }
 0x626   :  { %v3355_v9 = vsel %vm782_vm4, %v3291_v36, %v10496_v23 }
 0x629   :  { %v3313_v14 = vpop.permute.xlu0 %3312 }
 0x62a   :  { %v3354_v35 = vsel %vm782_vm4, %v3290_v39, %v3313_v14 }
 0x62d   :  { %v3327_v17 = vpop.permute.xlu1 %3326 }
 0x62e   :  { %v3358_v51 = vsel %vm3356_vm6, %v3353_v41, %v3327_v17 }
 0x631   :  { %v3325_v26 = vpop.permute.xlu0 %3324 }
 0x632   :  { %v3357_v45 = vsel %vm3356_vm6, %v3352_v25, %v3325_v26 }
 0x635   :  { %v3331_v18 = vpop.permute.xlu1 %3330  ;;  %v3329_v16 = vpop.permute.xlu0 %3328 }
 0x636   :  { %v3359_v28 = vsel %vm3356_vm6, %v3354_v35, %v3329_v16  ;;  %v3360_v31 = vsel %vm3356_vm6, %v3355_v9, %v3331_v18  ;;  %v3373_v35 = vld [vmem:[%s12918_s25 + $0x18] sm:$0xff] }
 0x639   :  { %v3343_v49 = vpop.permute.xlu1 %3342  ;;  %v3341_v6 = vpop.permute.xlu0 %3340 }
 0x63a   :  { %v3363_v54 = vsel %vm3361_vm7, %v3358_v51, %v3343_v49  ;;  %v3362_v5 = vsel %vm3361_vm7, %v3357_v45, %v3341_v6  ;;  %v3368_v45 = vld [vmem:[%s12729_s8 + $0x10] sm:$0xff] }
 0x63b   :  { %v3377_v10 = vsel %vm110_vm0, %v3363_v54, 0.0  ;;  %v3374_v57 = vsel %vm110_vm0, %v3362_v5, 0.0  ;;  %v3481_v6 = vld [vmem:[%s12728_s7 + $0x10] sm:$0xff]  ;;  %s8560_s7 = smov 34  }
 0x63c   :  { %3378 = vadd.xlane.f32.xlu1 %v3377_v10  ;;  %3375 = vadd.xlane.f32.xlu0 %v3374_v57  ;;  %v3372_v57 = vld [vmem:[%s12918_s25 + $0x10] sm:$0xff] }
 0x63d   :  { %v3347_v11 = vpop.permute.xlu1 %3346  ;;  %v3345_v61 = vpop.permute.xlu0 %3344 }
 0x63e   :  { %v3364_v34 = vsel %vm3361_vm7, %v3359_v28, %v3345_v61  ;;  %v3365_v30 = vsel %vm3361_vm7, %v3360_v31, %v3347_v11 }
 0x63f   :  { %v3380_v53 = vsel %vm110_vm0, %v3364_v34, 0.0  ;;  %v3383_v14 = vsel %vm110_vm0, %v3365_v30, 0.0 }
 0x640   :  { %3381 = vadd.xlane.f32.xlu0 %v3380_v53 }
 0x644   :  { %3384 = vadd.xlane.f32.xlu0 %v3383_v14 }
 0x6c9   :  { %v3379_v24 = vpop.xlane.xlu1 %3378  ;;  %v3376_v60 = vpop.xlane.xlu0 %3375 }
 0x6ca   :  { %v3388_v8 = vmul.f32 0.03125, %v3379_v24  ;;  %v3387_v50 = vmul.f32 0.03125, %v3376_v60 }
 0x6cc   :  { %v10539_v4 = vsub.f32 %v3363_v54, %v3388_v8  ;;  %v10541_v62 = vsub.f32 %v3362_v5, %v3387_v50  ;;  %v8156_v54 = vpack.c.bf16 %v3482_v63, %v3481_v6  ;;  %v3369_v5 = vld [vmem:[%s12729_s8 + $0x18] sm:$0xff]  ;;  %v3608_v6 = vld [vmem:[%s12730_s10 + $0xe0] sm:$0xff]  ;;  %v3609_v63 = vld [vmem:[%s12730_s10 + $0xe8] sm:$0xff]  ;;  %s8548_s8 = smov 10  }
 0x6cd   :  { %v3382_v23 = vpop.xlane.xlu0 %3381 }
 0x6ce   :  { %v3389_v7 = vmul.f32 0.03125, %v3382_v23  ;;  %v3396_v20 = vmul.f32 %v10539_v4, %v10539_v4  ;;  %v3395_v2 = vmul.f32 %v10541_v62, %v10541_v62  ;;  %8157 = vmatprep.subr.bf16.mxu1 %v8156_v54 }
 0x6cf   :  { %8159 = vmatpush3.bf16.msra.mxu1 %v8156_v54  ;;  %v3611_v54 = vld [vmem:[%s12730_s10 + $0xf8] sm:$0xff] }
 0x6d0   :  { %v10547_v0 = vsub.f32 %v3364_v34, %v3389_v7  ;;  %v3402_v3 = vsel %vm110_vm0, %v3396_v20, 0.0  ;;  %v3399_v13 = vsel %vm110_vm0, %v3395_v2, 0.0 }
 0x6d1   :  { %3403 = vadd.xlane.f32.xlu0 %v3402_v3  ;;  %3400 = vadd.xlane.f32.xlu1 %v3399_v13  ;;  %v3385_v22 = vpop.xlane.xlu0 %3384  ;;  %v3580_v13 = vld [vmem:[%s12730_s10] sm:$0xff] }
 0x6d2   :  { %v3390_v56 = vmul.f32 0.03125, %v3385_v22  ;;  %v3397_v27 = vmul.f32 %v10547_v0, %v10547_v0 }
 0x6d4   :  { %v10553_v17 = vsub.f32 %v3365_v30, %v3390_v56  ;;  %v3405_v26 = vsel %vm110_vm0, %v3397_v27, 0.0 }
 0x6d5   :  { %3406 = vadd.xlane.f32.xlu1 %v3405_v26 }
 0x6d6   :  { %v3398_v12 = vmul.f32 %v10553_v17, %v10553_v17 }
 0x6d8   :  { %v3408_v1 = vsel %vm110_vm0, %v3398_v12, 0.0  ;;  %v3581_v12 = vld [vmem:[%s12730_s10 + $0x8] sm:$0xff] }
 0x6d9   :  { %3409 = vadd.xlane.f32.xlu0 %v3408_v1  ;;  %v3582_v1 = vld [vmem:[%s12730_s10 + $0x10] sm:$0xff] }
 0x6e6   :  { %3453 = vperm.xlu1 %8491, %v3370_v55   ;;  %v3583_v55 = vld [vmem:[%s12730_s10 + $0x18] sm:$0xff] }
 0x6ea   :  { %3458 = vperm.xlu1 %8491, %v3371_v19   ;;  %v3584_v19 = vld [vmem:[%s12730_s10 + $0x20] sm:$0xff] }
 0x75e   :  { %v3401_v21 = vpop.xlane.xlu1 %3400  ;;  %v3404_v40 = vpop.xlane.xlu0 %3403 }
 0x75f   :  { %v3411_v43 = vmul.f32 0.03125, %v3401_v21  ;;  %v3412_v47 = vmul.f32 0.03125, %v3404_v40  ;;  %v3588_v21 = vld [vmem:[%s12730_s10 + $0x40] sm:$0xff]  ;;  %v3589_v40 = vld [vmem:[%s12730_s10 + $0x48] sm:$0xff] }
 0x761   :  { %v3415_v38 = vadd.f32 1e-05, %v3411_v43  ;;  %v3416_v48 = vadd.f32 1e-05, %v3412_v47  ;;  %v3590_v43 = vld [vmem:[%s12730_s10 + $0x50] sm:$0xff]  ;;  %v3591_v47 = vld [vmem:[%s12730_s10 + $0x58] sm:$0xff] }
 0x762   :  { %v3407_v18 = vpop.xlane.xlu1 %3406 }
 0x763   :  { %8508 = vrsqrt.f32 %v3415_v38  ;;  %v3413_v16 = vmul.f32 0.03125, %v3407_v18  ;;  %v3592_v38 = vld [vmem:[%s12730_s10 + $0x60] sm:$0xff]  ;;  %v3594_v18 = vld [vmem:[%s12730_s10 + $0x70] sm:$0xff] }
 0x764   :  { %8510 = vrsqrt.f32 %v3416_v48  ;;  %v3593_v48 = vld [vmem:[%s12730_s10 + $0x68] sm:$0xff] }
 0x765   :  { %v3417_v59 = vadd.f32 1e-05, %v3413_v16  ;;  %v3595_v16 = vld [vmem:[%s12730_s10 + $0x78] sm:$0xff] }
 0x766   :  { %v3410_v37 = vpop.xlane.xlu0 %3409  ;;  %v3454_v28 = vpop.permute.xlu1 %3453 }
 0x767   :  { %8512 = vrsqrt.f32 %v3417_v59  ;;  %v3414_v29 = vmul.f32 0.03125, %v3410_v37  ;;  %v3596_v59 = vld [vmem:[%s12730_s10 + $0x80] sm:$0xff]  ;;  %v3597_v37 = vld [vmem:[%s12730_s10 + $0x88] sm:$0xff] }
 0x769   :  { %v3418_v42 = vadd.f32 1e-05, %v3414_v29  ;;  %v3598_v29 = vld [vmem:[%s12730_s10 + $0x90] sm:$0xff] }
 0x76a   :  { %v3459_v11 = vpop.permute.xlu1 %3458 }
 0x76b   :  { %8514 = vrsqrt.f32 %v3418_v42  ;;  %v3599_v42 = vld [vmem:[%s12730_s10 + $0x98] sm:$0xff] }
 0x76d   :  { %v8509_v44 = vpop.eup %8508 }
 0x76e   :  { %v8511_v41 = vpop.eup %8510  ;;  %v3423_v25 = vmul.f32 %v8509_v44, %v3366_v32  ;;  %v3600_v32 = vld [vmem:[%s12730_s10 + $0xa0] sm:$0xff]  ;;  %v3602_v44 = vld [vmem:[%s12730_s10 + $0xb0] sm:$0xff] }
 0x76f   :  { %v3424_v51 = vmul.f32 %v8511_v41, %v3367_v46  ;;  %v3601_v46 = vld [vmem:[%s12730_s10 + $0xa8] sm:$0xff]  ;;  %v3603_v41 = vld [vmem:[%s12730_s10 + $0xb8] sm:$0xff] }
 0x770   :  { %3429 = vperm.xlu1 %8491, %v3423_v25   ;;  %v3604_v25 = vld [vmem:[%s12730_s10 + $0xc0] sm:$0xff] }
 0x771   :  { %v8513_v49 = vpop.eup %8512  ;;  %3434 = vperm.xlu0 %8490, %v3424_v51   ;;  %v3605_v51 = vld [vmem:[%s12730_s10 + $0xc8] sm:$0xff] }
 0x772   :  { %v3425_v39 = vmul.f32 %v8513_v49, %v3368_v45  ;;  %v3606_v45 = vld [vmem:[%s12730_s10 + $0xd0] sm:$0xff]  ;;  %v3607_v49 = vld [vmem:[%s12730_s10 + $0xd8] sm:$0xff] }
 0x775   :  { %v8515_v10 = vpop.eup %8514  ;;  %3439 = vperm.xlu0 %8490, %v3425_v39   ;;  %v3610_v39 = vld [vmem:[%s12730_s10 + $0xf0] sm:$0xff] }
 0x776   :  { %v3426_v36 = vmul.f32 %v8515_v10, %v3369_v5  ;;  %v3612_v5 = vld [vmem:[%s12730_s10 + $0x100] sm:$0xff]  ;;  %v3613_v10 = vld [vmem:[%s12730_s10 + $0x108] sm:$0xff] }
 0x778   :  { %3444 = vperm.xlu1 %8491, %v3426_v36   ;;  %v3615_v36 = vld [vmem:[%s12730_s10 + $0x118] sm:$0xff] }
 0x779   :  { %3463 = vperm.xlu0 %8490, %v3372_v57   ;;  %v3614_v57 = vld [vmem:[%s12730_s10 + $0x110] sm:$0xff] }
 0x77c   :  { %3468 = vperm.xlu1 %8491, %v3373_v35   ;;  %v3616_v35 = vld [vmem:[%s12730_s10 + $0x120] sm:$0xff] }
 0x7ef   :  { %v3430_v61 = vpop.permute.xlu1 %3429 }
 0x7f0   :  { %v3447_v9 = vmul.f32 %v3430_v61, %v10541_v62  ;;  %v3435_v34 = vpop.permute.xlu0 %3434  ;;  %v3619_v61 = vld [vmem:[%s12730_s10 + $0x138] sm:$0xff] }
 0x7f1   :  { %v3448_v31 = vmul.f32 %v3435_v34, %v10539_v4  ;;  %v3621_v34 = vld [vmem:[%s12730_s10 + $0x148] sm:$0xff] }
 0x7f2   :  { %v3471_v53 = vadd.f32 %v3454_v28, %v3447_v9  ;;  %v3617_v28 = vld [vmem:[%s12730_s10 + $0x128] sm:$0xff]  ;;  %v3620_v9 = vld [vmem:[%s12730_s10 + $0x140] sm:$0xff] }
 0x7f3   :  { %v3472_v30 = vadd.f32 %v3459_v11, %v3448_v31  ;;  %v3618_v11 = vld [vmem:[%s12730_s10 + $0x130] sm:$0xff] }
 0x7f4   :  { %v3475_v14 = vmax.f32 %v3471_v53, 0.0  ;;  %v3440_v24 = vpop.permute.xlu0 %3439  ;;  %v3622_v31 = vld [vmem:[%s12730_s10 + $0x150] sm:$0xff]  ;;  %v3623_v53 = vld [vmem:[%s12730_s10 + $0x158] sm:$0xff] }
 0x7f5   :  { %v3476_v60 = vmax.f32 %v3472_v30, 0.0  ;;  %v3449_v8 = vmul.f32 %v3440_v24, %v10547_v0  ;;  %v3624_v30 = vld [vmem:[%s12730_s10 + $0x160] sm:$0xff]  ;;  %v3626_v24 = vld [vmem:[%s12730_s10 + $0x170] sm:$0xff] }
 0x7f6   :  { %7889 = vmatprep.mubr.msk.f32.mxu1 %vm110_vm0, %v3475_v14  ;;  %v3625_v14 = vld [vmem:[%s12730_s10 + $0x168] sm:$0xff] }
 0x7f7   :  { %v3445_v50 = vpop.permute.xlu1 %3444  ;;  %7890 = vmatmul.mubr.msk.f32.vlgmr.msra.gmra.mrb[24].mxu1 %vm110_vm0, %v3476_v60  ;;  %v3627_v60 = vld [vmem:[%s12730_s10 + $0x178] sm:$0xff] }
 0x7f8   :  { %v3464_v23 = vpop.permute.xlu0 %3463  ;;  %v3450_v20 = vmul.f32 %v3445_v50, %v10553_v17  ;;  %v3629_v50 = vld [vmem:[%s12730_s10 + $0x188] sm:$0xff] }
 0x7f9   :  { %v3473_v7 = vadd.f32 %v3464_v23, %v3449_v8  ;;  %v3628_v8 = vld [vmem:[%s12730_s10 + $0x180] sm:$0xff]  ;;  %v3630_v23 = vld [vmem:[%s12730_s10 + $0x190] sm:$0xff] }
 0x7fb   :  { %v3477_v62 = vmax.f32 %v3473_v7, 0.0  ;;  %v3469_v2 = vpop.permute.xlu1 %3468  ;;  %v3631_v7 = vld [vmem:[%s12730_s10 + $0x198] sm:$0xff] }
 0x7fc   :  { %v3474_v3 = vadd.f32 %v3469_v2, %v3450_v20  ;;  %v3632_v20 = vld [vmem:[%s12730_s10 + $0x1a0] sm:$0xff]  ;;  %v3634_v2 = vld [vmem:[%s12730_s10 + $0x1b0] sm:$0xff] }
 0x7fd   :  { %7892 = vmatprep.mubr.msk.f32.mxu1 %vm110_vm0, %v3477_v62  ;;  %v3633_v62 = vld [vmem:[%s12730_s10 + $0x1a8] sm:$0xff] }
 0x7fe   :  { %v3478_v4 = vmax.f32 %v3474_v3, 0.0  ;;  %v3635_v3 = vld [vmem:[%s12730_s10 + $0x1b8] sm:$0xff] }
 0x800   :  { %7893 = vmatmul.mubr.msk.f32.gmra.mrb[26].mxu1 %vm110_vm0, %v3478_v4  ;;  %v3636_v4 = vld [vmem:[%s12730_s10 + $0x1c0] sm:$0xff] }
 0x801   :  { %7903 = vmatprep.mubr.msk.f32.mxu1 %vm110_vm0, %v3580_v13  ;;  %v3637_v13 = vld [vmem:[%s12730_s10 + $0x1c8] sm:$0xff] }
 0x8ca   :  { %v7891_v0 = vpop.f32.mrb[24].mxu1 }
 0x8cb   :  { %v3561_v22 = vpop.f32.mrb[25].mxu1 }
 0x8cc   :  { %v8160_v56 = vpack.c.bf16 %v7891_v0, %v3561_v22  ;;  %v3638_v0 = vld [vmem:[%s12730_s10 + $0x1d0] sm:$0xff]  ;;  %v3639_v22 = vld [vmem:[%s12730_s10 + $0x1d8] sm:$0xff] }
 0x8ce   :  { %8161 = vmatprep.subr.bf16.mxu1 %v8160_v56 }
 0x8cf   :  { %8163 = vmatpush3.bf16.msra.mxu1 %v8160_v56  ;;  %v3640_v56 = vld [vmem:[%s12730_s10 + $0x1e0] sm:$0xff] }
 0x8d3   :  { %v7894_v27 = vpop.f32.mrb[26].mxu1 }
 0x8d4   :  { %v3571_v17 = vpop.f32.mrb[27].mxu1 }
 0x8d5   :  { %v8164_v26 = vpack.c.bf16 %v7894_v27, %v3571_v17  ;;  %v3641_v27 = vld [vmem:[%s12730_s10 + $0x1e8] sm:$0xff]  ;;  %v3642_v17 = vld [vmem:[%s12730_s10 + $0x1f0] sm:$0xff] }
 0x8d7   :  { %8165 = vmatprep.subr.bf16.mxu1 %v8164_v26 }
 0x8d8   :  { %8167 = vmatpush3.bf16.msra.mxu1 %v8164_v26  ;;  %v3643_v26 = vld [vmem:[%s12730_s10 + $0x1f8] sm:$0xff] }
 0x8db   :  { %7904 = vmatmul.mubr.msk.f32.vlgmr.msra.gmra.mrb[28].mxu1 %vm110_vm0, %v3581_v12  ;;  %v3644_v12 = vld [vmem:[%s12730_s10 + $0x200] sm:$0xff] }
 0x8dc   :  { %7906 = vmatprep.mubr.msk.f32.mxu1 %vm110_vm0, %v3582_v1  ;;  %v3645_v1 = vld [vmem:[%s12730_s10 + $0x208] sm:$0xff] }
 0x8df   :  { %7907 = vmatmul.mubr.msk.f32.gmra.mrb[30].mxu1 %vm110_vm0, %v3583_v55  ;;  %v3646_v55 = vld [vmem:[%s12730_s10 + $0x210] sm:$0xff] }
 0x8e0   :  { %7909 = vmatprep.mubr.msk.f32.mxu1 %vm110_vm0, %v3584_v19  ;;  %v3647_v19 = vld [vmem:[%s12730_s10 + $0x218] sm:$0xff] }
 0x8e3   :  { %7910 = vmatmul.mubr.msk.f32.gmra.mrb[32].mxu1 %vm110_vm0, %v3585_v33  ;;  %v3648_v33 = vld [vmem:[%s12730_s10 + $0x220] sm:$0xff] }
 0x8e4   :  { %7912 = vmatprep.mubr.msk.f32.mxu1 %vm110_vm0, %v3586_v58  ;;  %v3649_v58 = vld [vmem:[%s12730_s10 + $0x228] sm:$0xff] }
 0x8e7   :  { %7913 = vmatmul.mubr.msk.f32.gmra.mrb[34].mxu1 %vm110_vm0, %v3587_v15  ;;  %v3650_v15 = vld [vmem:[%s12730_s10 + $0x230] sm:$0xff] }
 0x8e8   :  { %7915 = vmatprep.mubr.msk.f32.mxu1 %vm110_vm0, %v3588_v21  ;;  %v3651_v21 = vld [vmem:[%s12730_s10 + $0x238] sm:$0xff] }
 0x8eb   :  { %7916 = vmatmul.mubr.msk.f32.gmra.mrb[36].mxu1 %vm110_vm0, %v3589_v40 }
 0x8ec   :  { %7918 = vmatprep.mubr.msk.f32.mxu1 %vm110_vm0, %v3590_v43 }
 0x8ef   :  { %7919 = vmatmul.mubr.msk.f32.gmra.mrb[38].mxu1 %vm110_vm0, %v3591_v47 }
 0x8f0   :  { %7921 = vmatprep.mubr.msk.f32.mxu1 %vm110_vm0, %v3592_v38 }
 0x8f3   :  { %7922 = vmatmul.mubr.msk.f32.gmra.mrb[40].mxu1 %vm110_vm0, %v3593_v48 }
 0x8f4   :  { %7924 = vmatprep.mubr.msk.f32.mxu1 %vm110_vm0, %v3594_v18 }
 0x8f7   :  { %7925 = vmatmul.mubr.msk.f32.gmra.mrb[42].mxu1 %vm110_vm0, %v3595_v16 }
 0x8f8   :  { %7927 = vmatprep.mubr.msk.f32.mxu1 %vm110_vm0, %v3596_v59 }
 0x8fb   :  { %7928 = vmatmul.mubr.msk.f32.gmra.mrb[44].mxu1 %vm110_vm0, %v3597_v37 }
 0x8fc   :  { %7930 = vmatprep.mubr.msk.f32.mxu1 %vm110_vm0, %v3598_v29 }
 0x8ff   :  { %7931 = vmatmul.mubr.msk.f32.gmra.mrb[46].mxu1 %vm110_vm0, %v3599_v42 }
 0x900   :  { %7933 = vmatprep.mubr.msk.f32.mxu1 %vm110_vm0, %v3600_v32 }
 0x903   :  { %7934 = vmatmul.mubr.msk.f32.gmra.mrb[48].mxu1 %vm110_vm0, %v3601_v46 }
 0x904   :  { %7936 = vmatprep.mubr.msk.f32.mxu1 %vm110_vm0, %v3602_v44 }
 0x907   :  { %7937 = vmatmul.mubr.msk.f32.gmra.mrb[50].mxu1 %vm110_vm0, %v3603_v41 }
 0x908   :  { %7939 = vmatprep.mubr.msk.f32.mxu1 %vm110_vm0, %v3604_v25 }
 0x90b   :  { %7940 = vmatmul.mubr.msk.f32.gmra.mrb[52].mxu1 %vm110_vm0, %v3605_v51 }
 0x90c   :  { %7942 = vmatprep.mubr.msk.f32.mxu1 %vm110_vm0, %v3606_v45 }
 0x90f   :  { %7943 = vmatmul.mubr.msk.f32.gmra.mrb[54].mxu1 %vm110_vm0, %v3607_v49 }
 0x910   :  { %7945 = vmatprep.mubr.msk.f32.mxu1 %vm110_vm0, %v3608_v6 }
 0x913   :  { %7946 = vmatmul.mubr.msk.f32.gmra.mrb[56].mxu1 %vm110_vm0, %v3609_v63 }
 0x914   :  { %7948 = vmatprep.mubr.msk.f32.mxu1 %vm110_vm0, %v3610_v39 }
 0x917   :  { %7949 = vmatmul.mubr.msk.f32.gmra.mrb[58].mxu1 %vm110_vm0, %v3611_v54 }
 0x918   :  { %7951 = vmatprep.mubr.msk.f32.mxu1 %vm110_vm0, %v3612_v5 }
 0x91b   :  { %7952 = vmatmul.mubr.msk.f32.gmra.mrb[60].mxu1 %vm110_vm0, %v3613_v10 }
 0x91c   :  { %7954 = vmatprep.mubr.msk.f32.mxu1 %vm110_vm0, %v3614_v57 }
 0x91f   :  { %7955 = vmatmul.mubr.msk.f32.gmra.mrb[62].mxu1 %vm110_vm0, %v3615_v36 }
 0x920   :  { %7957 = vmatprep.mubr.msk.f32.mxu1 %vm110_vm0, %v3616_v35 }
 0x923   :  { %7958 = vmatmul.mubr.msk.f32.gmra.mrb[64].mxu1 %vm110_vm0, %v3617_v28 }
 0x924   :  { %7960 = vmatprep.mubr.msk.f32.mxu1 %vm110_vm0, %v3618_v11 }
 0x927   :  { %7961 = vmatmul.mubr.msk.f32.gmra.mrb[66].mxu1 %vm110_vm0, %v3619_v61  ;;  %v10931_v61 = vld [vmem:[%s12731_s11] sm:$0xff] }
 0x928   :  { %7963 = vmatprep.mubr.msk.f32.mxu1 %vm110_vm0, %v3620_v9 }
 0x92b   :  { %7964 = vmatmul.mubr.msk.f32.gmra.mrb[68].mxu1 %vm110_vm0, %v3621_v34 }
 0x92c   :  { %7966 = vmatprep.mubr.msk.f32.mxu1 %vm110_vm0, %v3622_v31  ;;  %v12919_v31 = vld [vmem:[#allocation2_spill] sm:$0xff] }
 0x92f   :  { %7967 = vmatmul.mubr.msk.f32.gmra.mrb[70].mxu1 %vm110_vm0, %v3623_v53  ;;  %v10936_v53 = vrot.slane %v10931_v61, %v12919_v31 }
 0x930   :  { %7969 = vmatprep.mubr.msk.f32.mxu1 %vm110_vm0, %v3624_v30 }
 0x933   :  { %7970 = vmatmul.mubr.msk.f32.gmra.mrb[72].mxu1 %vm110_vm0, %v3625_v14 }
 0x934   :  { %7972 = vmatprep.mubr.msk.f32.mxu1 %vm110_vm0, %v3626_v24 }
 0x937   :  { %7973 = vmatmul.mubr.msk.f32.gmra.mrb[74].mxu1 %vm110_vm0, %v3627_v60 }
 0x938   :  { %7975 = vmatprep.mubr.msk.f32.mxu1 %vm110_vm0, %v3628_v8 }
 0x93b   :  { %7976 = vmatmul.mubr.msk.f32.gmra.mrb[76].mxu1 %vm110_vm0, %v3629_v50 }
 0x93c   :  { %7978 = vmatprep.mubr.msk.f32.mxu1 %vm110_vm0, %v3630_v23 }
 0x93f   :  { %7979 = vmatmul.mubr.msk.f32.gmra.mrb[78].mxu1 %vm110_vm0, %v3631_v7 }
 0x940   :  { %7981 = vmatprep.mubr.msk.f32.mxu1 %vm110_vm0, %v3632_v20 }
 0x943   :  { %7982 = vmatmul.mubr.msk.f32.gmra.mrb[80].mxu1 %vm110_vm0, %v3633_v62 }
 0x944   :  { %7984 = vmatprep.mubr.msk.f32.mxu1 %vm110_vm0, %v3634_v2 }
 0x947   :  { %7985 = vmatmul.mubr.msk.f32.gmra.mrb[82].mxu1 %vm110_vm0, %v3635_v3 }
 0x948   :  { %7987 = vmatprep.mubr.msk.f32.mxu1 %vm110_vm0, %v3636_v4 }
 0x94b   :  { %7988 = vmatmul.mubr.msk.f32.gmra.mrb[84].mxu1 %vm110_vm0, %v3637_v13 }
 0x94c   :  { %7990 = vmatprep.mubr.msk.f32.mxu1 %vm110_vm0, %v3638_v0 }
 0x94f   :  { %7991 = vmatmul.mubr.msk.f32.gmra.mrb[86].mxu1 %vm110_vm0, %v3639_v22 }
 0x950   :  { %7993 = vmatprep.mubr.msk.f32.mxu1 %vm110_vm0, %v3640_v56 }
 0x953   :  { %7994 = vmatmul.mubr.msk.f32.gmra.mrb[88].mxu1 %vm110_vm0, %v3641_v27 }
 0x954   :  { %7996 = vmatprep.mubr.msk.f32.mxu1 %vm110_vm0, %v3642_v17 }
 0x957   :  { %7997 = vmatmul.mubr.msk.f32.gmra.mrb[90].mxu1 %vm110_vm0, %v3643_v26 }
 0x958   :  { %7999 = vmatprep.mubr.msk.f32.mxu1 %vm110_vm0, %v3644_v12 }
 0x95b   :  { %8000 = vmatmul.mubr.msk.f32.gmra.mrb[92].mxu1 %vm110_vm0, %v3645_v1 }
 0x95c   :  { %8002 = vmatprep.mubr.msk.f32.mxu1 %vm110_vm0, %v3646_v55 }
 0x95f   :  { %8003 = vmatmul.mubr.msk.f32.gmra.mrb[94].mxu1 %vm110_vm0, %v3647_v19 }
 0x960   :  { %8005 = vmatprep.mubr.msk.f32.mxu1 %vm110_vm0, %v3648_v33 }
 0x963   :  { %8006 = vmatmul.mubr.msk.f32.gmra.mrb[96].mxu1 %vm110_vm0, %v3649_v58 }
 0x964   :  { %8008 = vmatprep.mubr.msk.f32.mxu1 %vm110_vm0, %v3650_v15 }
 0x967   :  { %8009 = vmatmul.mubr.msk.f32.gmra.mrb[98].mxu1 %vm110_vm0, %v3651_v21 }
 0x9ae   :  { %v10891_v40 = vpop.f32.mrb[28].mxu1 }
 0x9af   :  { %v10893_v43 = vpop.f32.mrb[29].mxu1 }
 0x9b2   :  { %v7908_v47 = vpop.f32.mrb[30].mxu1 }
 0x9b3   :  { %4309 = vrot.lane.b32.xlu0 %v7908_v47, %s8548_s8  ;;  %v3944_v38 = vpop.f32.mrb[31].mxu1 }
 0x9b6   :  { %v7911_v48 = vpop.f32.mrb[32].mxu1 }
 0x9b7   :  { %4307 = vrot.lane.b32.xlu0 %v3944_v38, %s8548_s8  ;;  %v3954_v18 = vpop.f32.mrb[33].mxu1 }
 0x9b8   :  { %4311 = vrot.lane.b32.xlu1 %v3954_v18, %s8548_s8 }
 0x9ba   :  { %v7914_v16 = vpop.f32.mrb[34].mxu1 }
 0x9bb   :  { %4313 = vrot.lane.b32.xlu0 %v7911_v48, %s8548_s8  ;;  %v3964_v59 = vpop.f32.mrb[35].mxu1 }
 0x9bc   :  { %4317 = vrot.lane.b32.xlu1 %v7914_v16, %s8548_s8 }
 0x9be   :  { %v10900_v37 = vpop.f32.mrb[36].mxu1 }
 0x9bf   :  { %v10902_v29 = vpop.f32.mrb[37].mxu1 }
 0x9c0   :  { %4315 = vrot.lane.b32.xlu1 %v3964_v59, %s8548_s8 }
 0x9c2   :  { %v7920_v42 = vpop.f32.mrb[38].mxu1 }
 0x9c3   :  { %4362 = vrot.lane.b32.xlu0 %v7920_v42, %s8545_s27  ;;  %v3984_v32 = vpop.f32.mrb[39].mxu1 }
 0x9c4   :  { %4360 = vrot.lane.b32.xlu1 %v3984_v32, %s8545_s27 }
 0x9c6   :  { %v7923_v46 = vpop.f32.mrb[40].mxu1 }
 0x9c7   :  { %4366 = vrot.lane.b32.xlu0 %v7923_v46, %s8545_s27  ;;  %v3994_v44 = vpop.f32.mrb[41].mxu1 }
 0x9c8   :  { %4364 = vrot.lane.b32.xlu1 %v3994_v44, %s8545_s27 }
 0x9ca   :  { %v7926_v41 = vpop.f32.mrb[42].mxu1 }
 0x9cb   :  { %4370 = vrot.lane.b32.xlu0 %v7926_v41, %s8545_s27  ;;  %v4004_v25 = vpop.f32.mrb[43].mxu1 }
 0x9cc   :  { %4368 = vrot.lane.b32.xlu1 %v4004_v25, %s8545_s27 }
 0x9ce   :  { %v10911_v51 = vpop.f32.mrb[44].mxu1 }
 0x9cf   :  { %v10913_v45 = vpop.f32.mrb[45].mxu1 }
 0x9d2   :  { %v7932_v49 = vpop.f32.mrb[46].mxu1 }
 0x9d3   :  { %4422 = vrot.lane.b32.xlu1 %v7932_v49, %s8540_s5  ;;  %v4024_v6 = vpop.f32.mrb[47].mxu1 }
 0x9d4   :  { %4420 = vrot.lane.b32.xlu0 %v4024_v6, %s8540_s5 }
 0x9d6   :  { %v7935_v63 = vpop.f32.mrb[48].mxu1 }
 0x9d7   :  { %4426 = vrot.lane.b32.xlu1 %v7935_v63, %s8540_s5  ;;  %v4034_v39 = vpop.f32.mrb[49].mxu1 }
 0x9d8   :  { %4424 = vrot.lane.b32.xlu0 %v4034_v39, %s8540_s5 }
 0x9da   :  { %v7938_v54 = vpop.f32.mrb[50].mxu1 }
 0x9db   :  { %v4044_v5 = vpop.f32.mrb[51].mxu1 }
 0x9dc   :  { %4430 = vrot.lane.b32.xlu0 %v7938_v54, %s8540_s5 }
 0x9de   :  { %v10920_v10 = vpop.f32.mrb[52].mxu1 }
 0x9df   :  { %v10922_v57 = vpop.f32.mrb[53].mxu1 }
 0x9e0   :  { %4428 = vrot.lane.b32.xlu0 %v4044_v5, %s8540_s5 }
 0x9e2   :  { %v7944_v36 = vpop.f32.mrb[54].mxu1 }
 0x9e3   :  { %4482 = vrot.lane.b32.xlu1 %v7944_v36, %s8539_s28  ;;  %v4064_v35 = vpop.f32.mrb[55].mxu1 }
 0x9e6   :  { %v7947_v28 = vpop.f32.mrb[56].mxu1 }
 0x9e7   :  { %4480 = vrot.lane.b32.xlu1 %v4064_v35, %s8539_s28  ;;  %v4074_v11 = vpop.f32.mrb[57].mxu1 }
 0x9e8   :  { %4484 = vrot.lane.b32.xlu0 %v4074_v11, %s8539_s28 }
 0x9ea   :  { %v7950_v9 = vpop.f32.mrb[58].mxu1 }
 0x9eb   :  { %4486 = vrot.lane.b32.xlu1 %v7947_v28, %s8539_s28  ;;  %v4084_v34 = vpop.f32.mrb[59].mxu1 }
 0x9ec   :  { %4488 = vrot.lane.b32.xlu0 %v4084_v34, %s8539_s28 }
 0x9ee   :  { %v7953_v30 = vpop.f32.mrb[60].mxu1 }
 0x9ef   :  { %v10940_v14 = vmul.f32 %v7953_v30, %v10936_v53  ;;  %4490 = vrot.lane.b32.xlu1 %v7950_v9, %s8539_s28  ;;  %v4094_v24 = vpop.f32.mrb[61].mxu1 }
 0x9f0   :  { %v10944_v60 = vmul.f32 %v10936_v53, %v4094_v24 }
 0x9f2   :  { %v10946_v8 = vpop.f32.mrb[62].mxu1 }
 0x9f3   :  { %v10948_v50 = vpop.f32.mrb[63].mxu1 }
 0x9f6   :  { %v10950_v23 = vpop.f32.mrb[64].mxu1 }
 0x9f7   :  { %v10952_v7 = vpop.f32.mrb[65].mxu1 }
 0x9fa   :  { %v10954_v20 = vpop.f32.mrb[66].mxu1 }
 0x9fb   :  { %v10956_v62 = vpop.f32.mrb[67].mxu1 }
 0x9fe   :  { %v10958_v2 = vpop.f32.mrb[68].mxu1 }
 0x9ff   :  { %v10960_v3 = vpop.f32.mrb[69].mxu1 }
 0xa02   :  { %v7968_v4 = vpop.f32.mrb[70].mxu1 }
 0xa03   :  { %4562 = vrot.lane.b32.xlu1 %v7968_v4, %s8542_s29  ;;  %v4144_v13 = vpop.f32.mrb[71].mxu1 }
 0xa04   :  { %4560 = vrot.lane.b32.xlu0 %v4144_v13, %s8542_s29 }
 0xa06   :  { %v7971_v0 = vpop.f32.mrb[72].mxu1 }
 0xa07   :  { %4566 = vrot.lane.b32.xlu1 %v7971_v0, %s8542_s29  ;;  %v4154_v22 = vpop.f32.mrb[73].mxu1 }
 0xa08   :  { %4564 = vrot.lane.b32.xlu0 %v4154_v22, %s8542_s29 }
 0xa0a   :  { %v7974_v56 = vpop.f32.mrb[74].mxu1 }
 0xa0b   :  { %v4164_v27 = vpop.f32.mrb[75].mxu1 }
 0xa0c   :  { %4570 = vrot.lane.b32.xlu0 %v7974_v56, %s8542_s29 }
 0xa0e   :  { %v10967_v17 = vpop.f32.mrb[76].mxu1 }
 0xa0f   :  { %v10969_v26 = vpop.f32.mrb[77].mxu1 }
 0xa10   :  { %4568 = vrot.lane.b32.xlu0 %v4164_v27, %s8542_s29 }
 0xa12   :  { %v7980_v12 = vpop.f32.mrb[78].mxu1 }
 0xa13   :  { %4623 = vrot.lane.b32.xlu1 %v7980_v12, %s8544_s1  ;;  %v4184_v1 = vpop.f32.mrb[79].mxu1 }
 0xa16   :  { %v7983_v55 = vpop.f32.mrb[80].mxu1 }
 0xa17   :  { %4621 = vrot.lane.b32.xlu1 %v4184_v1, %s8544_s1  ;;  %v4194_v19 = vpop.f32.mrb[81].mxu1 }
 0xa18   :  { %4625 = vrot.lane.b32.xlu0 %v4194_v19, %s8544_s1 }
 0xa1a   :  { %v7986_v33 = vpop.f32.mrb[82].mxu1 }
 0xa1b   :  { %4627 = vrot.lane.b32.xlu1 %v7983_v55, %s8544_s1  ;;  %v4204_v58 = vpop.f32.mrb[83].mxu1  ;;  %v12920_v55 = vld [vmem:[#allocation7_spill] sm:$0xff] }
 0xa1c   :  { %4631 = vrot.lane.b32.xlu0 %v7986_v33, %s8544_s1  ;;  %v11066_v19 = vrot.slane %v10931_v61, %v12920_v55  ;;  %v12921_v33 = vld [vmem:[#allocation6_spill] sm:$0xff] }
 0xa1e   :  { %v7989_v15 = vpop.f32.mrb[84].mxu1 }
 0xa1f   :  { %v4214_v21 = vpop.f32.mrb[85].mxu1 }
 0xa20   :  { %4629 = vrot.lane.b32.xlu0 %v4204_v58, %s8544_s1  ;;  %v11070_v58 = vrot.slane %v10931_v61, %v12921_v33 }
 0xa22   :  { %v7992_v47 = vpop.f32.mrb[86].mxu1 }
 0xa23   :  { %4684 = vrot.lane.b32.xlu1 %v7992_v47, %s8549_s0  ;;  %v4224_v38 = vpop.f32.mrb[87].mxu1 }
 0xa25   :  { %v10985_v41 = vpop.permute.xlu0 %4309 }
 0xa26   :  { %v7995_v48 = vpop.f32.mrb[88].mxu1 }
 0xa27   :  { %4682 = vrot.lane.b32.xlu1 %v4224_v38, %s8549_s0  ;;  %v4234_v18 = vpop.f32.mrb[89].mxu1 }
 0xa28   :  { %4686 = vrot.lane.b32.xlu0 %v4234_v18, %s8549_s0  ;;  %v12923_v18 = vld [vmem:[#allocation32_spill] sm:$0xff] }
 0xa29   :  { %v10992_v54 = vpop.permute.xlu0 %4307 }
 0xa2a   :  { %v7998_v16 = vpop.f32.mrb[90].mxu1  ;;  %v10989_v6 = vpop.permute.xlu1 %4311 }
 0xa2b   :  { %4688 = vrot.lane.b32.xlu1 %v7995_v48, %s8549_s0  ;;  %v4244_v59 = vpop.f32.mrb[91].mxu1 }
 0xa2c   :  { %4692 = vrot.lane.b32.xlu0 %v7998_v16, %s8549_s0  ;;  %v11082_v16 = vrot.slane %v10931_v61, %v12923_v18 }
 0xa2d   :  { %v4314_v36 = vpop.permute.xlu0 %4313 }
 0xa2e   :  { %v8001_v42 = vpop.f32.mrb[92].mxu1  ;;  %v10995_v5 = vpop.permute.xlu1 %4317 }
 0xa2f   :  { %v4254_v32 = vpop.f32.mrb[93].mxu1 }
 0xa30   :  { %4690 = vrot.lane.b32.xlu0 %v4244_v59, %s8549_s0  ;;  %v12924_v59 = vld [vmem:[#allocation58_spill] sm:$0xff] }
 0xa32   :  { %v8004_v46 = vpop.f32.mrb[94].mxu1  ;;  %v4316_v35 = vpop.permute.xlu1 %4315 }
 0xa33   :  { %4744 = vrot.lane.b32.xlu1 %v8004_v46, %s8550_s3  ;;  %v4264_v44 = vpop.f32.mrb[95].mxu1  ;;  %v11094_v46 = vmul.f32 %v10936_v53, %v10948_v50  ;;  %v4332_v50 = vsel %vm4327_vm8, 0.0, %v10989_v6 }
 0xa35   :  { %v4363_v28 = vpop.permute.xlu0 %4362 }
 0xa36   :  { %v8007_v25 = vpop.f32.mrb[96].mxu1  ;;  %v4361_v11 = vpop.permute.xlu1 %4360  ;;  %v4383_v38 = vsel %vm782_vm4, 0.0, %v4363_v28 }
 0xa37   :  { %4742 = vrot.lane.b32.xlu1 %v4264_v44, %s8550_s3  ;;  %v4274_v49 = vpop.f32.mrb[97].mxu1  ;;  %v4382_v48 = vsel %vm782_vm4, 0.0, %v4361_v11  ;;  %v11098_v44 = vmul.f32 %v10950_v23, %v10936_v53  ;;  %v4335_v23 = vsel %vm4327_vm8, 0.0, %v10995_v5  ;;  %v4395_v28 = vmul.f32 %v11070_v58, %v4383_v38 }
 0xa38   :  { %4746 = vrot.lane.b32.xlu0 %v4274_v49, %s8550_s3  ;;  %v11103_v49 = vmul.f32 %v10936_v53, %v10952_v7  ;;  %v4394_v11 = vmul.f32 %v11070_v58, %v4382_v48  ;;  %v11118_v7 = vmul.f32 %v10954_v20, %v10936_v53  ;;  %v4344_v48 = vmul.f32 %v11066_v19, %v4332_v50 }
 0xa3a   :  { %v8010_v63 = vpop.f32.mrb[98].mxu1 }
 0xa3b   :  { %4748 = vrot.lane.b32.xlu1 %v8007_v25, %s8550_s3  ;;  %v4284_v39 = vpop.f32.mrb[99].mxu1 }
 0xa3c   :  { %4750 = vrot.lane.b32.xlu0 %v4284_v39, %s8550_s3  ;;  %v4333_v39 = vsel %vm4327_vm8, 0.0, %v4314_v36 }
 0xa3f   :  { %4752 = vrot.lane.b32.xlu1 %v8010_v63, %s8550_s3  ;;  %v4331_v63 = vsel %vm4327_vm8, 0.0, %v10985_v41  ;;  %v4334_v41 = vsel %vm4327_vm8, 0.0, %v4316_v35  ;;  %v4345_v35 = vmul.f32 %v11066_v19, %v4333_v39 }
 0xa40   :  { %4303 = vrot.lane.b32.xlu0 %v10893_v43, %s8548_s8  ;;  %v4367_v43 = vpop.permute.xlu0 %4366  ;;  %v4343_v5 = vmul.f32 %v11066_v19, %v4331_v63  ;;  %v4346_v63 = vmul.f32 %v11066_v19, %v4334_v41 }
 0xa41   :  { %v4385_v25 = vsel %vm782_vm4, 0.0, %v4367_v43  ;;  %v12925_v43 = vld [vmem:[#allocation11_spill] sm:$0xff] }
 0xa42   :  { %v11124_v6 = vrot.slane %v10931_v61, %v12925_v43 }
 0xa43   :  { %4356 = vrot.lane.b32.xlu1 %v10902_v29, %s8545_s27 }
 0xa44   :  { %4305 = vrot.lane.b32.xlu0 %v10891_v40, %s8548_s8  ;;  %v4365_v40 = vpop.permute.xlu1 %4364  ;;  %v11016_v29 = vpop.permute.xlu0 %4370  ;;  %s8563_s8 = smov 94  }
 0xa45   :  { %v4387_v43 = vsel %vm782_vm4, 0.0, %v11016_v29 }
 0xa46   :  { %v4399_v55 = vmul.f32 %v11070_v58, %v4387_v43 }
 0xa47   :  { %4358 = vrot.lane.b32.xlu1 %v10900_v37, %s8545_s27  ;;  %s8552_s27 = smov 64  }
 0xa48   :  { %4416 = vrot.lane.b32.xlu0 %v10913_v45, %s8540_s5  ;;  %v11022_v37 = vpop.permute.xlu0 %4420 }
 0xa49   :  { %v4442_v39 = vsel %vm741_vm3, 0.0, %v11022_v37 }
 0xa4b   :  { %4418 = vrot.lane.b32.xlu1 %v10911_v51, %s8540_s5  ;;  %v4369_v51 = vpop.permute.xlu1 %4368 }
 0xa4c   :  { %4476 = vrot.lane.b32.xlu0 %v10922_v57, %s8539_s28  ;;  %v4386_v18 = vsel %vm782_vm4, 0.0, %v4369_v51 }
 0xa4d   :  { %v4398_v29 = vmul.f32 %v11070_v58, %v4386_v18 }
 0xa4f   :  { %4478 = vrot.lane.b32.xlu1 %v10920_v10, %s8539_s28  ;;  %v4423_v45 = vpop.permute.xlu1 %4422  ;;  %v11028_v10 = vpop.permute.xlu0 %4424 }
 0xa50   :  { %4556 = vrot.lane.b32.xlu0 %v10960_v3, %s8542_s29  ;;  %v4443_v50 = vsel %vm741_vm3, 0.0, %v4423_v45  ;;  %v4444_v51 = vsel %vm741_vm3, 0.0, %v11028_v10 }
 0xa53   :  { %4558 = vrot.lane.b32.xlu1 %v10958_v2, %s8542_s29  ;;  %v4427_v57 = vpop.permute.xlu1 %4426  ;;  %v11032_v9 = vpop.permute.xlu0 %4430 }
 0xa54   :  { %4617 = vrot.lane.b32.xlu0 %v10969_v26, %s8544_s1 }
 0xa57   :  { %4619 = vrot.lane.b32.xlu1 %v10967_v17, %s8544_s1  ;;  %v11034_v34 = vpop.permute.xlu1 %4482  ;;  %v11036_v30 = vpop.permute.xlu0 %4428 }
 0xa58   :  { %4678 = vrot.lane.b32.xlu0 %v4214_v21, %s8549_s0  ;;  %v4503_v37 = vsel %vm723_vm1, 0.0, %v11034_v34 }
 0xa5b   :  { %4680 = vrot.lane.b32.xlu1 %v7989_v15, %s8549_s0  ;;  %v11038_v24 = vpop.permute.xlu1 %4480  ;;  %v11040_v2 = vpop.permute.xlu0 %4484  ;;  %v12922_v15 = vld [vmem:[#allocation28_spill] sm:$0xff] }
 0xa5c   :  { %4738 = vrot.lane.b32.xlu0 %v4254_v32, %s8550_s3  ;;  %v11074_v21 = vrot.slane %v10931_v61, %v12922_v15  ;;  %v11090_v32 = vmul.f32 %v10946_v8, %v10936_v53  ;;  %v4330_v8 = vsel %vm4327_vm8, 0.0, %v10992_v54  ;;  %v4397_v54 = vmul.f32 %v11070_v58, %v4385_v25 }
 0xa5d   :  { %v4342_v38 = vmul.f32 %v11066_v19, %v4330_v8  ;;  %v4347_v25 = vmul.f32 %v11066_v19, %v4335_v23  ;;  %v4403_v15 = vadd.f32 %v4395_v28, %v4343_v5  ;;  %v4445_v23 = vsel %vm741_vm3, 0.0, %v4427_v57 }
 0xa5e   :  { %v4447_v28 = vsel %vm741_vm3, 0.0, %v11032_v9  ;;  %v4502_v57 = vsel %vm723_vm1, 0.0, %v11038_v24  ;;  %v4454_v18 = vmul.f32 %v11074_v21, %v4442_v39  ;;  %v4457_v10 = vmul.f32 %v11074_v21, %v4445_v23 }
 0xa5f   :  { %4740 = vrot.lane.b32.xlu1 %v8001_v42, %s8550_s3  ;;  %v11042_v3 = vpop.permute.xlu1 %4486  ;;  %v11044_v4 = vpop.permute.xlu0 %4488  ;;  %v11086_v42 = vrot.slane %v10931_v61, %v12924_v59  ;;  %v4384_v59 = vsel %vm782_vm4, 0.0, %v4365_v40  ;;  %v4402_v8 = vadd.f32 %v4394_v11, %v4342_v38  ;;  %v4405_v40 = vadd.f32 %v4397_v54, %v4345_v35 }
 0xa60   :  { %v4396_v33 = vmul.f32 %v11070_v58, %v4384_v59  ;;  %v4455_v11 = vmul.f32 %v11074_v21, %v4443_v50  ;;  %v4446_v59 = vsel %vm741_vm3, 0.0, %v11036_v30  ;;  %v4504_v9 = vsel %vm723_vm1, 0.0, %v11040_v2 }
 0xa61   :  { %v4505_v54 = vsel %vm723_vm1, 0.0, %v11042_v3  ;;  %v4456_v30 = vmul.f32 %v11074_v21, %v4444_v51  ;;  %v4459_v34 = vmul.f32 %v11074_v21, %v4447_v28  ;;  %v4506_v24 = vsel %vm723_vm1, 0.0, %v11044_v4 }
 0xa62   :  { %v4404_v43 = vadd.f32 %v4396_v33, %v4344_v48  ;;  %v4458_v5 = vmul.f32 %v11074_v21, %v4446_v59  ;;  %v4515_v38 = vmul.f32 %v11082_v16, %v4503_v37  ;;  %v4514_v35 = vmul.f32 %v11082_v16, %v4502_v57 }
 0xa63   :  { %v11048_v0 = vpop.permute.xlu1 %4490  ;;  %v4407_v50 = vadd.f32 %v4399_v55, %v4347_v25  ;;  %v4406_v39 = vadd.f32 %v4398_v29, %v4346_v63  ;;  %v4516_v3 = vmul.f32 %v11082_v16, %v4504_v9  ;;  %v4517_v33 = vmul.f32 %v11082_v16, %v4505_v54 }
 0xa64   :  { %v4507_v2 = vsel %vm723_vm1, 0.0, %v11048_v0  ;;  %v4463_v23 = vadd.f32 %v4455_v11, %v4403_v15  ;;  %v4462_v51 = vadd.f32 %v4454_v18, %v4402_v8  ;;  %v4465_v28 = vadd.f32 %v4457_v10, %v4405_v40 }
 0xa65   :  { %v4518_v4 = vmul.f32 %v11082_v16, %v4506_v24  ;;  %v4464_v31 = vadd.f32 %v4456_v30, %v4404_v43  ;;  %v4467_v37 = vadd.f32 %v4459_v34, %v4407_v50  ;;  %v4519_v57 = vmul.f32 %v11082_v16, %v4507_v2 }
 0xa66   :  { %v4466_v55 = vadd.f32 %v4458_v5, %v4406_v39  ;;  %v4523_v25 = vadd.f32 %v4515_v38, %v4463_v23  ;;  %v4522_v63 = vadd.f32 %v4514_v35, %v4462_v51  ;;  %v4525_v15 = vadd.f32 %v4517_v33, %v4465_v28 }
 0xa67   :  { %v4524_v9 = vadd.f32 %v4516_v3, %v4464_v31  ;;  %v4538_v11 = vmul.f32 %v10936_v53, %v10956_v62  ;;  %v11192_v10 = vrot.slane %v10931_v61, %v10270_v52  ;;  %v4527_v54 = vadd.f32 %v4519_v57, %v4467_v37 }
 0xa68   :  { %v4526_v18 = vadd.f32 %v4518_v4, %v4466_v55  ;;  %v4542_v34 = vadd.f32 %v11094_v46, %v4522_v63  ;;  %v4545_v24 = vadd.f32 %v11098_v44, %v4525_v15  ;;  %v11214_v46 = vld [vmem:[%s12731_s11 + $0x8] ss:$0 sm:$0xff]  ;;  %s8551_s11 = smov 32  }
 0xa69   :  { %v4544_v5 = vadd.f32 %v11103_v49, %v4524_v9  ;;  %v4547_v2 = vadd.f32 %v11118_v7, %v4527_v54 }
 0xa6a   :  { %v4546_v50 = vadd.f32 %v4538_v11, %v4526_v18 }
 0xa75   :  { %v11052_v56 = vpop.permute.xlu1 %4562 }
 0xa76   :  { %v11046_v13 = vpop.permute.xlu0 %4560  ;;  %v4584_v0 = vsel %vm4580_vm9, %v11052_v56, 0.0 }
 0xa77   :  { %v4583_v29 = vsel %vm4580_vm9, %v11046_v13, 0.0  ;;  %v4596_v56 = vmul.f32 %v11086_v42, %v4584_v0 }
 0xa78   :  { %v4595_v31 = vmul.f32 %v11086_v42, %v4583_v29 }
 0xa79   :  { %v11056_v17 = vpop.permute.xlu1 %4566 }
 0xa7a   :  { %v11050_v22 = vpop.permute.xlu0 %4564  ;;  %v4586_v8 = vsel %vm4580_vm9, %v11056_v17, 0.0  ;;  %v4603_v35 = vadd.f32 %v4595_v31, %v4542_v34 }
 0xa7b   :  { %v4585_v13 = vsel %vm4580_vm9, %v11050_v22, 0.0  ;;  %v4598_v53 = vmul.f32 %v11086_v42, %v4586_v8 }
 0xa7d   :  { %v4606_v44 = vadd.f32 %v4598_v53, %v4545_v24 }
 0xa7e   :  { %v11054_v27 = vpop.permute.xlu0 %4570 }
 0xa7f   :  { %v4588_v49 = vsel %vm4580_vm9, %v11054_v27, 0.0 }
 0xa82   :  { %v11060_v12 = vpop.permute.xlu0 %4568 }
 0xa83   :  { %v4587_v7 = vsel %vm4580_vm9, %v11060_v12, 0.0 }
 0xa85   :  { %v11058_v26 = vpop.permute.xlu1 %4623 }
 0xa86   :  { %v4645_v40 = vsel %vm4641_vm10, %v11058_v26, 0.0  ;;  %v4543_v26 = vadd.f32 %v11090_v32, %v4523_v25 }
 0xa87   :  { %v4657_v62 = vmul.f32 %v11124_v6, %v4645_v40 }
 0xa88   :  { %v4604_v22 = vadd.f32 %v4596_v56, %v4543_v26 }
 0xa89   :  { %v11076_v47 = vpop.permute.xlu1 %4621 }
 0xa8a   :  { %v11062_v1 = vpop.permute.xlu0 %4625  ;;  %v4644_v30 = vsel %vm4641_vm10, %v11076_v47, 0.0  ;;  %v4665_v39 = vadd.f32 %v4657_v62, %v4604_v22 }
 0xa8b   :  { %v4656_v47 = vmul.f32 %v11124_v6, %v4644_v30  ;;  %v4646_v3 = vsel %vm4641_vm10, %v11062_v1, 0.0  ;;  %v4600_v1 = vmul.f32 %v11086_v42, %v4588_v49 }
 0xa8c   :  { %v4658_v55 = vmul.f32 %v11124_v6, %v4646_v3 }
 0xa8d   :  { %v11132_v20 = vpop.permute.xlu1 %4627  ;;  %v4664_v0 = vadd.f32 %v4656_v47, %v4603_v35 }
 0xa8e   :  { %v11126_v36 = vpop.permute.xlu0 %4631  ;;  %v4647_v23 = vsel %vm4641_vm10, %v11132_v20, 0.0  ;;  %v4599_v20 = vmul.f32 %v11086_v42, %v4587_v7 }
 0xa8f   :  { %v4659_v25 = vmul.f32 %v11124_v6, %v4647_v23  ;;  %v4649_v63 = vsel %vm4641_vm10, %v11126_v36, 0.0  ;;  %v4608_v36 = vadd.f32 %v4600_v1, %v4547_v2 }
 0xa91   :  { %v4667_v26 = vadd.f32 %v4659_v25, %v4606_v44 }
 0xa92   :  { %v11158_v41 = vpop.permute.xlu0 %4629 }
 0xa95   :  { %v4685_v45 = vpop.permute.xlu1 %4684 }
 0xa96   :  { %v4705_v17 = vsel %vm3361_vm7, %v4685_v45, 0.0  ;;  %v4597_v45 = vmul.f32 %v11086_v42, %v4585_v13 }
 0xa97   :  { %v4717_v32 = vmul.f32 %v11192_v10, %v4705_v17 }
 0xa99   :  { %v4683_v59 = vpop.permute.xlu1 %4682  ;;  %v4725_v37 = vadd.f32 %v4717_v32, %v4665_v39 }
 0xa9a   :  { %v4687_v48 = vpop.permute.xlu0 %4686  ;;  %v4704_v38 = vsel %vm3361_vm7, %v4683_v59, 0.0  ;;  %v4605_v59 = vadd.f32 %v4597_v45, %v4544_v5 }
 0xa9b   :  { %v4716_v51 = vmul.f32 %v11192_v10, %v4704_v38  ;;  %v4706_v27 = vsel %vm3361_vm7, %v4687_v48, 0.0  ;;  %v4648_v48 = vsel %vm4641_vm10, %v11158_v41, 0.0  ;;  %v4661_v41 = vmul.f32 %v11124_v6, %v4649_v63 }
 0xa9c   :  { %v4718_v8 = vmul.f32 %v11192_v10, %v4706_v27  ;;  %v4666_v13 = vadd.f32 %v4658_v55, %v4605_v59  ;;  %v4660_v53 = vmul.f32 %v11124_v6, %v4648_v48 }
 0xa9d   :  { %v4689_v61 = vpop.permute.xlu1 %4688  ;;  %v4724_v15 = vadd.f32 %v4716_v51, %v4664_v0  ;;  %v4669_v2 = vadd.f32 %v4661_v41, %v4608_v36 }
 0xa9e   :  { %v4693_v43 = vpop.permute.xlu0 %4692  ;;  %v4707_v12 = vsel %vm3361_vm7, %v4689_v61, 0.0  ;;  %v4607_v61 = vadd.f32 %v4599_v20, %v4546_v50  ;;  %v4726_v34 = vadd.f32 %v4718_v8, %v4666_v13 }
 0xa9f   :  { %v4719_v18 = vmul.f32 %v11192_v10, %v4707_v12  ;;  %v4709_v56 = vsel %vm3361_vm7, %v4693_v43, 0.0 }
 0xaa0   :  { %v4721_v24 = vmul.f32 %v11192_v10, %v4709_v56  ;;  %v4668_v47 = vadd.f32 %v4660_v53, %v4607_v61 }
 0xaa1   :  { %v4727_v45 = vadd.f32 %v4719_v18, %v4667_v26 }
 0xaa2   :  { %v4691_v28 = vpop.permute.xlu0 %4690  ;;  %v4729_v7 = vadd.f32 %v4721_v24, %v4669_v2 }
 0xaa3   :  { %v4708_v17 = vsel %vm3361_vm7, %v4691_v28, 0.0 }
 0xaa4   :  { %v4720_v32 = vmul.f32 %v11192_v10, %v4708_v17 }
 0xaa5   :  { %v4745_v33 = vpop.permute.xlu1 %4744 }
 0xaa6   :  { %v4766_v4 = vsel %vm4762_vm11, %v4745_v33, 0.0  ;;  %v4728_v23 = vadd.f32 %v4720_v32, %v4668_v47 }
 0xaa7   :  { %v4778_v57 = vmul.f32 %v11214_v46, %v4766_v4 }
 0xaa9   :  { %v4786_v29 = vadd.f32 %v4778_v57, %v4725_v37  ;;  %v4743_v9 = vpop.permute.xlu1 %4742 }
 0xaaa   :  { %v4765_v40 = vsel %vm4762_vm11, %v4743_v9, 0.0  ;;  %v4747_v11 = vpop.permute.xlu0 %4746 }
 0xaab   :  { %v4777_v54 = vmul.f32 %v11214_v46, %v4765_v40  ;;  %v4767_v31 = vsel %vm4762_vm11, %v4747_v11, 0.0  ;;  %4795 = vrot.lane.b32.xlu1 %v4786_v29, %s8551_s11 }
 0xaac   :  { %v4779_v30 = vmul.f32 %v11214_v46, %v4767_v31 }
 0xaad   :  { %v4785_v62 = vadd.f32 %v4777_v54, %v4724_v15  ;;  %v4749_v43 = vpop.permute.xlu1 %4748 }
 0xaae   :  { %v4768_v5 = vsel %vm4762_vm11, %v4749_v43, 0.0  ;;  %v4751_v22 = vpop.permute.xlu0 %4750  ;;  %v4787_v44 = vadd.f32 %v4779_v30, %v4726_v34 }
 0xaaf   :  { %v4780_v38 = vmul.f32 %v11214_v46, %v4768_v5  ;;  %v4769_v35 = vsel %vm4762_vm11, %v4751_v22, 0.0  ;;  %4793 = vrot.lane.b32.xlu0 %v4785_v62, %s8551_s11 }
 0xab0   :  { %v4781_v50 = vmul.f32 %v11214_v46, %v4769_v35 }
 0xab1   :  { %v4788_v49 = vadd.f32 %v4780_v38, %v4727_v45  ;;  %v4753_v39 = vpop.permute.xlu1 %4752 }
 0xab2   :  { %v4770_v3 = vsel %vm4762_vm11, %v4753_v39, 0.0  ;;  %v4304_v33 = vpop.permute.xlu0 %4303  ;;  %v4789_v28 = vadd.f32 %v4781_v50, %v4728_v23 }
 0xab3   :  { %v4782_v51 = vmul.f32 %v11214_v46, %v4770_v3  ;;  %4803 = vrot.lane.b32.xlu1 %v4788_v49, %s8552_s27  ;;  %4801 = vrot.lane.b32.xlu0 %v4787_v44, %s8552_s27  ;;  %v4328_v57 = vsel %vm4327_vm8, 0.0, %v4304_v33  ;;  %s8554_s27 = smov 18  }
 0xab4   :  { %v4340_v25 = vmul.f32 %v11066_v19, %v4328_v57 }
 0xab5   :  { %v4790_v4 = vadd.f32 %v4782_v51, %v4729_v7  ;;  %v4357_v59 = vpop.permute.xlu1 %4356 }
 0xab6   :  { %v4306_v37 = vpop.permute.xlu0 %4305  ;;  %v4380_v27 = vsel %vm782_vm4, 0.0, %v4357_v59 }
 0xab7   :  { %4811 = vrot.lane.b32.xlu1 %v4790_v4, %s8553_s30  ;;  %4809 = vrot.lane.b32.xlu0 %v4789_v28, %s8553_s30  ;;  %v4392_v0 = vmul.f32 %v11070_v58, %v4380_v27  ;;  %v4329_v63 = vsel %vm4327_vm8, 0.0, %v4306_v37  ;;  %vm6707_vm8 = vcmask 1040384  }
 0xab8   :  { %v4341_v11 = vmul.f32 %v11066_v19, %v4329_v63 }
 0xab9   :  { %v4359_v1 = vpop.permute.xlu1 %4358  ;;  %v4400_v15 = vadd.f32 %v4392_v0, %v4340_v25 }
 0xaba   :  { %v4381_v55 = vsel %vm782_vm4, 0.0, %v4359_v1  ;;  %v4417_v12 = vpop.permute.xlu0 %4416 }
 0xabb   :  { %v4440_v20 = vsel %vm741_vm3, 0.0, %v4417_v12  ;;  %v4393_v9 = vmul.f32 %v11070_v58, %v4381_v55 }
 0xabc   :  { %v4452_v29 = vmul.f32 %v11074_v21, %v4440_v20 }
 0xabd   :  { %v4419_v48 = vpop.permute.xlu1 %4418  ;;  %v4401_v36 = vadd.f32 %v4393_v9, %v4341_v11  ;;  %v4824_v9 = vld [vmem:[%s12732_s14] sm:$0xff] }
 0xabe   :  { %v4441_v8 = vsel %vm741_vm3, 0.0, %v4419_v48  ;;  %v4477_v40 = vpop.permute.xlu0 %4476  ;;  %v4460_v54 = vadd.f32 %v4452_v29, %v4400_v15  ;;  %vm5577_vm3 = vcmask 916480  }
 0xabf   :  { %v4453_v18 = vmul.f32 %v11074_v21, %v4441_v8  ;;  %v4500_v56 = vsel %vm723_vm1, 0.0, %v4477_v40 }
 0xac0   :  { %v4512_v31 = vmul.f32 %v11082_v16, %v4500_v56 }
 0xac1   :  { %v4479_v13 = vpop.permute.xlu1 %4478  ;;  %v4461_v26 = vadd.f32 %v4453_v18, %v4401_v36  ;;  %v4876_v36 = vld [vmem:[%s12733_s12 + $0x8] sm:$0xff] }
 0xac2   :  { %v4520_v41 = vadd.f32 %v4512_v31, %v4460_v54  ;;  %v4501_v17 = vsel %vm723_vm1, 0.0, %v4479_v13  ;;  %v4557_v58 = vpop.permute.xlu0 %4556  ;;  %v4875_v31 = vld [vmem:[%s12733_s12] sm:$0xff] }
 0xac3   :  { %v4513_v53 = vmul.f32 %v11082_v16, %v4501_v17  ;;  %v4581_v62 = vsel %vm4580_vm9, %v4557_v58, 0.0  ;;  %v8168_v13 = vpack.c.bf16 %v4876_v36, %v4875_v31  ;;  %v4878_v17 = vld [vmem:[%s12733_s12 + $0x18] sm:$0xff]  ;;  %v4879_v58 = vld [vmem:[%s12733_s12 + $0x20] sm:$0xff]  ;;  %v4979_v31 = vld [vmem:[%s12735_s15 + $0x68] sm:$0xff] }
 0xac4   :  { %v4540_v21 = vadd.f32 %v10944_v60, %v4520_v41  ;;  %v4593_v43 = vmul.f32 %v11086_v42, %v4581_v62  ;;  %v4877_v41 = vld [vmem:[%s12733_s12 + $0x10] sm:$0xff] }
 0xac5   :  { %v4521_v30 = vadd.f32 %v4513_v53, %v4461_v26  ;;  %v4559_v19 = vpop.permute.xlu1 %4558  ;;  %8169 = vmatprep.subr.bf16.mxu1 %v8168_v13  ;;  %v8172_v26 = vpack.c.bf16 %v4878_v17, %v4877_v41  ;;  %v4880_v53 = vld [vmem:[%s12733_s12 + $0x28] sm:$0xff]  ;;  %v4980_v36 = vld [vmem:[%s12735_s15 + $0x70] sm:$0xff]  ;;  %v4982_v41 = vld [vmem:[%s12735_s15 + $0x80] sm:$0xff] }
 0xac6   :  { %v4582_v61 = vsel %vm4580_vm9, %v4559_v19, 0.0  ;;  %v4618_v34 = vpop.permute.xlu0 %4617  ;;  %v4601_v32 = vadd.f32 %v4593_v43, %v4540_v21  ;;  %8171 = vmatpush3.bf16.msra.mxu1 %v8168_v13  ;;  %v8176_v62 = vpack.c.bf16 %v4880_v53, %v4879_v58  ;;  %v4882_v19 = vld [vmem:[%s12733_s12 + $0x38] sm:$0xff]  ;;  %v4883_v43 = vld [vmem:[%s12733_s12 + $0x40] sm:$0xff]  ;;  %v4983_v17 = vld [vmem:[%s12735_s15 + $0x88] sm:$0xff] }
 0xac7   :  { %v4642_v24 = vsel %vm4641_vm10, %v4618_v34, 0.0  ;;  %v4541_v22 = vadd.f32 %v10940_v14, %v4521_v30  ;;  %v4594_v45 = vmul.f32 %v11086_v42, %v4582_v61  ;;  %v4881_v30 = vld [vmem:[%s12733_s12 + $0x30] sm:$0xff]  ;;  %8173 = vmatprep.subr.bf16.mxu1 %v8172_v26  ;;  %v4884_v61 = vld [vmem:[%s12733_s12 + $0x48] sm:$0xff]  ;;  %v4981_v13 = vld [vmem:[%s12735_s15 + $0x78] sm:$0xff] }
 0xac8   :  { %v4654_v5 = vmul.f32 %v11124_v6, %v4642_v24  ;;  %v8180_v21 = vpack.c.bf16 %v4882_v19, %v4881_v30  ;;  %v8184_v34 = vpack.c.bf16 %v4884_v61, %v4883_v43  ;;  %v4885_v24 = vld [vmem:[%s12733_s12 + $0x50] sm:$0xff]  ;;  %v4986_v53 = vld [vmem:[%s12735_s15 + $0xa0] sm:$0xff]  ;;  %v4989_v19 = vld [vmem:[%s12735_s15 + $0xb8] sm:$0xff] }
 0xac9   :  { %v4620_v16 = vpop.permute.xlu1 %4619  ;;  %v4602_v49 = vadd.f32 %v4594_v45, %v4541_v22  ;;  %v4887_v45 = vld [vmem:[%s12733_s12 + $0x60] sm:$0xff]  ;;  %v4984_v58 = vld [vmem:[%s12735_s15 + $0x90] sm:$0xff]  ;;  %v4991_v43 = vld [vmem:[%s12735_s15 + $0xc8] sm:$0xff] }
 0xaca   :  { %v4643_v38 = vsel %vm4641_vm10, %v4620_v16, 0.0  ;;  %v4679_v35 = vpop.permute.xlu0 %4678  ;;  %v4662_v47 = vadd.f32 %v4654_v5, %v4601_v32  ;;  %8175 = vmatpush3.bf16.msra.mxu1 %v8172_v26  ;;  %v4886_v5 = vld [vmem:[%s12733_s12 + $0x58] sm:$0xff]  ;;  %v4888_v16 = vld [vmem:[%s12733_s12 + $0x68] sm:$0xff]  ;;  %v4988_v30 = vld [vmem:[%s12735_s15 + $0xb0] sm:$0xff]  ;;  %vm6845_vm10 = vcmask 769024  }
 0xacb   :  { %v4655_v60 = vmul.f32 %v11124_v6, %v4643_v38  ;;  %v4702_v2 = vsel %vm3361_vm7, %v4679_v35, 0.0  ;;  %8177 = vmatprep.subr.bf16.mxu1 %v8176_v62  ;;  %v8188_v22 = vpack.c.bf16 %v4886_v5, %v4885_v24  ;;  %v8192_v32 = vpack.c.bf16 %v4888_v16, %v4887_v45  ;;  %v4889_v38 = vld [vmem:[%s12733_s12 + $0x70] sm:$0xff]  ;;  %v4890_v35 = vld [vmem:[%s12733_s12 + $0x78] sm:$0xff]  ;;  %v4994_v24 = vld [vmem:[%s12735_s15 + $0xe0] sm:$0xff] }
 0xacc   :  { %v4714_v44 = vmul.f32 %v11192_v10, %v4702_v2  ;;  %v4985_v26 = vld [vmem:[%s12735_s15 + $0x98] sm:$0xff]  ;;  %v4992_v61 = vld [vmem:[%s12735_s15 + $0xd0] sm:$0xff]  ;;  %v4995_v5 = vld [vmem:[%s12735_s15 + $0xe8] sm:$0xff] }
 0xacd   :  { %v4681_v50 = vpop.permute.xlu1 %4680  ;;  %v4663_v33 = vadd.f32 %v4655_v60, %v4602_v49  ;;  %v8196_v60 = vpack.c.bf16 %v4890_v35, %v4889_v38  ;;  %v4997_v45 = vld [vmem:[%s12735_s15 + $0xf8] sm:$0xff]  ;;  %v4998_v16 = vld [vmem:[%s12735_s15 + $0x100] sm:$0xff]  ;;  %v5000_v38 = vld [vmem:[%s12735_s15 + $0x110] sm:$0xff] }
 0xace   :  { %v4722_v39 = vadd.f32 %v4714_v44, %v4662_v47  ;;  %v4703_v3 = vsel %vm3361_vm7, %v4681_v50, 0.0  ;;  %v4739_v14 = vpop.permute.xlu0 %4738  ;;  %8179 = vmatpush3.bf16.msra.mxu1 %v8176_v62  ;;  %v4987_v62 = vld [vmem:[%s12735_s15 + $0xa8] sm:$0xff]  ;;  %v5001_v35 = vld [vmem:[%s12735_s15 + $0x118] sm:$0xff]  ;;  %vm6736_vm7 = vcmask 801792  }
 0xacf   :  { %v4715_v42 = vmul.f32 %v11192_v10, %v4703_v3  ;;  %v4763_v7 = vsel %vm4762_vm11, %v4739_v14, 0.0  ;;  %8181 = vmatprep.subr.bf16.mxu1 %v8180_v21  ;;  %v4822_v3 = vld [vmem:[%s12734_s13] sm:$0xff] }
 0xad0   :  { %v4775_v23 = vmul.f32 %v11214_v46, %v4763_v7 }
 0xad1   :  { %v4723_v51 = vadd.f32 %v4715_v42, %v4663_v33  ;;  %v4741_v6 = vpop.permute.xlu1 %4740  ;;  %v4823_v42 = vld [vmem:[%s12734_s13 + $0x8] sm:$0xff] }
 0xad2   :  { %v4783_v28 = vadd.f32 %v4775_v23, %v4722_v39  ;;  %v4764_v4 = vsel %vm4762_vm11, %v4741_v6, 0.0  ;;  %8183 = vmatpush3.bf16.msra.mxu1 %v8180_v21  ;;  %v4825_v23 = vld [vmem:[%s12732_s14 + $0x8] sm:$0xff]  ;;  %v4990_v21 = vld [vmem:[%s12735_s15 + $0xc0] sm:$0xff] }
 0xad3   :  { %v4776_v59 = vmul.f32 %v11214_v46, %v4764_v4  ;;  %8185 = vmatprep.subr.bf16.mxu1 %v8184_v34 }
 0xad5   :  { %v4784_v37 = vadd.f32 %v4776_v59, %v4723_v51 }
 0xad6   :  { %8187 = vmatpush3.bf16.msra.mxu1 %v8184_v34  ;;  %v4993_v34 = vld [vmem:[%s12735_s15 + $0xd8] sm:$0xff] }
 0xad7   :  { %8189 = vmatprep.subr.bf16.mxu1 %v8188_v22 }
 0xada   :  { %8191 = vmatpush3.bf16.msra.mxu1 %v8188_v22  ;;  %v4996_v22 = vld [vmem:[%s12735_s15 + $0xf0] sm:$0xff] }
 0xadb   :  { %8193 = vmatprep.subr.bf16.mxu1 %v8192_v32 }
 0xade   :  { %8195 = vmatpush3.bf16.msra.mxu1 %v8192_v32  ;;  %v4999_v32 = vld [vmem:[%s12735_s15 + $0x108] sm:$0xff] }
 0xadf   :  { %8197 = vmatprep.subr.bf16.mxu1 %v8196_v60 }
 0xae2   :  { %8199 = vmatpush3.bf16.msra.mxu1 %v8196_v60 }
 0xb1d   :  { %v4796_v27 = vpop.permute.xlu1 %4795 }
 0xb1e   :  { %v4816_v55 = vsel %vm110_vm0, %v4784_v37, %v4796_v27 }
 0xb21   :  { %v4794_v57 = vpop.permute.xlu0 %4793 }
 0xb22   :  { %v4815_v10 = vsel %vm110_vm0, %v4783_v28, %v4794_v57 }
 0xb25   :  { %v4804_v1 = vpop.permute.xlu1 %4803  ;;  %v4802_v0 = vpop.permute.xlu0 %4801 }
 0xb26   :  { %v4818_v12 = vsel %vm1136_vm5, %v4816_v55, %v4804_v1  ;;  %v4817_v20 = vsel %vm1136_vm5, %v4815_v10, %v4802_v0  ;;  %v4966_v10 = vld [vmem:[%s12735_s15] sm:$0xff]  ;;  %vm5610_vm5 = vcmask 900096  }
 0xb29   :  { %v4812_v25 = vpop.permute.xlu1 %4811  ;;  %v4810_v63 = vpop.permute.xlu0 %4809 }
 0xb2a   :  { %v4821_v29 = vsel %vm4819_vm12, %v4818_v12, %v4812_v25  ;;  %v4820_v46 = vsel %vm4819_vm12, %v4817_v20, %v4810_v63  ;;  %v4967_v63 = vld [vmem:[%s12735_s15 + $0x8] sm:$0xff] }
 0xb2b   :  { %4828 = vadd.xlane.f32.xlu1 %v4821_v29  ;;  %4826 = vadd.xlane.f32.xlu0 %v4820_v46 }
 0xb3c   :  { %4863 = vperm.xlu1 %8491, %v4824_v9   ;;  %v4970_v9 = vld [vmem:[%s12735_s15 + $0x20] sm:$0xff] }
 0xbb8   :  { %v4829_v48 = vpop.xlane.xlu1 %4828  ;;  %v4827_v15 = vpop.xlane.xlu0 %4826 }
 0xbb9   :  { %v4832_v8 = vmul.f32 0.0078125, %v4829_v48  ;;  %v4831_v40 = vmul.f32 0.0078125, %v4827_v15  ;;  %v4971_v48 = vld [vmem:[%s12735_s15 + $0x28] sm:$0xff]  ;;  %v4972_v15 = vld [vmem:[%s12735_s15 + $0x30] sm:$0xff] }
 0xbbb   :  { %v11302_v11 = vsub.f32 %v4820_v46, %v4831_v40  ;;  %v11304_v18 = vsub.f32 %v4821_v29, %v4832_v8  ;;  %v4968_v29 = vld [vmem:[%s12735_s15 + $0x10] sm:$0xff]  ;;  %v4969_v46 = vld [vmem:[%s12735_s15 + $0x18] sm:$0xff]  ;;  %v4974_v40 = vld [vmem:[%s12735_s15 + $0x40] sm:$0xff] }
 0xbbc   :  { %v4864_v6 = vpop.permute.xlu1 %4863  ;;  %v4973_v8 = vld [vmem:[%s12735_s15 + $0x38] sm:$0xff] }
 0xbbd   :  { %v4835_v56 = vmul.f32 %v11302_v11, %v11302_v11  ;;  %v4836_v54 = vmul.f32 %v11304_v18, %v11304_v18 }
 0xbbf   :  { %4837 = vadd.xlane.f32.xlu0 %v4835_v56  ;;  %v4977_v56 = vld [vmem:[%s12735_s15 + $0x58] sm:$0xff] }
 0xbc3   :  { %4839 = vadd.xlane.f32.xlu0 %v4836_v54  ;;  %v4978_v54 = vld [vmem:[%s12735_s15 + $0x60] sm:$0xff] }
 0xc4c   :  { %v4838_v2 = vpop.xlane.xlu0 %4837 }
 0xc4d   :  { %v4841_v47 = vmul.f32 0.0078125, %v4838_v2 }
 0xc4f   :  { %v4843_v44 = vadd.f32 1e-05, %v4841_v47 }
 0xc50   :  { %v4840_v49 = vpop.xlane.xlu0 %4839 }
 0xc51   :  { %8516 = vrsqrt.f32 %v4843_v44  ;;  %v4842_v50 = vmul.f32 0.0078125, %v4840_v49 }
 0xc53   :  { %v4844_v39 = vadd.f32 1e-05, %v4842_v50 }
 0xc55   :  { %8518 = vrsqrt.f32 %v4844_v39 }
 0xc5b   :  { %v8517_v14 = vpop.eup %8516 }
 0xc5c   :  { %v4847_v33 = vmul.f32 %v8517_v14, %v4822_v3 }
 0xc5e   :  { %4851 = vperm.xlu1 %8491, %v4847_v33  }
 0xc5f   :  { %v8519_v7 = vpop.eup %8518 }
 0xc60   :  { %v4848_v51 = vmul.f32 %v8519_v7, %v4823_v42 }
 0xc62   :  { %4868 = vperm.xlu1 %8491, %v4825_v23   ;;  %4856 = vperm.xlu0 %8490, %v4848_v51  }
 0xcdd   :  { %v4852_v28 = vpop.permute.xlu1 %4851 }
 0xcde   :  { %v4859_v4 = vmul.f32 %v4852_v28, %v11302_v11  ;;  %v4975_v11 = vld [vmem:[%s12735_s15 + $0x48] sm:$0xff] }
 0xce0   :  { %v4871_v59 = vadd.f32 %v4864_v6, %v4859_v4 }
 0xce1   :  { %v4857_v37 = vpop.permute.xlu0 %4856  ;;  %v4869_v1 = vpop.permute.xlu1 %4868 }
 0xce2   :  { %v4873_v27 = vmax.f32 %v4871_v59, 0.0  ;;  %v4860_v57 = vmul.f32 %v4857_v37, %v11304_v18  ;;  %v4976_v18 = vld [vmem:[%s12735_s15 + $0x50] sm:$0xff]  ;;  %s8555_s15 = smov 14  }
 0xce4   :  { %v4872_v0 = vadd.f32 %v4869_v1, %v4860_v57  ;;  %8043 = vmatprep.mubr.f32.mxu1 %v4873_v27 }
 0xce6   :  { %v4874_v55 = vmax.f32 %v4872_v0, 0.0 }
 0xce8   :  { %8044 = vmatmul.mubr.f32.vlgmr.msra.gmra.mrb[100].mxu1 %v4874_v55 }
 0xce9   :  { %8050 = vmatprep.mubr.msk.f32.mxu1 %vm3356_vm6, %v4966_v10 }
 0xdbb   :  { %v8045_v12 = vpop.f32.mrb[100].mxu1 }
 0xdbc   :  { %v4957_v20 = vpop.f32.mrb[101].mxu1 }
 0xdbd   :  { %v8200_v25 = vpack.c.bf16 %v8045_v12, %v4957_v20 }
 0xdbf   :  { %8201 = vmatprep.subr.bf16.mxu1 %v8200_v25 }
 0xdc0   :  { %8203 = vmatpush3.bf16.msra.mxu1 %v8200_v25 }
 0xdc3   :  { %8051 = vmatmul.mubr.msk.f32.vlgmr.msra.gmra.mrb[102].mxu1 %vm3356_vm6, %v4967_v63 }
 0xdc4   :  { %8053 = vmatprep.mubr.msk.f32.mxu1 %vm3356_vm6, %v4968_v29 }
 0xdc7   :  { %8054 = vmatmul.mubr.msk.f32.gmra.mrb[104].mxu1 %vm3356_vm6, %v4969_v46 }
 0xdc8   :  { %8056 = vmatprep.mubr.msk.f32.mxu1 %vm3356_vm6, %v4970_v9 }
 0xdcb   :  { %8057 = vmatmul.mubr.msk.f32.gmra.mrb[106].mxu1 %vm3356_vm6, %v4971_v48 }
 0xdcc   :  { %8059 = vmatprep.mubr.msk.f32.mxu1 %vm3356_vm6, %v4972_v15 }
 0xdcf   :  { %8060 = vmatmul.mubr.msk.f32.gmra.mrb[108].mxu1 %vm3356_vm6, %v4973_v8 }
 0xdd0   :  { %8062 = vmatprep.mubr.msk.f32.mxu1 %vm3356_vm6, %v4974_v40 }
 0xdd3   :  { %8063 = vmatmul.mubr.msk.f32.gmra.mrb[110].mxu1 %vm3356_vm6, %v4975_v11 }
 0xdd4   :  { %8065 = vmatprep.mubr.msk.f32.mxu1 %vm3356_vm6, %v4976_v18 }
 0xdd7   :  { %8066 = vmatmul.mubr.msk.f32.gmra.mrb[112].mxu1 %vm3356_vm6, %v4977_v56 }
 0xdd8   :  { %8068 = vmatprep.mubr.msk.f32.mxu1 %vm3356_vm6, %v4978_v54 }
 0xddb   :  { %8069 = vmatmul.mubr.msk.f32.gmra.mrb[114].mxu1 %vm3356_vm6, %v4979_v31 }
 0xddc   :  { %8071 = vmatprep.mubr.msk.f32.mxu1 %vm3356_vm6, %v4980_v36 }
 0xddf   :  { %8072 = vmatmul.mubr.msk.f32.gmra.mrb[116].mxu1 %vm3356_vm6, %v4981_v13 }
 0xde0   :  { %8074 = vmatprep.mubr.msk.f32.mxu1 %vm3356_vm6, %v4982_v41 }
 0xde3   :  { %8075 = vmatmul.mubr.msk.f32.gmra.mrb[118].mxu1 %vm3356_vm6, %v4983_v17 }
 0xde4   :  { %8077 = vmatprep.mubr.msk.f32.mxu1 %vm3356_vm6, %v4984_v58 }
 0xde7   :  { %8078 = vmatmul.mubr.msk.f32.gmra.mrb[120].mxu1 %vm3356_vm6, %v4985_v26 }
 0xde8   :  { %8080 = vmatprep.mubr.msk.f32.mxu1 %vm3356_vm6, %v4986_v53 }
 0xdeb   :  { %8081 = vmatmul.mubr.msk.f32.gmra.mrb[122].mxu1 %vm3356_vm6, %v4987_v62 }
 0xdec   :  { %8083 = vmatprep.mubr.msk.f32.mxu1 %vm3356_vm6, %v4988_v30 }
 0xdef   :  { %8084 = vmatmul.mubr.msk.f32.gmra.mrb[124].mxu1 %vm3356_vm6, %v4989_v19 }
 0xdf0   :  { %8086 = vmatprep.mubr.msk.f32.mxu1 %vm3356_vm6, %v4990_v21 }
 0xdf3   :  { %8087 = vmatmul.mubr.msk.f32.gmra.mrb[126].mxu1 %vm3356_vm6, %v4991_v43  ;;  %v11536_v43 = vld [vmem:[%s12736_s16] sm:$0xff] }
 0xdf4   :  { %8089 = vmatprep.mubr.msk.f32.mxu1 %vm3356_vm6, %v4992_v61 }
 0xdf7   :  { %8090 = vmatmul.mubr.msk.f32.gmra.mrb[128].mxu1 %vm3356_vm6, %v4993_v34  ;;  %v12926_v34 = vld [vmem:[#allocation2_spill] sm:$0xff] }
 0xdf8   :  { %8092 = vmatprep.mubr.msk.f32.mxu1 %vm3356_vm6, %v4994_v24  ;;  %v11540_v24 = vrot.slane %v11536_v43, %v12926_v34 }
 0xdfb   :  { %8093 = vmatmul.mubr.msk.f32.gmra.mrb[130].mxu1 %vm3356_vm6, %v4995_v5 }
 0xdfc   :  { %8095 = vmatprep.mubr.msk.f32.mxu1 %vm3356_vm6, %v4996_v22  ;;  %v12927_v22 = vld [vmem:[#allocation7_spill] sm:$0xff] }
 0xdff   :  { %8096 = vmatmul.mubr.msk.f32.gmra.mrb[132].mxu1 %vm3356_vm6, %v4997_v45  ;;  %v5381_v45 = vrot.slane %v11536_v43, %v12927_v22 }
 0xe00   :  { %8098 = vmatprep.mubr.msk.f32.mxu1 %vm3356_vm6, %v4998_v16  ;;  %v12928_v16 = vld [vmem:[#allocation6_spill] sm:$0xff] }
 0xe03   :  { %8099 = vmatmul.mubr.msk.f32.gmra.mrb[134].mxu1 %vm3356_vm6, %v4999_v32  ;;  %v5409_v32 = vrot.slane %v11536_v43, %v12928_v16 }
 0xe04   :  { %8101 = vmatprep.mubr.msk.f32.mxu1 %vm3356_vm6, %v5000_v38 }
 0xe07   :  { %8102 = vmatmul.mubr.msk.f32.gmra.mrb[136].mxu1 %vm3356_vm6, %v5001_v35  ;;  %v12929_v35 = vld [vmem:[#allocation28_spill] sm:$0xff] }
 0xe96   :  { %v8052_v60 = vpop.f32.mrb[102].mxu1 }
 0xe97   :  { %5363 = vrot.lane.b32.xlu1 %v8052_v60, %s8554_s27  ;;  %v5176_v2 = vpop.f32.mrb[103].mxu1  ;;  %v5442_v60 = vrot.slane %v11536_v43, %v12929_v35 }
 0xe98   :  { %5361 = vrot.lane.b32.xlu0 %v5176_v2, %s8554_s27  ;;  %v12930_v2 = vld [vmem:[#allocation32_spill] sm:$0xff] }
 0xe9a   :  { %v8055_v47 = vpop.f32.mrb[104].mxu1 }
 0xe9b   :  { %v5186_v44 = vpop.f32.mrb[105].mxu1 }
 0xe9c   :  { %5367 = vrot.lane.b32.xlu0 %v8055_v47, %s8554_s27  ;;  %v5474_v47 = vrot.slane %v11536_v43, %v12930_v2 }
 0xe9e   :  { %v8058_v49 = vpop.f32.mrb[106].mxu1 }
 0xe9f   :  { %5392 = vrot.lane.b32.xlu1 %v8058_v49, %s8546_s9  ;;  %v5196_v50 = vpop.f32.mrb[107].mxu1 }
 0xea0   :  { %5365 = vrot.lane.b32.xlu0 %v5186_v44, %s8554_s27 }
 0xea2   :  { %v8061_v39 = vpop.f32.mrb[108].mxu1 }
 0xea3   :  { %5396 = vrot.lane.b32.xlu1 %v8061_v39, %s8546_s9  ;;  %v5206_v3 = vpop.f32.mrb[109].mxu1  ;;  %v12931_v39 = vld [vmem:[#allocation58_spill] sm:$0xff] }
 0xea4   :  { %5390 = vrot.lane.b32.xlu0 %v5196_v50, %s8546_s9 }
 0xea6   :  { %v8064_v14 = vpop.f32.mrb[110].mxu1 }
 0xea7   :  { %5394 = vrot.lane.b32.xlu1 %v5206_v3, %s8546_s9  ;;  %v5216_v33 = vpop.f32.mrb[111].mxu1  ;;  %s8556_s9 = smov 114   ;;  %v11560_v3 = vrot.slane %v11536_v43, %v12931_v39 }
 0xea8   :  { %5422 = vrot.lane.b32.xlu0 %v5216_v33, %s8555_s15 }
 0xeaa   :  { %v8067_v42 = vpop.f32.mrb[112].mxu1 }
 0xeab   :  { %5424 = vrot.lane.b32.xlu1 %v8064_v14, %s8555_s15  ;;  %v5226_v7 = vpop.f32.mrb[113].mxu1 }
 0xeac   :  { %5426 = vrot.lane.b32.xlu0 %v5226_v7, %s8555_s15 }
 0xeae   :  { %v8070_v23 = vpop.f32.mrb[114].mxu1 }
 0xeaf   :  { %5428 = vrot.lane.b32.xlu1 %v8067_v42, %s8555_s15  ;;  %v5236_v51 = vpop.f32.mrb[115].mxu1 }
 0xeb0   :  { %5457 = vrot.lane.b32.xlu0 %v8070_v23, %s8539_s28 }
 0xeb2   :  { %v8073_v6 = vpop.f32.mrb[116].mxu1 }
 0xeb3   :  { %5455 = vrot.lane.b32.xlu1 %v5236_v51, %s8539_s28  ;;  %v5246_v28 = vpop.f32.mrb[117].mxu1 }
 0xeb4   :  { %5459 = vrot.lane.b32.xlu0 %v5246_v28, %s8539_s28  ;;  %v12932_v28 = vld [vmem:[#allocation11_spill] sm:$0xff] }
 0xeb6   :  { %v11520_v4 = vpop.f32.mrb[118].mxu1 }
 0xeb7   :  { %5461 = vrot.lane.b32.xlu1 %v8073_v6, %s8539_s28  ;;  %v11523_v59 = vpop.f32.mrb[119].mxu1  ;;  %v11555_v49 = vmul.f32 %v11520_v4, %v11540_v24  ;;  %v11575_v4 = vrot.slane %v11536_v43, %v12932_v28 }
 0xeb8   :  { %v11564_v33 = vmul.f32 %v11540_v24, %v11523_v59 }
 0xeba   :  { %v11525_v37 = vpop.f32.mrb[120].mxu1 }
 0xebb   :  { %v11527_v27 = vpop.f32.mrb[121].mxu1  ;;  %v11570_v23 = vmul.f32 %v11525_v37, %v11540_v24 }
 0xebe   :  { %v8082_v57 = vpop.f32.mrb[122].mxu1 }
 0xebf   :  { %5501 = vrot.lane.b32.xlu1 %v8082_v57, %s8542_s29  ;;  %v5276_v1 = vpop.f32.mrb[123].mxu1 }
 0xec0   :  { %5499 = vrot.lane.b32.xlu0 %v5276_v1, %s8542_s29 }
 0xec2   :  { %v8085_v0 = vpop.f32.mrb[124].mxu1 }
 0xec3   :  { %5505 = vrot.lane.b32.xlu1 %v8085_v0, %s8542_s29  ;;  %v5286_v55 = vpop.f32.mrb[125].mxu1 }
 0xec4   :  { %5503 = vrot.lane.b32.xlu0 %v5286_v55, %s8542_s29 }
 0xec6   :  { %v8088_v10 = vpop.f32.mrb[126].mxu1 }
 0xec7   :  { %v5296_v12 = vpop.f32.mrb[127].mxu1 }
 0xec8   :  { %5534 = vrot.lane.b32.xlu0 %v8088_v10, %s8556_s9  ;;  %5532 = vrot.lane.b32.xlu1 %v5296_v12, %s8556_s9 }
 0xeca   :  { %v8091_v20 = vpop.f32.mrb[128].mxu1 }
 0xecb   :  { %v5306_v25 = vpop.f32.mrb[129].mxu1 }
 0xecc   :  { %5538 = vrot.lane.b32.xlu1 %v8091_v20, %s8556_s9  ;;  %5536 = vrot.lane.b32.xlu0 %v5306_v25, %s8556_s9 }
 0xece   :  { %v8094_v63 = vpop.f32.mrb[130].mxu1 }
 0xecf   :  { %v5316_v29 = vpop.f32.mrb[131].mxu1 }
 0xed0   :  { %5567 = vrot.lane.b32.xlu0 %v8094_v63, %s8557_s4  ;;  %5565 = vrot.lane.b32.xlu1 %v5316_v29, %s8557_s4 }
 0xed2   :  { %v8097_v46 = vpop.f32.mrb[132].mxu1 }
 0xed3   :  { %v5326_v9 = vpop.f32.mrb[133].mxu1 }
 0xed4   :  { %5571 = vrot.lane.b32.xlu1 %v8097_v46, %s8557_s4  ;;  %5569 = vrot.lane.b32.xlu0 %v5326_v9, %s8557_s4 }
 0xed6   :  { %v8100_v48 = vpop.f32.mrb[134].mxu1 }
 0xed7   :  { %v5336_v15 = vpop.f32.mrb[135].mxu1 }
 0xed8   :  { %5600 = vrot.lane.b32.xlu0 %v8100_v48, %s8558_s24  ;;  %5598 = vrot.lane.b32.xlu1 %v5336_v15, %s8558_s24 }
 0xeda   :  { %v8103_v8 = vpop.f32.mrb[136].mxu1 }
 0xedb   :  { %v5346_v40 = vpop.f32.mrb[137].mxu1 }
 0xedc   :  { %5604 = vrot.lane.b32.xlu1 %v8103_v8, %s8558_s24  ;;  %5602 = vrot.lane.b32.xlu0 %v5346_v40, %s8558_s24 }
 0xf09   :  { %v5364_v18 = vpop.permute.xlu1 %5363 }
 0xf0a   :  { %v5362_v11 = vpop.permute.xlu0 %5361  ;;  %v5375_v38 = vsel %vm5373_vm13, 0.0, %v5364_v18 }
 0xf0b   :  { %v5374_v42 = vsel %vm5373_vm13, 0.0, %v5362_v11  ;;  %v5383_v51 = vmul.f32 %v5381_v45, %v5375_v38 }
 0xf0c   :  { %v5382_v55 = vmul.f32 %v5381_v45, %v5374_v42 }
 0xf0e   :  { %v5368_v56 = vpop.permute.xlu0 %5367 }
 0xf0f   :  { %v5377_v63 = vsel %vm5373_vm13, 0.0, %v5368_v56 }
 0xf11   :  { %v5393_v54 = vpop.permute.xlu1 %5392 }
 0xf12   :  { %v5366_v31 = vpop.permute.xlu0 %5365  ;;  %v5403_v50 = vsel %vm3356_vm6, 0.0, %v5393_v54 }
 0xf13   :  { %v5411_v57 = vmul.f32 %v5409_v32, %v5403_v50  ;;  %v5376_v59 = vsel %vm5373_vm13, 0.0, %v5366_v31 }
 0xf14   :  { %v5384_v48 = vmul.f32 %v5381_v45, %v5376_v59 }
 0xf15   :  { %v5397_v36 = vpop.permute.xlu1 %5396  ;;  %v5415_v11 = vadd.f32 %v5411_v57, %v5383_v51 }
 0xf16   :  { %v5391_v13 = vpop.permute.xlu0 %5390  ;;  %v5405_v10 = vsel %vm3356_vm6, 0.0, %v5397_v36 }
 0xf17   :  { %v5402_v7 = vsel %vm3356_vm6, 0.0, %v5391_v13  ;;  %v5413_v18 = vmul.f32 %v5409_v32, %v5405_v10 }
 0xf18   :  { %v5410_v12 = vmul.f32 %v5409_v32, %v5402_v7 }
 0xf19   :  { %v5395_v41 = vpop.permute.xlu1 %5394 }
 0xf1a   :  { %v5423_v17 = vpop.permute.xlu0 %5422  ;;  %v5404_v1 = vsel %vm3356_vm6, 0.0, %v5395_v41  ;;  %v5414_v36 = vadd.f32 %v5410_v12, %v5382_v55  ;;  %vm6506_vm6 = vcmask 1041408  }
 0xf1b   :  { %v5435_v0 = vsel %vm5434_vm14, 0.0, %v5423_v17  ;;  %v5412_v15 = vmul.f32 %v5409_v32, %v5404_v1 }
 0xf1c   :  { %v5443_v8 = vmul.f32 %v5442_v60, %v5435_v0 }
 0xf1d   :  { %v5425_v58 = vpop.permute.xlu1 %5424  ;;  %v5416_v38 = vadd.f32 %v5412_v15, %v5384_v48 }
 0xf1e   :  { %v5427_v53 = vpop.permute.xlu0 %5426  ;;  %v5436_v6 = vsel %vm5434_vm14, 0.0, %v5425_v58  ;;  %v5447_v50 = vadd.f32 %v5443_v8, %v5414_v36 }
 0xf1f   :  { %v5444_v29 = vmul.f32 %v5442_v60, %v5436_v6  ;;  %v5437_v46 = vsel %vm5434_vm14, 0.0, %v5427_v53  ;;  %v5385_v53 = vmul.f32 %v5381_v45, %v5377_v63  ;;  %v5585_v45 = vrot.slane %v11536_v43, %v10270_v52 }
 0xf20   :  { %v5445_v13 = vmul.f32 %v5442_v60, %v5437_v46 }
 0xf21   :  { %v5429_v26 = vpop.permute.xlu1 %5428  ;;  %v5417_v32 = vadd.f32 %v5413_v18, %v5385_v53 }
 0xf22   :  { %v5458_v30 = vpop.permute.xlu0 %5457  ;;  %v5438_v40 = vsel %vm5434_vm14, 0.0, %v5429_v26  ;;  %v5449_v6 = vadd.f32 %v5445_v13, %v5416_v38 }
 0xf23   :  { %v5468_v37 = vsel %vm723_vm1, 0.0, %v5458_v30  ;;  %v5448_v30 = vadd.f32 %v5444_v29, %v5415_v11 }
 0xf24   :  { %v5476_v54 = vmul.f32 %v5474_v47, %v5468_v37 }
 0xf25   :  { %v5456_v62 = vpop.permute.xlu1 %5455 }
 0xf26   :  { %v5460_v21 = vpop.permute.xlu0 %5459  ;;  %v5467_v9 = vsel %vm723_vm1, 0.0, %v5456_v62  ;;  %v5446_v62 = vmul.f32 %v5442_v60, %v5438_v40  ;;  %v5480_v7 = vadd.f32 %v5476_v54, %v5448_v30 }
 0xf27   :  { %v5469_v31 = vsel %vm723_vm1, 0.0, %v5460_v21  ;;  %v5475_v41 = vmul.f32 %v5474_v47, %v5467_v9 }
 0xf28   :  { %v5477_v42 = vmul.f32 %v5474_v47, %v5469_v31  ;;  %v5450_v1 = vadd.f32 %v5446_v62, %v5417_v32  ;;  %v5492_v43 = vadd.f32 %v11555_v49, %v5480_v7  ;;  %v7216_v31 = vld [vmem:[%s12736_s16 + $0x8] ss:$0 sm:$0xff]  ;;  %s8562_s16 = smov 98  }
 0xf29   :  { %v5462_v19 = vpop.permute.xlu1 %5461  ;;  %v5479_v57 = vadd.f32 %v5475_v41, %v5447_v50 }
 0xf2a   :  { %v5470_v56 = vsel %vm723_vm1, 0.0, %v5462_v19 }
 0xf2b   :  { %v5478_v51 = vmul.f32 %v5474_v47, %v5470_v56  ;;  %v5489_v47 = vmul.f32 %v11540_v24, %v11527_v27  ;;  %v5491_v29 = vadd.f32 %v11564_v33, %v5479_v57 }
 0xf2d   :  { %v5482_v37 = vadd.f32 %v5478_v51, %v5450_v1 }
 0xf2f   :  { %v5494_v33 = vadd.f32 %v11570_v23, %v5482_v37  ;;  %v5682_v37 = vld [vmem:[%s12737_s17 + $0x38] sm:$0xff] }
 0xf31   :  { %v5502_v61 = vpop.permute.xlu1 %5501 }
 0xf32   :  { %v5500_v5 = vpop.permute.xlu0 %5499  ;;  %v5513_v26 = vsel %vm5511_vm15, %v5502_v61, 0.0 }
 0xf33   :  { %v5512_v21 = vsel %vm5511_vm15, %v5500_v5, 0.0  ;;  %v5521_v0 = vmul.f32 %v11560_v3, %v5513_v26  ;;  %v5481_v5 = vadd.f32 %v5477_v42, %v5449_v6 }
 0xf34   :  { %v5520_v10 = vmul.f32 %v11560_v3, %v5512_v21 }
 0xf35   :  { %v11551_v44 = vpop.permute.xlu1 %5505  ;;  %v5525_v9 = vadd.f32 %v5521_v0, %v5492_v43  ;;  %v5493_v40 = vadd.f32 %v5489_v47, %v5481_v5  ;;  %v5677_v43 = vld [vmem:[%s12737_s17 + $0x10] sm:$0xff] }
 0xf36   :  { %v5504_v14 = vpop.permute.xlu0 %5503  ;;  %v5524_v8 = vadd.f32 %v5520_v10, %v5491_v29  ;;  %v5686_v29 = vld [vmem:[%s12737_s17 + $0x58] sm:$0xff] }
 0xf37   :  { %v5514_v55 = vsel %vm5511_vm15, %v5504_v14, 0.0  ;;  %v5515_v14 = vsel %vm5511_vm15, %v11551_v44, 0.0 }
 0xf38   :  { %v5523_v44 = vmul.f32 %v11560_v3, %v5515_v14  ;;  %v5690_v14 = vld [vmem:[%s12737_s17 + $0x78] sm:$0xff] }
 0xf3a   :  { %v5535_v20 = vpop.permute.xlu0 %5534  ;;  %v5533_v25 = vpop.permute.xlu1 %5532  ;;  %v5527_v26 = vadd.f32 %v5523_v44, %v5494_v33  ;;  %v5706_v33 = vld [vmem:[%s12737_s17 + $0xf8] sm:$0xff] }
 0xf3b   :  { %v5546_v19 = vsel %vm5544_vm2, %v5535_v20, 0.0  ;;  %v5545_v61 = vsel %vm5544_vm2, %v5533_v25, 0.0  ;;  %v5522_v25 = vmul.f32 %v11560_v3, %v5514_v55 }
 0xf3c   :  { %v5554_v20 = vmul.f32 %v11575_v4, %v5546_v19  ;;  %v5553_v27 = vmul.f32 %v11575_v4, %v5545_v61 }
 0xf3d   :  { %v5526_v36 = vadd.f32 %v5522_v25, %v5493_v40  ;;  %v5697_v40 = vld [vmem:[%s12737_s17 + $0xb0] sm:$0xff] }
 0xf3e   :  { %v5539_v17 = vpop.permute.xlu1 %5538  ;;  %v5537_v58 = vpop.permute.xlu0 %5536  ;;  %v5558_v18 = vadd.f32 %v5554_v20, %v5525_v9  ;;  %v5557_v13 = vadd.f32 %v5553_v27, %v5524_v8  ;;  %v8336_v27 = vpack.c.bf16 %v5690_v14, %v5686_v29  ;;  %v5694_v9 = vld [vmem:[%s12737_s17 + $0x98] sm:$0xff]  ;;  %v5693_v8 = vld [vmem:[%s12737_s17 + $0x90] sm:$0xff] }
 0xf3f   :  { %v5548_v48 = vsel %vm5544_vm2, %v5539_v17, 0.0  ;;  %v5547_v49 = vsel %vm5544_vm2, %v5537_v58, 0.0  ;;  %v8342_v44 = vpack.c.bf16 %v5697_v40, %v5693_v8  ;;  %v5742_v29 = vld [vmem:[%s12737_s17 + $0x218] sm:$0xff]  ;;  %v5676_v8 = vld [vmem:[%s12737_s17 + $0x8] sm:$0xff] }
 0xf40   :  { %v5556_v41 = vmul.f32 %v11575_v4, %v5548_v48  ;;  %v5555_v56 = vmul.f32 %v11575_v4, %v5547_v49  ;;  %v5698_v48 = vld [vmem:[%s12737_s17 + $0xb8] sm:$0xff]  ;;  %v5680_v40 = vld [vmem:[%s12737_s17 + $0x28] sm:$0xff] }
 0xf41   :  { %v5746_v14 = vld [vmem:[%s12737_s17 + $0x238] sm:$0xff] }
 0xf42   :  { %v5568_v59 = vpop.permute.xlu0 %5567  ;;  %v5566_v60 = vpop.permute.xlu1 %5565  ;;  %v5559_v32 = vadd.f32 %v5555_v56, %v5526_v36  ;;  %v5710_v36 = vld [vmem:[%s12737_s17 + $0x118] sm:$0xff] }
 0xf43   :  { %v5579_v12 = vsel %vm5577_vm3, %v5568_v59, 0.0  ;;  %v5578_v63 = vsel %vm5577_vm3, %v5566_v60, 0.0  ;;  %v5560_v59 = vadd.f32 %v5556_v41, %v5527_v26 }
 0xf44   :  { %v5587_v15 = vmul.f32 %v5585_v45, %v5579_v12  ;;  %v5586_v11 = vmul.f32 %v5585_v45, %v5578_v63  ;;  %v5678_v12 = vld [vmem:[%s12737_s17 + $0x18] sm:$0xff]  ;;  %v5681_v63 = vld [vmem:[%s12737_s17 + $0x30] sm:$0xff] }
 0xf45   :  { %v8332_v20 = vpack.c.bf16 %v5682_v37, %v5678_v12  ;;  %v8334_v25 = vpack.c.bf16 %v5681_v63, %v5677_v43  ;;  %v5734_v12 = vld [vmem:[%s12737_s17 + $0x1d8] sm:$0xff]  ;;  %v5733_v43 = vld [vmem:[%s12737_s17 + $0x1d0] sm:$0xff] }
 0xf46   :  { %v5572_v24 = vpop.permute.xlu1 %5571  ;;  %v5570_v46 = vpop.permute.xlu0 %5569  ;;  %v5591_v53 = vadd.f32 %v5587_v15, %v5558_v18  ;;  %v5590_v62 = vadd.f32 %v5586_v11, %v5557_v13  ;;  %v8340_v15 = vpack.c.bf16 %v5698_v48, %v5694_v9  ;;  %v5702_v11 = vld [vmem:[%s12737_s17 + $0xd8] sm:$0xff]  ;;  %v5737_v63 = vld [vmem:[%s12737_s17 + $0x1f0] sm:$0xff] }
 0xf47   :  { %v5580_v54 = vsel %vm5577_vm3, %v5570_v46, 0.0  ;;  %v5581_v23 = vsel %vm5577_vm3, %v5572_v24, 0.0  ;;  %v5685_v24 = vld [vmem:[%s12737_s17 + $0x50] sm:$0xff]  ;;  %8333 = vmatprep.subr.bf16.mxu0 %v8332_v20  ;;  %v8344_v18 = vpack.c.bf16 %v5706_v33, %v5702_v11  ;;  %v5714_v13 = vld [vmem:[%s12737_s17 + $0x138] sm:$0xff] }
 0xf48   :  { %v5588_v38 = vmul.f32 %v5585_v45, %v5580_v54  ;;  %v5589_v7 = vmul.f32 %v5585_v45, %v5581_v23  ;;  %v5689_v46 = vld [vmem:[%s12737_s17 + $0x70] sm:$0xff]  ;;  %8335 = vmatpush1.bf16.msra.mxu0 %v8334_v25  ;;  %v8348_v56 = vpack.c.bf16 %v5714_v13, %v5710_v36  ;;  %v5722_v23 = vld [vmem:[%s12737_s17 + $0x178] sm:$0xff]  ;;  %v8362_v25 = vpack.c.bf16 %v5737_v63, %v5733_v43 }
 0xf49   :  { %v8338_v49 = vpack.c.bf16 %v5689_v46, %v5685_v24  ;;  %8337 = vmatprep.subr.bf16.mxu0 %v8336_v27  ;;  %v5701_v54 = vld [vmem:[%s12737_s17 + $0xd0] sm:$0xff]  ;;  %v5738_v37 = vld [vmem:[%s12737_s17 + $0x1f8] sm:$0xff]  ;;  %v8364_v27 = vpack.c.bf16 %v5746_v14, %v5742_v29  ;;  %v5707_v29 = vld [vmem:[%s12737_s17 + $0x100] sm:$0xff] }
 0xf4a   :  { %v5601_v17 = vpop.permute.xlu0 %5600  ;;  %v5599_v58 = vpop.permute.xlu1 %5598  ;;  %v5592_v60 = vadd.f32 %v5588_v38, %v5559_v32  ;;  %v5593_v55 = vadd.f32 %v5589_v7, %v5560_v59  ;;  %v5721_v38 = vld [vmem:[%s12737_s17 + $0x170] sm:$0xff]  ;;  %v8360_v20 = vpack.c.bf16 %v5738_v37, %v5734_v12  ;;  %v5750_v9 = vld [vmem:[%s12737_s17 + $0x258] sm:$0xff]  ;;  %v5708_v12 = vld [vmem:[%s12737_s17 + $0x108] sm:$0xff] }
 0xf4b   :  { %v5612_v3 = vsel %vm5610_vm5, %v5601_v17, 0.0  ;;  %v5611_v30 = vsel %vm5610_vm5, %v5599_v58, 0.0  ;;  %v5709_v17 = vld [vmem:[%s12737_s17 + $0x110] sm:$0xff]  ;;  %v5754_v48 = vld [vmem:[%s12737_s17 + $0x278] sm:$0xff]  ;;  %v5712_v37 = vld [vmem:[%s12737_s17 + $0x128] sm:$0xff] }
 0xf4c   :  { %v5620_v50 = vmul.f32 %v7216_v31, %v5612_v3  ;;  %v5619_v42 = vmul.f32 %v7216_v31, %v5611_v30  ;;  %8339 = vmatpush1.bf16.msra.mxu0 %v8338_v49  ;;  %v5713_v58 = vld [vmem:[%s12737_s17 + $0x130] sm:$0xff]  ;;  %v8368_v11 = vpack.c.bf16 %v5754_v48, %v5750_v9  ;;  %v5762_v36 = vld [vmem:[%s12737_s17 + $0x2b8] sm:$0xff]  ;;  %v8220_v63 = vpack.c.bf16 %v5712_v37, %v5708_v12  ;;  %v5711_v14 = vld [vmem:[%s12737_s17 + $0x120] sm:$0xff] }
 0xf4d   :  { %8341 = vmatprep.subr.bf16.mxu0 %v8340_v15  ;;  %v8350_v3 = vpack.c.bf16 %v5713_v58, %v5709_v17  ;;  %v5741_v24 = vld [vmem:[%s12737_s17 + $0x210] sm:$0xff]  ;;  %v5683_v17 = vld [vmem:[%s12737_s17 + $0x40] sm:$0xff] }
 0xf4e   :  { %v11621_v51 = vadd.f32 %v5620_v50, %v5591_v53  ;;  %v11623_v21 = vadd.f32 %v5619_v42, %v5590_v62  ;;  %v5605_v4 = vpop.permute.xlu1 %5604  ;;  %v5603_v6 = vpop.permute.xlu0 %5602  ;;  %v5718_v53 = vld [vmem:[%s12737_s17 + $0x158] sm:$0xff]  ;;  %v5717_v62 = vld [vmem:[%s12737_s17 + $0x150] sm:$0xff]  ;;  %v5687_v58 = vld [vmem:[%s12737_s17 + $0x60] sm:$0xff] }
 0xf4f   :  { %v5614_v57 = vsel %vm5610_vm5, %v5605_v4, 0.0  ;;  %v5613_v19 = vsel %vm5610_vm5, %v5603_v6, 0.0  ;;  %v8352_v30 = vpack.c.bf16 %v5722_v23, %v5718_v53  ;;  %v8354_v50 = vpack.c.bf16 %v5721_v38, %v5717_v62  ;;  %v5745_v46 = vld [vmem:[%s12737_s17 + $0x230] sm:$0xff]  ;;  %v5692_v62 = vld [vmem:[%s12737_s17 + $0x88] sm:$0xff]  ;;  %v5747_v37 = vld [vmem:[%s12737_s17 + $0x240] sm:$0xff] }
 0xf50   :  { %v5622_v1 = vmul.f32 %v7216_v31, %v5614_v57  ;;  %v5621_v0 = vmul.f32 %v7216_v31, %v5613_v19  ;;  %v5629_v61 = vadd.f32 %v11621_v51, %v11623_v21  ;;  %v5705_v31 = vld [vmem:[%s12737_s17 + $0xf0] sm:$0xff]  ;;  %8343 = vmatpush1.bf16.msra.mxu0 %v8342_v44  ;;  %v8366_v49 = vpack.c.bf16 %v5745_v46, %v5741_v24  ;;  %v5696_v38 = vld [vmem:[%s12737_s17 + $0xa8] sm:$0xff]  ;;  %v5774_v24 = vld [vmem:[%s12737_s17 + $0x318] sm:$0xff] }
 0xf51   :  { %v8346_v41 = vpack.c.bf16 %v5705_v31, %v5701_v54  ;;  %8345 = vmatprep.subr.bf16.mxu0 %v8344_v18  ;;  %v5749_v15 = vld [vmem:[%s12737_s17 + $0x250] sm:$0xff]  ;;  %v8204_v44 = vpack.c.bf16 %v5680_v40, %v5676_v8  ;;  %v5675_v18 = vld [vmem:[%s12737_s17] sm:$0xff]  ;;  %v5758_v31 = vld [vmem:[%s12737_s17 + $0x298] sm:$0xff] }
 0xf52   :  { %v5625_v47 = vadd.f32 %v5621_v0, %v5592_v60  ;;  %v5626_v45 = vadd.f32 %v5622_v1, %v5593_v55  ;;  %v5628_v0 = vld [vmem:[%s12738_s19] sm:$0xff]  ;;  %v5726_v55 = vld [vmem:[%s12737_s17 + $0x198] sm:$0xff]  ;;  %v5753_v33 = vld [vmem:[%s12737_s17 + $0x270] sm:$0xff] }
 0xf53   :  { %v5679_v54 = vld [vmem:[%s12737_s17 + $0x20] sm:$0xff]  ;;  %8205 = vmatprep.subr.bf16.mxu1 %v8204_v44  ;;  %v8370_v53 = vpack.c.bf16 %v5753_v33, %v5749_v15  ;;  %v5757_v23 = vld [vmem:[%s12737_s17 + $0x290] sm:$0xff]  ;;  %v5778_v46 = vld [vmem:[%s12737_s17 + $0x338] sm:$0xff]  ;;  %v8222_v15 = vpack.c.bf16 %v5711_v14, %v5707_v29 }
 0xf54   :  { %v5630_v5 = vadd.f32 %v5629_v61, %v5625_v47  ;;  %8347 = vmatpush1.bf16.msra.mxu0 %v8346_v41  ;;  %v5730_v61 = vld [vmem:[%s12737_s17 + $0x1b8] sm:$0xff]  ;;  %v8206_v13 = vpack.c.bf16 %v5679_v54, %v5675_v18  ;;  %v5684_v41 = vld [vmem:[%s12737_s17 + $0x48] sm:$0xff]  ;;  %v8380_v9 = vpack.c.bf16 %v5778_v46, %v5774_v24  ;;  %v5773_v48 = vld [vmem:[%s12737_s17 + $0x310] sm:$0xff] }
 0xf55   :  { %8349 = vmatprep.subr.bf16.mxu0 %v8348_v56  ;;  %v5688_v56 = vld [vmem:[%s12737_s17 + $0x68] sm:$0xff]  ;;  %v5719_v33 = vld [vmem:[%s12737_s17 + $0x160] sm:$0xff] }
 0xf56   :  { %v5631_v10 = vadd.f32 %v5630_v5, %v5626_v45  ;;  %v5729_v5 = vld [vmem:[%s12737_s17 + $0x1b0] sm:$0xff]  ;;  %8207 = vmatpush1.bf16.msra.mxu1 %v8206_v13  ;;  %v5724_v44 = vld [vmem:[%s12737_s17 + $0x188] sm:$0xff] }
 0xf57   :  { %v5728_v18 = vld [vmem:[%s12737_s17 + $0x1a8] sm:$0xff] }
 0xf58   :  { %5632 = vadd.xlane.f32.xlu0 %v5631_v10  ;;  %8351 = vmatpush1.bf16.msra.mxu0 %v8350_v3  ;;  %v8208_v3 = vpack.c.bf16 %v5688_v56, %v5684_v41  ;;  %v8228_v13 = vpack.c.bf16 %v5728_v18, %v5724_v44  ;;  %v5732_v41 = vld [vmem:[%s12737_s17 + $0x1c8] sm:$0xff]  ;;  %v5782_v56 = vld [vmem:[%s12737_s17 + $0x358] sm:$0xff]  ;;  %v5771_v44 = vld [vmem:[%s12737_s17 + $0x300] sm:$0xff] }
 0xf59   :  { %8353 = vmatprep.subr.bf16.mxu0 %v8352_v30  ;;  %v8210_v30 = vpack.c.bf16 %v5687_v58, %v5683_v17  ;;  %v5786_v17 = vld [vmem:[%s12737_s17 + $0x378] sm:$0xff]  ;;  %v5736_v58 = vld [vmem:[%s12737_s17 + $0x1e8] sm:$0xff]  ;;  %v5775_v18 = vld [vmem:[%s12737_s17 + $0x320] sm:$0xff] }
 0xf5a   :  { %8209 = vmatprep.subr.bf16.mxu1 %v8208_v3  ;;  %v5785_v3 = vld [vmem:[%s12737_s17 + $0x370] sm:$0xff]  ;;  %v5764_v24 = vld [vmem:[%s12737_s17 + $0x2c8] sm:$0xff] }
 0xf5b   :  { %8211 = vmatpush1.bf16.msra.mxu1 %v8210_v30  ;;  %v5768_v46 = vld [vmem:[%s12737_s17 + $0x2e8] sm:$0xff] }
 0xf5c   :  { %8355 = vmatpush1.bf16.msra.mxu0 %v8354_v50  ;;  %v8372_v50 = vpack.c.bf16 %v5762_v36, %v5758_v31  ;;  %v5723_v31 = vld [vmem:[%s12737_s17 + $0x180] sm:$0xff] }
 0xf5d   :  { %v5727_v36 = vld [vmem:[%s12737_s17 + $0x1a0] sm:$0xff] }
 0xfe5   :  { %v5633_v42 = vpop.xlane.xlu0 %5632 }
 0xfe6   :  { %v5635_v26 = vmul.f32 0.001953125, %v5633_v42  ;;  %v5761_v42 = vld [vmem:[%s12737_s17 + $0x2b0] sm:$0xff] }
 0xfe8   :  { %v11702_v32 = vsub.f32 %v11623_v21, %v5635_v26  ;;  %v11705_v7 = vsub.f32 %v11621_v51, %v5635_v26  ;;  %v11707_v4 = vsub.f32 %v5625_v47, %v5635_v26  ;;  %v11709_v6 = vsub.f32 %v5626_v45, %v5635_v26  ;;  %v5725_v47 = vld [vmem:[%s12737_s17 + $0x190] sm:$0xff] }
 0xfe9   :  { %v8356_v45 = vpack.c.bf16 %v5730_v61, %v5726_v55  ;;  %v8358_v10 = vpack.c.bf16 %v5729_v5, %v5725_v47  ;;  %v8212_v26 = vpack.c.bf16 %v5696_v38, %v5692_v62  ;;  %v5699_v55 = vld [vmem:[%s12737_s17 + $0xc0] sm:$0xff]  ;;  %v5765_v5 = vld [vmem:[%s12737_s17 + $0x2d0] sm:$0xff]  ;;  %v8230_v62 = vpack.c.bf16 %v5727_v36, %v5723_v31  ;;  %v5784_v31 = vld [vmem:[%s12737_s17 + $0x368] sm:$0xff] }
 0xfea   :  { %v5640_v57 = vmul.f32 %v11702_v32, %v11702_v32  ;;  %v5641_v19 = vmul.f32 %v11705_v7, %v11705_v7  ;;  %v5642_v59 = vmul.f32 %v11707_v4, %v11707_v4  ;;  %v5643_v21 = vmul.f32 %v11709_v6, %v11709_v6  ;;  %v5703_v47 = vld [vmem:[%s12737_s17 + $0xe0] sm:$0xff] }
 0xfeb   :  { %8357 = vmatprep.subr.bf16.mxu0 %v8356_v45  ;;  %8213 = vmatprep.subr.bf16.mxu1 %v8212_v26  ;;  %v8218_v43 = vpack.c.bf16 %v5703_v47, %v5699_v55  ;;  %v5731_v38 = vld [vmem:[%s12737_s17 + $0x1c0] sm:$0xff]  ;;  %v8254_v36 = vpack.c.bf16 %v5775_v18, %v5771_v44  ;;  %v5818_v44 = vld [vmem:[%s12737_s17 + $0x478] sm:$0xff] }
 0xfec   :  { %v5644_v60 = vadd.f32 %v5641_v19, %v5640_v57  ;;  %8359 = vmatpush1.bf16.msra.mxu0 %v8358_v10  ;;  %v5691_v57 = vld [vmem:[%s12737_s17 + $0x80] sm:$0xff]  ;;  %v5769_v10 = vld [vmem:[%s12737_s17 + $0x2f0] sm:$0xff] }
 0xfed   :  { %8361 = vmatprep.subr.bf16.mxu0 %v8360_v20  ;;  %v5695_v19 = vld [vmem:[%s12737_s17 + $0xa0] sm:$0xff]  ;;  %v8378_v20 = vpack.c.bf16 %v5769_v10, %v5765_v5  ;;  %v5752_v5 = vld [vmem:[%s12737_s17 + $0x268] sm:$0xff] }
 0xfee   :  { %v5645_v1 = vadd.f32 %v5644_v60, %v5642_v59  ;;  %v5700_v59 = vld [vmem:[%s12737_s17 + $0xc8] sm:$0xff]  ;;  %v5735_v26 = vld [vmem:[%s12737_s17 + $0x1e0] sm:$0xff] }
 0xfef   :  { %v5704_v60 = vld [vmem:[%s12737_s17 + $0xe8] sm:$0xff]  ;;  %v5743_v47 = vld [vmem:[%s12737_s17 + $0x220] sm:$0xff] }
 0xff0   :  { %v5646_v51 = vadd.f32 %v5645_v1, %v5643_v21  ;;  %8363 = vmatpush1.bf16.msra.mxu0 %v8362_v25  ;;  %v5766_v21 = vld [vmem:[%s12737_s17 + $0x2d8] sm:$0xff]  ;;  %v8216_v61 = vpack.c.bf16 %v5704_v60, %v5700_v59  ;;  %v5716_v25 = vld [vmem:[%s12737_s17 + $0x148] sm:$0xff] }
 0xff1   :  { %8365 = vmatprep.subr.bf16.mxu0 %v8364_v27  ;;  %v5770_v1 = vld [vmem:[%s12737_s17 + $0x2f8] sm:$0xff]  ;;  %v5720_v27 = vld [vmem:[%s12737_s17 + $0x168] sm:$0xff] }
 0xff2   :  { %5647 = vadd.xlane.f32.xlu1 %v5646_v51  ;;  %v8374_v51 = vpack.c.bf16 %v5761_v42, %v5757_v23  ;;  %v8376_v45 = vpack.c.bf16 %v5770_v1, %v5766_v21  ;;  %v8224_v40 = vpack.c.bf16 %v5720_v27, %v5716_v25  ;;  %v5781_v23 = vld [vmem:[%s12737_s17 + $0x350] sm:$0xff]  ;;  %v8232_v42 = vpack.c.bf16 %v5736_v58, %v5732_v41  ;;  %v5744_v59 = vld [vmem:[%s12737_s17 + $0x228] sm:$0xff]  ;;  %v5755_v25 = vld [vmem:[%s12737_s17 + $0x280] sm:$0xff] }
 0xff3   :  { %v8386_v30 = vpack.c.bf16 %v5785_v3, %v5781_v23  ;;  %v5789_v21 = vld [vmem:[%s12737_s17 + $0x390] sm:$0xff]  ;;  %v5759_v27 = vld [vmem:[%s12737_s17 + $0x2a0] sm:$0xff]  ;;  %v5792_v58 = vld [vmem:[%s12737_s17 + $0x3a8] sm:$0xff] }
 0xff4   :  { %8367 = vmatpush1.bf16.msra.mxu0 %v8366_v49  ;;  %v5777_v49 = vld [vmem:[%s12737_s17 + $0x330] sm:$0xff]  ;;  %v5779_v41 = vld [vmem:[%s12737_s17 + $0x340] sm:$0xff] }
 0xff5   :  { %8369 = vmatprep.subr.bf16.mxu0 %v8368_v11  ;;  %v8382_v8 = vpack.c.bf16 %v5777_v49, %v5773_v48  ;;  %v5715_v11 = vld [vmem:[%s12737_s17 + $0x140] sm:$0xff]  ;;  %v5793_v1 = vld [vmem:[%s12737_s17 + $0x3b0] sm:$0xff]  ;;  %v8248_v48 = vpack.c.bf16 %v5768_v46, %v5764_v24 }
 0xff6   :  { %v8226_v54 = vpack.c.bf16 %v5719_v33, %v5715_v11  ;;  %v5763_v49 = vld [vmem:[%s12737_s17 + $0x2c0] sm:$0xff] }
 0xff7   :  { %v5787_v3 = vld [vmem:[%s12737_s17 + $0x380] sm:$0xff] }
 0xff8   :  { %8371 = vmatpush1.bf16.msra.mxu0 %v8370_v53  ;;  %v8384_v53 = vpack.c.bf16 %v5786_v17, %v5782_v56  ;;  %v5783_v56 = vld [vmem:[%s12737_s17 + $0x360] sm:$0xff]  ;;  %v5788_v17 = vld [vmem:[%s12737_s17 + $0x388] sm:$0xff] }
 0xff9   :  { %8373 = vmatprep.subr.bf16.mxu0 %v8372_v50  ;;  %v5790_v50 = vld [vmem:[%s12737_s17 + $0x398] sm:$0xff]  ;;  %v8260_v23 = vpack.c.bf16 %v5792_v58, %v5788_v17  ;;  %v5817_v17 = vld [vmem:[%s12737_s17 + $0x470] sm:$0xff]  ;;  %v5820_v58 = vld [vmem:[%s12737_s17 + $0x488] sm:$0xff] }
 0xffc   :  { %8375 = vmatpush1.bf16.msra.mxu0 %v8374_v51  ;;  %v8390_v51 = vpack.c.bf16 %v5793_v1, %v5789_v21  ;;  %v5800_v21 = vld [vmem:[%s12737_s17 + $0x3e8] sm:$0xff]  ;;  %v5798_v1 = vld [vmem:[%s12737_s17 + $0x3d8] sm:$0xff] }
 0xffd   :  { %8377 = vmatprep.subr.bf16.mxu0 %v8376_v45  ;;  %v5748_v45 = vld [vmem:[%s12737_s17 + $0x248] sm:$0xff] }
 0xffe   :  { %v8240_v12 = vpack.c.bf16 %v5752_v5, %v5748_v45  ;;  %v5797_v5 = vld [vmem:[%s12737_s17 + $0x3d0] sm:$0xff] }
0x1000   :  { %8379 = vmatpush1.bf16.msra.mxu0 %v8378_v20  ;;  %v5756_v20 = vld [vmem:[%s12737_s17 + $0x288] sm:$0xff] }
0x1001   :  { %8381 = vmatprep.subr.bf16.mxu0 %v8380_v9  ;;  %v8246_v9 = vpack.c.bf16 %v5759_v27, %v5755_v25 }
0x1003   :  { %5664 = vperm.xlu1 %8491, %v5628_v0   ;;  %v8214_v0 = vpack.c.bf16 %v5695_v19, %v5691_v57  ;;  %v5740_v57 = vld [vmem:[%s12737_s17 + $0x208] sm:$0xff]  ;;  %v5794_v19 = vld [vmem:[%s12737_s17 + $0x3b8] sm:$0xff] }
0x1004   :  { %8383 = vmatpush1.bf16.msra.mxu0 %v8382_v8  ;;  %v8388_v60 = vpack.c.bf16 %v5794_v19, %v5790_v50  ;;  %v8236_v55 = vpack.c.bf16 %v5744_v59, %v5740_v57  ;;  %v5772_v8 = vld [vmem:[%s12737_s17 + $0x308] sm:$0xff]  ;;  %v6878_v59 = vld [vmem:[%s12740_s22] sm:$0x7] }
0x1005   :  { %8215 = vmatpush1.bf16.msra.mxu1 %v8214_v0  ;;  %8385 = vmatprep.subr.bf16.mxu0 %v8384_v53  ;;  %v8234_v0 = vpack.c.bf16 %v5735_v26, %v5731_v38  ;;  %v8258_v53 = vpack.c.bf16 %v5783_v56, %v5779_v41  ;;  %v5627_v26 = vld [vmem:[%s12739_s18] sm:$0xff]  ;;  %v5813_v56 = vld [vmem:[%s12737_s17 + $0x450] sm:$0xff] }
0x1006   :  { %8217 = vmatprep.subr.bf16.mxu1 %v8216_v61  ;;  %v5739_v61 = vld [vmem:[%s12737_s17 + $0x200] sm:$0xff] }
0x1007   :  { %v8238_v10 = vpack.c.bf16 %v5743_v47, %v5739_v61  ;;  %v5799_v61 = vld [vmem:[%s12737_s17 + $0x3e0] sm:$0xff] }
0x1008   :  { %8387 = vmatpush1.bf16.msra.mxu0 %v8386_v30  ;;  %v5791_v30 = vld [vmem:[%s12737_s17 + $0x3a0] sm:$0xff] }
0x1009   :  { %8219 = vmatpush1.bf16.msra.mxu1 %v8218_v43  ;;  %8389 = vmatprep.subr.bf16.mxu0 %v8388_v60  ;;  %v5751_v43 = vld [vmem:[%s12737_s17 + $0x260] sm:$0xff]  ;;  %v5796_v60 = vld [vmem:[%s12737_s17 + $0x3c8] sm:$0xff] }
0x100a   :  { %8221 = vmatprep.subr.bf16.mxu1 %v8220_v63  ;;  %v5760_v63 = vld [vmem:[%s12737_s17 + $0x2a8] sm:$0xff]  ;;  %v8242_v29 = vpack.c.bf16 %v5751_v43, %v5747_v37  ;;  %v5815_v41 = vld [vmem:[%s12737_s17 + $0x460] sm:$0xff] }
0x100b   :  { %v8244_v14 = vpack.c.bf16 %v5760_v63, %v5756_v20  ;;  %v5804_v37 = vld [vmem:[%s12737_s17 + $0x408] sm:$0xff]  ;;  %v5806_v20 = vld [vmem:[%s12737_s17 + $0x418] sm:$0xff] }
0x100c   :  { %8391 = vmatpush1.bf16.msra.mxu0 %v8390_v51  ;;  %v8264_v51 = vpack.c.bf16 %v5800_v21, %v5796_v60  ;;  %v5808_v43 = vld [vmem:[%s12737_s17 + $0x428] sm:$0xff]  ;;  %v5821_v60 = vld [vmem:[%s12737_s17 + $0x490] sm:$0xff] }
0x100d   :  { %8223 = vmatpush1.bf16.msra.mxu1 %v8222_v15  ;;  %v5767_v15 = vld [vmem:[%s12737_s17 + $0x2e0] sm:$0xff]  ;;  %v8268_v63 = vpack.c.bf16 %v5808_v43, %v5804_v37  ;;  %v5825_v21 = vld [vmem:[%s12737_s17 + $0x4b0] sm:$0xff] }
0x100e   :  { %8225 = vmatprep.subr.bf16.mxu1 %v8224_v40  ;;  %v5776_v40 = vld [vmem:[%s12737_s17 + $0x328] sm:$0xff]  ;;  %v8250_v11 = vpack.c.bf16 %v5767_v15, %v5763_v49  ;;  %v5807_v49 = vld [vmem:[%s12737_s17 + $0x420] sm:$0xff]  ;;  %v5829_v37 = vld [vmem:[%s12737_s17 + $0x4d0] sm:$0xff] }
0x100f   :  { %v8252_v33 = vpack.c.bf16 %v5776_v40, %v5772_v8  ;;  %v5812_v8 = vld [vmem:[%s12737_s17 + $0x448] sm:$0xff]  ;;  %v5833_v43 = vld [vmem:[%s12737_s17 + $0x4f0] sm:$0xff] }
0x1011   :  { %8227 = vmatpush1.bf16.msra.mxu1 %v8226_v54  ;;  %v5780_v54 = vld [vmem:[%s12737_s17 + $0x348] sm:$0xff] }
0x1012   :  { %8229 = vmatprep.subr.bf16.mxu1 %v8228_v13  ;;  %v8256_v13 = vpack.c.bf16 %v5784_v31, %v5780_v54 }
0x1015   :  { %8231 = vmatpush1.bf16.msra.mxu1 %v8230_v62  ;;  %v8262_v62 = vpack.c.bf16 %v5791_v30, %v5787_v3  ;;  %v5824_v3 = vld [vmem:[%s12737_s17 + $0x4a8] sm:$0xff]  ;;  %v5822_v30 = vld [vmem:[%s12737_s17 + $0x498] sm:$0xff] }
0x1016   :  { %8233 = vmatprep.subr.bf16.mxu1 %v8232_v42 }
0x1019   :  { %8235 = vmatpush1.bf16.msra.mxu1 %v8234_v0  ;;  %v5802_v0 = vld [vmem:[%s12737_s17 + $0x3f8] sm:$0xff] }
0x101a   :  { %8237 = vmatprep.subr.bf16.mxu1 %v8236_v55  ;;  %v5795_v55 = vld [vmem:[%s12737_s17 + $0x3c0] sm:$0xff]  ;;  %v8392_v47 = vpack.c.bf16 %v5802_v0, %v5798_v1  ;;  %v5828_v1 = vld [vmem:[%s12737_s17 + $0x4c8] sm:$0xff]  ;;  %v5830_v0 = vld [vmem:[%s12737_s17 + $0x4d8] sm:$0xff] }
0x101b   :  { %v8266_v45 = vpack.c.bf16 %v5799_v61, %v5795_v55  ;;  %v5834_v55 = vld [vmem:[%s12737_s17 + $0x4f8] sm:$0xff] }
0x101c   :  { %8393 = vmatprep.subr.bf16.mxu0 %v8392_v47  ;;  %v8406_v47 = vpack.c.bf16 %v5825_v21, %v5821_v60  ;;  %v5866_v60 = vld [vmem:[%s12737_s17 + $0x5f8] sm:$0xff] }
0x101d   :  { %8239 = vmatpush1.bf16.msra.mxu1 %v8238_v10  ;;  %v5801_v10 = vld [vmem:[%s12737_s17 + $0x3f0] sm:$0xff] }
0x101e   :  { %8241 = vmatprep.subr.bf16.mxu1 %v8240_v12  ;;  %v8394_v12 = vpack.c.bf16 %v5801_v10, %v5797_v5  ;;  %v5831_v5 = vld [vmem:[%s12737_s17 + $0x4e0] sm:$0xff] }
0x1020   :  { %8395 = vmatpush1.bf16.msra.mxu0 %v8394_v12  ;;  %v8408_v12 = vpack.c.bf16 %v5834_v55, %v5830_v0  ;;  %v5863_v0 = vld [vmem:[%s12737_s17 + $0x5e0] sm:$0xff] }
0x1021   :  { %8243 = vmatpush1.bf16.msra.mxu1 %v8242_v29  ;;  %v5810_v29 = vld [vmem:[%s12737_s17 + $0x438] sm:$0xff] }
0x1022   :  { %8245 = vmatprep.subr.bf16.mxu1 %v8244_v14  ;;  %v8396_v14 = vpack.c.bf16 %v5810_v29, %v5806_v20  ;;  %v5836_v20 = vld [vmem:[%s12737_s17 + $0x508] sm:$0xff]  ;;  %v5838_v29 = vld [vmem:[%s12737_s17 + $0x518] sm:$0xff] }
0x1024   :  { %8397 = vmatprep.subr.bf16.mxu0 %v8396_v14  ;;  %v5842_v14 = vld [vmem:[%s12737_s17 + $0x538] sm:$0xff] }
0x1025   :  { %8247 = vmatpush1.bf16.msra.mxu1 %v8246_v9  ;;  %v5803_v9 = vld [vmem:[%s12737_s17 + $0x400] sm:$0xff] }
0x1026   :  { %8249 = vmatprep.subr.bf16.mxu1 %v8248_v48  ;;  %v8270_v31 = vpack.c.bf16 %v5807_v49, %v5803_v9  ;;  %v5839_v9 = vld [vmem:[%s12737_s17 + $0x520] sm:$0xff] }
0x1029   :  { %8251 = vmatpush1.bf16.msra.mxu1 %v8250_v11  ;;  %v5816_v11 = vld [vmem:[%s12737_s17 + $0x468] sm:$0xff] }
0x102a   :  { %8253 = vmatprep.subr.bf16.mxu1 %v8252_v33  ;;  %v5814_v33 = vld [vmem:[%s12737_s17 + $0x458] sm:$0xff] }
0x102d   :  { %8255 = vmatpush1.bf16.msra.mxu1 %v8254_v36 }
0x102e   :  { %8257 = vmatprep.subr.bf16.mxu1 %v8256_v13  ;;  %v5811_v13 = vld [vmem:[%s12737_s17 + $0x440] sm:$0xff] }
0x1031   :  { %8259 = vmatpush1.bf16.msra.mxu1 %v8258_v53  ;;  %v8272_v53 = vpack.c.bf16 %v5816_v11, %v5812_v8  ;;  %v5848_v8 = vld [vmem:[%s12737_s17 + $0x568] sm:$0xff]  ;;  %v5850_v11 = vld [vmem:[%s12737_s17 + $0x578] sm:$0xff] }
0x1032   :  { %8261 = vmatprep.subr.bf16.mxu1 %v8260_v23  ;;  %v8400_v23 = vpack.c.bf16 %v5818_v44, %v5814_v33 }
0x1035   :  { %8263 = vmatpush1.bf16.msra.mxu1 %v8262_v62  ;;  %v5826_v62 = vld [vmem:[%s12737_s17 + $0x4b8] sm:$0xff] }
0x1036   :  { %8265 = vmatprep.subr.bf16.mxu1 %v8264_v51  ;;  %v5832_v51 = vld [vmem:[%s12737_s17 + $0x4e8] sm:$0xff] }
0x1037   :  { %v8280_v10 = vpack.c.bf16 %v5832_v51, %v5828_v1  ;;  %v5859_v51 = vld [vmem:[%s12737_s17 + $0x5c0] sm:$0xff] }
0x1039   :  { %8267 = vmatpush1.bf16.msra.mxu1 %v8266_v45  ;;  %v5827_v45 = vld [vmem:[%s12737_s17 + $0x4c0] sm:$0xff] }
0x103a   :  { %8269 = vmatprep.subr.bf16.mxu1 %v8268_v63  ;;  %v5840_v63 = vld [vmem:[%s12737_s17 + $0x528] sm:$0xff] }
0x103b   :  { %v8284_v49 = vpack.c.bf16 %v5840_v63, %v5836_v20  ;;  %v5867_v63 = vld [vmem:[%s12737_s17 + $0x600] sm:$0xff] }
0x107f   :  { %v5648_v38 = vpop.xlane.xlu1 %5647 }
0x1080   :  { %v5649_v50 = vmul.f32 0.001953125, %v5648_v38 }
0x1082   :  { %v5650_v42 = vadd.f32 1e-05, %v5649_v50  ;;  %v8274_v50 = vpack.c.bf16 %v5815_v41, %v5811_v13  ;;  %v5845_v13 = vld [vmem:[%s12737_s17 + $0x550] sm:$0xff] }
0x1083   :  { %v12063_v48 = vpop.permute.xlu1 %5664  ;;  %v5849_v41 = vld [vmem:[%s12737_s17 + $0x570] sm:$0xff] }
0x1084   :  { %8520 = vrsqrt.f32 %v5650_v42  ;;  %v8402_v42 = vpack.c.bf16 %v5817_v17, %v5813_v56  ;;  %v5852_v56 = vld [vmem:[%s12737_s17 + $0x588] sm:$0xff] }
0x1085   :  { %v5856_v17 = vld [vmem:[%s12737_s17 + $0x5a8] sm:$0xff] }
0x108e   :  { %v8521_v57 = vpop.eup %8520 }
0x108f   :  { %v5652_v19 = vmul.f32 %v8521_v57, %v5627_v26  ;;  %v5819_v26 = vld [vmem:[%s12737_s17 + $0x480] sm:$0xff] }
0x1090   :  { %v5823_v57 = vld [vmem:[%s12737_s17 + $0x4a0] sm:$0xff] }
0x1091   :  { %5655 = vperm.xlu0 %8490, %v5652_v19   ;;  %v8276_v19 = vpack.c.bf16 %v5824_v3, %v5820_v58  ;;  %v8278_v61 = vpack.c.bf16 %v5823_v57, %v5819_v26  ;;  %v5854_v58 = vld [vmem:[%s12737_s17 + $0x598] sm:$0xff]  ;;  %v8418_v3 = vpack.c.bf16 %v5849_v41, %v5845_v13  ;;  %v5857_v26 = vld [vmem:[%s12737_s17 + $0x5b0] sm:$0xff]  ;;  %v5860_v57 = vld [vmem:[%s12737_s17 + $0x5c8] sm:$0xff] }
0x1092   :  { %v5890_v13 = vld [vmem:[%s12737_s17 + $0x6b8] sm:$0xff] }
0x1095   :  { %6881 = vperm.xlu0 %8490, %v6878_v59   ;;  %v8404_v59 = vpack.c.bf16 %v5826_v62, %v5822_v30  ;;  %v5851_v30 = vld [vmem:[%s12737_s17 + $0x580] sm:$0xff] }
0x1096   :  { %v5855_v62 = vld [vmem:[%s12737_s17 + $0x5a0] sm:$0xff] }
0x1097   :  { %v8294_v21 = vpack.c.bf16 %v5855_v62, %v5851_v30  ;;  %v5889_v30 = vld [vmem:[%s12737_s17 + $0x6b0] sm:$0xff]  ;;  %v5892_v62 = vld [vmem:[%s12737_s17 + $0x6c8] sm:$0xff] }
0x1110   :  { %v12052_v25 = vpop.permute.xlu0 %5655 }
0x1111   :  { %v5658_v27 = vmul.f32 %v12052_v25, %v11702_v32  ;;  %v5659_v24 = vmul.f32 %v12052_v25, %v11705_v7  ;;  %v5661_v46 = vmul.f32 %v12052_v25, %v11709_v6  ;;  %v5805_v32 = vld [vmem:[%s12737_s17 + $0x410] sm:$0xff] }
0x1112   :  { %v5809_v7 = vld [vmem:[%s12737_s17 + $0x430] sm:$0xff] }
0x1113   :  { %v5667_v6 = vadd.f32 %v12063_v48, %v5658_v27  ;;  %v5668_v15 = vadd.f32 %v12063_v48, %v5659_v24  ;;  %v5670_v40 = vadd.f32 %v12063_v48, %v5661_v46  ;;  %v8398_v36 = vpack.c.bf16 %v5809_v7, %v5805_v32  ;;  %v5835_v46 = vld [vmem:[%s12737_s17 + $0x500] sm:$0xff]  ;;  %v5837_v7 = vld [vmem:[%s12737_s17 + $0x510] sm:$0xff] }
0x1114   :  { %v8282_v27 = vpack.c.bf16 %v5831_v5, %v5827_v45  ;;  %v8410_v24 = vpack.c.bf16 %v5833_v43, %v5829_v37  ;;  %v8412_v32 = vpack.c.bf16 %v5842_v14, %v5838_v29  ;;  %v8286_v33 = vpack.c.bf16 %v5839_v9, %v5835_v46  ;;  %v5865_v45 = vld [vmem:[%s12737_s17 + $0x5f0] sm:$0xff]  ;;  %v5868_v5 = vld [vmem:[%s12737_s17 + $0x608] sm:$0xff]  ;;  %v5874_v37 = vld [vmem:[%s12737_s17 + $0x638] sm:$0xff] }
0x1115   :  { %v5671_v18 = vmax.f32 %v5667_v6, 0.0  ;;  %v5672_v54 = vmax.f32 %v5668_v15, 0.0  ;;  %v5674_v38 = vmax.f32 %v5670_v40, 0.0  ;;  %v5841_v6 = vld [vmem:[%s12737_s17 + $0x530] sm:$0xff]  ;;  %v5844_v15 = vld [vmem:[%s12737_s17 + $0x548] sm:$0xff]  ;;  %v5846_v40 = vld [vmem:[%s12737_s17 + $0x558] sm:$0xff]  ;;  %v8298_v43 = vpack.c.bf16 %v5863_v0, %v5859_v51 }
0x1116   :  { %v8414_v44 = vpack.c.bf16 %v5841_v6, %v5837_v7  ;;  %v5871_v29 = vld [vmem:[%s12737_s17 + $0x620] sm:$0xff]  ;;  %v5873_v46 = vld [vmem:[%s12737_s17 + $0x630] sm:$0xff]  ;;  %v5876_v9 = vld [vmem:[%s12737_s17 + $0x648] sm:$0xff] }
0x1117   :  { %5995 = vmatprep.mubr.f32.mxu1 %v5672_v54  ;;  %6137 = vmatprep.mubr.f32.mxu0 %v5672_v54  ;;  %v5847_v54 = vld [vmem:[%s12737_s17 + $0x560] sm:$0xff]  ;;  %v5882_v7 = vld [vmem:[%s12737_s17 + $0x678] sm:$0xff]  ;;  %v8302_v6 = vpack.c.bf16 %v5871_v29, %v5867_v63  ;;  %v5897_v51 = vld [vmem:[%s12737_s17 + $0x6f0] sm:$0xff] }
0x1118   :  { %5996 = vmatmul.mubr.f32.vlgmr.msra.gmra.mrb[138].mxu1 %v5671_v18  ;;  %6138 = vmatmul.mubr.f32.vlgmr.msra.gmra.mrb[152].mxu0 %v5671_v18  ;;  %v5843_v18 = vld [vmem:[%s12737_s17 + $0x540] sm:$0xff]  ;;  %v5900_v0 = vld [vmem:[%s12737_s17 + $0x708] sm:$0xff]  ;;  %v5905_v63 = vld [vmem:[%s12737_s17 + $0x730] sm:$0xff] }
0x1119   :  { %8271 = vmatpush1.bf16.msra.mxu1 %v8270_v31  ;;  %8399 = vmatpush1.bf16.msra.mxu0 %v8398_v36  ;;  %v8288_v31 = vpack.c.bf16 %v5848_v8, %v5844_v15  ;;  %v8416_v36 = vpack.c.bf16 %v5850_v11, %v5846_v40  ;;  %v5875_v8 = vld [vmem:[%s12737_s17 + $0x640] sm:$0xff]  ;;  %v5908_v29 = vld [vmem:[%s12737_s17 + $0x748] sm:$0xff] }
0x111a   :  { %6066 = vmatprep.mubr.f32.mxu1 %v5674_v38  ;;  %6208 = vmatprep.mubr.f32.mxu0 %v5674_v38  ;;  %v8292_v38 = vpack.c.bf16 %v5856_v17, %v5852_v56  ;;  %v5879_v40 = vld [vmem:[%s12737_s17 + $0x660] sm:$0xff] }
0x111b   :  { %8273 = vmatprep.subr.bf16.mxu1 %v8272_v53  ;;  %8401 = vmatprep.subr.bf16.mxu0 %v8400_v23  ;;  %v5858_v53 = vld [vmem:[%s12737_s17 + $0x5b8] sm:$0xff]  ;;  %v8290_v23 = vpack.c.bf16 %v5847_v54, %v5843_v18  ;;  %v5881_v18 = vld [vmem:[%s12737_s17 + $0x670] sm:$0xff]  ;;  %v5884_v54 = vld [vmem:[%s12737_s17 + $0x688] sm:$0xff]  ;;  %v8306_v41 = vpack.c.bf16 %v5879_v40, %v5875_v8 }
0x111c   :  { %v5883_v17 = vld [vmem:[%s12737_s17 + $0x680] sm:$0xff]  ;;  %v5913_v8 = vld [vmem:[%s12737_s17 + $0x770] sm:$0xff]  ;;  %v5916_v40 = vld [vmem:[%s12737_s17 + $0x788] sm:$0xff] }
0x111d   :  { %8275 = vmatpush1.bf16.msra.mxu1 %v8274_v50  ;;  %8403 = vmatpush1.bf16.msra.mxu0 %v8402_v42  ;;  %v8420_v50 = vpack.c.bf16 %v5858_v53, %v5854_v58  ;;  %v5853_v42 = vld [vmem:[%s12737_s17 + $0x590] sm:$0xff]  ;;  %v5887_v58 = vld [vmem:[%s12737_s17 + $0x6a0] sm:$0xff] }
0x111e   :  { %8277 = vmatprep.subr.bf16.mxu1 %v8276_v19  ;;  %8405 = vmatprep.subr.bf16.mxu0 %v8404_v59  ;;  %v5864_v19 = vld [vmem:[%s12737_s17 + $0x5e8] sm:$0xff]  ;;  %v5862_v59 = vld [vmem:[%s12737_s17 + $0x5d8] sm:$0xff]  ;;  %v8422_v1 = vpack.c.bf16 %v5857_v26, %v5853_v42  ;;  %v8310_v26 = vpack.c.bf16 %v5887_v58, %v5883_v17  ;;  %v5921_v17 = vld [vmem:[%s12737_s17 + $0x7b0] sm:$0xff] }
0x111f   :  { %v8296_v55 = vpack.c.bf16 %v5864_v19, %v5860_v57  ;;  %v5898_v42 = vld [vmem:[%s12737_s17 + $0x6f8] sm:$0xff]  ;;  %v5891_v19 = vld [vmem:[%s12737_s17 + $0x6c0] sm:$0xff]  ;;  %v5924_v58 = vld [vmem:[%s12737_s17 + $0x7c8] sm:$0xff] }
0x1121   :  { %8279 = vmatpush1.bf16.msra.mxu1 %v8278_v61  ;;  %8407 = vmatpush1.bf16.msra.mxu0 %v8406_v47  ;;  %v8424_v61 = vpack.c.bf16 %v5866_v60, %v5862_v59  ;;  %v5861_v47 = vld [vmem:[%s12737_s17 + $0x5d0] sm:$0xff]  ;;  %v5895_v59 = vld [vmem:[%s12737_s17 + $0x6e0] sm:$0xff] }
0x1122   :  { %8281 = vmatprep.subr.bf16.mxu1 %v8280_v10  ;;  %8409 = vmatprep.subr.bf16.mxu0 %v8408_v12  ;;  %v5872_v10 = vld [vmem:[%s12737_s17 + $0x628] sm:$0xff]  ;;  %v5870_v12 = vld [vmem:[%s12737_s17 + $0x618] sm:$0xff]  ;;  %v8426_v20 = vpack.c.bf16 %v5865_v45, %v5861_v47  ;;  %v8314_v45 = vpack.c.bf16 %v5895_v59, %v5891_v19  ;;  %v5925_v19 = vld [vmem:[%s12737_s17 + $0x7d0] sm:$0xff] }
0x1123   :  { %v8300_v14 = vpack.c.bf16 %v5872_v10, %v5868_v5  ;;  %v5906_v47 = vld [vmem:[%s12737_s17 + $0x738] sm:$0xff]  ;;  %v5899_v10 = vld [vmem:[%s12737_s17 + $0x700] sm:$0xff]  ;;  %v5929_v59 = vld [vmem:[%s12737_s17 + $0x7f0] sm:$0xff] }
0x1125   :  { %8283 = vmatpush1.bf16.msra.mxu1 %v8282_v27  ;;  %8411 = vmatpush1.bf16.msra.mxu0 %v8410_v24  ;;  %v8428_v27 = vpack.c.bf16 %v5874_v37, %v5870_v12  ;;  %v5869_v24 = vld [vmem:[%s12737_s17 + $0x610] sm:$0xff]  ;;  %v5903_v12 = vld [vmem:[%s12737_s17 + $0x720] sm:$0xff] }
0x1126   :  { %8285 = vmatprep.subr.bf16.mxu1 %v8284_v49  ;;  %8413 = vmatprep.subr.bf16.mxu0 %v8412_v32  ;;  %v5880_v49 = vld [vmem:[%s12737_s17 + $0x668] sm:$0xff]  ;;  %v5878_v32 = vld [vmem:[%s12737_s17 + $0x658] sm:$0xff]  ;;  %v8430_v15 = vpack.c.bf16 %v5873_v46, %v5869_v24  ;;  %v8318_v46 = vpack.c.bf16 %v5903_v12, %v5899_v10 }
0x1127   :  { %v8304_v11 = vpack.c.bf16 %v5880_v49, %v5876_v9  ;;  %v5914_v24 = vld [vmem:[%s12737_s17 + $0x778] sm:$0xff]  ;;  %v5907_v49 = vld [vmem:[%s12737_s17 + $0x740] sm:$0xff] }
0x1129   :  { %8287 = vmatpush1.bf16.msra.mxu1 %v8286_v33  ;;  %8415 = vmatpush1.bf16.msra.mxu0 %v8414_v44  ;;  %v8432_v33 = vpack.c.bf16 %v5882_v7, %v5878_v32  ;;  %v5877_v44 = vld [vmem:[%s12737_s17 + $0x650] sm:$0xff]  ;;  %v5911_v32 = vld [vmem:[%s12737_s17 + $0x760] sm:$0xff] }
0x112a   :  { %8289 = vmatprep.subr.bf16.mxu1 %v8288_v31  ;;  %8417 = vmatprep.subr.bf16.mxu0 %v8416_v36  ;;  %v5888_v31 = vld [vmem:[%s12737_s17 + $0x6a8] sm:$0xff]  ;;  %v5886_v36 = vld [vmem:[%s12737_s17 + $0x698] sm:$0xff]  ;;  %v8434_v56 = vpack.c.bf16 %v5881_v18, %v5877_v44  ;;  %v8322_v18 = vpack.c.bf16 %v5911_v32, %v5907_v49 }
0x112b   :  { %v8308_v53 = vpack.c.bf16 %v5888_v31, %v5884_v54  ;;  %v5922_v44 = vld [vmem:[%s12737_s17 + $0x7b8] sm:$0xff]  ;;  %v5915_v31 = vld [vmem:[%s12737_s17 + $0x780] sm:$0xff] }
0x112d   :  { %8291 = vmatpush1.bf16.msra.mxu1 %v8290_v23  ;;  %8419 = vmatpush1.bf16.msra.mxu0 %v8418_v3  ;;  %v8436_v23 = vpack.c.bf16 %v5890_v13, %v5886_v36  ;;  %v5885_v3 = vld [vmem:[%s12737_s17 + $0x690] sm:$0xff]  ;;  %v5919_v36 = vld [vmem:[%s12737_s17 + $0x7a0] sm:$0xff] }
0x112e   :  { %8293 = vmatprep.subr.bf16.mxu1 %v8292_v38  ;;  %8421 = vmatprep.subr.bf16.mxu0 %v8420_v50  ;;  %v5896_v38 = vld [vmem:[%s12737_s17 + $0x6e8] sm:$0xff]  ;;  %v5894_v50 = vld [vmem:[%s12737_s17 + $0x6d8] sm:$0xff]  ;;  %v8438_v57 = vpack.c.bf16 %v5889_v30, %v5885_v3  ;;  %v8326_v30 = vpack.c.bf16 %v5919_v36, %v5915_v31 }
0x112f   :  { %v8312_v60 = vpack.c.bf16 %v5896_v38, %v5892_v62  ;;  %v5930_v3 = vld [vmem:[%s12737_s17 + $0x7f8] sm:$0xff]  ;;  %v5923_v38 = vld [vmem:[%s12737_s17 + $0x7c0] sm:$0xff] }
0x1131   :  { %8295 = vmatpush1.bf16.msra.mxu1 %v8294_v21  ;;  %8423 = vmatpush1.bf16.msra.mxu0 %v8422_v1  ;;  %v8440_v21 = vpack.c.bf16 %v5898_v42, %v5894_v50  ;;  %v5893_v1 = vld [vmem:[%s12737_s17 + $0x6d0] sm:$0xff]  ;;  %v5660_v50 = vmul.f32 %v12052_v25, %v11707_v4  ;;  %v8458_v4 = vpack.c.bf16 %v5929_v59, %v5925_v19 }
0x1132   :  { %8297 = vmatprep.subr.bf16.mxu1 %v8296_v55  ;;  %8425 = vmatprep.subr.bf16.mxu0 %v8424_v61  ;;  %v5904_v55 = vld [vmem:[%s12737_s17 + $0x728] sm:$0xff]  ;;  %v5902_v61 = vld [vmem:[%s12737_s17 + $0x718] sm:$0xff]  ;;  %v8442_v5 = vpack.c.bf16 %v5897_v51, %v5893_v1  ;;  %v8559_v1 = vmov 0.0  }
0x1133   :  { %v8316_v37 = vpack.c.bf16 %v5904_v55, %v5900_v0  ;;  %v5669_v25 = vadd.f32 %v12063_v48, %v5660_v50  ;;  %v6216_v48 = vld [vmem:[%s12741_s20 + $0x8] sm:$0xff] }
0x1135   :  { %8299 = vmatpush1.bf16.msra.mxu1 %v8298_v43  ;;  %8427 = vmatpush1.bf16.msra.mxu0 %v8426_v20  ;;  %v8444_v43 = vpack.c.bf16 %v5906_v47, %v5902_v61  ;;  %v5901_v20 = vld [vmem:[%s12737_s17 + $0x710] sm:$0xff]  ;;  %v6215_v47 = vld [vmem:[%s12741_s20] sm:$0xff] }
0x1136   :  { %8301 = vmatprep.subr.bf16.mxu1 %v8300_v14  ;;  %8429 = vmatprep.subr.bf16.mxu0 %v8428_v27  ;;  %v5912_v14 = vld [vmem:[%s12737_s17 + $0x768] sm:$0xff]  ;;  %v5910_v27 = vld [vmem:[%s12737_s17 + $0x758] sm:$0xff]  ;;  %v8446_v9 = vpack.c.bf16 %v5905_v63, %v5901_v20 }
0x1137   :  { %v8320_v7 = vpack.c.bf16 %v5912_v14, %v5908_v29 }
0x1139   :  { %8303 = vmatpush1.bf16.msra.mxu1 %v8302_v6  ;;  %8431 = vmatpush1.bf16.msra.mxu0 %v8430_v15  ;;  %v8448_v6 = vpack.c.bf16 %v5914_v24, %v5910_v27  ;;  %v5909_v15 = vld [vmem:[%s12737_s17 + $0x750] sm:$0xff] }
0x113a   :  { %8305 = vmatprep.subr.bf16.mxu1 %v8304_v11  ;;  %8433 = vmatprep.subr.bf16.mxu0 %v8432_v33  ;;  %v5920_v11 = vld [vmem:[%s12737_s17 + $0x7a8] sm:$0xff]  ;;  %v5918_v33 = vld [vmem:[%s12737_s17 + $0x798] sm:$0xff]  ;;  %v8450_v54 = vpack.c.bf16 %v5913_v8, %v5909_v15 }
0x113b   :  { %v8324_v13 = vpack.c.bf16 %v5920_v11, %v5916_v40 }
0x113d   :  { %8307 = vmatpush1.bf16.msra.mxu1 %v8306_v41  ;;  %8435 = vmatpush1.bf16.msra.mxu0 %v8434_v56  ;;  %v8452_v41 = vpack.c.bf16 %v5922_v44, %v5918_v33  ;;  %v5917_v56 = vld [vmem:[%s12737_s17 + $0x790] sm:$0xff] }
0x113e   :  { %8309 = vmatprep.subr.bf16.mxu1 %v8308_v53  ;;  %8437 = vmatprep.subr.bf16.mxu0 %v8436_v23  ;;  %v5928_v53 = vld [vmem:[%s12737_s17 + $0x7e8] sm:$0xff]  ;;  %v5926_v23 = vld [vmem:[%s12737_s17 + $0x7d8] sm:$0xff]  ;;  %v8454_v62 = vpack.c.bf16 %v5921_v17, %v5917_v56 }
0x113f   :  { %v8328_v42 = vpack.c.bf16 %v5928_v53, %v5924_v58 }
0x1141   :  { %8311 = vmatpush1.bf16.msra.mxu1 %v8310_v26  ;;  %8439 = vmatpush1.bf16.msra.mxu0 %v8438_v57  ;;  %v8456_v26 = vpack.c.bf16 %v5930_v3, %v5926_v23  ;;  %v5927_v57 = vld [vmem:[%s12737_s17 + $0x7e0] sm:$0xff] }
0x1142   :  { %8313 = vmatprep.subr.bf16.mxu1 %v8312_v60  ;;  %8441 = vmatprep.subr.bf16.mxu0 %v8440_v21  ;;  %v8330_v60 = vpack.c.bf16 %v5927_v57, %v5923_v38  ;;  %v5673_v21 = vmax.f32 %v5669_v25, 0.0  ;;  %v12512_v38 = vpop.permute.xlu0 %6881 }
0x1145   :  { %8315 = vmatpush1.bf16.msra.mxu1 %v8314_v45  ;;  %8443 = vmatpush1.bf16.msra.mxu0 %v8442_v5  ;;  %v6217_v45 = vld [vmem:[%s12741_s20 + $0x10] sm:$0xff]  ;;  %v6218_v5 = vld [vmem:[%s12741_s20 + $0x18] sm:$0x7]  ;;  %s8561_s20 = smov 30  }
0x1146   :  { %8317 = vmatprep.subr.bf16.mxu1 %v8316_v37  ;;  %8445 = vmatprep.subr.bf16.mxu0 %v8444_v43 }
0x1149   :  { %8319 = vmatpush1.bf16.msra.mxu1 %v8318_v46  ;;  %8447 = vmatpush1.bf16.msra.mxu0 %v8446_v9 }
0x114a   :  { %8321 = vmatprep.subr.bf16.mxu1 %v8320_v7  ;;  %8449 = vmatprep.subr.bf16.mxu0 %v8448_v6 }
0x114d   :  { %8323 = vmatpush1.bf16.msra.mxu1 %v8322_v18  ;;  %8451 = vmatpush1.bf16.msra.mxu0 %v8450_v54 }
0x114e   :  { %8325 = vmatprep.subr.bf16.mxu1 %v8324_v13  ;;  %8453 = vmatprep.subr.bf16.mxu0 %v8452_v41 }
0x1151   :  { %8327 = vmatpush1.bf16.msra.mxu1 %v8326_v30  ;;  %8455 = vmatpush1.bf16.msra.mxu0 %v8454_v62 }
0x1152   :  { %8329 = vmatprep.subr.bf16.mxu1 %v8328_v42  ;;  %8457 = vmatprep.subr.bf16.mxu0 %v8456_v26 }
0x1155   :  { %8331 = vmatpush1.bf16.msra.mxu1 %v8330_v60  ;;  %8459 = vmatpush1.bf16.msra.mxu0 %v8458_v4 }
0x1158   :  { %6067 = vmatmul.mubr.f32.vlgmr.msra.gmra.mrb[138].mxu1 %v5673_v21  ;;  %6209 = vmatmul.mubr.f32.vlgmr.msra.gmra.mrb[152].mxu0 %v5673_v21 }
0x1159   :  { %6295 = vmatprep.mubr.f32.mxu1 %v8559_v1 }
0x122b   :  { %v6068_v51 = vpop.f32.mrb[138].mxu1  ;;  %v6210_v0 = vpop.f32.mrb[152].mxu0 }
0x122c   :  { %v6070_v55 = vpop.f32.mrb[139].mxu1  ;;  %v6212_v61 = vpop.f32.mrb[153].mxu0 }
0x122d   :  { %6231 = vmatprep.subr.mxu1 %v6070_v55 }
0x122e   :  { %6232 = vmatpush1.msra.mxu1 %v6068_v51  ;;  %v6409_v51 = vld [vmem:[%s12742_s21] sm:$0xff] }
0x122f   :  { %7217 = vmatmul.mubr.msk.f32.vlgmr.msra.gmra.mrb[140].mxu1 %vm782_vm4, %v6215_v47  ;;  %6320 = vmatprep.subr.mxu1 %v6212_v61  ;;  %v6481_v55 = vrot.slane %v6409_v51, %v12928_v16 }
0x1230   :  { %6321 = vmatpush1.msra.mxu1 %v6210_v0  ;;  %6301 = vmatprep.mubr.f32.mxu1 %v8559_v1 }
0x1233   :  { %7218 = vmatmul.mubr.msk.f32.gmra.mrb[142].mxu1 %vm782_vm4, %v6216_v48 }
0x1234   :  { %6307 = vmatprep.mubr.f32.mxu1 %v8559_v1 }
0x1237   :  { %7219 = vmatmul.mubr.msk.f32.gmra.mrb[144].mxu1 %vm782_vm4, %v6217_v45 }
0x1238   :  { %6313 = vmatprep.mubr.f32.mxu1 %v8559_v1 }
0x123b   :  { %7220 = vmatmul.mubr.msk.f32.gmra.mrb[146].mxu1 %vm782_vm4, %v6218_v5 }
0x123c   :  { %6384 = vmatprep.mubr.f32.mxu1 %v8559_v1 }
0x123f   :  { %7221 = vmatmul.mubr.msk.f32.vlgmr.msra.gmra.mrb[148].mxu1 %vm782_vm4, %v6215_v47  ;;  %v6441_v47 = vrot.slane %v6409_v51, %v12927_v22 }
0x1240   :  { %6390 = vmatprep.mubr.f32.mxu1 %v8559_v1 }
0x1243   :  { %7222 = vmatmul.mubr.msk.f32.gmra.mrb[150].mxu1 %vm782_vm4, %v6216_v48  ;;  %v6538_v48 = vrot.slane %v6409_v51, %v12929_v35 }
0x1244   :  { %6396 = vmatprep.mubr.f32.mxu1 %v8559_v1 }
0x1247   :  { %7223 = vmatmul.mubr.msk.f32.gmra.mrb[152].mxu1 %vm782_vm4, %v6217_v45 }
0x1248   :  { %6402 = vmatprep.mubr.f32.mxu1 %v8559_v1 }
0x124b   :  { %7224 = vmatmul.mubr.msk.f32.gmra.mrb[154].mxu1 %vm782_vm4, %v6218_v5  ;;  %vm6429_vm4 = vcmask 277504  }
0x1302   :  { %v6297_v10 = vpop.f32.mrb[140].mxu1 }
0x1303   :  { %6421 = vrot.lane.b32.xlu0 %v6297_v10, %s8560_s7  ;;  %v6299_v12 = vpop.f32.mrb[141].mxu1  ;;  %v6458_v37 = vrot.slane %v6297_v10, 3  ;;  %v6507_v63 = vrot.slane %v6297_v10, 6 }
0x1304   :  { %6423 = vrot.lane.b32.xlu1 %v6299_v12, %s8560_s7  ;;  %v6459_v43 = vrot.slane %v6299_v12, 3  ;;  %v6510_v27 = vrot.slane %v6299_v12, 6 }
0x1306   :  { %v12462_v20 = vpop.f32.mrb[142].mxu1 }
0x1307   :  { %v6508_v29 = vrot.slane %v12462_v20, 6  ;;  %6462 = vrot.lane.b32.xlu0 %v6458_v37, %s8551_s11  ;;  %v12466_v14 = vpop.f32.mrb[143].mxu1  ;;  %v6559_v7 = vrot.slane %v12462_v20, 1 }
0x1308   :  { %v6511_v24 = vrot.slane %v12466_v14, 6  ;;  %6464 = vrot.lane.b32.xlu1 %v6459_v43, %s8551_s11  ;;  %v6560_v6 = vrot.slane %v12466_v14, 1 }
0x1309   :  { %v6509_v46 = vsel %vm6506_vm6, %v6507_v63, %v6508_v29 }
0x130a   :  { %v6512_v9 = vsel %vm6506_vm6, %v6510_v27, %v6511_v24  ;;  %v6309_v49 = vpop.f32.mrb[144].mxu1  ;;  %v6678_v24 = vrot.slane %v6409_v51, %v12931_v39 }
0x130b   :  { %6643 = vrot.lane.b32.xlu0 %v12462_v20, %s8542_s29  ;;  %v6311_v32 = vpop.f32.mrb[145].mxu1 }
0x130c   :  { %6645 = vrot.lane.b32.xlu1 %v12466_v14, %s8542_s29 }
0x130e   :  { %v6315_v15 = vpop.f32.mrb[146].mxu1 }
0x130f   :  { %6563 = vrot.lane.b32.xlu0 %v6559_v7, %s8539_s28  ;;  %v6317_v8 = vpop.f32.mrb[147].mxu1  ;;  %v6582_v7 = vrot.slane %v6409_v51, %v12930_v2 }
0x1310   :  { %6565 = vrot.lane.b32.xlu1 %v6560_v6, %s8539_s28  ;;  %v12557_v6 = vld [vmem:[%s12742_s21 + $0x8] sm:$0xff] }
0x1312   :  { %v6386_v40 = vpop.f32.mrb[148].mxu1 }
0x1313   :  { %6519 = vrot.lane.b32.xlu0 %v6509_v46, %s8561_s20  ;;  %v6388_v11 = vpop.f32.mrb[149].mxu1  ;;  %v6513_v33 = vrot.slane %v6386_v40, 6  ;;  %v6460_v23 = vrot.slane %v6386_v40, 3 }
0x1314   :  { %6521 = vrot.lane.b32.xlu1 %v6512_v9, %s8561_s20  ;;  %v6516_v44 = vrot.slane %v6388_v11, 6  ;;  %v6461_v3 = vrot.slane %v6388_v11, 3  ;;  %v6606_v9 = vrot.slane %v6409_v51, %v12926_v34 }
0x1316   :  { %v12482_v18 = vpop.f32.mrb[150].mxu1 }
0x1317   :  { %6651 = vrot.lane.b32.xlu0 %v6309_v49, %s8542_s29  ;;  %v6514_v54 = vrot.slane %v12482_v18, 6  ;;  %v12486_v31 = vpop.f32.mrb[151].mxu1  ;;  %v6561_v30 = vrot.slane %v12482_v18, 1 }
0x1318   :  { %6653 = vrot.lane.b32.xlu1 %v6311_v32, %s8542_s29  ;;  %v6517_v36 = vrot.slane %v12486_v31, 6  ;;  %v6562_v62 = vrot.slane %v12486_v31, 1 }
0x1319   :  { %v6515_v13 = vsel %vm6506_vm6, %v6513_v33, %v6514_v54 }
0x131a   :  { %v6518_v41 = vsel %vm6506_vm6, %v6516_v44, %v6517_v36  ;;  %v6398_v56 = vpop.f32.mrb[152].mxu1 }
0x131b   :  { %6728 = vrot.lane.b32.xlu0 %v6309_v49, %s8562_s16  ;;  %v6400_v17 = vpop.f32.mrb[153].mxu1 }
0x131c   :  { %6730 = vrot.lane.b32.xlu1 %v6311_v32, %s8562_s16 }
0x131e   :  { %v6404_v58 = vpop.f32.mrb[154].mxu1 }
0x131f   :  { %6781 = vrot.lane.b32.xlu0 %v6309_v49, %s8553_s30  ;;  %v6406_v53 = vpop.f32.mrb[155].mxu1 }
0x1320   :  { %6783 = vrot.lane.b32.xlu1 %v6311_v32, %s8553_s30 }
0x1323   :  { %6839 = vrot.lane.b32.xlu0 %v6317_v8, %s8563_s8 }
0x1324   :  { %6837 = vrot.lane.b32.xlu1 %v6315_v15, %s8563_s8 }
0x1327   :  { %6425 = vrot.lane.b32.xlu0 %v6386_v40, %s8560_s7  ;;  %v12564_v40 = vld [vmem:[%s12742_s21 + $0x10] sm:$0xff] }
0x1328   :  { %6427 = vrot.lane.b32.xlu1 %v6388_v11, %s8560_s7  ;;  %v12569_v11 = vld [vmem:[%s12742_s21 + $0x18] sm:$0xff] }
0x132b   :  { %6466 = vrot.lane.b32.xlu0 %v6460_v23, %s8551_s11 }
0x132c   :  { %6468 = vrot.lane.b32.xlu1 %v6461_v3, %s8551_s11 }
0x132f   :  { %6647 = vrot.lane.b32.xlu0 %v12482_v18, %s8542_s29 }
0x1330   :  { %6649 = vrot.lane.b32.xlu1 %v12486_v31, %s8542_s29 }
0x1333   :  { %6567 = vrot.lane.b32.xlu0 %v6561_v30, %s8539_s28 }
0x1334   :  { %6569 = vrot.lane.b32.xlu1 %v6562_v62, %s8539_s28 }
0x1337   :  { %6523 = vrot.lane.b32.xlu0 %v6515_v13, %s8561_s20  ;;  %v6619_v13 = vmul.f32 %v6606_v9, %v12462_v20  ;;  %v6800_v20 = vrot.slane %v6409_v51, %v10270_v52 }
0x1338   :  { %6525 = vrot.lane.b32.xlu1 %v6518_v41, %s8561_s20  ;;  %v6610_v41 = vrot.slane %v12557_v6, %v12926_v34 }
0x133b   :  { %6655 = vrot.lane.b32.xlu0 %v6398_v56, %s8542_s29 }
0x133c   :  { %6657 = vrot.lane.b32.xlu1 %v6400_v17, %s8542_s29 }
0x133f   :  { %6732 = vrot.lane.b32.xlu0 %v6398_v56, %s8562_s16 }
0x1340   :  { %6734 = vrot.lane.b32.xlu1 %v6400_v17, %s8562_s16 }
0x1343   :  { %6785 = vrot.lane.b32.xlu0 %v6398_v56, %s8553_s30 }
0x1344   :  { %6787 = vrot.lane.b32.xlu1 %v6400_v17, %s8553_s30  ;;  %v6748_v17 = vrot.slane %v6409_v51, %v12932_v28 }
0x1347   :  { %6843 = vrot.lane.b32.xlu0 %v6406_v53, %s8563_s8  ;;  %v6618_v53 = vrot.slane %v12569_v11, %v12926_v34 }
0x1348   :  { %6841 = vrot.lane.b32.xlu1 %v6404_v58, %s8563_s8  ;;  %v6614_v58 = vrot.slane %v12564_v40, %v12926_v34 }
0x1375   :  { %v12514_v50 = vpop.permute.xlu0 %6421 }
0x1376   :  { %v12516_v42 = vpop.permute.xlu1 %6423  ;;  %v6437_v5 = vsel %vm6429_vm4, 0.0, %v12514_v50 }
0x1377   :  { %v6454_v43 = vmul.f32 %v6441_v47, %v6437_v5  ;;  %v6627_v47 = vrot.slane %v6619_v13, 4  ;;  %v12595_v5 = vmul.f32 %v6610_v41, %v12466_v14 }
0x1379   :  { %v6463_v26 = vpop.permute.xlu0 %6462 }
0x137a   :  { %v12518_v57 = vpop.permute.xlu1 %6464  ;;  %v6477_v61 = vsel %vm110_vm0, 0.0, %v6463_v26 }
0x137b   :  { %v6494_v37 = vmul.f32 %v6481_v55, %v6477_v61 }
0x137d   :  { %v6644_v19 = vpop.permute.xlu0 %6643  ;;  %v6498_v49 = vadd.f32 %v6494_v37, %v6454_v43  ;;  %v12601_v37 = vmul.f32 %v6618_v53, %v12486_v31 }
0x137e   :  { %v12520_v59 = vpop.permute.xlu1 %6645 }
0x137f   :  { %v6659_v32 = vsel %vm5511_vm15, %v6644_v19, %v12520_v59  ;;  %v6445_v19 = vrot.slane %v12557_v6, %v12927_v22 }
0x1380   :  { %v6691_v54 = vmul.f32 %v6678_v24, %v6659_v32  ;;  %v6628_v32 = vrot.slane %v12595_v5, 4 }
0x1381   :  { %v12522_v60 = vpop.permute.xlu0 %6563 }
0x1382   :  { %v12524_v4 = vpop.permute.xlu1 %6565  ;;  %v6578_v15 = vsel %vm723_vm1, 0.0, %v12522_v60  ;;  %v6708_v55 = vrot.slane %v6691_v54, 7  ;;  %v6489_v54 = vrot.slane %v12564_v40, %v12928_v16 }
0x1383   :  { %v6595_v56 = vmul.f32 %v6582_v7, %v6578_v15 }
0x1385   :  { %v12526_v25 = vpop.permute.xlu0 %6519 }
0x1386   :  { %v12528_v21 = vpop.permute.xlu1 %6521  ;;  %v6534_v10 = vsel %vm4580_vm9, 0.0, %v12526_v25 }
0x1387   :  { %v6551_v63 = vmul.f32 %v6538_v48, %v6534_v10  ;;  %v6470_v48 = vsel %vm110_vm0, %v6463_v26, %v12518_v57  ;;  %v12598_v10 = vmul.f32 %v6614_v58, %v12482_v18  ;;  %v6586_v18 = vrot.slane %v12557_v6, %v12930_v2 }
0x1388   :  { %v6453_v58 = vrot.slane %v12569_v11, %v12927_v22 }
0x1389   :  { %v6652_v1 = vpop.permute.xlu0 %6651  ;;  %v6555_v33 = vadd.f32 %v6551_v63, %v6498_v49  ;;  %v6430_v63 = vsel %vm6429_vm4, %v12514_v50, %v12516_v42  ;;  %v6629_v7 = vrot.slane %v12598_v10, 4 }
0x138a   :  { %v12533_v0 = vpop.permute.xlu1 %6653  ;;  %v6455_v50 = vmul.f32 %v6445_v19, %v6430_v63  ;;  %v6686_v19 = vrot.slane %v12564_v40, %v12931_v39 }
0x138b   :  { %v6662_v29 = vsel %vm5511_vm15, %v6652_v1, %v12533_v0  ;;  %v6599_v30 = vadd.f32 %v6595_v56, %v6555_v33  ;;  %v6485_v1 = vrot.slane %v12557_v6, %v12928_v16  ;;  %v7225_v56 = vld [vmem:[%s12742_s21 + $0x20] ss:$0 sm:$0xff] }
0x138c   :  { %v6695_v8 = vmul.f32 %v6678_v24, %v6662_v29  ;;  %v6527_v29 = vsel %vm4580_vm9, %v12526_v25, %v12528_v21  ;;  %v6449_v25 = vrot.slane %v12564_v40, %v12927_v22 }
0x138d   :  { %v6729_v45 = vpop.permute.xlu0 %6728  ;;  %v6635_v26 = vadd.f32 %v6627_v47, %v6599_v30  ;;  %v6495_v24 = vmul.f32 %v6485_v1, %v6470_v48  ;;  %v6493_v30 = vrot.slane %v12569_v11, %v12928_v16 }
0x138e   :  { %v12543_v12 = vpop.permute.xlu1 %6730  ;;  %v6709_v23 = vrot.slane %v6695_v8, 7  ;;  %v6630_v8 = vrot.slane %v12601_v37, 4 }
0x138f   :  { %v6737_v3 = vsel %vm6736_vm7, %v6729_v45, %v12543_v12  ;;  %v6542_v45 = vrot.slane %v12557_v6, %v12929_v35  ;;  %v6499_v41 = vadd.f32 %v6495_v24, %v6455_v50 }
0x1390   :  { %v6761_v51 = vmul.f32 %v6748_v17, %v6737_v3  ;;  %v6710_v43 = vsel %vm6707_vm8, %v6708_v55, %v6709_v23 }
0x1391   :  { %v6782_v27 = vpop.permute.xlu0 %6781  ;;  %v6724_v31 = vadd.f32 %v6710_v43, %v6635_v26  ;;  %v6552_v15 = vmul.f32 %v6542_v45, %v6527_v29  ;;  %v6550_v26 = vrot.slane %v12569_v11, %v12929_v35  ;;  %v6752_v29 = vrot.slane %v12557_v6, %v12932_v28 }
0x1392   :  { %v12548_v46 = vpop.permute.xlu1 %6783  ;;  %v6769_v49 = vrot.slane %v6761_v51, 2  ;;  %v6590_v51 = vrot.slane %v12564_v40, %v12930_v2 }
0x1393   :  { %v6789_v61 = vsel %vm4819_vm12, %v6782_v27, %v12548_v46  ;;  %v6556_v1 = vadd.f32 %v6552_v15, %v6499_v41 }
0x1394   :  { %v6813_v27 = vmul.f32 %v6800_v20, %v6789_v61  ;;  %v6777_v3 = vadd.f32 %v6769_v49, %v6724_v31  ;;  %v6682_v20 = vrot.slane %v12557_v6, %v12931_v39 }
0x1395   :  { %v12571_v44 = vpop.permute.xlu0 %6839 }
0x1396   :  { %v6838_v36 = vpop.permute.xlu1 %6837  ;;  %v6821_v33 = vrot.slane %v6813_v27, 5 }
0x1397   :  { %v6846_v17 = vsel %vm6845_vm10, %v6838_v36, %v12571_v44  ;;  %v6571_v36 = vsel %vm723_vm1, %v12522_v60, %v12524_v4  ;;  %v6594_v60 = vrot.slane %v12569_v11, %v12930_v2  ;;  %v6804_v2 = vrot.slane %v12557_v6, %v10270_v52 }
0x1398   :  { %v6829_v55 = vadd.f32 %v6821_v33, %v6777_v3  ;;  %v6870_v61 = vmul.f32 %v7225_v56, %v6846_v17  ;;  %v6596_v63 = vmul.f32 %v6586_v18, %v6571_v36 }
0x1399   :  { %v6426_v62 = vpop.permute.xlu0 %6425 }
0x139a   :  { %v6428_v34 = vpop.permute.xlu1 %6427  ;;  %v6431_v22 = vsel %vm6429_vm4, %v12516_v42, %v6426_v62  ;;  %v6546_v42 = vrot.slane %v12564_v40, %v12929_v35  ;;  %v6874_v24 = vadd.f32 %v6870_v61, %v6829_v55 }
0x139b   :  { %v6432_v45 = vsel %vm6429_vm4, %v6426_v62, %v6428_v34  ;;  %v6756_v62 = vrot.slane %v12564_v40, %v12932_v28  ;;  %v6760_v34 = vrot.slane %v12569_v11, %v12932_v28 }
0x139d   :  { %v6467_v14 = vpop.permute.xlu0 %6466 }
0x139e   :  { %v6469_v9 = vpop.permute.xlu1 %6468  ;;  %v6471_v53 = vsel %vm110_vm0, %v12518_v57, %v6467_v14  ;;  %v6690_v57 = vrot.slane %v12569_v11, %v12931_v39  ;;  %v6456_v39 = vmul.f32 %v6449_v25, %v6431_v22 }
0x139f   :  { %v6496_v16 = vmul.f32 %v6489_v54, %v6471_v53  ;;  %v6472_v47 = vsel %vm110_vm0, %v6467_v14, %v6469_v9  ;;  %v6600_v14 = vadd.f32 %v6596_v63, %v6556_v1  ;;  %v6457_v9 = vmul.f32 %v6453_v58, %v6432_v45 }
0x13a0   :  { %v6497_v27 = vmul.f32 %v6493_v30, %v6472_v47 }
0x13a1   :  { %v6648_v13 = vpop.permute.xlu0 %6647  ;;  %v6500_v18 = vadd.f32 %v6496_v16, %v6456_v39  ;;  %v6636_v55 = vadd.f32 %v6628_v32, %v6600_v14 }
0x13a2   :  { %v6650_v23 = vpop.permute.xlu1 %6649  ;;  %v6660_v35 = vsel %vm5511_vm15, %v12520_v59, %v6648_v13  ;;  %v6501_v56 = vadd.f32 %v6497_v27, %v6457_v9  ;;  %v6808_v59 = vrot.slane %v12564_v40, %v10270_v52  ;;  %v6884_v40 = vadd.f32 %v12512_v38, %v6874_v24 }
0x13a3   :  { %v6661_v49 = vsel %vm5511_vm15, %v6648_v13, %v6650_v23  ;;  %v6673_v50 = vsel %vm5511_vm15, %v6650_v23, 0.0  ;;  %v6812_v13 = vrot.slane %v12569_v11, %v10270_v52  ;;  %v6692_v58 = vmul.f32 %v6682_v20, %v6660_v35  ;;  %v7227_v52 = vld [vmem:[%s12742_s21 + $0x30] ss:$0 sm:$0xff] }
0x13a4   :  { %v6693_v53 = vmul.f32 %v6686_v19, %v6661_v49 }
0x13a5   :  { %v6568_v48 = vpop.permute.xlu0 %6567 }
0x13a6   :  { %v6570_v43 = vpop.permute.xlu1 %6569  ;;  %v6572_v28 = vsel %vm723_vm1, %v12524_v4, %v6568_v48 }
0x13a7   :  { %v6573_v25 = vsel %vm723_vm1, %v6568_v48, %v6570_v43  ;;  %v6597_v30 = vmul.f32 %v6590_v51, %v6572_v28  ;;  %v6711_v51 = vrot.slane %v6692_v58, 7 }
0x13a8   :  { %v6598_v4 = vmul.f32 %v6594_v60, %v6573_v25  ;;  %v6714_v60 = vrot.slane %v6693_v53, 7 }
0x13a9   :  { %v6524_v31 = vpop.permute.xlu0 %6523 }
0x13aa   :  { %v6528_v15 = vsel %vm4580_vm9, %v12528_v21, %v6524_v31  ;;  %v6526_v33 = vpop.permute.xlu1 %6525  ;;  %v6694_v21 = vmul.f32 %v6690_v57, %v6673_v50 }
0x13ab   :  { %v6553_v54 = vmul.f32 %v6546_v42, %v6528_v15  ;;  %v6529_v41 = vsel %vm4580_vm9, %v6524_v31, %v6526_v33 }
0x13ac   :  { %v6554_v17 = vmul.f32 %v6550_v26, %v6529_v41 }
0x13ad   :  { %v6557_v23 = vadd.f32 %v6553_v54, %v6500_v18  ;;  %v6656_v3 = vpop.permute.xlu0 %6655  ;;  %v6888_v54 = vsub.f32 0.0, %v6884_v40 }
0x13ae   :  { %v6558_v36 = vadd.f32 %v6554_v17, %v6501_v56  ;;  %v6663_v1 = vsel %vm5511_vm15, %v12533_v0, %v6656_v3  ;;  %v6658_v22 = vpop.permute.xlu1 %6657  ;;  %v6717_v0 = vrot.slane %v6694_v21, 7 }
0x13af   :  { %v6696_v61 = vmul.f32 %v6682_v20, %v6663_v1  ;;  %v6664_v11 = vsel %vm5511_vm15, %v6656_v3, %v6658_v22  ;;  %v6601_v16 = vadd.f32 %v6597_v30, %v6557_v23  ;;  %v6674_v48 = vsel %vm5511_vm15, %v6658_v22, 0.0 }
0x13b0   :  { %v6602_v47 = vadd.f32 %v6598_v4, %v6558_v36  ;;  %v6697_v45 = vmul.f32 %v6686_v19, %v6664_v11  ;;  %v6698_v42 = vmul.f32 %v6690_v57, %v6674_v48 }
0x13b1   :  { %v6712_v43 = vrot.slane %v6696_v61, 7  ;;  %v6733_v63 = vpop.permute.xlu0 %6732  ;;  %v6637_v24 = vadd.f32 %v6629_v7, %v6601_v16 }
0x13b2   :  { %v6638_v5 = vadd.f32 %v6630_v8, %v6602_v47  ;;  %v6715_v32 = vrot.slane %v6697_v45, 7  ;;  %v6738_v20 = vsel %vm6736_vm7, %v12543_v12, %v6733_v63  ;;  %v6735_v39 = vpop.permute.xlu1 %6734  ;;  %v6718_v27 = vrot.slane %v6698_v42, 7 }
0x13b3   :  { %v6713_v26 = vsel %vm6707_vm8, %v6711_v51, %v6712_v43  ;;  %v6762_v14 = vmul.f32 %v6752_v29, %v6738_v20  ;;  %v6739_v19 = vsel %vm6736_vm7, %v6733_v63, %v6735_v39  ;;  %v6744_v9 = vsel %vm6736_vm7, %v6735_v39, 0.0 }
0x13b4   :  { %v6716_v57 = vsel %vm6707_vm8, %v6714_v60, %v6715_v32  ;;  %v6763_v37 = vmul.f32 %v6756_v62, %v6739_v19  ;;  %v6719_v8 = vsel %vm6707_vm8, %v6717_v0, %v6718_v27  ;;  %v6725_v18 = vadd.f32 %v6713_v26, %v6636_v55 }
0x13b5   :  { %v6770_v31 = vrot.slane %v6762_v14, 2  ;;  %v6764_v12 = vmul.f32 %v6760_v34, %v6744_v9  ;;  %v6786_v35 = vpop.permute.xlu0 %6785  ;;  %v6726_v49 = vadd.f32 %v6716_v57, %v6637_v24  ;;  %v6727_v50 = vadd.f32 %v6719_v8, %v6638_v5  ;;  %v7228_v34 = vld [vmem:[%s12742_s21 + $0x38] ss:$0 sm:$0xff] }
0x13b6   :  { %v6771_v15 = vrot.slane %v6763_v37, 2  ;;  %v6790_v29 = vsel %vm4819_vm12, %v12548_v46, %v6786_v35  ;;  %v6788_v33 = vpop.permute.xlu1 %6787  ;;  %v7226_v46 = vld [vmem:[%s12742_s21 + $0x28] ss:$0 sm:$0xff]  ;;  %v6892_v55 = vmul.f32 1.442695, %v6888_v54 }
0x13b7   :  { %v6772_v10 = vrot.slane %v6764_v12, 2  ;;  %v6814_v7 = vmul.f32 %v6804_v2, %v6790_v29  ;;  %v6791_v62 = vsel %vm4819_vm12, %v6786_v35, %v6788_v33  ;;  %v6796_v28 = vsel %vm4819_vm12, %v6788_v33, 0.0 }
0x13b8   :  { %v6815_v25 = vmul.f32 %v6808_v59, %v6791_v62  ;;  %v6778_v41 = vadd.f32 %v6770_v31, %v6725_v18  ;;  %v6816_v17 = vmul.f32 %v6812_v13, %v6796_v28  ;;  %v6779_v2 = vadd.f32 %v6771_v15, %v6726_v49 }
0x13b9   :  { %v6822_v56 = vrot.slane %v6814_v7, 5  ;;  %v6844_v6 = vpop.permute.xlu0 %6843  ;;  %v6780_v58 = vadd.f32 %v6772_v10, %v6727_v50  ;;  %8522 = vpow2.f32 %v6892_v55 }
0x13ba   :  { %v6823_v59 = vrot.slane %v6815_v25, 5  ;;  %v6842_v53 = vpop.permute.xlu1 %6841  ;;  %v6853_v21 = vsel %vm6845_vm10, %v6844_v6, 0.0  ;;  %v6824_v3 = vrot.slane %v6816_v17, 5 }
0x13bb   :  { %v6830_v23 = vadd.f32 %v6822_v56, %v6778_v41  ;;  %v6847_v13 = vsel %vm6845_vm10, %v12571_v44, %v6842_v53  ;;  %v6848_v30 = vsel %vm6845_vm10, %v6842_v53, %v6844_v6  ;;  %v6873_v22 = vmul.f32 %v7228_v34, %v6853_v21 }
0x13bc   :  { %v6831_v4 = vadd.f32 %v6823_v59, %v6779_v2  ;;  %v6871_v36 = vmul.f32 %v7226_v46, %v6847_v13  ;;  %v6872_v1 = vmul.f32 %v7227_v52, %v6848_v30  ;;  %v6832_v40 = vadd.f32 %v6824_v3, %v6780_v58 }
0x13be   :  { %v6875_v61 = vadd.f32 %v6871_v36, %v6830_v23  ;;  %v6876_v11 = vadd.f32 %v6872_v1, %v6831_v4  ;;  %v6877_v16 = vadd.f32 %v6873_v22, %v6832_v40 }
0x13c0   :  { %v6885_v47 = vadd.f32 %v12512_v38, %v6875_v61  ;;  %v6886_v48 = vadd.f32 %v12512_v38, %v6876_v11  ;;  %v6887_v45 = vadd.f32 %v12512_v38, %v6877_v16 }
0x13c2   :  { %v6889_v51 = vsub.f32 0.0, %v6885_v47  ;;  %v6890_v44 = vsub.f32 0.0, %v6886_v48  ;;  %v6891_v60 = vsub.f32 0.0, %v6887_v45 }
0x13c3   :  { %v8523_v0 = vpop.eup %8522 }
0x13c4   :  { %v6894_v43 = vmul.f32 1.442695, %v6889_v51  ;;  %v6896_v42 = vmul.f32 1.442695, %v6890_v44  ;;  %v6898_v63 = vmul.f32 1.442695, %v6891_v60 }
0x13c5   :  { %v6900_v5 = vadd.f32 1.0, %v8523_v0 }
0x13c6   :  { %8524 = vpow2.f32 %v6894_v43 }
0x13c7   :  { %8526 = vpow2.f32 %v6896_v42 }
0x13c8   :  { %8528 = vpow2.f32 %v6898_v63 }
0x13c9   :  { %8530 = vrcp.f32 %v6900_v5 }
0x13d0   :  { %v8525_v32 = vpop.eup %8524 }
0x13d1   :  { %v8527_v20 = vpop.eup %8526  ;;  %v6901_v39 = vadd.f32 1.0, %v8525_v32 }
0x13d2   :  { %v8529_v26 = vpop.eup %8528  ;;  %v6902_v27 = vadd.f32 1.0, %v8527_v20 }
0x13d3   :  { %8532 = vrcp.f32 %v6901_v39  ;;  %v6903_v14 = vadd.f32 1.0, %v8529_v26  ;;  %v8531_v38 = vpop.eup %8530 }
0x13d4   :  { %8534 = vrcp.f32 %v6902_v27 }
0x13d5   :  { %8536 = vrcp.f32 %v6903_v14 }
0x13dd   :  { %v8533_v19 = vpop.eup %8532 }
0x13de   :  { %v8535_v24 = vpop.eup %8534  ;;  %v6916_v57 = vcombine.low %v8531_v38, %v8533_v19 }
0x13df   :  { %v8537_v9 = vpop.eup %8536 }
0x13e0   :  { %6920 = vst [vmem:[%s12743_s23] sm:$0x77] %v6916_v57  ;;  %v6917_v37 = vcombine.low %v8535_v24, %v8537_v9 }
0x13e2   :  { %6921 = vst [vmem:[%s12743_s23 + $0x8] sm:$0x77] %v6917_v37 }

</bundles_post_ra>
